<compile_context>
chip_gen: v7x
topology: tpu7x:2x2x1
jax: 0.10.0
libtpu: 0.0.40
codegen_flags: <defaults>
</compile_context>

<pallas_src>
import jax
import jax.numpy as jnp
from jax.experimental import pallas as pl
from jax.experimental.pallas import tpu as pltpu

CONTEXT = 20
IN_FEATURE = 40 * (1 + 2 * CONTEXT)   # 1640
OUT_FEATURE = 71
OUT_PADDED = 128                      # lane-dense final output store
BN_EPS = 1e-5

# Static architecture of the PyTorch module (padded final layer).
LAYER_DIMS = ((IN_FEATURE, 1024), (1024, 1024), (1024, 1024), (1024, 512),
              (512, OUT_PADDED))
HAS_BN = (True, True, True, True, False)
ACTS = ("relu", "relu", "sigmoid", "sigmoid", "none")   # static, NOT jit args


# ---------------------------------------------------------------------------
# Fused Pallas kernel: the whole MLP in one kernel body.
#   refs = (x, w1, ss1, w2, ss2, w3, ss3, w4, ss4, w5, ss5, out)
#   w*  : (K, N) bf16      ss* : (2, N) f32  (row 0 = scale, row 1 = shift)
# ---------------------------------------------------------------------------
def _mlp_fused_kernel(x_ref, *refs):
    o_ref = refs[-1]
    layer_refs = refs[:-1]
    h = x_ref[...]                                        # (B, IN_FEATURE) f32
    for li, act in enumerate(ACTS):
        w_ref = layer_refs[2 * li]
        ss_ref = layer_refs[2 * li + 1]
        y = jnp.dot(h.astype(w_ref.dtype), w_ref[...],
                    preferred_element_type=jnp.float32)   # MXU, f32 accumulate
        ss = ss_ref[...]
        y = y * ss[0:1, :] + ss[1:2, :]                   # folded bias + BN
        if act == "relu":
            y = jnp.maximum(y, 0.0)
        elif act == "sigmoid":
            y = jax.nn.sigmoid(y)                         # EUP exp + recip
        h = y
    o_ref[...] = h.astype(o_ref.dtype)


@jax.jit
def mlp_forward(x, params):
    """x: (B, IN_FEATURE) f32; params: list of (w_bf16, scale_shift_f32)."""
    B = x.shape[0]
    flat = [x]
    for w, ss in params:
        flat.append(w)
        flat.append(ss)
    vmem = pl.BlockSpec(memory_space=pltpu.MemorySpace.VMEM)
    out = pl.pallas_call(
        _mlp_fused_kernel,
        out_shape=jax.ShapeDtypeStruct((B, OUT_PADDED), jnp.float32),
        in_specs=[vmem] * len(flat),
        out_specs=vmem,
    )(*flat)
    return out[:, :OUT_FEATURE]


# ---------------------------------------------------------------------------
# Parameter construction (deterministic, PyTorch-default-like init)
# ---------------------------------------------------------------------------
def _init_linear(key, fan_in, fan_out):
    kw, kb = jax.random.split(key)
    bound = 1.0 / jnp.sqrt(float(fan_in))
    w = jax.random.uniform(kw, (fan_in, fan_out), jnp.float32, -bound, bound)
    b = jax.random.uniform(kb, (fan_out,), jnp.float32, -bound, bound)
    return w, b


def _init_bn(key, n):
    # PyTorch defaults (gamma=1, beta=0, mean=0, var=1), perturbed
    # deterministically so the BN fold is non-trivial.
    k1, k2, k3, k4 = jax.random.split(key, 4)
    gamma = 1.0 + 0.1 * jax.random.normal(k1, (n,), jnp.float32)
    beta = 0.1 * jax.random.normal(k2, (n,), jnp.float32)
    mean = 0.1 * jax.random.normal(k3, (n,), jnp.float32)
    var = 1.0 + 0.1 * jnp.abs(jax.random.normal(k4, (n,), jnp.float32))
    return gamma, beta, mean, var


def _fold_bn(bias, gamma, beta, mean, var):
    """Fold Linear bias + eval-mode BatchNorm into (scale, shift)."""
    s = gamma / jnp.sqrt(var + BN_EPS)
    shift = (bias - mean) * s + beta
    return s, shift


def build_params(key):
    params = []
    keys = jax.random.split(key, len(LAYER_DIMS))
    n_layers = len(LAYER_DIMS)
    for li, ((fi, fo), bn, k) in enumerate(zip(LAYER_DIMS, HAS_BN, keys)):
        kl, kb = jax.random.split(k)
        if li == n_layers - 1:
            # Real final layer is 512 -> 71; zero-pad to 128 output lanes.
            w, b = _init_linear(kl, fi, OUT_FEATURE)
            w = jnp.pad(w, ((0, 0), (0, OUT_PADDED - OUT_FEATURE)))
            b = jnp.pad(b, (0, OUT_PADDED - OUT_FEATURE))
        else:
            w, b = _init_linear(kl, fi, fo)
        if bn:
            gamma, beta, mean, var = _init_bn(kb, fo)
            scale, shift = _fold_bn(b, gamma, beta, mean, var)
        else:
            scale = jnp.ones((fo,), jnp.float32)
            shift = b
        scale_shift = jnp.stack([scale, shift]).astype(jnp.float32)  # (2, fo)
        params.append((w.astype(jnp.bfloat16), scale_shift))
    return params


# ---------------------------------------------------------------------------
# Pure-JAX reference (same bf16 weights / f32 accumulation)
# ---------------------------------------------------------------------------
def mlp_reference(x, params):
    h = x
    for (w, ss), act in zip(params, ACTS):
        y = jnp.dot(h.astype(jnp.bfloat16), w,
                    preferred_element_type=jnp.float32)
        y = y * ss[0:1, :] + ss[1:2, :]
        if act == "relu":
            y = jnp.maximum(y, 0.0)
        elif act == "sigmoid":
            y = jax.nn.sigmoid(y)
        h = y
    return h[:, :OUT_FEATURE]


if __name__ == "__main__":
    key = jax.random.PRNGKey(0)
    kx, kp = jax.random.split(key)

    B = 8
    x = jax.random.normal(kx, (B, IN_FEATURE), jnp.float32)
    params = build_params(kp)

    out = mlp_forward(x, params)
    out = jax.block_until_ready(out)
    assert out.shape == (B, OUT_FEATURE), out.shape

    ref = mlp_reference(x, params)
    max_err = float(jnp.max(jnp.abs(out - ref)))
    assert jnp.allclose(out, ref, atol=1e-3, rtol=1e-3), max_err

    print("KERNEL_OK")
</pallas_src>

<mosaic_0001>
module attributes {stable_mosaic.version = 11 : i64} {
  func.func @_mlp_fused_kernel(%arg0: memref<8x1640xf32, #tpu.memory_space<vmem>>, %arg1: memref<1640x1024xbf16, #tpu.memory_space<vmem>>, %arg2: memref<2x1024xf32, #tpu.memory_space<vmem>>, %arg3: memref<1024x1024xbf16, #tpu.memory_space<vmem>>, %arg4: memref<2x1024xf32, #tpu.memory_space<vmem>>, %arg5: memref<1024x1024xbf16, #tpu.memory_space<vmem>>, %arg6: memref<2x1024xf32, #tpu.memory_space<vmem>>, %arg7: memref<1024x512xbf16, #tpu.memory_space<vmem>>, %arg8: memref<2x512xf32, #tpu.memory_space<vmem>>, %arg9: memref<512x128xbf16, #tpu.memory_space<vmem>>, %arg10: memref<2x128xf32, #tpu.memory_space<vmem>>, %arg11: memref<8x128xf32, #tpu.memory_space<vmem>>) attributes {dimension_semantics = [], scalar_prefetch = 0 : i64, scratch_operands = 0 : i64, tpu.core_type = #tpu.core_type<tc>} {
    %c0 = arith.constant 0 : index
    %c0_0 = arith.constant 0 : index
    %0 = vector.load %arg0[%c0, %c0_0] : memref<8x1640xf32, #tpu.memory_space<vmem>>, vector<8x1640xf32>
    %1 = arith.truncf %0 : vector<8x1640xf32> to vector<8x1640xbf16>
    %c0_1 = arith.constant 0 : index
    %c0_2 = arith.constant 0 : index
    %2 = vector.load %arg1[%c0_1, %c0_2] : memref<1640x1024xbf16, #tpu.memory_space<vmem>>, vector<1640x1024xbf16>
    %cst = arith.constant dense<0.000000e+00> : vector<8x1024xf32>
    %3 = tpu.matmul %1, %2, %cst {dimension_numbers = #tpu.dot_dimension_numbers<[1], [0], [0], [1], [0, 0, 1, 1], [], []>} : vector<8x1640xbf16>, vector<1640x1024xbf16>, vector<8x1024xf32> -> vector<8x1024xf32>
    %c0_3 = arith.constant 0 : index
    %c0_4 = arith.constant 0 : index
    %4 = vector.load %arg2[%c0_3, %c0_4] : memref<2x1024xf32, #tpu.memory_space<vmem>>, vector<2x1024xf32>
    %5 = vector.extract_strided_slice %4 {offsets = [0, 0], sizes = [1, 1024], strides = [1, 1]} : vector<2x1024xf32> to vector<1x1024xf32>
    %6 = vector.broadcast %5 : vector<1x1024xf32> to vector<8x1024xf32>
    %7 = arith.mulf %3, %6 : vector<8x1024xf32>
    %8 = vector.extract_strided_slice %4 {offsets = [1, 0], sizes = [1, 1024], strides = [1, 1]} : vector<2x1024xf32> to vector<1x1024xf32>
    %9 = vector.broadcast %8 : vector<1x1024xf32> to vector<8x1024xf32>
    %10 = arith.addf %7, %9 : vector<8x1024xf32>
    %cst_5 = arith.constant 0.000000e+00 : f32
    %11 = vector.broadcast %cst_5 : f32 to vector<8x1024xf32>
    %12 = arith.maximumf %10, %11 : vector<8x1024xf32>
    %13 = arith.truncf %12 : vector<8x1024xf32> to vector<8x1024xbf16>
    %c0_6 = arith.constant 0 : index
    %c0_7 = arith.constant 0 : index
    %14 = vector.load %arg3[%c0_6, %c0_7] : memref<1024x1024xbf16, #tpu.memory_space<vmem>>, vector<1024x1024xbf16>
    %cst_8 = arith.constant dense<0.000000e+00> : vector<8x1024xf32>
    %15 = tpu.matmul %13, %14, %cst_8 {dimension_numbers = #tpu.dot_dimension_numbers<[1], [0], [0], [1], [0, 0, 1, 1], [], []>} : vector<8x1024xbf16>, vector<1024x1024xbf16>, vector<8x1024xf32> -> vector<8x1024xf32>
    %c0_9 = arith.constant 0 : index
    %c0_10 = arith.constant 0 : index
    %16 = vector.load %arg4[%c0_9, %c0_10] : memref<2x1024xf32, #tpu.memory_space<vmem>>, vector<2x1024xf32>
    %17 = vector.extract_strided_slice %16 {offsets = [0, 0], sizes = [1, 1024], strides = [1, 1]} : vector<2x1024xf32> to vector<1x1024xf32>
    %18 = vector.broadcast %17 : vector<1x1024xf32> to vector<8x1024xf32>
    %19 = arith.mulf %15, %18 : vector<8x1024xf32>
    %20 = vector.extract_strided_slice %16 {offsets = [1, 0], sizes = [1, 1024], strides = [1, 1]} : vector<2x1024xf32> to vector<1x1024xf32>
    %21 = vector.broadcast %20 : vector<1x1024xf32> to vector<8x1024xf32>
    %22 = arith.addf %19, %21 : vector<8x1024xf32>
    %cst_11 = arith.constant 0.000000e+00 : f32
    %23 = vector.broadcast %cst_11 : f32 to vector<8x1024xf32>
    %24 = arith.maximumf %22, %23 : vector<8x1024xf32>
    %25 = arith.truncf %24 : vector<8x1024xf32> to vector<8x1024xbf16>
    %c0_12 = arith.constant 0 : index
    %c0_13 = arith.constant 0 : index
    %26 = vector.load %arg5[%c0_12, %c0_13] : memref<1024x1024xbf16, #tpu.memory_space<vmem>>, vector<1024x1024xbf16>
    %cst_14 = arith.constant dense<0.000000e+00> : vector<8x1024xf32>
    %27 = tpu.matmul %25, %26, %cst_14 {dimension_numbers = #tpu.dot_dimension_numbers<[1], [0], [0], [1], [0, 0, 1, 1], [], []>} : vector<8x1024xbf16>, vector<1024x1024xbf16>, vector<8x1024xf32> -> vector<8x1024xf32>
    %c0_15 = arith.constant 0 : index
    %c0_16 = arith.constant 0 : index
    %28 = vector.load %arg6[%c0_15, %c0_16] : memref<2x1024xf32, #tpu.memory_space<vmem>>, vector<2x1024xf32>
    %29 = vector.extract_strided_slice %28 {offsets = [0, 0], sizes = [1, 1024], strides = [1, 1]} : vector<2x1024xf32> to vector<1x1024xf32>
    %30 = vector.broadcast %29 : vector<1x1024xf32> to vector<8x1024xf32>
    %31 = arith.mulf %27, %30 : vector<8x1024xf32>
    %32 = vector.extract_strided_slice %28 {offsets = [1, 0], sizes = [1, 1024], strides = [1, 1]} : vector<2x1024xf32> to vector<1x1024xf32>
    %33 = vector.broadcast %32 : vector<1x1024xf32> to vector<8x1024xf32>
    %34 = arith.addf %31, %33 : vector<8x1024xf32>
    %35 = arith.negf %34 : vector<8x1024xf32>
    %36 = math.exp %35 : vector<8x1024xf32>
    %cst_17 = arith.constant 1.000000e+00 : f32
    %37 = vector.broadcast %cst_17 : f32 to vector<8x1024xf32>
    %38 = arith.addf %37, %36 : vector<8x1024xf32>
    %39 = arith.divf %37, %38 : vector<8x1024xf32>
    %40 = arith.truncf %39 : vector<8x1024xf32> to vector<8x1024xbf16>
    %c0_18 = arith.constant 0 : index
    %c0_19 = arith.constant 0 : index
    %41 = vector.load %arg7[%c0_18, %c0_19] : memref<1024x512xbf16, #tpu.memory_space<vmem>>, vector<1024x512xbf16>
    %cst_20 = arith.constant dense<0.000000e+00> : vector<8x512xf32>
    %42 = tpu.matmul %40, %41, %cst_20 {dimension_numbers = #tpu.dot_dimension_numbers<[1], [0], [0], [1], [0, 0, 1, 1], [], []>} : vector<8x1024xbf16>, vector<1024x512xbf16>, vector<8x512xf32> -> vector<8x512xf32>
    %c0_21 = arith.constant 0 : index
    %c0_22 = arith.constant 0 : index
    %43 = vector.load %arg8[%c0_21, %c0_22] : memref<2x512xf32, #tpu.memory_space<vmem>>, vector<2x512xf32>
    %44 = vector.extract_strided_slice %43 {offsets = [0, 0], sizes = [1, 512], strides = [1, 1]} : vector<2x512xf32> to vector<1x512xf32>
    %45 = vector.broadcast %44 : vector<1x512xf32> to vector<8x512xf32>
    %46 = arith.mulf %42, %45 : vector<8x512xf32>
    %47 = vector.extract_strided_slice %43 {offsets = [1, 0], sizes = [1, 512], strides = [1, 1]} : vector<2x512xf32> to vector<1x512xf32>
    %48 = vector.broadcast %47 : vector<1x512xf32> to vector<8x512xf32>
    %49 = arith.addf %46, %48 : vector<8x512xf32>
    %50 = arith.negf %49 : vector<8x512xf32>
    %51 = math.exp %50 : vector<8x512xf32>
    %cst_23 = arith.constant 1.000000e+00 : f32
    %52 = vector.broadcast %cst_23 : f32 to vector<8x512xf32>
    %53 = arith.addf %52, %51 : vector<8x512xf32>
    %54 = arith.divf %52, %53 : vector<8x512xf32>
    %55 = arith.truncf %54 : vector<8x512xf32> to vector<8x512xbf16>
    %c0_24 = arith.constant 0 : index
    %c0_25 = arith.constant 0 : index
    %56 = vector.load %arg9[%c0_24, %c0_25] : memref<512x128xbf16, #tpu.memory_space<vmem>>, vector<512x128xbf16>
    %cst_26 = arith.constant dense<0.000000e+00> : vector<8x128xf32>
    %57 = tpu.matmul %55, %56, %cst_26 {dimension_numbers = #tpu.dot_dimension_numbers<[1], [0], [0], [1], [0, 0, 1, 1], [], []>} : vector<8x512xbf16>, vector<512x128xbf16>, vector<8x128xf32> -> vector<8x128xf32>
    %c0_27 = arith.constant 0 : index
    %c0_28 = arith.constant 0 : index
    %58 = vector.load %arg10[%c0_27, %c0_28] : memref<2x128xf32, #tpu.memory_space<vmem>>, vector<2x128xf32>
    %59 = vector.extract_strided_slice %58 {offsets = [0, 0], sizes = [1, 128], strides = [1, 1]} : vector<2x128xf32> to vector<1x128xf32>
    %60 = vector.broadcast %59 : vector<1x128xf32> to vector<8x128xf32>
    %61 = arith.mulf %57, %60 : vector<8x128xf32>
    %62 = vector.extract_strided_slice %58 {offsets = [1, 0], sizes = [1, 128], strides = [1, 1]} : vector<2x128xf32> to vector<1x128xf32>
    %63 = vector.broadcast %62 : vector<1x128xf32> to vector<8x128xf32>
    %64 = arith.addf %61, %63 : vector<8x128xf32>
    %c0_29 = arith.constant 0 : index
    %c0_30 = arith.constant 0 : index
    %65 = vector.load %arg11[%c0_29, %c0_30] : memref<8x128xf32, #tpu.memory_space<vmem>>, vector<8x128xf32>
    tpu.vector_store %arg11[%c0_29, %c0_30], %64 {strides = array<i32>} : memref<8x128xf32, #tpu.memory_space<vmem>>, vector<8x128xf32>,
    return
  }
}

</mosaic_0001>

<bundles_post_ra>
// kernel: mlp_forward.1
= control target key start
LH: loop header
LB: loop body
LE: loop exit
PB: predicated region body
PF: predicated region fallthrough
CT: control target
= control target key end

     0   :  { %16 = vsyncpa [#allocation3], 0  ;;  %s20510_s0 = inlined_call_operand.hbm [shape: f32[8,1640], index: 0, kind: input, shape index: {}]   ;;  %s20511_s1 = inlined_call_operand.hbm [shape: bf16[1640,1024], index: 1, kind: input, shape index: {}]   ;;  %s20512_s2 = inlined_call_operand.hbm [shape: f32[2,1024], index: 2, kind: input, shape index: {}]   ;;  %s20513_s3 = inlined_call_operand.hbm [shape: bf16[1024,1024], index: 3, kind: input, shape index: {}]   ;;  %s20514_s4 = inlined_call_operand.hbm [shape: f32[2,1024], index: 4, kind: input, shape index: {}]   ;;  %s20515_s5 = inlined_call_operand.hbm [shape: bf16[1024,1024], index: 5, kind: input, shape index: {}]   ;;  %s20516_s6 = inlined_call_operand.hbm [shape: f32[2,1024], index: 6, kind: input, shape index: {}]   ;;  %s20517_s7 = inlined_call_operand.hbm [shape: bf16[1024,512], index: 7, kind: input, shape index: {}]   ;;  %s20518_s8 = inlined_call_operand.hbm [shape: f32[2,512], index: 8, kind: input, shape index: {}]   ;;  %s20519_s9 = inlined_call_operand.hbm [shape: bf16[512,128], index: 9, kind: input, shape index: {}]   ;;  %s20520_s10 = inlined_call_operand.hbm [shape: f32[2,128], index: 10, kind: input, shape index: {}]   ;;  %s20521_s11 = inlined_call_operand.hbm [shape: f32[8,128], index: 11, kind: output, shape index: {}]  }
   0x1   :  { %17 = vsyncpa [#allocation6], 0 }
   0x2   :  { %18 = vsyncpa [#allocation9], 0 }
   0x3   :  { %19 = vsyncpa [#allocation12], 0 }
   0x4   :  { %20 = vsyncpa [#allocation15], 0 }
   0x5   :  { %21 = vsyncpa [#allocation18], 0 }
   0x6   :  { %22 = vsyncpa [#allocation4], 0  ;;  %s19864_s17 = smov [#allocation5]   ;;  %s19586_s21 = scalar_lea.hbm %s20511_s1, 104960 }
   0x7   :  { %s38_s18 = sshll.u32 %s19864_s17, 4  ;;  %p19587_p0 = scmp.ne.s32.totalorder %s20511_s1, %s19586_s21  ;;  %s39_s18 = int_to_ptr.vmem [resolvable:$true] %s38_s18 }
   0x8   :  { %p19590_p1 = scmp.lt.u32.totalorder %s19586_s21, %s20511_s1 }
   0xa   :  { %p19592_p2 = pnand %p19590_p1, %p19587_p0 }
   0xc   :  { %19595 = shalt.err (!%p19592_p2)
}
   0xd   :  { %s19596_s26 = scalar_lea.vmem %s39_s18, 104960  ;;  %p19601_p4 = scmp.lt.s32.totalorder %s39_s18, %s39_s18 }
   0xe   :  { %p19597_p3 = scmp.ne.s32.totalorder %s39_s18, %s19596_s26  ;;  %p19602_p5 = scmp.lt.s32.totalorder %s19596_s26, %s19596_s26 }
  0x10   :  { %p19603_p6 = por %p19602_p5, %p19601_p4 }
  0x12   :  { %p19604_p7 = pnand %p19603_p6, %p19597_p3 }
  0x14   :  { %19607 = shalt.err (!%p19604_p7)
}
  0x15   :  { %s19865_s27 = smov 512   ;;  %s19866_s28 = smov 32  }
  0x16   :  { %44 = dma.hbm_to_vmem [thread:$0]  %s20511_s1, 104960, %s39_s18, [#allocation6], %s19865_s27, %s19865_s27, %s19866_s28  }
  0x17   :  { %s19867_s12 = smov [#allocation8]   ;;  %s19868_s14 = smov [#allocation11]  }
  0x18   :  { %s60_s13 = sshll.u32 %s19867_s12, 4  ;;  %s82_s15 = sshll.u32 %s19868_s14, 4  ;;  %s61_s13 = int_to_ptr.vmem [resolvable:$true] %s60_s13  ;;  %s83_s15 = int_to_ptr.vmem [resolvable:$true] %s82_s15 }
  0x19   :  { %s19608_s19 = scalar_lea.hbm %s20513_s3, 65536 }
  0x1a   :  { %p19609_p8 = scmp.ne.s32.totalorder %s20513_s3, %s19608_s19  ;;  %p19612_p9 = scmp.lt.u32.totalorder %s19608_s19, %s20513_s3 }
  0x1c   :  { %p19614_p10 = pnand %p19612_p9, %p19609_p8 }
  0x1e   :  { %19617 = shalt.err (!%p19614_p10)
}
  0x1f   :  { %s19618_s1 = scalar_lea.vmem %s61_s13, 65536  ;;  %p19623_p12 = scmp.lt.s32.totalorder %s61_s13, %s61_s13 }
  0x20   :  { %p19619_p11 = scmp.ne.s32.totalorder %s61_s13, %s19618_s1  ;;  %p19624_p13 = scmp.lt.s32.totalorder %s19618_s1, %s19618_s1 }
  0x22   :  { %p19625_p0 = por %p19624_p13, %p19623_p12 }
  0x24   :  { %p19626_p1 = pnand %p19625_p0, %p19619_p11 }
  0x26   :  { %19629 = shalt.err (!%p19626_p1)
}
  0x27   :  { %66 = dma.hbm_to_vmem [thread:$0]  %s20513_s3, 65536, %s61_s13, [#allocation9], %s19865_s27, %s19865_s27, %s19866_s28  }
  0x28   :  { %s19630_s29 = scalar_lea.hbm %s20515_s5, 65536 }
  0x29   :  { %p19631_p2 = scmp.ne.s32.totalorder %s20515_s5, %s19630_s29  ;;  %p19634_p3 = scmp.lt.u32.totalorder %s19630_s29, %s20515_s5 }
  0x2b   :  { %p19636_p4 = pnand %p19634_p3, %p19631_p2 }
  0x2d   :  { %19639 = shalt.err (!%p19636_p4)
}
  0x2e   :  { %s19640_s17 = scalar_lea.vmem %s83_s15, 65536  ;;  %p19645_p6 = scmp.lt.s32.totalorder %s83_s15, %s83_s15 }
  0x2f   :  { %p19641_p5 = scmp.ne.s32.totalorder %s83_s15, %s19640_s17  ;;  %p19646_p7 = scmp.lt.s32.totalorder %s19640_s17, %s19640_s17 }
  0x31   :  { %p19647_p8 = por %p19646_p7, %p19645_p6 }
  0x33   :  { %p19648_p9 = pnand %p19647_p8, %p19641_p5 }
  0x35   :  { %19651 = shalt.err (!%p19648_p9)
}
  0x36   :  { %88 = dma.hbm_to_vmem [thread:$0]  %s20515_s5, 65536, %s83_s15, [#allocation12], %s19865_s27, %s19865_s27, %s19866_s28  }
  0x37   :  { %s19869_s19 = smov [#allocation14]   ;;  %s19652_s23 = scalar_lea.hbm %s20517_s7, 32768 }
  0x38   :  { %s104_s20 = sshll.u32 %s19869_s19, 4  ;;  %p19653_p10 = scmp.ne.s32.totalorder %s20517_s7, %s19652_s23  ;;  %s105_s20 = int_to_ptr.vmem [resolvable:$true] %s104_s20 }
  0x39   :  { %p19656_p11 = scmp.lt.u32.totalorder %s19652_s23, %s20517_s7 }
  0x3b   :  { %p19658_p12 = pnand %p19656_p11, %p19653_p10 }
  0x3d   :  { %19661 = shalt.err (!%p19658_p12)
}
  0x3e   :  { %s19662_s26 = scalar_lea.vmem %s105_s20, 32768  ;;  %p19667_p0 = scmp.lt.s32.totalorder %s105_s20, %s105_s20 }
  0x3f   :  { %p19663_p13 = scmp.ne.s32.totalorder %s105_s20, %s19662_s26  ;;  %p19668_p1 = scmp.lt.s32.totalorder %s19662_s26, %s19662_s26 }
  0x41   :  { %p19669_p2 = por %p19668_p1, %p19667_p0 }
  0x43   :  { %p19670_p3 = pnand %p19669_p2, %p19663_p13 }
  0x45   :  { %19673 = shalt.err (!%p19670_p3)
}
  0x46   :  { %s19870_s5 = smov 256   ;;  %s19871_s27 = smov 16  }
  0x47   :  { %110 = dma.hbm_to_vmem [thread:$0]  %s20517_s7, 32768, %s105_s20, [#allocation15], %s19870_s5, %s19870_s5, %s19871_s27  }
  0x48   :  { %s19872_s29 = smov [#allocation17]   ;;  %s19674_s16 = scalar_lea.hbm %s20519_s9, 4096 }
  0x49   :  { %s126_s30 = sshll.u32 %s19872_s29, 4  ;;  %p19675_p4 = scmp.ne.s32.totalorder %s20519_s9, %s19674_s16  ;;  %s127_s30 = int_to_ptr.vmem [resolvable:$true] %s126_s30 }
  0x4a   :  { %p19678_p5 = scmp.lt.u32.totalorder %s19674_s16, %s20519_s9 }
  0x4c   :  { %p19680_p6 = pnand %p19678_p5, %p19675_p4 }
  0x4e   :  { %19683 = shalt.err (!%p19680_p6)
}
  0x4f   :  { %s19684_s21 = scalar_lea.vmem %s127_s30, 4096  ;;  %p19689_p8 = scmp.lt.s32.totalorder %s127_s30, %s127_s30 }
  0x50   :  { %p19685_p7 = scmp.ne.s32.totalorder %s127_s30, %s19684_s21  ;;  %p19690_p9 = scmp.lt.s32.totalorder %s19684_s21, %s19684_s21 }
  0x52   :  { %p19691_p10 = por %p19690_p9, %p19689_p8 }
  0x54   :  { %p19692_p11 = pnand %p19691_p10, %p19685_p7 }
  0x56   :  { %19695 = shalt.err (!%p19692_p11)
}
  0x57   :  { %s19873_s7 = smov 64   ;;  %s19874_s20 = smov 4  }
  0x58   :  { %132 = dma.hbm_to_vmem [thread:$0]  %s20519_s9, 4096, %s127_s30, [#allocation18], %s19873_s7, %s19873_s7, %s19874_s20  }
  0x59   :  { %s19875_s1 = smov [#allocation2]   ;;  %s19876_s24 = smov [#allocation7]  }
  0x5a   :  { %s29_s18 = sshll.u32 %s19875_s1, 4  ;;  %s51_s25 = sshll.u32 %s19876_s24, 4  ;;  %s30_s18 = int_to_ptr.vmem [resolvable:$true] %s29_s18  ;;  %s52_s25 = int_to_ptr.vmem [resolvable:$true] %s51_s25 }
  0x5b   :  { %s19696_s27 = scalar_lea.hbm %s20510_s0, 1664 }
  0x5c   :  { %p19697_p12 = scmp.ne.s32.totalorder %s20510_s0, %s19696_s27  ;;  %p19700_p13 = scmp.lt.u32.totalorder %s19696_s27, %s20510_s0 }
  0x5e   :  { %p19702_p0 = pnand %p19700_p13, %p19697_p12 }
  0x60   :  { %19705 = shalt.err (!%p19702_p0)
}
  0x61   :  { %s19706_s9 = scalar_lea.vmem %s30_s18, 1664  ;;  %p19711_p2 = scmp.lt.s32.totalorder %s30_s18, %s30_s18 }
  0x62   :  { %p19707_p1 = scmp.ne.s32.totalorder %s30_s18, %s19706_s9  ;;  %p19712_p3 = scmp.lt.s32.totalorder %s19706_s9, %s19706_s9 }
  0x64   :  { %p19713_p4 = por %p19712_p3, %p19711_p2 }
  0x66   :  { %p19714_p5 = pnand %p19713_p4, %p19707_p1 }
  0x68   :  { %19717 = shalt.err (!%p19714_p5)
}
  0x69   :  { %32 = dma.hbm_to_vmem [thread:$0]  %s20510_s0, 1664, %s30_s18, [#allocation3]  }
  0x6a   :  { %s19718_s3 = scalar_lea.hbm %s20512_s2, 256 }
  0x6b   :  { %p19719_p6 = scmp.ne.s32.totalorder %s20512_s2, %s19718_s3  ;;  %p19722_p7 = scmp.lt.u32.totalorder %s19718_s3, %s20512_s2 }
  0x6d   :  { %p19724_p8 = pnand %p19722_p7, %p19719_p6 }
  0x6f   :  { %19727 = shalt.err (!%p19724_p8)
}
  0x70   :  { %s19728_s20 = scalar_lea.vmem %s52_s25, 256  ;;  %p19733_p10 = scmp.lt.s32.totalorder %s52_s25, %s52_s25 }
  0x71   :  { %p19729_p9 = scmp.ne.s32.totalorder %s52_s25, %s19728_s20  ;;  %p19734_p11 = scmp.lt.s32.totalorder %s19728_s20, %s19728_s20 }
  0x73   :  { %p19735_p12 = por %p19734_p11, %p19733_p10 }
  0x75   :  { %p19736_p13 = pnand %p19735_p12, %p19729_p9 }
  0x77   :  { %19739 = shalt.err (!%p19736_p13)
}
  0x78   :  { %54 = dma.hbm_to_vmem [thread:$0]  %s20512_s2, 256, %s52_s25, [#allocation6]  }
  0x79   :  { %s19877_s23 = smov [#allocation10]   ;;  %s19878_s18 = smov [#allocation13]  }
  0x7a   :  { %s73_s1 = sshll.u32 %s19877_s23, 4  ;;  %s95_s24 = sshll.u32 %s19878_s18, 4  ;;  %s74_s1 = int_to_ptr.vmem [resolvable:$true] %s73_s1  ;;  %s96_s24 = int_to_ptr.vmem [resolvable:$true] %s95_s24 }
  0x7b   :  { %s19740_s27 = scalar_lea.hbm %s20514_s4, 256 }
  0x7c   :  { %p19741_p0 = scmp.ne.s32.totalorder %s20514_s4, %s19740_s27  ;;  %p19744_p1 = scmp.lt.u32.totalorder %s19740_s27, %s20514_s4 }
  0x7e   :  { %p19746_p2 = pnand %p19744_p1, %p19741_p0 }
  0x80   :  { %19749 = shalt.err (!%p19746_p2)
}
  0x81   :  { %s19750_s2 = scalar_lea.vmem %s74_s1, 256  ;;  %p19755_p4 = scmp.lt.s32.totalorder %s74_s1, %s74_s1 }
  0x82   :  { %p19751_p3 = scmp.ne.s32.totalorder %s74_s1, %s19750_s2  ;;  %p19756_p5 = scmp.lt.s32.totalorder %s19750_s2, %s19750_s2 }
  0x84   :  { %p19757_p6 = por %p19756_p5, %p19755_p4 }
  0x86   :  { %p19758_p7 = pnand %p19757_p6, %p19751_p3 }
  0x88   :  { %19761 = shalt.err (!%p19758_p7)
}
  0x89   :  { %76 = dma.hbm_to_vmem [thread:$0]  %s20514_s4, 256, %s74_s1, [#allocation9]  }
  0x8a   :  { %s19762_s16 = scalar_lea.hbm %s20516_s6, 256 }
  0x8b   :  { %p19763_p8 = scmp.ne.s32.totalorder %s20516_s6, %s19762_s16  ;;  %p19766_p9 = scmp.lt.u32.totalorder %s19762_s16, %s20516_s6 }
  0x8d   :  { %p19768_p10 = pnand %p19766_p9, %p19763_p8 }
  0x8f   :  { %19771 = shalt.err (!%p19768_p10)
}
  0x90   :  { %s19772_s21 = scalar_lea.vmem %s96_s24, 256  ;;  %p19777_p12 = scmp.lt.s32.totalorder %s96_s24, %s96_s24 }
  0x91   :  { %p19773_p11 = scmp.ne.s32.totalorder %s96_s24, %s19772_s21  ;;  %p19778_p13 = scmp.lt.s32.totalorder %s19772_s21, %s19772_s21 }
  0x93   :  { %p19779_p0 = por %p19778_p13, %p19777_p12 }
  0x95   :  { %p19780_p1 = pnand %p19779_p0, %p19773_p11 }
  0x97   :  { %19783 = shalt.err (!%p19780_p1)
}
  0x98   :  { %98 = dma.hbm_to_vmem [thread:$0]  %s20516_s6, 256, %s96_s24, [#allocation12]  }
  0x99   :  { %s19879_s20 = smov [#allocation16]   ;;  %s19880_s22 = smov [#allocation19]  }
  0x9a   :  { %s117_s0 = sshll.u32 %s19879_s20, 4  ;;  %s139_s23 = sshll.u32 %s19880_s22, 4  ;;  %s118_s0 = int_to_ptr.vmem [resolvable:$true] %s117_s0  ;;  %s140_s23 = int_to_ptr.vmem [resolvable:$true] %s139_s23 }
  0x9b   :  { %s19784_s26 = scalar_lea.hbm %s20518_s8, 128 }
  0x9c   :  { %p19785_p2 = scmp.ne.s32.totalorder %s20518_s8, %s19784_s26  ;;  %p19788_p3 = scmp.lt.u32.totalorder %s19784_s26, %s20518_s8 }
  0x9e   :  { %p19790_p4 = pnand %p19788_p3, %p19785_p2 }
  0xa0   :  { %19793 = shalt.err (!%p19790_p4)
}
  0xa1   :  { %s19794_s6 = scalar_lea.vmem %s118_s0, 128  ;;  %p19799_p6 = scmp.lt.s32.totalorder %s118_s0, %s118_s0 }
  0xa2   :  { %p19795_p5 = scmp.ne.s32.totalorder %s118_s0, %s19794_s6  ;;  %p19800_p7 = scmp.lt.s32.totalorder %s19794_s6, %s19794_s6 }
  0xa4   :  { %p19801_p8 = por %p19800_p7, %p19799_p6 }
  0xa6   :  { %p19802_p9 = pnand %p19801_p8, %p19795_p5 }
  0xa8   :  { %19805 = shalt.err (!%p19802_p9)
}
  0xa9   :  { %120 = dma.hbm_to_vmem [thread:$0]  %s20518_s8, 128, %s118_s0, [#allocation15]  }
  0xaa   :  { %s19806_s25 = scalar_lea.hbm %s20520_s10, 32 }
  0xab   :  { %p19807_p10 = scmp.ne.s32.totalorder %s20520_s10, %s19806_s25  ;;  %p19810_p11 = scmp.lt.u32.totalorder %s19806_s25, %s20520_s10 }
  0xad   :  { %p19812_p12 = pnand %p19810_p11, %p19807_p10 }
  0xaf   :  { %19815 = shalt.err (!%p19812_p12)
}
  0xb0   :  { %s19816_s17 = scalar_lea.vmem %s140_s23, 32  ;;  %p19821_p0 = scmp.lt.s32.totalorder %s140_s23, %s140_s23 }
  0xb1   :  { %p19817_p13 = scmp.ne.s32.totalorder %s140_s23, %s19816_s17  ;;  %p19822_p1 = scmp.lt.s32.totalorder %s19816_s17, %s19816_s17 }
  0xb3   :  { %p19823_p2 = por %p19822_p1, %p19821_p0 }
  0xb5   :  { %p19824_p3 = pnand %p19823_p2, %p19817_p13 }
  0xb7   :  { %19827 = shalt.err (!%p19824_p3)
}
  0xb8   :  { %142 = dma.hbm_to_vmem [thread:$0]  %s20520_s10, 32, %s140_s23, [#allocation18]  }
  0xb9   :  { %19850 = dma.done.wait [#allocation3], 1664  }
  0xba   :  { %19851 = vsyncadd [#allocation3], 4294965632 }
  0xbb   :  { %19852 = dma.done.wait [#allocation6], 105216  }
  0xbc   :  { %19853 = vsyncadd [#allocation6], 4294862080 }
  0xbd   :  { %19854 = dma.done.wait [#allocation9], 65792  }
  0xbe   :  { %19855 = vsyncadd [#allocation9], 4294901504 }
  0xbf   :  { %19856 = dma.done.wait [#allocation12], 65792  }
  0xc0   :  { %19857 = vsyncadd [#allocation12], 4294901504 }
  0xc1   :  { %19858 = dma.done.wait [#allocation15], 32896  }
  0xc2   :  { %19859 = vsyncadd [#allocation15], 4294934400 }
  0xc3   :  { %19860 = dma.done.wait [#allocation18], 4128  }
  0xc4   :  { %19861 = vsyncadd [#allocation18], 4294963168  ;;  %v203_v0 = vld [vmem:[#allocation5] sm:$0xff]  ;;  %v204_v2 = vld [vmem:[#allocation5 + $0x8] sm:$0xff]  ;;  %vm5127_vm0 = vcmask 1043456   ;;  %vm5123_vm1 = vcmask 850944  }
  0xc5   :  { %v207_v1 = vld [vmem:[#allocation5 + $0x20] sm:$0xff]  ;;  %v208_v4 = vld [vmem:[#allocation5 + $0x28] sm:$0xff]  ;;  %s19882_s10 = smov [#allocation20]  }
  0xc6   :  { %v16679_v3 = vcombine.high %v203_v0, %v207_v1  ;;  %v16678_v5 = vcombine.low %v203_v0, %v207_v1  ;;  %v211_v6 = vld [vmem:[#allocation5 + $0x40] sm:$0xff]  ;;  %v16681_v8 = vcombine.high %v204_v2, %v208_v4  ;;  %v16680_v9 = vcombine.low %v204_v2, %v208_v4  ;;  %v212_v11 = vld [vmem:[#allocation5 + $0x48] sm:$0xff]  ;;  %s16664_s13 = sshll.u32 %s19882_s10, 4  ;;  %s16665_s13 = int_to_ptr.vmem [resolvable:$true] %s16664_s13 }
  0xc7   :  { %v215_v7 = vld [vmem:[#allocation5 + $0x60] sm:$0xff]  ;;  %v216_v12 = vld [vmem:[#allocation5 + $0x68] sm:$0xff]  ;;  %s19828_s19 = scalar_lea.vmem %s16665_s13, 128  ;;  %p19833_p5 = scmp.lt.s32.totalorder %s16665_s13, %s16665_s13 }
  0xc8   :  { %v16687_v10 = vcombine.high %v211_v6, %v215_v7  ;;  %v219_v13 = vld [vmem:[#allocation5 + $0x80] sm:$0xff]  ;;  %5152 = vmatprep.subr.bf16.mxu0 %v16679_v3  ;;  %v16689_v14 = vcombine.high %v212_v11, %v216_v12  ;;  %v220_v16 = vld [vmem:[#allocation5 + $0x88] sm:$0xff]  ;;  %5439 = vmatprep.subr.bf16.mxu1 %v16681_v8  ;;  %v16686_v18 = vcombine.low %v211_v6, %v215_v7  ;;  %p19829_p4 = scmp.ne.s32.totalorder %s16665_s13, %s19828_s19  ;;  %p19834_p6 = scmp.lt.s32.totalorder %s19828_s19, %s19828_s19 }
  0xc9   :  { %v223_v15 = vld [vmem:[#allocation5 + $0xa0] sm:$0xff]  ;;  %v224_v17 = vld [vmem:[#allocation5 + $0xa8] sm:$0xff]  ;;  %5153 = vmatpush1.bf16.msra.mxu0 %v16678_v5  ;;  %5440 = vmatpush1.bf16.msra.mxu1 %v16680_v9  ;;  %v16688_v19 = vcombine.low %v212_v11, %v216_v12 }
  0xca   :  { %5154 = vmatprep.subr.bf16.mxu0 %v16687_v10  ;;  %v16695_v20 = vcombine.high %v219_v13, %v223_v15  ;;  %5441 = vmatprep.subr.bf16.mxu1 %v16689_v14  ;;  %v16697_v21 = vcombine.high %v220_v16, %v224_v17  ;;  %v227_v22 = vld [vmem:[#allocation5 + $0xc0] sm:$0xff]  ;;  %v228_v24 = vld [vmem:[#allocation5 + $0xc8] sm:$0xff]  ;;  %v16694_v26 = vcombine.low %v219_v13, %v223_v15  ;;  %p19835_p7 = por %p19834_p6, %p19833_p5 }
  0xcb   :  { %v231_v23 = vld [vmem:[#allocation5 + $0xe0] sm:$0xff]  ;;  %v232_v25 = vld [vmem:[#allocation5 + $0xe8] sm:$0xff]  ;;  %v16696_v27 = vcombine.low %v220_v16, %v224_v17 }
  0xcc   :  { %v16703_v28 = vcombine.high %v227_v22, %v231_v23  ;;  %v16705_v29 = vcombine.high %v228_v24, %v232_v25  ;;  %v235_v30 = vld [vmem:[#allocation5 + $0x100] sm:$0xff]  ;;  %v236_v32 = vld [vmem:[#allocation5 + $0x108] sm:$0xff]  ;;  %v16702_v34 = vcombine.low %v227_v22, %v231_v23  ;;  %v16704_v35 = vcombine.low %v228_v24, %v232_v25  ;;  %p19836_p8 = pnand %p19835_p7, %p19829_p4 }
  0xcd   :  { %5155 = vmatpush1.bf16.msra.mxu0 %v16686_v18  ;;  %5442 = vmatpush1.bf16.msra.mxu1 %v16688_v19  ;;  %v239_v31 = vld [vmem:[#allocation5 + $0x120] sm:$0xff]  ;;  %v240_v33 = vld [vmem:[#allocation5 + $0x128] sm:$0xff] }
  0xce   :  { %5156 = vmatprep.subr.bf16.mxu0 %v16695_v20  ;;  %5443 = vmatprep.subr.bf16.mxu1 %v16697_v21  ;;  %v16711_v36 = vcombine.high %v235_v30, %v239_v31  ;;  %v16713_v37 = vcombine.high %v236_v32, %v240_v33  ;;  %v243_v38 = vld [vmem:[#allocation5 + $0x140] sm:$0xff]  ;;  %v244_v40 = vld [vmem:[#allocation5 + $0x148] sm:$0xff]  ;;  %v16710_v42 = vcombine.low %v235_v30, %v239_v31 }
  0xcf   :  { %v247_v39 = vld [vmem:[#allocation5 + $0x160] sm:$0xff]  ;;  %v248_v41 = vld [vmem:[#allocation5 + $0x168] sm:$0xff]  ;;  %v16712_v43 = vcombine.low %v236_v32, %v240_v33 }
  0xd0   :  { %v16719_v44 = vcombine.high %v243_v38, %v247_v39  ;;  %v16721_v45 = vcombine.high %v244_v40, %v248_v41  ;;  %v251_v46 = vld [vmem:[#allocation5 + $0x180] sm:$0xff]  ;;  %v252_v48 = vld [vmem:[#allocation5 + $0x188] sm:$0xff]  ;;  %v16718_v50 = vcombine.low %v243_v38, %v247_v39  ;;  %v16720_v51 = vcombine.low %v244_v40, %v248_v41 }
  0xd1   :  { %5157 = vmatpush1.bf16.msra.mxu0 %v16694_v26  ;;  %5444 = vmatpush1.bf16.msra.mxu1 %v16696_v27  ;;  %v255_v47 = vld [vmem:[#allocation5 + $0x1a0] sm:$0xff]  ;;  %v256_v49 = vld [vmem:[#allocation5 + $0x1a8] sm:$0xff] }
  0xd2   :  { %5158 = vmatprep.subr.bf16.mxu0 %v16703_v28  ;;  %5445 = vmatprep.subr.bf16.mxu1 %v16705_v29  ;;  %v16727_v52 = vcombine.high %v251_v46, %v255_v47  ;;  %v178_v53 = vld [vmem:[#allocation2 + $0x8] sm:$0xff]  ;;  %v16729_v54 = vcombine.high %v252_v48, %v256_v49  ;;  %v260_v58 = vld [vmem:[#allocation5 + $0x1c8] sm:$0xff]  ;;  %v16726_v60 = vcombine.low %v251_v46, %v255_v47 }
  0xd3   :  { %v259_v55 = vld [vmem:[#allocation5 + $0x1c0] sm:$0xff]  ;;  %v20084_v57 = vpack.c.bf16 %v178_v53, %v178_v53  ;;  %v264_v59 = vld [vmem:[#allocation5 + $0x1e8] sm:$0xff]  ;;  %v16728_v61 = vcombine.low %v252_v48, %v256_v49 }
  0xd4   :  { %v263_v56 = vld [vmem:[#allocation5 + $0x1e0] sm:$0xff]  ;;  %v16737_v63 = vcombine.high %v260_v58, %v264_v59  ;;  %v268_v2 = vld [vmem:[#allocation5 + $0x208] sm:$0xff]  ;;  %v16736_v5 = vcombine.low %v260_v58, %v264_v59 }
  0xd5   :  { %5159 = vmatpush1.bf16.msra.mxu0 %v16702_v34  ;;  %5446 = vmatpush1.bf16.msra.mxu1 %v16704_v35  ;;  %v16735_v62 = vcombine.high %v259_v55, %v263_v56  ;;  %v267_v0 = vld [vmem:[#allocation5 + $0x200] sm:$0xff]  ;;  %v272_v3 = vld [vmem:[#allocation5 + $0x228] sm:$0xff]  ;;  %v16734_v4 = vcombine.low %v259_v55, %v263_v56 }
  0xd6   :  { %5160 = vmatprep.subr.bf16.mxu0 %v16711_v36  ;;  %5447 = vmatprep.subr.bf16.mxu1 %v16713_v37  ;;  %v271_v1 = vld [vmem:[#allocation5 + $0x220] sm:$0xff]  ;;  %v16745_v7 = vcombine.high %v268_v2, %v272_v3  ;;  %v276_v10 = vld [vmem:[#allocation5 + $0x248] sm:$0xff]  ;;  %v16744_v13 = vcombine.low %v268_v2, %v272_v3 }
  0xd7   :  { %5184 = vmatprep.mubr.bf16.mxu0 %v20084_v57  ;;  %5471 = vmatprep.mubr.bf16.mxu1 %v20084_v57  ;;  %v16743_v6 = vcombine.high %v267_v0, %v271_v1  ;;  %v275_v8 = vld [vmem:[#allocation5 + $0x240] sm:$0xff]  ;;  %v280_v11 = vld [vmem:[#allocation5 + $0x268] sm:$0xff]  ;;  %v16742_v12 = vcombine.low %v267_v0, %v271_v1 }
  0xd8   :  { %v279_v9 = vld [vmem:[#allocation5 + $0x260] sm:$0xff]  ;;  %v16753_v15 = vcombine.high %v276_v10, %v280_v11  ;;  %v284_v18 = vld [vmem:[#allocation5 + $0x288] sm:$0xff]  ;;  %v16752_v21 = vcombine.low %v276_v10, %v280_v11 }
  0xd9   :  { %5161 = vmatpush1.bf16.msra.mxu0 %v16710_v42  ;;  %5448 = vmatpush1.bf16.msra.mxu1 %v16712_v43  ;;  %v16751_v14 = vcombine.high %v275_v8, %v279_v9  ;;  %v283_v16 = vld [vmem:[#allocation5 + $0x280] sm:$0xff]  ;;  %v288_v19 = vld [vmem:[#allocation5 + $0x2a8] sm:$0xff]  ;;  %v16750_v20 = vcombine.low %v275_v8, %v279_v9 }
  0xda   :  { %5162 = vmatprep.subr.bf16.mxu0 %v16719_v44  ;;  %5449 = vmatprep.subr.bf16.mxu1 %v16721_v45  ;;  %v287_v17 = vld [vmem:[#allocation5 + $0x2a0] sm:$0xff]  ;;  %v16761_v23 = vcombine.high %v284_v18, %v288_v19  ;;  %v292_v26 = vld [vmem:[#allocation5 + $0x2c8] sm:$0xff]  ;;  %v16760_v29 = vcombine.low %v284_v18, %v288_v19 }
  0xdb   :  { %v16759_v22 = vcombine.high %v283_v16, %v287_v17  ;;  %v291_v24 = vld [vmem:[#allocation5 + $0x2c0] sm:$0xff]  ;;  %v296_v27 = vld [vmem:[#allocation5 + $0x2e8] sm:$0xff]  ;;  %v16758_v28 = vcombine.low %v283_v16, %v287_v17 }
  0xdc   :  { %v295_v25 = vld [vmem:[#allocation5 + $0x2e0] sm:$0xff]  ;;  %v16769_v31 = vcombine.high %v292_v26, %v296_v27  ;;  %v300_v34 = vld [vmem:[#allocation5 + $0x308] sm:$0xff]  ;;  %v16768_v37 = vcombine.low %v292_v26, %v296_v27 }
  0xdd   :  { %5163 = vmatpush1.bf16.msra.mxu0 %v16718_v50  ;;  %5450 = vmatpush1.bf16.msra.mxu1 %v16720_v51  ;;  %v16767_v30 = vcombine.high %v291_v24, %v295_v25  ;;  %v299_v32 = vld [vmem:[#allocation5 + $0x300] sm:$0xff]  ;;  %v304_v35 = vld [vmem:[#allocation5 + $0x328] sm:$0xff]  ;;  %v16766_v36 = vcombine.low %v291_v24, %v295_v25 }
  0xde   :  { %5164 = vmatprep.subr.bf16.mxu0 %v16727_v52  ;;  %5451 = vmatprep.subr.bf16.mxu1 %v16729_v54  ;;  %v303_v33 = vld [vmem:[#allocation5 + $0x320] sm:$0xff]  ;;  %v16777_v39 = vcombine.high %v300_v34, %v304_v35  ;;  %v308_v42 = vld [vmem:[#allocation5 + $0x348] sm:$0xff]  ;;  %v16776_v45 = vcombine.low %v300_v34, %v304_v35 }
  0xdf   :  { %v16775_v38 = vcombine.high %v299_v32, %v303_v33  ;;  %v307_v40 = vld [vmem:[#allocation5 + $0x340] sm:$0xff]  ;;  %v312_v43 = vld [vmem:[#allocation5 + $0x368] sm:$0xff]  ;;  %v16774_v44 = vcombine.low %v299_v32, %v303_v33 }
  0xe0   :  { %v311_v41 = vld [vmem:[#allocation5 + $0x360] sm:$0xff]  ;;  %v16785_v47 = vcombine.high %v308_v42, %v312_v43  ;;  %v316_v50 = vld [vmem:[#allocation5 + $0x388] sm:$0xff]  ;;  %v16784_v53 = vcombine.low %v308_v42, %v312_v43 }
  0xe1   :  { %5165 = vmatpush1.bf16.msra.mxu0 %v16726_v60  ;;  %5452 = vmatpush1.bf16.msra.mxu1 %v16728_v61  ;;  %v16783_v46 = vcombine.high %v307_v40, %v311_v41  ;;  %v315_v48 = vld [vmem:[#allocation5 + $0x380] sm:$0xff]  ;;  %v320_v51 = vld [vmem:[#allocation5 + $0x3a8] sm:$0xff]  ;;  %v16782_v52 = vcombine.low %v307_v40, %v311_v41 }
  0xe2   :  { %5166 = vmatprep.subr.bf16.mxu0 %v16735_v62  ;;  %5453 = vmatprep.subr.bf16.mxu1 %v16737_v63  ;;  %v319_v49 = vld [vmem:[#allocation5 + $0x3a0] sm:$0xff]  ;;  %v16793_v55 = vcombine.high %v316_v50, %v320_v51  ;;  %v324_v59 = vld [vmem:[#allocation5 + $0x3c8] sm:$0xff]  ;;  %v16792_v62 = vcombine.low %v316_v50, %v320_v51 }
  0xe3   :  { %v16791_v54 = vcombine.high %v315_v48, %v319_v49  ;;  %v323_v56 = vld [vmem:[#allocation5 + $0x3c0] sm:$0xff]  ;;  %v328_v60 = vld [vmem:[#allocation5 + $0x3e8] sm:$0xff]  ;;  %v16790_v61 = vcombine.low %v315_v48, %v319_v49 }
  0xe4   :  { %v327_v58 = vld [vmem:[#allocation5 + $0x3e0] sm:$0xff]  ;;  %v16801_v0 = vcombine.high %v324_v59, %v328_v60  ;;  %v332_v3 = vld [vmem:[#allocation5 + $0x408] sm:$0xff] }
  0xe5   :  { %5167 = vmatpush1.bf16.msra.mxu0 %v16734_v4  ;;  %5454 = vmatpush1.bf16.msra.mxu1 %v16736_v5  ;;  %v16799_v63 = vcombine.high %v323_v56, %v327_v58  ;;  %v331_v1 = vld [vmem:[#allocation5 + $0x400] sm:$0xff]  ;;  %v336_v4 = vld [vmem:[#allocation5 + $0x428] sm:$0xff]  ;;  %v16798_v5 = vcombine.low %v323_v56, %v327_v58 }
  0xe6   :  { %5168 = vmatprep.subr.bf16.mxu0 %v16743_v6  ;;  %5455 = vmatprep.subr.bf16.mxu1 %v16745_v7  ;;  %v335_v2 = vld [vmem:[#allocation5 + $0x420] sm:$0xff]  ;;  %v177_v6 = vld [vmem:[#allocation2] sm:$0xff]  ;;  %v16800_v7 = vcombine.low %v324_v59, %v328_v60  ;;  %v16809_v9 = vcombine.high %v332_v3, %v336_v4  ;;  %v16808_v17 = vcombine.low %v332_v3, %v336_v4  ;;  %v352_v24 = vld [vmem:[#allocation5 + $0x4a8] sm:$0xff] }
  0xe7   :  { %v16807_v8 = vcombine.high %v331_v1, %v335_v2  ;;  %v339_v10 = vld [vmem:[#allocation5 + $0x440] sm:$0xff]  ;;  %v16806_v16 = vcombine.low %v331_v1, %v335_v2  ;;  %v360_v32 = vld [vmem:[#allocation5 + $0x4e8] sm:$0xff] }
  0xe8   :  { %v343_v11 = vld [vmem:[#allocation5 + $0x460] sm:$0xff]  ;;  %v368_v40 = vld [vmem:[#allocation5 + $0x528] sm:$0xff] }
  0xe9   :  { %5169 = vmatpush1.bf16.msra.mxu0 %v16742_v12  ;;  %5456 = vmatpush1.bf16.msra.mxu1 %v16744_v13  ;;  %v20088_v12 = vpack.c.bf16 %v177_v6, %v177_v6  ;;  %v340_v13 = vld [vmem:[#allocation5 + $0x448] sm:$0xff]  ;;  %v16815_v18 = vcombine.high %v339_v10, %v343_v11  ;;  %v16814_v25 = vcombine.low %v339_v10, %v343_v11  ;;  %v399_v6 = vld [vmem:[#allocation5 + $0x620] sm:$0xff] }
  0xea   :  { %5170 = vmatprep.subr.bf16.mxu0 %v16751_v14  ;;  %5457 = vmatprep.subr.bf16.mxu1 %v16753_v15  ;;  %v344_v14 = vld [vmem:[#allocation5 + $0x468] sm:$0xff]  ;;  %v180_v15 = vld [vmem:[#allocation2 + $0x18] sm:$0xff] }
  0xeb   :  { %v16817_v19 = vcombine.high %v340_v13, %v344_v14  ;;  %v16816_v26 = vcombine.low %v340_v13, %v344_v14  ;;  %v376_v48 = vld [vmem:[#allocation5 + $0x568] sm:$0xff]  ;;  %v403_v14 = vld [vmem:[#allocation5 + $0x640] sm:$0xff] }
  0xec   :  { %v384_v56 = vld [vmem:[#allocation5 + $0x5a8] sm:$0xff] }
  0xed   :  { %5171 = vmatpush1.bf16.msra.mxu0 %v16750_v20  ;;  %5458 = vmatpush1.bf16.msra.mxu1 %v16752_v21  ;;  %v347_v20 = vld [vmem:[#allocation5 + $0x480] sm:$0xff]  ;;  %v392_v1 = vld [vmem:[#allocation5 + $0x5e8] sm:$0xff] }
  0xee   :  { %5172 = vmatprep.subr.bf16.mxu0 %v16759_v22  ;;  %5459 = vmatprep.subr.bf16.mxu1 %v16761_v23  ;;  %v351_v21 = vld [vmem:[#allocation5 + $0x4a0] sm:$0xff]  ;;  %v348_v22 = vld [vmem:[#allocation5 + $0x488] sm:$0xff]  ;;  %v20090_v23 = vpack.c.bf16 %v180_v15, %v180_v15 }
  0xef   :  { %v16823_v27 = vcombine.high %v347_v20, %v351_v21  ;;  %v16822_v33 = vcombine.low %v347_v20, %v351_v21  ;;  %v16824_v34 = vcombine.low %v348_v22, %v352_v24  ;;  %v407_v15 = vld [vmem:[#allocation5 + $0x660] sm:$0xff] }
  0xf0   :  { %v16879_v21 = vcombine.high %v403_v14, %v407_v15 }
  0xf1   :  { %5173 = vmatpush1.bf16.msra.mxu0 %v16758_v28  ;;  %5460 = vmatpush1.bf16.msra.mxu1 %v16760_v29  ;;  %v355_v28 = vld [vmem:[#allocation5 + $0x4c0] sm:$0xff] }
  0xf2   :  { %5174 = vmatprep.subr.bf16.mxu0 %v16767_v30  ;;  %5461 = vmatprep.subr.bf16.mxu1 %v16769_v31  ;;  %v359_v29 = vld [vmem:[#allocation5 + $0x4e0] sm:$0xff]  ;;  %v356_v30 = vld [vmem:[#allocation5 + $0x4c8] sm:$0xff]  ;;  %v16825_v31 = vcombine.high %v348_v22, %v352_v24 }
  0xf3   :  { %v16831_v35 = vcombine.high %v355_v28, %v359_v29  ;;  %v16830_v41 = vcombine.low %v355_v28, %v359_v29  ;;  %v16832_v42 = vcombine.low %v356_v30, %v360_v32  ;;  %v411_v22 = vld [vmem:[#allocation5 + $0x680] sm:$0xff]  ;;  %v16878_v28 = vcombine.low %v403_v14, %v407_v15  ;;  %v179_v14 = vld [vmem:[#allocation2 + $0x10] sm:$0xff] }
  0xf4   :  { %v415_v24 = vld [vmem:[#allocation5 + $0x6a0] sm:$0xff] }
  0xf5   :  { %5175 = vmatpush1.bf16.msra.mxu0 %v16766_v36  ;;  %5462 = vmatpush1.bf16.msra.mxu1 %v16768_v37  ;;  %v363_v36 = vld [vmem:[#allocation5 + $0x500] sm:$0xff] }
  0xf6   :  { %5176 = vmatprep.subr.bf16.mxu0 %v16775_v38  ;;  %5463 = vmatprep.subr.bf16.mxu1 %v16777_v39  ;;  %v367_v37 = vld [vmem:[#allocation5 + $0x520] sm:$0xff]  ;;  %v364_v38 = vld [vmem:[#allocation5 + $0x508] sm:$0xff]  ;;  %v16833_v39 = vcombine.high %v356_v30, %v360_v32  ;;  %v16887_v30 = vcombine.high %v411_v22, %v415_v24 }
  0xf7   :  { %v16839_v43 = vcombine.high %v363_v36, %v367_v37  ;;  %v16838_v49 = vcombine.low %v363_v36, %v367_v37  ;;  %v16840_v50 = vcombine.low %v364_v38, %v368_v40  ;;  %v423_v32 = vld [vmem:[#allocation5 + $0x6e0] sm:$0xff]  ;;  %v16886_v36 = vcombine.low %v411_v22, %v415_v24 }
  0xf8   :  { %v182_v24 = vld [vmem:[#allocation2 + $0x28] sm:$0xff] }
  0xf9   :  { %5177 = vmatpush1.bf16.msra.mxu0 %v16774_v44  ;;  %5464 = vmatpush1.bf16.msra.mxu1 %v16776_v45  ;;  %v371_v44 = vld [vmem:[#allocation5 + $0x540] sm:$0xff] }
  0xfa   :  { %5178 = vmatprep.subr.bf16.mxu0 %v16783_v46  ;;  %5465 = vmatprep.subr.bf16.mxu1 %v16785_v47  ;;  %v375_v45 = vld [vmem:[#allocation5 + $0x560] sm:$0xff]  ;;  %v372_v46 = vld [vmem:[#allocation5 + $0x548] sm:$0xff]  ;;  %v16841_v47 = vcombine.high %v364_v38, %v368_v40 }
  0xfb   :  { %v16847_v51 = vcombine.high %v371_v44, %v375_v45  ;;  %v16846_v58 = vcombine.low %v371_v44, %v375_v45  ;;  %v16848_v59 = vcombine.low %v372_v46, %v376_v48  ;;  %v431_v40 = vld [vmem:[#allocation5 + $0x720] sm:$0xff] }
  0xfd   :  { %5179 = vmatpush1.bf16.msra.mxu0 %v16782_v52  ;;  %5466 = vmatpush1.bf16.msra.mxu1 %v16784_v53  ;;  %v379_v52 = vld [vmem:[#allocation5 + $0x580] sm:$0xff] }
  0xfe   :  { %5180 = vmatprep.subr.bf16.mxu0 %v16791_v54  ;;  %5467 = vmatprep.subr.bf16.mxu1 %v16793_v55  ;;  %v383_v53 = vld [vmem:[#allocation5 + $0x5a0] sm:$0xff]  ;;  %v380_v54 = vld [vmem:[#allocation5 + $0x588] sm:$0xff]  ;;  %v16849_v55 = vcombine.high %v372_v46, %v376_v48 }
  0xff   :  { %v16855_v60 = vcombine.high %v379_v52, %v383_v53  ;;  %v16854_v2 = vcombine.low %v379_v52, %v383_v53  ;;  %v16856_v3 = vcombine.low %v380_v54, %v384_v56  ;;  %v439_v48 = vld [vmem:[#allocation5 + $0x760] sm:$0xff] }
 0x101   :  { %5181 = vmatpush1.bf16.msra.mxu0 %v16790_v61  ;;  %5468 = vmatpush1.bf16.msra.mxu1 %v16792_v62  ;;  %v387_v61 = vld [vmem:[#allocation5 + $0x5c0] sm:$0xff] }
 0x102   :  { %5182 = vmatprep.subr.bf16.mxu0 %v16799_v63  ;;  %5469 = vmatprep.subr.bf16.mxu1 %v16801_v0  ;;  %v391_v62 = vld [vmem:[#allocation5 + $0x5e0] sm:$0xff]  ;;  %v388_v63 = vld [vmem:[#allocation5 + $0x5c8] sm:$0xff]  ;;  %v16857_v0 = vcombine.high %v380_v54, %v384_v56 }
 0x103   :  { %v16863_v4 = vcombine.high %v387_v61, %v391_v62  ;;  %v16862_v10 = vcombine.low %v387_v61, %v391_v62  ;;  %v16864_v11 = vcombine.low %v388_v63, %v392_v1  ;;  %v447_v56 = vld [vmem:[#allocation5 + $0x7a0] sm:$0xff] }
 0x105   :  { %5183 = vmatpush1.bf16.msra.mxu0 %v16798_v5  ;;  %5470 = vmatpush1.bf16.msra.mxu1 %v16800_v7  ;;  %v395_v5 = vld [vmem:[#allocation5 + $0x600] sm:$0xff]  ;;  %v396_v7 = vld [vmem:[#allocation5 + $0x608] sm:$0xff] }
 0x106   :  { %5193 = vmatprep.subr.bf16.mxu0 %v16807_v8  ;;  %5480 = vmatprep.subr.bf16.mxu1 %v16809_v9  ;;  %v16865_v8 = vcombine.high %v388_v63, %v392_v1  ;;  %v400_v9 = vld [vmem:[#allocation5 + $0x628] sm:$0xff]  ;;  %v16871_v13 = vcombine.high %v395_v5, %v399_v6  ;;  %v455_v1 = vld [vmem:[#allocation5 + $0x7e0] sm:$0xff] }
 0x107   :  { %v16872_v20 = vcombine.low %v396_v7, %v400_v9 }
 0x108   :  { %5185 = vmatmul.mubr.bf16.vlgmr.msra.gmra.mrb[0].mxu0 %v20088_v12  ;;  %5472 = vmatmul.mubr.bf16.vlgmr.msra.gmra.mrb[0].mxu1 %v20088_v12 }
 0x109   :  { %5194 = vmatpush1.bf16.msra.mxu0 %v16806_v16  ;;  %5481 = vmatpush1.bf16.msra.mxu1 %v16808_v17  ;;  %v404_v16 = vld [vmem:[#allocation5 + $0x648] sm:$0xff]  ;;  %v16873_v17 = vcombine.high %v396_v7, %v400_v9  ;;  %v463_v9 = vld [vmem:[#allocation5 + $0x820] sm:$0xff] }
 0x10a   :  { %5195 = vmatprep.subr.bf16.mxu0 %v16815_v18  ;;  %5482 = vmatprep.subr.bf16.mxu1 %v16817_v19  ;;  %v408_v18 = vld [vmem:[#allocation5 + $0x668] sm:$0xff]  ;;  %v16870_v19 = vcombine.low %v395_v5, %v399_v6  ;;  %v459_v6 = vld [vmem:[#allocation5 + $0x800] sm:$0xff] }
 0x10b   :  { %5225 = vmatprep.mubr.bf16.mxu0 %v20090_v23  ;;  %5512 = vmatprep.mubr.bf16.mxu1 %v20090_v23  ;;  %v16880_v29 = vcombine.low %v404_v16, %v408_v18 }
 0x10d   :  { %5196 = vmatpush1.bf16.msra.mxu0 %v16814_v25  ;;  %5483 = vmatpush1.bf16.msra.mxu1 %v16816_v26  ;;  %v412_v25 = vld [vmem:[#allocation5 + $0x688] sm:$0xff]  ;;  %v16881_v26 = vcombine.high %v404_v16, %v408_v18  ;;  %v467_v16 = vld [vmem:[#allocation5 + $0x840] sm:$0xff]  ;;  %v16935_v18 = vcombine.high %v459_v6, %v463_v9 }
 0x10e   :  { %5197 = vmatprep.subr.bf16.mxu0 %v16823_v27  ;;  %5484 = vmatprep.subr.bf16.mxu1 %v16825_v31  ;;  %v416_v27 = vld [vmem:[#allocation5 + $0x6a8] sm:$0xff]  ;;  %v419_v31 = vld [vmem:[#allocation5 + $0x6c0] sm:$0xff] }
 0x10f   :  { %v16888_v37 = vcombine.low %v412_v25, %v416_v27  ;;  %v16895_v38 = vcombine.high %v419_v31, %v423_v32  ;;  %v16894_v44 = vcombine.low %v419_v31, %v423_v32  ;;  %v479_v31 = vld [vmem:[#allocation5 + $0x8a0] sm:$0xff]  ;;  %v476_v32 = vld [vmem:[#allocation5 + $0x888] sm:$0xff] }
 0x111   :  { %5198 = vmatpush1.bf16.msra.mxu0 %v16822_v33  ;;  %5485 = vmatpush1.bf16.msra.mxu1 %v16824_v34  ;;  %v420_v33 = vld [vmem:[#allocation5 + $0x6c8] sm:$0xff]  ;;  %v16889_v34 = vcombine.high %v412_v25, %v416_v27  ;;  %v20096_v25 = vpack.c.bf16 %v179_v14, %v179_v14 }
 0x112   :  { %5199 = vmatprep.subr.bf16.mxu0 %v16831_v35  ;;  %5486 = vmatprep.subr.bf16.mxu1 %v16833_v39  ;;  %v424_v35 = vld [vmem:[#allocation5 + $0x6e8] sm:$0xff]  ;;  %v427_v39 = vld [vmem:[#allocation5 + $0x700] sm:$0xff] }
 0x113   :  { %v16896_v45 = vcombine.low %v420_v33, %v424_v35  ;;  %v16903_v46 = vcombine.high %v427_v39, %v431_v40  ;;  %v16902_v52 = vcombine.low %v427_v39, %v431_v40  ;;  %v487_v39 = vld [vmem:[#allocation5 + $0x8e0] sm:$0xff]  ;;  %v484_v40 = vld [vmem:[#allocation5 + $0x8c8] sm:$0xff] }
 0x115   :  { %5200 = vmatpush1.bf16.msra.mxu0 %v16830_v41  ;;  %5487 = vmatpush1.bf16.msra.mxu1 %v16832_v42  ;;  %v428_v41 = vld [vmem:[#allocation5 + $0x708] sm:$0xff]  ;;  %v16897_v42 = vcombine.high %v420_v33, %v424_v35 }
 0x116   :  { %5201 = vmatprep.subr.bf16.mxu0 %v16839_v43  ;;  %5488 = vmatprep.subr.bf16.mxu1 %v16841_v47  ;;  %v432_v43 = vld [vmem:[#allocation5 + $0x728] sm:$0xff]  ;;  %v435_v47 = vld [vmem:[#allocation5 + $0x740] sm:$0xff] }
 0x117   :  { %v16904_v53 = vcombine.low %v428_v41, %v432_v43  ;;  %v16911_v54 = vcombine.high %v435_v47, %v439_v48  ;;  %v16910_v61 = vcombine.low %v435_v47, %v439_v48  ;;  %v480_v33 = vld [vmem:[#allocation5 + $0x8a8] sm:$0xff]  ;;  %v495_v47 = vld [vmem:[#allocation5 + $0x920] sm:$0xff] }
 0x118   :  { %v492_v48 = vld [vmem:[#allocation5 + $0x908] sm:$0xff] }
 0x119   :  { %5202 = vmatpush1.bf16.msra.mxu0 %v16838_v49  ;;  %5489 = vmatpush1.bf16.msra.mxu1 %v16840_v50  ;;  %v436_v49 = vld [vmem:[#allocation5 + $0x748] sm:$0xff]  ;;  %v16905_v50 = vcombine.high %v428_v41, %v432_v43  ;;  %v16953_v41 = vcombine.high %v476_v32, %v480_v33 }
 0x11a   :  { %5203 = vmatprep.subr.bf16.mxu0 %v16847_v51  ;;  %5490 = vmatprep.subr.bf16.mxu1 %v16849_v55  ;;  %v440_v51 = vld [vmem:[#allocation5 + $0x768] sm:$0xff]  ;;  %v443_v55 = vld [vmem:[#allocation5 + $0x780] sm:$0xff] }
 0x11b   :  { %v16912_v62 = vcombine.low %v436_v49, %v440_v51  ;;  %v16919_v63 = vcombine.high %v443_v55, %v447_v56  ;;  %v16918_v5 = vcombine.low %v443_v55, %v447_v56  ;;  %v503_v55 = vld [vmem:[#allocation5 + $0x960] sm:$0xff]  ;;  %v500_v56 = vld [vmem:[#allocation5 + $0x948] sm:$0xff] }
 0x11d   :  { %5204 = vmatpush1.bf16.msra.mxu0 %v16846_v58  ;;  %5491 = vmatpush1.bf16.msra.mxu1 %v16848_v59  ;;  %v444_v58 = vld [vmem:[#allocation5 + $0x788] sm:$0xff]  ;;  %v16913_v59 = vcombine.high %v436_v49, %v440_v51 }
 0x11e   :  { %5205 = vmatprep.subr.bf16.mxu0 %v16855_v60  ;;  %5492 = vmatprep.subr.bf16.mxu1 %v16857_v0  ;;  %v448_v60 = vld [vmem:[#allocation5 + $0x7a8] sm:$0xff]  ;;  %v451_v0 = vld [vmem:[#allocation5 + $0x7c0] sm:$0xff] }
 0x11f   :  { %v16920_v7 = vcombine.low %v444_v58, %v448_v60  ;;  %v16926_v15 = vcombine.low %v451_v0, %v455_v1 }
 0x121   :  { %5206 = vmatpush1.bf16.msra.mxu0 %v16854_v2  ;;  %5493 = vmatpush1.bf16.msra.mxu1 %v16856_v3  ;;  %v452_v2 = vld [vmem:[#allocation5 + $0x7c8] sm:$0xff]  ;;  %v16921_v3 = vcombine.high %v444_v58, %v448_v60 }
 0x122   :  { %5207 = vmatprep.subr.bf16.mxu0 %v16863_v4  ;;  %5494 = vmatprep.subr.bf16.mxu1 %v16865_v8  ;;  %v456_v4 = vld [vmem:[#allocation5 + $0x7e8] sm:$0xff]  ;;  %v16927_v8 = vcombine.high %v451_v0, %v455_v1  ;;  %v511_v0 = vld [vmem:[#allocation5 + $0x9a0] sm:$0xff] }
 0x123   :  { %v508_v1 = vld [vmem:[#allocation5 + $0x988] sm:$0xff] }
 0x125   :  { %5208 = vmatpush1.bf16.msra.mxu0 %v16862_v10  ;;  %5495 = vmatpush1.bf16.msra.mxu1 %v16864_v11  ;;  %v460_v10 = vld [vmem:[#allocation5 + $0x808] sm:$0xff] }
 0x126   :  { %5209 = vmatprep.subr.bf16.mxu0 %v16871_v13  ;;  %5496 = vmatprep.subr.bf16.mxu1 %v16873_v17  ;;  %v464_v11 = vld [vmem:[#allocation5 + $0x828] sm:$0xff]  ;;  %v16929_v13 = vcombine.high %v452_v2, %v456_v4  ;;  %v16928_v17 = vcombine.low %v452_v2, %v456_v4 }
 0x127   :  { %v16937_v22 = vcombine.high %v460_v10, %v464_v11  ;;  %v16936_v27 = vcombine.low %v460_v10, %v464_v11  ;;  %v520_v11 = vld [vmem:[#allocation5 + $0x9e8] sm:$0xff] }
 0x129   :  { %5210 = vmatpush1.bf16.msra.mxu0 %v16870_v19  ;;  %5497 = vmatpush1.bf16.msra.mxu1 %v16872_v20  ;;  %v471_v19 = vld [vmem:[#allocation5 + $0x860] sm:$0xff]  ;;  %v468_v20 = vld [vmem:[#allocation5 + $0x848] sm:$0xff] }
 0x12a   :  { %5211 = vmatprep.subr.bf16.mxu0 %v16879_v21  ;;  %5498 = vmatprep.subr.bf16.mxu1 %v16881_v26  ;;  %v472_v21 = vld [vmem:[#allocation5 + $0x868] sm:$0xff]  ;;  %v16934_v26 = vcombine.low %v459_v6, %v463_v9  ;;  %v16942_v35 = vcombine.low %v467_v16, %v471_v19 }
 0x12b   :  { %v516_v9 = vld [vmem:[#allocation5 + $0x9c8] sm:$0xff] }
 0x12d   :  { %5212 = vmatpush1.bf16.msra.mxu0 %v16878_v28  ;;  %5499 = vmatpush1.bf16.msra.mxu1 %v16880_v29  ;;  %v16943_v28 = vcombine.high %v467_v16, %v471_v19  ;;  %v475_v29 = vld [vmem:[#allocation5 + $0x880] sm:$0xff]  ;;  %v16993_v19 = vcombine.high %v516_v9, %v520_v11 }
 0x12e   :  { %5213 = vmatprep.subr.bf16.mxu0 %v16887_v30  ;;  %5500 = vmatprep.subr.bf16.mxu1 %v16889_v34  ;;  %v16945_v30 = vcombine.high %v468_v20, %v472_v21  ;;  %v20098_v34 = vpack.c.bf16 %v182_v24, %v182_v24  ;;  %v16950_v43 = vcombine.low %v475_v29, %v479_v31  ;;  %v523_v16 = vld [vmem:[#allocation5 + $0xa00] sm:$0xff] }
 0x131   :  { %5214 = vmatpush1.bf16.msra.mxu0 %v16886_v36  ;;  %5501 = vmatpush1.bf16.msra.mxu1 %v16888_v37  ;;  %v16944_v36 = vcombine.low %v468_v20, %v472_v21  ;;  %v16951_v37 = vcombine.high %v475_v29, %v479_v31  ;;  %v528_v20 = vld [vmem:[#allocation5 + $0xa28] sm:$0xff] }
 0x132   :  { %5215 = vmatprep.subr.bf16.mxu0 %v16895_v38  ;;  %5502 = vmatprep.subr.bf16.mxu1 %v16897_v42  ;;  %v483_v38 = vld [vmem:[#allocation5 + $0x8c0] sm:$0xff]  ;;  %v488_v42 = vld [vmem:[#allocation5 + $0x8e8] sm:$0xff] }
 0x133   :  { %v16961_v49 = vcombine.high %v484_v40, %v488_v42  ;;  %v16958_v51 = vcombine.low %v483_v38, %v487_v39 }
 0x135   :  { %5216 = vmatpush1.bf16.msra.mxu0 %v16894_v44  ;;  %5503 = vmatpush1.bf16.msra.mxu1 %v16896_v45  ;;  %v16952_v44 = vcombine.low %v476_v32, %v480_v33  ;;  %v16959_v45 = vcombine.high %v483_v38, %v487_v39  ;;  %v544_v39 = vld [vmem:[#allocation5 + $0xaa8] sm:$0xff] }
 0x136   :  { %5217 = vmatprep.subr.bf16.mxu0 %v16903_v46  ;;  %5504 = vmatprep.subr.bf16.mxu1 %v16905_v50  ;;  %v491_v46 = vld [vmem:[#allocation5 + $0x900] sm:$0xff]  ;;  %v496_v50 = vld [vmem:[#allocation5 + $0x928] sm:$0xff] }
 0x137   :  { %v16969_v58 = vcombine.high %v492_v48, %v496_v50  ;;  %v16966_v60 = vcombine.low %v491_v46, %v495_v47 }
 0x139   :  { %5218 = vmatpush1.bf16.msra.mxu0 %v16902_v52  ;;  %5505 = vmatpush1.bf16.msra.mxu1 %v16904_v53  ;;  %v16960_v52 = vcombine.low %v484_v40, %v488_v42  ;;  %v16967_v53 = vcombine.high %v491_v46, %v495_v47  ;;  %v552_v47 = vld [vmem:[#allocation5 + $0xae8] sm:$0xff] }
 0x13a   :  { %5219 = vmatprep.subr.bf16.mxu0 %v16911_v54  ;;  %5506 = vmatprep.subr.bf16.mxu1 %v16913_v59  ;;  %v499_v54 = vld [vmem:[#allocation5 + $0x940] sm:$0xff]  ;;  %v504_v59 = vld [vmem:[#allocation5 + $0x968] sm:$0xff] }
 0x13b   :  { %v16977_v2 = vcombine.high %v500_v56, %v504_v59  ;;  %v16974_v4 = vcombine.low %v499_v54, %v503_v55 }
 0x13d   :  { %5220 = vmatpush1.bf16.msra.mxu0 %v16910_v61  ;;  %5507 = vmatpush1.bf16.msra.mxu1 %v16912_v62  ;;  %v16968_v61 = vcombine.low %v492_v48, %v496_v50  ;;  %v16975_v62 = vcombine.high %v499_v54, %v503_v55  ;;  %v560_v55 = vld [vmem:[#allocation5 + $0xb28] sm:$0xff] }
 0x13e   :  { %5221 = vmatprep.subr.bf16.mxu0 %v16919_v63  ;;  %5508 = vmatprep.subr.bf16.mxu1 %v16921_v3  ;;  %v507_v63 = vld [vmem:[#allocation5 + $0x980] sm:$0xff]  ;;  %v512_v3 = vld [vmem:[#allocation5 + $0x9a8] sm:$0xff] }
 0x13f   :  { %v16983_v6 = vcombine.high %v507_v63, %v511_v0  ;;  %v16985_v10 = vcombine.high %v508_v1, %v512_v3  ;;  %v16984_v14 = vcombine.low %v508_v1, %v512_v3 }
 0x141   :  { %5222 = vmatpush1.bf16.msra.mxu0 %v16918_v5  ;;  %5509 = vmatpush1.bf16.msra.mxu1 %v16920_v7  ;;  %v16976_v5 = vcombine.low %v500_v56, %v504_v59  ;;  %v515_v7 = vld [vmem:[#allocation5 + $0x9c0] sm:$0xff] }
 0x142   :  { %5223 = vmatprep.subr.bf16.mxu0 %v16927_v8  ;;  %5510 = vmatprep.subr.bf16.mxu1 %v16929_v13  ;;  %v519_v8 = vld [vmem:[#allocation5 + $0x9e0] sm:$0xff]  ;;  %v16982_v13 = vcombine.low %v507_v63, %v511_v0  ;;  %v568_v0 = vld [vmem:[#allocation5 + $0xb68] sm:$0xff] }
 0x143   :  { %v16990_v21 = vcombine.low %v515_v7, %v519_v8 }
 0x145   :  { %5224 = vmatpush1.bf16.msra.mxu0 %v16926_v15  ;;  %5511 = vmatpush1.bf16.msra.mxu1 %v16928_v17  ;;  %v16991_v15 = vcombine.high %v515_v7, %v519_v8  ;;  %v527_v17 = vld [vmem:[#allocation5 + $0xa20] sm:$0xff]  ;;  %v576_v8 = vld [vmem:[#allocation5 + $0xba8] sm:$0xff] }
 0x146   :  { %5234 = vmatprep.subr.bf16.mxu0 %v16935_v18  ;;  %5521 = vmatprep.subr.bf16.mxu1 %v16937_v22  ;;  %v524_v18 = vld [vmem:[#allocation5 + $0xa08] sm:$0xff]  ;;  %v16992_v22 = vcombine.low %v516_v9, %v520_v11  ;;  %v16999_v24 = vcombine.high %v523_v16, %v527_v17  ;;  %v16998_v31 = vcombine.low %v523_v16, %v527_v17 }
 0x147   :  { %v17001_v29 = vcombine.high %v524_v18, %v528_v20  ;;  %v17000_v32 = vcombine.low %v524_v18, %v528_v20  ;;  %v584_v17 = vld [vmem:[#allocation5 + $0xbe8] sm:$0xff] }
 0x148   :  { %5226 = vmatmul.mubr.bf16.vlgmr.msra.gmra.mrb[0].mxu0 %v20096_v25  ;;  %5513 = vmatmul.mubr.bf16.vlgmr.msra.gmra.mrb[0].mxu1 %v20096_v25 }
 0x149   :  { %5235 = vmatpush1.bf16.msra.mxu0 %v16934_v26  ;;  %5522 = vmatpush1.bf16.msra.mxu1 %v16936_v27  ;;  %v531_v26 = vld [vmem:[#allocation5 + $0xa40] sm:$0xff] }
 0x14a   :  { %5236 = vmatprep.subr.bf16.mxu0 %v16943_v28  ;;  %5523 = vmatprep.subr.bf16.mxu1 %v16945_v30  ;;  %v535_v27 = vld [vmem:[#allocation5 + $0xa60] sm:$0xff]  ;;  %v532_v28 = vld [vmem:[#allocation5 + $0xa48] sm:$0xff] }
 0x14b   :  { %5266 = vmatprep.mubr.bf16.mxu0 %v20098_v34  ;;  %5553 = vmatprep.mubr.bf16.mxu1 %v20098_v34  ;;  %v536_v30 = vld [vmem:[#allocation5 + $0xa68] sm:$0xff]  ;;  %v17007_v33 = vcombine.high %v531_v26, %v535_v27  ;;  %v17006_v40 = vcombine.low %v531_v26, %v535_v27 }
 0x14c   :  { %v17009_v38 = vcombine.high %v532_v28, %v536_v30  ;;  %v592_v26 = vld [vmem:[#allocation5 + $0xc28] sm:$0xff] }
 0x14d   :  { %5237 = vmatpush1.bf16.msra.mxu0 %v16942_v35  ;;  %5524 = vmatpush1.bf16.msra.mxu1 %v16944_v36  ;;  %v539_v35 = vld [vmem:[#allocation5 + $0xa80] sm:$0xff] }
 0x14e   :  { %5238 = vmatprep.subr.bf16.mxu0 %v16951_v37  ;;  %5525 = vmatprep.subr.bf16.mxu1 %v16953_v41  ;;  %v543_v36 = vld [vmem:[#allocation5 + $0xaa0] sm:$0xff]  ;;  %v540_v37 = vld [vmem:[#allocation5 + $0xa88] sm:$0xff]  ;;  %v17008_v41 = vcombine.low %v532_v28, %v536_v30  ;;  %v181_v28 = vld [vmem:[#allocation2 + $0x20] sm:$0xff] }
 0x14f   :  { %v17015_v42 = vcombine.high %v539_v35, %v543_v36  ;;  %v17017_v46 = vcombine.high %v540_v37, %v544_v39  ;;  %v17014_v48 = vcombine.low %v539_v35, %v543_v36  ;;  %v595_v30 = vld [vmem:[#allocation5 + $0xc40] sm:$0xff]  ;;  %v596_v35 = vld [vmem:[#allocation5 + $0xc48] sm:$0xff] }
 0x150   :  { %v600_v36 = vld [vmem:[#allocation5 + $0xc68] sm:$0xff] }
 0x151   :  { %5239 = vmatpush1.bf16.msra.mxu0 %v16950_v43  ;;  %5526 = vmatpush1.bf16.msra.mxu1 %v16952_v44  ;;  %v547_v43 = vld [vmem:[#allocation5 + $0xac0] sm:$0xff] }
 0x152   :  { %5240 = vmatprep.subr.bf16.mxu0 %v16959_v45  ;;  %5527 = vmatprep.subr.bf16.mxu1 %v16961_v49  ;;  %v551_v44 = vld [vmem:[#allocation5 + $0xae0] sm:$0xff]  ;;  %v548_v45 = vld [vmem:[#allocation5 + $0xac8] sm:$0xff]  ;;  %v17016_v49 = vcombine.low %v540_v37, %v544_v39  ;;  %v20104_v39 = vpack.c.bf16 %v181_v28, %v181_v28 }
 0x153   :  { %v17023_v50 = vcombine.high %v547_v43, %v551_v44  ;;  %v17025_v54 = vcombine.high %v548_v45, %v552_v47  ;;  %v17022_v56 = vcombine.low %v547_v43, %v551_v44  ;;  %v603_v43 = vld [vmem:[#allocation5 + $0xc80] sm:$0xff]  ;;  %v17073_v44 = vcombine.high %v596_v35, %v600_v36  ;;  %v648_v28 = vld [vmem:[#allocation5 + $0xde8] sm:$0xff] }
 0x155   :  { %5241 = vmatpush1.bf16.msra.mxu0 %v16958_v51  ;;  %5528 = vmatpush1.bf16.msra.mxu1 %v16960_v52  ;;  %v555_v51 = vld [vmem:[#allocation5 + $0xb00] sm:$0xff] }
 0x156   :  { %5242 = vmatprep.subr.bf16.mxu0 %v16967_v53  ;;  %5529 = vmatprep.subr.bf16.mxu1 %v16969_v58  ;;  %v559_v52 = vld [vmem:[#allocation5 + $0xb20] sm:$0xff]  ;;  %v556_v53 = vld [vmem:[#allocation5 + $0xb08] sm:$0xff]  ;;  %v17024_v58 = vcombine.low %v548_v45, %v552_v47 }
 0x157   :  { %v17031_v59 = vcombine.high %v555_v51, %v559_v52  ;;  %v17033_v63 = vcombine.high %v556_v53, %v560_v55  ;;  %v17030_v1 = vcombine.low %v555_v51, %v559_v52  ;;  %v607_v45 = vld [vmem:[#allocation5 + $0xca0] sm:$0xff]  ;;  %v608_v47 = vld [vmem:[#allocation5 + $0xca8] sm:$0xff] }
 0x158   :  { %v17079_v51 = vcombine.high %v603_v43, %v607_v45  ;;  %v611_v52 = vld [vmem:[#allocation5 + $0xcc0] sm:$0xff] }
 0x159   :  { %5243 = vmatpush1.bf16.msra.mxu0 %v16966_v60  ;;  %5530 = vmatpush1.bf16.msra.mxu1 %v16968_v61  ;;  %v563_v60 = vld [vmem:[#allocation5 + $0xb40] sm:$0xff] }
 0x15a   :  { %5244 = vmatprep.subr.bf16.mxu0 %v16975_v62  ;;  %5531 = vmatprep.subr.bf16.mxu1 %v16977_v2  ;;  %v567_v61 = vld [vmem:[#allocation5 + $0xb60] sm:$0xff]  ;;  %v564_v62 = vld [vmem:[#allocation5 + $0xb48] sm:$0xff]  ;;  %v17032_v2 = vcombine.low %v556_v53, %v560_v55 }
 0x15b   :  { %v17039_v3 = vcombine.high %v563_v60, %v567_v61  ;;  %v17041_v7 = vcombine.high %v564_v62, %v568_v0  ;;  %v17038_v9 = vcombine.low %v563_v60, %v567_v61  ;;  %v615_v53 = vld [vmem:[#allocation5 + $0xce0] sm:$0xff] }
 0x15c   :  { %v17087_v60 = vcombine.high %v611_v52, %v615_v53  ;;  %v619_v61 = vld [vmem:[#allocation5 + $0xd00] sm:$0xff] }
 0x15d   :  { %5245 = vmatpush1.bf16.msra.mxu0 %v16974_v4  ;;  %5532 = vmatpush1.bf16.msra.mxu1 %v16976_v5  ;;  %v571_v4 = vld [vmem:[#allocation5 + $0xb80] sm:$0xff] }
 0x15e   :  { %5246 = vmatprep.subr.bf16.mxu0 %v16983_v6  ;;  %5533 = vmatprep.subr.bf16.mxu1 %v16985_v10  ;;  %v575_v5 = vld [vmem:[#allocation5 + $0xba0] sm:$0xff]  ;;  %v572_v6 = vld [vmem:[#allocation5 + $0xb88] sm:$0xff]  ;;  %v17040_v10 = vcombine.low %v564_v62, %v568_v0 }
 0x15f   :  { %v17047_v11 = vcombine.high %v571_v4, %v575_v5  ;;  %v17049_v16 = vcombine.high %v572_v6, %v576_v8  ;;  %v17046_v18 = vcombine.low %v571_v4, %v575_v5  ;;  %v17048_v20 = vcombine.low %v572_v6, %v576_v8  ;;  %v623_v62 = vld [vmem:[#allocation5 + $0xd20] sm:$0xff] }
 0x160   :  { %v17095_v4 = vcombine.high %v619_v61, %v623_v62  ;;  %v627_v5 = vld [vmem:[#allocation5 + $0xd40] sm:$0xff] }
 0x161   :  { %5247 = vmatpush1.bf16.msra.mxu0 %v16982_v13  ;;  %5534 = vmatpush1.bf16.msra.mxu1 %v16984_v14  ;;  %v579_v13 = vld [vmem:[#allocation5 + $0xbc0] sm:$0xff] }
 0x162   :  { %5248 = vmatprep.subr.bf16.mxu0 %v16991_v15  ;;  %5535 = vmatprep.subr.bf16.mxu1 %v16993_v19  ;;  %v583_v14 = vld [vmem:[#allocation5 + $0xbe0] sm:$0xff]  ;;  %v580_v15 = vld [vmem:[#allocation5 + $0xbc8] sm:$0xff] }
 0x163   :  { %v587_v19 = vld [vmem:[#allocation5 + $0xc00] sm:$0xff]  ;;  %v17057_v27 = vcombine.high %v580_v15, %v584_v17 }
 0x164   :  { %v631_v6 = vld [vmem:[#allocation5 + $0xd60] sm:$0xff] }
 0x165   :  { %5249 = vmatpush1.bf16.msra.mxu0 %v16990_v21  ;;  %5536 = vmatpush1.bf16.msra.mxu1 %v16992_v22  ;;  %v17055_v21 = vcombine.high %v579_v13, %v583_v14  ;;  %v591_v22 = vld [vmem:[#allocation5 + $0xc20] sm:$0xff] }
 0x166   :  { %5250 = vmatprep.subr.bf16.mxu0 %v16999_v24  ;;  %5537 = vmatprep.subr.bf16.mxu1 %v17001_v29  ;;  %v588_v24 = vld [vmem:[#allocation5 + $0xc08] sm:$0xff]  ;;  %v17054_v29 = vcombine.low %v579_v13, %v583_v14  ;;  %v17103_v13 = vcombine.high %v627_v5, %v631_v6  ;;  %v635_v14 = vld [vmem:[#allocation5 + $0xd80] sm:$0xff] }
 0x167   :  { %v17065_v37 = vcombine.high %v588_v24, %v592_v26 }
 0x169   :  { %5251 = vmatpush1.bf16.msra.mxu0 %v16998_v31  ;;  %5538 = vmatpush1.bf16.msra.mxu1 %v17000_v32  ;;  %v17056_v31 = vcombine.low %v580_v15, %v584_v17  ;;  %v17063_v32 = vcombine.high %v587_v19, %v591_v22  ;;  %v639_v15 = vld [vmem:[#allocation5 + $0xda0] sm:$0xff] }
 0x16a   :  { %5252 = vmatprep.subr.bf16.mxu0 %v17007_v33  ;;  %5539 = vmatprep.subr.bf16.mxu1 %v17009_v38  ;;  %v599_v33 = vld [vmem:[#allocation5 + $0xc60] sm:$0xff]  ;;  %v184_v38 = vld [vmem:[#allocation2 + $0x38] sm:$0xff] }
 0x16d   :  { %5253 = vmatpush1.bf16.msra.mxu0 %v17006_v40  ;;  %5540 = vmatpush1.bf16.msra.mxu1 %v17008_v41  ;;  %v17062_v40 = vcombine.low %v587_v19, %v591_v22  ;;  %v17064_v41 = vcombine.low %v588_v24, %v592_v26  ;;  %v17102_v19 = vcombine.low %v627_v5, %v631_v6  ;;  %v643_v22 = vld [vmem:[#allocation5 + $0xdc0] sm:$0xff]  ;;  %v644_v26 = vld [vmem:[#allocation5 + $0xdc8] sm:$0xff] }
 0x16e   :  { %5254 = vmatprep.subr.bf16.mxu0 %v17015_v42  ;;  %5541 = vmatprep.subr.bf16.mxu1 %v17017_v46  ;;  %v17071_v42 = vcombine.high %v595_v30, %v599_v33  ;;  %v604_v46 = vld [vmem:[#allocation5 + $0xc88] sm:$0xff]  ;;  %v647_v24 = vld [vmem:[#allocation5 + $0xde0] sm:$0xff] }
 0x16f   :  { %v17081_v55 = vcombine.high %v604_v46, %v608_v47  ;;  %v683_v5 = vld [vmem:[#allocation5 + $0xf00] sm:$0xff] }
 0x170   :  { %v687_v6 = vld [vmem:[#allocation5 + $0xf20] sm:$0xff] }
 0x171   :  { %5255 = vmatpush1.bf16.msra.mxu0 %v17014_v48  ;;  %5542 = vmatpush1.bf16.msra.mxu1 %v17016_v49  ;;  %v20106_v48 = vpack.c.bf16 %v184_v38, %v184_v38  ;;  %v17070_v49 = vcombine.low %v595_v30, %v599_v33  ;;  %v655_v33 = vld [vmem:[#allocation5 + $0xe20] sm:$0xff]  ;;  %v17118_v38 = vcombine.low %v643_v22, %v647_v24 }
 0x172   :  { %5256 = vmatprep.subr.bf16.mxu0 %v17023_v50  ;;  %5543 = vmatprep.subr.bf16.mxu1 %v17025_v54  ;;  %v17072_v50 = vcombine.low %v596_v35, %v600_v36  ;;  %v612_v54 = vld [vmem:[#allocation5 + $0xcc8] sm:$0xff]  ;;  %v17121_v36 = vcombine.high %v644_v26, %v648_v28 }
 0x173   :  { %v652_v35 = vld [vmem:[#allocation5 + $0xe08] sm:$0xff] }
 0x175   :  { %5257 = vmatpush1.bf16.msra.mxu0 %v17022_v56  ;;  %5544 = vmatpush1.bf16.msra.mxu1 %v17024_v58  ;;  %v616_v56 = vld [vmem:[#allocation5 + $0xce8] sm:$0xff]  ;;  %v17078_v58 = vcombine.low %v603_v43, %v607_v45  ;;  %v663_v43 = vld [vmem:[#allocation5 + $0xe60] sm:$0xff] }
 0x176   :  { %5258 = vmatprep.subr.bf16.mxu0 %v17031_v59  ;;  %5545 = vmatprep.subr.bf16.mxu1 %v17033_v63  ;;  %v17080_v59 = vcombine.low %v604_v46, %v608_v47  ;;  %v620_v63 = vld [vmem:[#allocation5 + $0xd08] sm:$0xff]  ;;  %v17089_v0 = vcombine.high %v612_v54, %v616_v56 }
 0x177   :  { %v664_v46 = vld [vmem:[#allocation5 + $0xe68] sm:$0xff] }
 0x179   :  { %5259 = vmatpush1.bf16.msra.mxu0 %v17030_v1  ;;  %5546 = vmatpush1.bf16.msra.mxu1 %v17032_v2  ;;  %v624_v1 = vld [vmem:[#allocation5 + $0xd28] sm:$0xff]  ;;  %v17086_v2 = vcombine.low %v611_v52, %v615_v53  ;;  %v671_v52 = vld [vmem:[#allocation5 + $0xea0] sm:$0xff] }
 0x17a   :  { %5260 = vmatprep.subr.bf16.mxu0 %v17039_v3  ;;  %5547 = vmatprep.subr.bf16.mxu1 %v17041_v7  ;;  %v17088_v3 = vcombine.low %v612_v54, %v616_v56  ;;  %v628_v7 = vld [vmem:[#allocation5 + $0xd48] sm:$0xff]  ;;  %v17097_v8 = vcombine.high %v620_v63, %v624_v1 }
 0x17b   :  { %v668_v53 = vld [vmem:[#allocation5 + $0xe88] sm:$0xff] }
 0x17d   :  { %5261 = vmatpush1.bf16.msra.mxu0 %v17038_v9  ;;  %5548 = vmatpush1.bf16.msra.mxu1 %v17040_v10  ;;  %v632_v9 = vld [vmem:[#allocation5 + $0xd68] sm:$0xff]  ;;  %v17094_v10 = vcombine.low %v619_v61, %v623_v62  ;;  %v675_v61 = vld [vmem:[#allocation5 + $0xec0] sm:$0xff] }
 0x17e   :  { %5262 = vmatprep.subr.bf16.mxu0 %v17047_v11  ;;  %5549 = vmatprep.subr.bf16.mxu1 %v17049_v16  ;;  %v17096_v11 = vcombine.low %v620_v63, %v624_v1  ;;  %v636_v16 = vld [vmem:[#allocation5 + $0xd88] sm:$0xff]  ;;  %v17105_v17 = vcombine.high %v628_v7, %v632_v9  ;;  %v679_v62 = vld [vmem:[#allocation5 + $0xee0] sm:$0xff] }
 0x17f   :  { %v676_v63 = vld [vmem:[#allocation5 + $0xec8] sm:$0xff] }
 0x181   :  { %5263 = vmatpush1.bf16.msra.mxu0 %v17046_v18  ;;  %5550 = vmatpush1.bf16.msra.mxu1 %v17048_v20  ;;  %v640_v18 = vld [vmem:[#allocation5 + $0xda8] sm:$0xff]  ;;  %v17104_v20 = vcombine.low %v628_v7, %v632_v9  ;;  %v17150_v9 = vcombine.low %v675_v61, %v679_v62 }
 0x182   :  { %5264 = vmatprep.subr.bf16.mxu0 %v17055_v21  ;;  %5551 = vmatprep.subr.bf16.mxu1 %v17057_v27  ;;  %v17111_v21 = vcombine.high %v635_v14, %v639_v15  ;;  %v17113_v27 = vcombine.high %v636_v16, %v640_v18  ;;  %v17112_v30 = vcombine.low %v636_v16, %v640_v18  ;;  %v684_v7 = vld [vmem:[#allocation5 + $0xf08] sm:$0xff] }
 0x183   :  { %v692_v16 = vld [vmem:[#allocation5 + $0xf48] sm:$0xff]  ;;  %v17158_v18 = vcombine.low %v683_v5, %v687_v6 }
 0x185   :  { %5265 = vmatpush1.bf16.msra.mxu0 %v17054_v29  ;;  %5552 = vmatpush1.bf16.msra.mxu1 %v17056_v31  ;;  %v17110_v29 = vcombine.low %v635_v14, %v639_v15  ;;  %v17119_v31 = vcombine.high %v643_v22, %v647_v24  ;;  %v691_v14 = vld [vmem:[#allocation5 + $0xf40] sm:$0xff] }
 0x186   :  { %5275 = vmatprep.subr.bf16.mxu0 %v17063_v32  ;;  %5562 = vmatprep.subr.bf16.mxu1 %v17065_v37  ;;  %v651_v32 = vld [vmem:[#allocation5 + $0xe00] sm:$0xff]  ;;  %v656_v37 = vld [vmem:[#allocation5 + $0xe28] sm:$0xff] }
 0x187   :  { %v17129_v45 = vcombine.high %v652_v35, %v656_v37  ;;  %v17126_v47 = vcombine.low %v651_v32, %v655_v33  ;;  %v695_v15 = vld [vmem:[#allocation5 + $0xf60] sm:$0xff] }
 0x188   :  { %5267 = vmatmul.mubr.bf16.vlgmr.msra.gmra.mrb[0].mxu0 %v20104_v39  ;;  %5554 = vmatmul.mubr.bf16.vlgmr.msra.gmra.mrb[0].mxu1 %v20104_v39  ;;  %v699_v22 = vld [vmem:[#allocation5 + $0xf80] sm:$0xff] }
 0x189   :  { %5276 = vmatpush1.bf16.msra.mxu0 %v17062_v40  ;;  %5563 = vmatpush1.bf16.msra.mxu1 %v17064_v41  ;;  %v17120_v40 = vcombine.low %v644_v26, %v648_v28  ;;  %v17127_v41 = vcombine.high %v651_v32, %v655_v33  ;;  %v703_v24 = vld [vmem:[#allocation5 + $0xfa0] sm:$0xff]  ;;  %v700_v26 = vld [vmem:[#allocation5 + $0xf88] sm:$0xff]  ;;  %v17166_v28 = vcombine.low %v691_v14, %v695_v15 }
 0x18a   :  { %5277 = vmatprep.subr.bf16.mxu0 %v17071_v42  ;;  %5564 = vmatprep.subr.bf16.mxu1 %v17073_v44  ;;  %v659_v42 = vld [vmem:[#allocation5 + $0xe40] sm:$0xff]  ;;  %v660_v44 = vld [vmem:[#allocation5 + $0xe48] sm:$0xff] }
 0x18b   :  { %5307 = vmatprep.mubr.bf16.mxu0 %v20106_v48  ;;  %5594 = vmatprep.mubr.bf16.mxu1 %v20106_v48  ;;  %v17137_v54 = vcombine.high %v660_v44, %v664_v46  ;;  %v17134_v56 = vcombine.low %v659_v42, %v663_v43  ;;  %v707_v32 = vld [vmem:[#allocation5 + $0xfc0] sm:$0xff] }
 0x18c   :  { %v711_v33 = vld [vmem:[#allocation5 + $0xfe0] sm:$0xff] }
 0x18d   :  { %5278 = vmatpush1.bf16.msra.mxu0 %v17070_v49  ;;  %5565 = vmatpush1.bf16.msra.mxu1 %v17072_v50  ;;  %v17128_v49 = vcombine.low %v652_v35, %v656_v37  ;;  %v17135_v50 = vcombine.high %v659_v42, %v663_v43  ;;  %v708_v35 = vld [vmem:[#allocation5 + $0xfc8] sm:$0xff]  ;;  %v17174_v37 = vcombine.low %v699_v22, %v703_v24  ;;  %v715_v42 = vld [vmem:[#allocation5 + $0x1000] sm:$0xff] }
 0x18e   :  { %5279 = vmatprep.subr.bf16.mxu0 %v17079_v51  ;;  %5566 = vmatprep.subr.bf16.mxu1 %v17081_v55  ;;  %v667_v51 = vld [vmem:[#allocation5 + $0xe80] sm:$0xff]  ;;  %v672_v55 = vld [vmem:[#allocation5 + $0xea8] sm:$0xff] }
 0x18f   :  { %v17142_v1 = vcombine.low %v667_v51, %v671_v52  ;;  %v719_v43 = vld [vmem:[#allocation5 + $0x1020] sm:$0xff] }
 0x191   :  { %5280 = vmatpush1.bf16.msra.mxu0 %v17078_v58  ;;  %5567 = vmatpush1.bf16.msra.mxu1 %v17080_v59  ;;  %v17136_v58 = vcombine.low %v660_v44, %v664_v46  ;;  %v17143_v59 = vcombine.high %v667_v51, %v671_v52  ;;  %v716_v44 = vld [vmem:[#allocation5 + $0x1008] sm:$0xff]  ;;  %v17182_v46 = vcombine.low %v707_v32, %v711_v33  ;;  %v723_v52 = vld [vmem:[#allocation5 + $0x1040] sm:$0xff] }
 0x192   :  { %5281 = vmatprep.subr.bf16.mxu0 %v17087_v60  ;;  %5568 = vmatprep.subr.bf16.mxu1 %v17089_v0  ;;  %v17145_v60 = vcombine.high %v668_v53, %v672_v55  ;;  %v680_v0 = vld [vmem:[#allocation5 + $0xee8] sm:$0xff] }
 0x195   :  { %5282 = vmatpush1.bf16.msra.mxu0 %v17086_v2  ;;  %5569 = vmatpush1.bf16.msra.mxu1 %v17088_v3  ;;  %v17144_v2 = vcombine.low %v668_v53, %v672_v55  ;;  %v17151_v3 = vcombine.high %v675_v61, %v679_v62  ;;  %v727_v53 = vld [vmem:[#allocation5 + $0x1060] sm:$0xff]  ;;  %v724_v55 = vld [vmem:[#allocation5 + $0x1048] sm:$0xff] }
 0x196   :  { %5283 = vmatprep.subr.bf16.mxu0 %v17095_v4  ;;  %5570 = vmatprep.subr.bf16.mxu1 %v17097_v8  ;;  %v17153_v4 = vcombine.high %v676_v63, %v680_v0  ;;  %v688_v8 = vld [vmem:[#allocation5 + $0xf28] sm:$0xff]  ;;  %v17199_v61 = vcombine.high %v723_v52, %v727_v53 }
 0x199   :  { %5284 = vmatpush1.bf16.msra.mxu0 %v17094_v10  ;;  %5571 = vmatpush1.bf16.msra.mxu1 %v17096_v11  ;;  %v17152_v10 = vcombine.low %v676_v63, %v680_v0  ;;  %v17159_v11 = vcombine.high %v683_v5, %v687_v6  ;;  %v731_v63 = vld [vmem:[#allocation5 + $0x1080] sm:$0xff] }
 0x19a   :  { %5285 = vmatprep.subr.bf16.mxu0 %v17103_v13  ;;  %5572 = vmatprep.subr.bf16.mxu1 %v17105_v17  ;;  %v17161_v13 = vcombine.high %v684_v7, %v688_v8  ;;  %v696_v17 = vld [vmem:[#allocation5 + $0xf68] sm:$0xff]  ;;  %v735_v0 = vld [vmem:[#allocation5 + $0x10a0] sm:$0xff] }
 0x19b   :  { %v17207_v6 = vcombine.high %v731_v63, %v735_v0 }
 0x19d   :  { %5286 = vmatpush1.bf16.msra.mxu0 %v17102_v19  ;;  %5573 = vmatpush1.bf16.msra.mxu1 %v17104_v20  ;;  %v17160_v19 = vcombine.low %v684_v7, %v688_v8  ;;  %v17167_v20 = vcombine.high %v691_v14, %v695_v15  ;;  %v739_v8 = vld [vmem:[#allocation5 + $0x10c0] sm:$0xff] }
 0x19e   :  { %5287 = vmatprep.subr.bf16.mxu0 %v17111_v21  ;;  %5574 = vmatprep.subr.bf16.mxu1 %v17113_v27  ;;  %v17169_v21 = vcombine.high %v692_v16, %v696_v17  ;;  %v704_v27 = vld [vmem:[#allocation5 + $0xfa8] sm:$0xff] }
 0x1a1   :  { %5288 = vmatpush1.bf16.msra.mxu0 %v17110_v29  ;;  %5575 = vmatpush1.bf16.msra.mxu1 %v17112_v30  ;;  %v17168_v29 = vcombine.low %v692_v16, %v696_v17  ;;  %v17175_v30 = vcombine.high %v699_v22, %v703_v24  ;;  %v747_v17 = vld [vmem:[#allocation5 + $0x1100] sm:$0xff] }
 0x1a2   :  { %5289 = vmatprep.subr.bf16.mxu0 %v17119_v31  ;;  %5576 = vmatprep.subr.bf16.mxu1 %v17121_v36  ;;  %v17177_v31 = vcombine.high %v700_v26, %v704_v27  ;;  %v712_v36 = vld [vmem:[#allocation5 + $0xfe8] sm:$0xff] }
 0x1a5   :  { %5290 = vmatpush1.bf16.msra.mxu0 %v17118_v38  ;;  %5577 = vmatpush1.bf16.msra.mxu1 %v17120_v40  ;;  %v17176_v38 = vcombine.low %v700_v26, %v704_v27  ;;  %v17183_v40 = vcombine.high %v707_v32, %v711_v33  ;;  %v755_v27 = vld [vmem:[#allocation5 + $0x1140] sm:$0xff] }
 0x1a6   :  { %5291 = vmatprep.subr.bf16.mxu0 %v17127_v41  ;;  %5578 = vmatprep.subr.bf16.mxu1 %v17129_v45  ;;  %v17185_v41 = vcombine.high %v708_v35, %v712_v36  ;;  %v720_v45 = vld [vmem:[#allocation5 + $0x1028] sm:$0xff] }
 0x1a7   :  { %v17193_v51 = vcombine.high %v716_v44, %v720_v45 }
 0x1a9   :  { %5292 = vmatpush1.bf16.msra.mxu0 %v17126_v47  ;;  %5579 = vmatpush1.bf16.msra.mxu1 %v17128_v49  ;;  %v183_v47 = vld [vmem:[#allocation2 + $0x30] sm:$0xff]  ;;  %v17184_v49 = vcombine.low %v708_v35, %v712_v36  ;;  %v763_v36 = vld [vmem:[#allocation5 + $0x1180] sm:$0xff] }
 0x1aa   :  { %5293 = vmatprep.subr.bf16.mxu0 %v17135_v50  ;;  %5580 = vmatprep.subr.bf16.mxu1 %v17137_v54  ;;  %v17191_v50 = vcombine.high %v715_v42, %v719_v43  ;;  %v20112_v54 = vpack.c.bf16 %v183_v47, %v183_v47  ;;  %v772_v47 = vld [vmem:[#allocation5 + $0x11c8] sm:$0xff] }
 0x1ad   :  { %5294 = vmatpush1.bf16.msra.mxu0 %v17134_v56  ;;  %5581 = vmatpush1.bf16.msra.mxu1 %v17136_v58  ;;  %v728_v56 = vld [vmem:[#allocation5 + $0x1068] sm:$0xff]  ;;  %v186_v58 = vld [vmem:[#allocation2 + $0x48] sm:$0xff] }
 0x1ae   :  { %5295 = vmatprep.subr.bf16.mxu0 %v17143_v59  ;;  %5582 = vmatprep.subr.bf16.mxu1 %v17145_v60  ;;  %v17190_v59 = vcombine.low %v715_v42, %v719_v43  ;;  %v17192_v60 = vcombine.low %v716_v44, %v720_v45  ;;  %v17201_v62 = vcombine.high %v724_v55, %v728_v56  ;;  %v771_v45 = vld [vmem:[#allocation5 + $0x11c0] sm:$0xff] }
 0x1af   :  { %v17200_v5 = vcombine.low %v724_v55, %v728_v56  ;;  %v779_v55 = vld [vmem:[#allocation5 + $0x1200] sm:$0xff] }
 0x1b0   :  { %v783_v56 = vld [vmem:[#allocation5 + $0x1220] sm:$0xff] }
 0x1b1   :  { %5296 = vmatpush1.bf16.msra.mxu0 %v17142_v1  ;;  %5583 = vmatpush1.bf16.msra.mxu1 %v17144_v2  ;;  %v20114_v1 = vpack.c.bf16 %v186_v58, %v186_v58  ;;  %v732_v2 = vld [vmem:[#allocation5 + $0x1088] sm:$0xff] }
 0x1b2   :  { %5297 = vmatprep.subr.bf16.mxu0 %v17151_v3  ;;  %5584 = vmatprep.subr.bf16.mxu1 %v17153_v4  ;;  %v736_v3 = vld [vmem:[#allocation5 + $0x10a8] sm:$0xff]  ;;  %v17198_v4 = vcombine.low %v723_v52, %v727_v53 }
 0x1b3   :  { %v17209_v7 = vcombine.high %v732_v2, %v736_v3  ;;  %v17208_v14 = vcombine.low %v732_v2, %v736_v3  ;;  %v780_v58 = vld [vmem:[#allocation5 + $0x1208] sm:$0xff]  ;;  %v791_v2 = vld [vmem:[#allocation5 + $0x1260] sm:$0xff] }
 0x1b4   :  { %v788_v3 = vld [vmem:[#allocation5 + $0x1248] sm:$0xff] }
 0x1b5   :  { %5298 = vmatpush1.bf16.msra.mxu0 %v17150_v9  ;;  %5585 = vmatpush1.bf16.msra.mxu1 %v17152_v10  ;;  %v743_v9 = vld [vmem:[#allocation5 + $0x10e0] sm:$0xff]  ;;  %v740_v10 = vld [vmem:[#allocation5 + $0x10c8] sm:$0xff] }
 0x1b6   :  { %5299 = vmatprep.subr.bf16.mxu0 %v17159_v11  ;;  %5586 = vmatprep.subr.bf16.mxu1 %v17161_v13  ;;  %v744_v11 = vld [vmem:[#allocation5 + $0x10e8] sm:$0xff]  ;;  %v17206_v13 = vcombine.low %v731_v63, %v735_v0  ;;  %v17215_v15 = vcombine.high %v739_v8, %v743_v9  ;;  %v787_v0 = vld [vmem:[#allocation5 + $0x1240] sm:$0xff] }
 0x1b7   :  { %v17217_v16 = vcombine.high %v740_v10, %v744_v11  ;;  %v17216_v22 = vcombine.low %v740_v10, %v744_v11  ;;  %v799_v10 = vld [vmem:[#allocation5 + $0x12a0] sm:$0xff]  ;;  %v796_v11 = vld [vmem:[#allocation5 + $0x1288] sm:$0xff] }
 0x1b9   :  { %5300 = vmatpush1.bf16.msra.mxu0 %v17158_v18  ;;  %5587 = vmatpush1.bf16.msra.mxu1 %v17160_v19  ;;  %v751_v18 = vld [vmem:[#allocation5 + $0x1120] sm:$0xff]  ;;  %v748_v19 = vld [vmem:[#allocation5 + $0x1108] sm:$0xff] }
 0x1ba   :  { %5301 = vmatprep.subr.bf16.mxu0 %v17167_v20  ;;  %5588 = vmatprep.subr.bf16.mxu1 %v17169_v21  ;;  %v752_v20 = vld [vmem:[#allocation5 + $0x1128] sm:$0xff]  ;;  %v17214_v21 = vcombine.low %v739_v8, %v743_v9  ;;  %v17223_v24 = vcombine.high %v747_v17, %v751_v18  ;;  %v795_v9 = vld [vmem:[#allocation5 + $0x1280] sm:$0xff] }
 0x1bb   :  { %v17225_v26 = vcombine.high %v748_v19, %v752_v20  ;;  %v17224_v32 = vcombine.low %v748_v19, %v752_v20  ;;  %v807_v19 = vld [vmem:[#allocation5 + $0x12e0] sm:$0xff]  ;;  %v804_v20 = vld [vmem:[#allocation5 + $0x12c8] sm:$0xff] }
 0x1bd   :  { %5302 = vmatpush1.bf16.msra.mxu0 %v17166_v28  ;;  %5589 = vmatpush1.bf16.msra.mxu1 %v17168_v29  ;;  %v759_v28 = vld [vmem:[#allocation5 + $0x1160] sm:$0xff]  ;;  %v756_v29 = vld [vmem:[#allocation5 + $0x1148] sm:$0xff] }
 0x1be   :  { %5303 = vmatprep.subr.bf16.mxu0 %v17175_v30  ;;  %5590 = vmatprep.subr.bf16.mxu1 %v17177_v31  ;;  %v760_v30 = vld [vmem:[#allocation5 + $0x1168] sm:$0xff]  ;;  %v17222_v31 = vcombine.low %v747_v17, %v751_v18  ;;  %v17231_v33 = vcombine.high %v755_v27, %v759_v28  ;;  %v803_v18 = vld [vmem:[#allocation5 + $0x12c0] sm:$0xff] }
 0x1bf   :  { %v17233_v35 = vcombine.high %v756_v29, %v760_v30  ;;  %v17232_v42 = vcombine.low %v756_v29, %v760_v30  ;;  %v815_v29 = vld [vmem:[#allocation5 + $0x1320] sm:$0xff]  ;;  %v812_v30 = vld [vmem:[#allocation5 + $0x1308] sm:$0xff] }
 0x1c1   :  { %5304 = vmatpush1.bf16.msra.mxu0 %v17174_v37  ;;  %5591 = vmatpush1.bf16.msra.mxu1 %v17176_v38  ;;  %v767_v37 = vld [vmem:[#allocation5 + $0x11a0] sm:$0xff]  ;;  %v764_v38 = vld [vmem:[#allocation5 + $0x1188] sm:$0xff] }
 0x1c2   :  { %5305 = vmatprep.subr.bf16.mxu0 %v17183_v40  ;;  %5592 = vmatprep.subr.bf16.mxu1 %v17185_v41  ;;  %v768_v40 = vld [vmem:[#allocation5 + $0x11a8] sm:$0xff]  ;;  %v17230_v41 = vcombine.low %v755_v27, %v759_v28  ;;  %v17239_v43 = vcombine.high %v763_v36, %v767_v37  ;;  %v811_v28 = vld [vmem:[#allocation5 + $0x1300] sm:$0xff] }
 0x1c3   :  { %v17241_v44 = vcombine.high %v764_v38, %v768_v40 }
 0x1c5   :  { %5306 = vmatpush1.bf16.msra.mxu0 %v17182_v46  ;;  %5593 = vmatpush1.bf16.msra.mxu1 %v17184_v49  ;;  %v775_v46 = vld [vmem:[#allocation5 + $0x11e0] sm:$0xff]  ;;  %v776_v49 = vld [vmem:[#allocation5 + $0x11e8] sm:$0xff] }
 0x1c6   :  { %5316 = vmatprep.subr.bf16.mxu0 %v17191_v50  ;;  %5603 = vmatprep.subr.bf16.mxu1 %v17193_v51  ;;  %v17238_v50 = vcombine.low %v763_v36, %v767_v37  ;;  %v17240_v51 = vcombine.low %v764_v38, %v768_v40  ;;  %v17247_v52 = vcombine.high %v771_v45, %v775_v46  ;;  %v819_v37 = vld [vmem:[#allocation5 + $0x1340] sm:$0xff]  ;;  %v820_v40 = vld [vmem:[#allocation5 + $0x1348] sm:$0xff] }
 0x1c7   :  { %v17249_v53 = vcombine.high %v772_v47, %v776_v49  ;;  %v823_v38 = vld [vmem:[#allocation5 + $0x1360] sm:$0xff] }
 0x1c8   :  { %5308 = vmatmul.mubr.bf16.vlgmr.msra.gmra.mrb[0].mxu0 %v20112_v54  ;;  %5595 = vmatmul.mubr.bf16.vlgmr.msra.gmra.mrb[0].mxu1 %v20112_v54 }
 0x1c9   :  { %5317 = vmatpush1.bf16.msra.mxu0 %v17190_v59  ;;  %5604 = vmatpush1.bf16.msra.mxu1 %v17192_v60  ;;  %v784_v59 = vld [vmem:[#allocation5 + $0x1228] sm:$0xff]  ;;  %v17246_v60 = vcombine.low %v771_v45, %v775_v46  ;;  %v827_v46 = vld [vmem:[#allocation5 + $0x1380] sm:$0xff] }
 0x1ca   :  { %5318 = vmatprep.subr.bf16.mxu0 %v17199_v61  ;;  %5605 = vmatprep.subr.bf16.mxu1 %v17201_v62  ;;  %v17248_v61 = vcombine.low %v772_v47, %v776_v49  ;;  %v17255_v62 = vcombine.high %v779_v55, %v783_v56  ;;  %v17257_v63 = vcombine.high %v780_v58, %v784_v59  ;;  %v831_v47 = vld [vmem:[#allocation5 + $0x13a0] sm:$0xff]  ;;  %v828_v49 = vld [vmem:[#allocation5 + $0x1388] sm:$0xff] }
 0x1cb   :  { %5348 = vmatprep.mubr.bf16.mxu0 %v20114_v1  ;;  %5635 = vmatprep.mubr.bf16.mxu1 %v20114_v1 }
 0x1cd   :  { %5319 = vmatpush1.bf16.msra.mxu0 %v17198_v4  ;;  %5606 = vmatpush1.bf16.msra.mxu1 %v17200_v5  ;;  %v792_v4 = vld [vmem:[#allocation5 + $0x1268] sm:$0xff]  ;;  %v17254_v5 = vcombine.low %v779_v55, %v783_v56  ;;  %v835_v56 = vld [vmem:[#allocation5 + $0x13c0] sm:$0xff] }
 0x1ce   :  { %5320 = vmatprep.subr.bf16.mxu0 %v17207_v6  ;;  %5607 = vmatprep.subr.bf16.mxu1 %v17209_v7  ;;  %v17256_v6 = vcombine.low %v780_v58, %v784_v59  ;;  %v17263_v7 = vcombine.high %v787_v0, %v791_v2  ;;  %v17265_v8 = vcombine.high %v788_v3, %v792_v4  ;;  %v839_v58 = vld [vmem:[#allocation5 + $0x13e0] sm:$0xff]  ;;  %v836_v59 = vld [vmem:[#allocation5 + $0x13c8] sm:$0xff] }
 0x1d1   :  { %5321 = vmatpush1.bf16.msra.mxu0 %v17206_v13  ;;  %5608 = vmatpush1.bf16.msra.mxu1 %v17208_v14  ;;  %v800_v13 = vld [vmem:[#allocation5 + $0x12a8] sm:$0xff]  ;;  %v17262_v14 = vcombine.low %v787_v0, %v791_v2  ;;  %v843_v2 = vld [vmem:[#allocation5 + $0x1400] sm:$0xff] }
 0x1d2   :  { %5322 = vmatprep.subr.bf16.mxu0 %v17215_v15  ;;  %5609 = vmatprep.subr.bf16.mxu1 %v17217_v16  ;;  %v17264_v15 = vcombine.low %v788_v3, %v792_v4  ;;  %v17271_v16 = vcombine.high %v795_v9, %v799_v10  ;;  %v17273_v17 = vcombine.high %v796_v11, %v800_v13  ;;  %v847_v3 = vld [vmem:[#allocation5 + $0x1420] sm:$0xff]  ;;  %v844_v4 = vld [vmem:[#allocation5 + $0x1408] sm:$0xff] }
 0x1d5   :  { %5323 = vmatpush1.bf16.msra.mxu0 %v17214_v21  ;;  %5610 = vmatpush1.bf16.msra.mxu1 %v17216_v22  ;;  %v808_v21 = vld [vmem:[#allocation5 + $0x12e8] sm:$0xff]  ;;  %v17270_v22 = vcombine.low %v795_v9, %v799_v10  ;;  %v17319_v9 = vcombine.high %v843_v2, %v847_v3 }
 0x1d6   :  { %5324 = vmatprep.subr.bf16.mxu0 %v17223_v24  ;;  %5611 = vmatprep.subr.bf16.mxu1 %v17225_v26  ;;  %v17272_v24 = vcombine.low %v796_v11, %v800_v13  ;;  %v17279_v26 = vcombine.high %v803_v18, %v807_v19  ;;  %v17281_v27 = vcombine.high %v804_v20, %v808_v21  ;;  %v851_v11 = vld [vmem:[#allocation5 + $0x1440] sm:$0xff] }
 0x1d7   :  { %v855_v13 = vld [vmem:[#allocation5 + $0x1460] sm:$0xff] }
 0x1d9   :  { %5325 = vmatpush1.bf16.msra.mxu0 %v17222_v31  ;;  %5612 = vmatpush1.bf16.msra.mxu1 %v17224_v32  ;;  %v816_v31 = vld [vmem:[#allocation5 + $0x1328] sm:$0xff]  ;;  %v17278_v32 = vcombine.low %v803_v18, %v807_v19  ;;  %v17318_v18 = vcombine.low %v843_v2, %v847_v3 }
 0x1da   :  { %5326 = vmatprep.subr.bf16.mxu0 %v17231_v33  ;;  %5613 = vmatprep.subr.bf16.mxu1 %v17233_v35  ;;  %v17280_v33 = vcombine.low %v804_v20, %v808_v21  ;;  %v17287_v35 = vcombine.high %v811_v28, %v815_v29  ;;  %v17289_v36 = vcombine.high %v812_v30, %v816_v31  ;;  %v896_v2 = vld [vmem:[#allocation5 + $0x15a8] sm:$0xff] }
 0x1db   :  { %v17327_v20 = vcombine.high %v851_v11, %v855_v13 }
 0x1dd   :  { %5327 = vmatpush1.bf16.msra.mxu0 %v17230_v41  ;;  %5614 = vmatpush1.bf16.msra.mxu1 %v17232_v42  ;;  %v824_v41 = vld [vmem:[#allocation5 + $0x1368] sm:$0xff]  ;;  %v17286_v42 = vcombine.low %v811_v28, %v815_v29  ;;  %v17326_v29 = vcombine.low %v851_v11, %v855_v13 }
 0x1de   :  { %5328 = vmatprep.subr.bf16.mxu0 %v17239_v43  ;;  %5615 = vmatprep.subr.bf16.mxu1 %v17241_v44  ;;  %v17288_v43 = vcombine.low %v812_v30, %v816_v31  ;;  %v17295_v44 = vcombine.high %v819_v37, %v823_v38  ;;  %v17297_v45 = vcombine.high %v820_v40, %v824_v41  ;;  %v864_v28 = vld [vmem:[#allocation5 + $0x14a8] sm:$0xff] }
 0x1e1   :  { %5329 = vmatpush1.bf16.msra.mxu0 %v17238_v50  ;;  %5616 = vmatpush1.bf16.msra.mxu1 %v17240_v51  ;;  %v832_v50 = vld [vmem:[#allocation5 + $0x13a8] sm:$0xff]  ;;  %v17294_v51 = vcombine.low %v819_v37, %v823_v38 }
 0x1e2   :  { %5330 = vmatprep.subr.bf16.mxu0 %v17247_v52  ;;  %5617 = vmatprep.subr.bf16.mxu1 %v17249_v53  ;;  %v17296_v52 = vcombine.low %v820_v40, %v824_v41  ;;  %v17303_v53 = vcombine.high %v827_v46, %v831_v47  ;;  %v17305_v55 = vcombine.high %v828_v49, %v832_v50  ;;  %v872_v37 = vld [vmem:[#allocation5 + $0x14e8] sm:$0xff] }
 0x1e5   :  { %5331 = vmatpush1.bf16.msra.mxu0 %v17246_v60  ;;  %5618 = vmatpush1.bf16.msra.mxu1 %v17248_v61  ;;  %v840_v60 = vld [vmem:[#allocation5 + $0x13e8] sm:$0xff]  ;;  %v17302_v61 = vcombine.low %v827_v46, %v831_v47 }
 0x1e6   :  { %5332 = vmatprep.subr.bf16.mxu0 %v17255_v62  ;;  %5619 = vmatprep.subr.bf16.mxu1 %v17257_v63  ;;  %v17304_v62 = vcombine.low %v828_v49, %v832_v50  ;;  %v17311_v63 = vcombine.high %v835_v56, %v839_v58  ;;  %v17313_v0 = vcombine.high %v836_v59, %v840_v60  ;;  %v880_v46 = vld [vmem:[#allocation5 + $0x1528] sm:$0xff] }
 0x1e9   :  { %5333 = vmatpush1.bf16.msra.mxu0 %v17254_v5  ;;  %5620 = vmatpush1.bf16.msra.mxu1 %v17256_v6  ;;  %v848_v5 = vld [vmem:[#allocation5 + $0x1428] sm:$0xff]  ;;  %v17310_v6 = vcombine.low %v835_v56, %v839_v58 }
 0x1ea   :  { %5334 = vmatprep.subr.bf16.mxu0 %v17263_v7  ;;  %5621 = vmatprep.subr.bf16.mxu1 %v17265_v8  ;;  %v185_v7 = vld [vmem:[#allocation2 + $0x40] sm:$0xff]  ;;  %v17312_v8 = vcombine.low %v836_v59, %v840_v60  ;;  %v17321_v10 = vcombine.high %v844_v4, %v848_v5  ;;  %v17320_v19 = vcombine.low %v844_v4, %v848_v5  ;;  %v888_v56 = vld [vmem:[#allocation5 + $0x1568] sm:$0xff] }
 0x1ed   :  { %5335 = vmatpush1.bf16.msra.mxu0 %v17262_v14  ;;  %5622 = vmatpush1.bf16.msra.mxu1 %v17264_v15  ;;  %v20120_v14 = vpack.c.bf16 %v185_v7, %v185_v7  ;;  %v852_v15 = vld [vmem:[#allocation5 + $0x1448] sm:$0xff]  ;;  %v899_v7 = vld [vmem:[#allocation5 + $0x15c0] sm:$0xff] }
 0x1ee   :  { %5336 = vmatprep.subr.bf16.mxu0 %v17271_v16  ;;  %5623 = vmatprep.subr.bf16.mxu1 %v17273_v17  ;;  %v856_v16 = vld [vmem:[#allocation5 + $0x1468] sm:$0xff]  ;;  %v188_v17 = vld [vmem:[#allocation2 + $0x58] sm:$0xff] }
 0x1ef   :  { %v17329_v21 = vcombine.high %v852_v15, %v856_v16  ;;  %v17328_v30 = vcombine.low %v852_v15, %v856_v16 }
 0x1f1   :  { %5337 = vmatpush1.bf16.msra.mxu0 %v17270_v22  ;;  %5624 = vmatpush1.bf16.msra.mxu1 %v17272_v24  ;;  %v859_v22 = vld [vmem:[#allocation5 + $0x1480] sm:$0xff] }
 0x1f2   :  { %5338 = vmatprep.subr.bf16.mxu0 %v17279_v26  ;;  %5625 = vmatprep.subr.bf16.mxu1 %v17281_v27  ;;  %v863_v24 = vld [vmem:[#allocation5 + $0x14a0] sm:$0xff]  ;;  %v20122_v26 = vpack.c.bf16 %v188_v17, %v188_v17  ;;  %v860_v27 = vld [vmem:[#allocation5 + $0x1488] sm:$0xff] }
 0x1f3   :  { %v17335_v31 = vcombine.high %v859_v22, %v863_v24  ;;  %v17334_v38 = vcombine.low %v859_v22, %v863_v24  ;;  %v17336_v40 = vcombine.low %v860_v27, %v864_v28  ;;  %v907_v17 = vld [vmem:[#allocation5 + $0x1600] sm:$0xff] }
 0x1f5   :  { %5339 = vmatpush1.bf16.msra.mxu0 %v17278_v32  ;;  %5626 = vmatpush1.bf16.msra.mxu1 %v17280_v33  ;;  %v17337_v32 = vcombine.high %v860_v27, %v864_v28  ;;  %v867_v33 = vld [vmem:[#allocation5 + $0x14c0] sm:$0xff] }
 0x1f6   :  { %5340 = vmatprep.subr.bf16.mxu0 %v17287_v35  ;;  %5627 = vmatprep.subr.bf16.mxu1 %v17289_v36  ;;  %v871_v35 = vld [vmem:[#allocation5 + $0x14e0] sm:$0xff]  ;;  %v868_v36 = vld [vmem:[#allocation5 + $0x14c8] sm:$0xff] }
 0x1f7   :  { %v17343_v41 = vcombine.high %v867_v33, %v871_v35  ;;  %v17342_v47 = vcombine.low %v867_v33, %v871_v35  ;;  %v17344_v49 = vcombine.low %v868_v36, %v872_v37  ;;  %v915_v28 = vld [vmem:[#allocation5 + $0x1640] sm:$0xff] }
 0x1f9   :  { %5341 = vmatpush1.bf16.msra.mxu0 %v17286_v42  ;;  %5628 = vmatpush1.bf16.msra.mxu1 %v17288_v43  ;;  %v17345_v42 = vcombine.high %v868_v36, %v872_v37  ;;  %v875_v43 = vld [vmem:[#allocation5 + $0x1500] sm:$0xff] }
 0x1fa   :  { %5342 = vmatprep.subr.bf16.mxu0 %v17295_v44  ;;  %5629 = vmatprep.subr.bf16.mxu1 %v17297_v45  ;;  %v879_v44 = vld [vmem:[#allocation5 + $0x1520] sm:$0xff]  ;;  %v876_v45 = vld [vmem:[#allocation5 + $0x1508] sm:$0xff] }
 0x1fb   :  { %v17351_v50 = vcombine.high %v875_v43, %v879_v44  ;;  %v17350_v58 = vcombine.low %v875_v43, %v879_v44  ;;  %v17352_v59 = vcombine.low %v876_v45, %v880_v46  ;;  %v923_v37 = vld [vmem:[#allocation5 + $0x1680] sm:$0xff] }
 0x1fd   :  { %5343 = vmatpush1.bf16.msra.mxu0 %v17294_v51  ;;  %5630 = vmatpush1.bf16.msra.mxu1 %v17296_v52  ;;  %v17353_v51 = vcombine.high %v876_v45, %v880_v46  ;;  %v883_v52 = vld [vmem:[#allocation5 + $0x1540] sm:$0xff] }
 0x1fe   :  { %5344 = vmatprep.subr.bf16.mxu0 %v17303_v53  ;;  %5631 = vmatprep.subr.bf16.mxu1 %v17305_v55  ;;  %v887_v53 = vld [vmem:[#allocation5 + $0x1560] sm:$0xff]  ;;  %v884_v55 = vld [vmem:[#allocation5 + $0x1548] sm:$0xff] }
 0x1ff   :  { %v17359_v60 = vcombine.high %v883_v52, %v887_v53  ;;  %v17358_v3 = vcombine.low %v883_v52, %v887_v53  ;;  %v17360_v4 = vcombine.low %v884_v55, %v888_v56  ;;  %v931_v46 = vld [vmem:[#allocation5 + $0x16c0] sm:$0xff] }
 0x201   :  { %5345 = vmatpush1.bf16.msra.mxu0 %v17302_v61  ;;  %5632 = vmatpush1.bf16.msra.mxu1 %v17304_v62  ;;  %v17361_v61 = vcombine.high %v884_v55, %v888_v56  ;;  %v891_v62 = vld [vmem:[#allocation5 + $0x1580] sm:$0xff] }
 0x202   :  { %5346 = vmatprep.subr.bf16.mxu0 %v17311_v63  ;;  %5633 = vmatprep.subr.bf16.mxu1 %v17313_v0  ;;  %v895_v63 = vld [vmem:[#allocation5 + $0x15a0] sm:$0xff]  ;;  %v892_v0 = vld [vmem:[#allocation5 + $0x1588] sm:$0xff] }
 0x203   :  { %v17367_v5 = vcombine.high %v891_v62, %v895_v63  ;;  %v17366_v11 = vcombine.low %v891_v62, %v895_v63  ;;  %v17368_v13 = vcombine.low %v892_v0, %v896_v2  ;;  %v939_v56 = vld [vmem:[#allocation5 + $0x1700] sm:$0xff] }
 0x205   :  { %5347 = vmatpush1.bf16.msra.mxu0 %v17310_v6  ;;  %5634 = vmatpush1.bf16.msra.mxu1 %v17312_v8  ;;  %v17369_v6 = vcombine.high %v892_v0, %v896_v2  ;;  %v903_v8 = vld [vmem:[#allocation5 + $0x15e0] sm:$0xff] }
 0x206   :  { %5357 = vmatprep.subr.bf16.mxu0 %v17319_v9  ;;  %5644 = vmatprep.subr.bf16.mxu1 %v17321_v10  ;;  %v900_v9 = vld [vmem:[#allocation5 + $0x15c8] sm:$0xff]  ;;  %v17375_v15 = vcombine.high %v899_v7, %v903_v8  ;;  %v947_v2 = vld [vmem:[#allocation5 + $0x1740] sm:$0xff] }
 0x207   :  { %v904_v10 = vld [vmem:[#allocation5 + $0x15e8] sm:$0xff] }
 0x208   :  { %5349 = vmatmul.mubr.bf16.vlgmr.msra.gmra.mrb[0].mxu0 %v20120_v14  ;;  %5636 = vmatmul.mubr.bf16.vlgmr.msra.gmra.mrb[0].mxu1 %v20120_v14  ;;  %v17377_v16 = vcombine.high %v900_v9, %v904_v10  ;;  %v17376_v22 = vcombine.low %v900_v9, %v904_v10  ;;  %v955_v10 = vld [vmem:[#allocation5 + $0x1780] sm:$0xff] }
 0x209   :  { %5358 = vmatpush1.bf16.msra.mxu0 %v17318_v18  ;;  %5645 = vmatpush1.bf16.msra.mxu1 %v17320_v19  ;;  %v911_v18 = vld [vmem:[#allocation5 + $0x1620] sm:$0xff]  ;;  %v908_v19 = vld [vmem:[#allocation5 + $0x1608] sm:$0xff] }
 0x20a   :  { %5359 = vmatprep.subr.bf16.mxu0 %v17327_v20  ;;  %5646 = vmatprep.subr.bf16.mxu1 %v17329_v21  ;;  %v912_v20 = vld [vmem:[#allocation5 + $0x1628] sm:$0xff]  ;;  %v17374_v21 = vcombine.low %v899_v7, %v903_v8  ;;  %v17383_v24 = vcombine.high %v907_v17, %v911_v18 }
 0x20b   :  { %5389 = vmatprep.mubr.bf16.mxu0 %v20122_v26  ;;  %5676 = vmatprep.mubr.bf16.mxu1 %v20122_v26  ;;  %v17385_v27 = vcombine.high %v908_v19, %v912_v20  ;;  %v17384_v33 = vcombine.low %v908_v19, %v912_v20  ;;  %v963_v20 = vld [vmem:[#allocation5 + $0x17c0] sm:$0xff] }
 0x20d   :  { %5360 = vmatpush1.bf16.msra.mxu0 %v17326_v29  ;;  %5647 = vmatpush1.bf16.msra.mxu1 %v17328_v30  ;;  %v919_v29 = vld [vmem:[#allocation5 + $0x1660] sm:$0xff]  ;;  %v916_v30 = vld [vmem:[#allocation5 + $0x1648] sm:$0xff] }
 0x20e   :  { %5361 = vmatprep.subr.bf16.mxu0 %v17335_v31  ;;  %5648 = vmatprep.subr.bf16.mxu1 %v17337_v32  ;;  %v920_v31 = vld [vmem:[#allocation5 + $0x1668] sm:$0xff]  ;;  %v17382_v32 = vcombine.low %v907_v17, %v911_v18  ;;  %v17391_v35 = vcombine.high %v915_v28, %v919_v29 }
 0x20f   :  { %v17393_v36 = vcombine.high %v916_v30, %v920_v31  ;;  %v17392_v43 = vcombine.low %v916_v30, %v920_v31  ;;  %v971_v31 = vld [vmem:[#allocation5 + $0x1800] sm:$0xff] }
 0x211   :  { %5362 = vmatpush1.bf16.msra.mxu0 %v17334_v38  ;;  %5649 = vmatpush1.bf16.msra.mxu1 %v17336_v40  ;;  %v927_v38 = vld [vmem:[#allocation5 + $0x16a0] sm:$0xff]  ;;  %v924_v40 = vld [vmem:[#allocation5 + $0x1688] sm:$0xff] }
 0x212   :  { %5363 = vmatprep.subr.bf16.mxu0 %v17343_v41  ;;  %5650 = vmatprep.subr.bf16.mxu1 %v17345_v42  ;;  %v928_v41 = vld [vmem:[#allocation5 + $0x16a8] sm:$0xff]  ;;  %v17390_v42 = vcombine.low %v915_v28, %v919_v29  ;;  %v17399_v44 = vcombine.high %v923_v37, %v927_v38 }
 0x213   :  { %v17401_v45 = vcombine.high %v924_v40, %v928_v41  ;;  %v17400_v52 = vcombine.low %v924_v40, %v928_v41 }
 0x215   :  { %5364 = vmatpush1.bf16.msra.mxu0 %v17342_v47  ;;  %5651 = vmatpush1.bf16.msra.mxu1 %v17344_v49  ;;  %v935_v47 = vld [vmem:[#allocation5 + $0x16e0] sm:$0xff]  ;;  %v932_v49 = vld [vmem:[#allocation5 + $0x16c8] sm:$0xff] }
 0x216   :  { %5365 = vmatprep.subr.bf16.mxu0 %v17351_v50  ;;  %5652 = vmatprep.subr.bf16.mxu1 %v17353_v51  ;;  %v936_v50 = vld [vmem:[#allocation5 + $0x16e8] sm:$0xff]  ;;  %v17398_v51 = vcombine.low %v923_v37, %v927_v38  ;;  %v17407_v53 = vcombine.high %v931_v46, %v935_v47 }
 0x217   :  { %v17409_v55 = vcombine.high %v932_v49, %v936_v50  ;;  %v17408_v62 = vcombine.low %v932_v49, %v936_v50  ;;  %v187_v37 = vld [vmem:[#allocation2 + $0x50] sm:$0xff] }
 0x219   :  { %5366 = vmatpush1.bf16.msra.mxu0 %v17350_v58  ;;  %5653 = vmatpush1.bf16.msra.mxu1 %v17352_v59  ;;  %v943_v58 = vld [vmem:[#allocation5 + $0x1720] sm:$0xff]  ;;  %v940_v59 = vld [vmem:[#allocation5 + $0x1708] sm:$0xff] }
 0x21a   :  { %5367 = vmatprep.subr.bf16.mxu0 %v17359_v60  ;;  %5654 = vmatprep.subr.bf16.mxu1 %v17361_v61  ;;  %v944_v60 = vld [vmem:[#allocation5 + $0x1728] sm:$0xff]  ;;  %v17406_v61 = vcombine.low %v931_v46, %v935_v47  ;;  %v17415_v63 = vcombine.high %v939_v56, %v943_v58 }
 0x21b   :  { %v17417_v0 = vcombine.high %v940_v59, %v944_v60  ;;  %v17416_v7 = vcombine.low %v940_v59, %v944_v60  ;;  %v984_v46 = vld [vmem:[#allocation5 + $0x1868] sm:$0xff] }
 0x21d   :  { %5368 = vmatpush1.bf16.msra.mxu0 %v17358_v3  ;;  %5655 = vmatpush1.bf16.msra.mxu1 %v17360_v4  ;;  %v951_v3 = vld [vmem:[#allocation5 + $0x1760] sm:$0xff]  ;;  %v948_v4 = vld [vmem:[#allocation5 + $0x1748] sm:$0xff] }
 0x21e   :  { %5369 = vmatprep.subr.bf16.mxu0 %v17367_v5  ;;  %5656 = vmatprep.subr.bf16.mxu1 %v17369_v6  ;;  %v952_v5 = vld [vmem:[#allocation5 + $0x1768] sm:$0xff]  ;;  %v17414_v6 = vcombine.low %v939_v56, %v943_v58  ;;  %v17423_v8 = vcombine.high %v947_v2, %v951_v3 }
 0x21f   :  { %v17425_v9 = vcombine.high %v948_v4, %v952_v5  ;;  %v17424_v17 = vcombine.low %v948_v4, %v952_v5  ;;  %v992_v56 = vld [vmem:[#allocation5 + $0x18a8] sm:$0xff] }
 0x221   :  { %5370 = vmatpush1.bf16.msra.mxu0 %v17366_v11  ;;  %5657 = vmatpush1.bf16.msra.mxu1 %v17368_v13  ;;  %v959_v11 = vld [vmem:[#allocation5 + $0x17a0] sm:$0xff]  ;;  %v956_v13 = vld [vmem:[#allocation5 + $0x1788] sm:$0xff] }
 0x222   :  { %5371 = vmatprep.subr.bf16.mxu0 %v17375_v15  ;;  %5658 = vmatprep.subr.bf16.mxu1 %v17377_v16  ;;  %v960_v15 = vld [vmem:[#allocation5 + $0x17a8] sm:$0xff]  ;;  %v17422_v16 = vcombine.low %v947_v2, %v951_v3  ;;  %v17431_v18 = vcombine.high %v955_v10, %v959_v11 }
 0x223   :  { %v17433_v19 = vcombine.high %v956_v13, %v960_v15  ;;  %v17432_v28 = vcombine.low %v956_v13, %v960_v15  ;;  %v996_v2 = vld [vmem:[#allocation5 + $0x18c8] sm:$0xff] }
 0x224   :  { %v1000_v3 = vld [vmem:[#allocation5 + $0x18e8] sm:$0xff] }
 0x225   :  { %5372 = vmatpush1.bf16.msra.mxu0 %v17374_v21  ;;  %5659 = vmatpush1.bf16.msra.mxu1 %v17376_v22  ;;  %v967_v21 = vld [vmem:[#allocation5 + $0x17e0] sm:$0xff]  ;;  %v964_v22 = vld [vmem:[#allocation5 + $0x17c8] sm:$0xff]  ;;  %v17472_v15 = vcombine.low %v996_v2, %v1000_v3 }
 0x226   :  { %5373 = vmatprep.subr.bf16.mxu0 %v17383_v24  ;;  %5660 = vmatprep.subr.bf16.mxu1 %v17385_v27  ;;  %v968_v24 = vld [vmem:[#allocation5 + $0x17e8] sm:$0xff]  ;;  %v17430_v27 = vcombine.low %v955_v10, %v959_v11  ;;  %v17439_v29 = vcombine.high %v963_v20, %v967_v21 }
 0x227   :  { %v17441_v30 = vcombine.high %v964_v22, %v968_v24  ;;  %v17440_v38 = vcombine.low %v964_v22, %v968_v24  ;;  %v1004_v10 = vld [vmem:[#allocation5 + $0x1908] sm:$0xff] }
 0x228   :  { %v1008_v11 = vld [vmem:[#allocation5 + $0x1928] sm:$0xff] }
 0x229   :  { %5374 = vmatpush1.bf16.msra.mxu0 %v17382_v32  ;;  %5661 = vmatpush1.bf16.msra.mxu1 %v17384_v33  ;;  %v975_v32 = vld [vmem:[#allocation5 + $0x1820] sm:$0xff]  ;;  %v972_v33 = vld [vmem:[#allocation5 + $0x1808] sm:$0xff]  ;;  %v17480_v24 = vcombine.low %v1004_v10, %v1008_v11 }
 0x22a   :  { %5375 = vmatprep.subr.bf16.mxu0 %v17391_v35  ;;  %5662 = vmatprep.subr.bf16.mxu1 %v17393_v36  ;;  %v976_v35 = vld [vmem:[#allocation5 + $0x1828] sm:$0xff]  ;;  %v17438_v36 = vcombine.low %v963_v20, %v967_v21  ;;  %v17447_v40 = vcombine.high %v971_v31, %v975_v32  ;;  %v17446_v47 = vcombine.low %v971_v31, %v975_v32 }
 0x22b   :  { %v17449_v41 = vcombine.high %v972_v33, %v976_v35  ;;  %v17448_v49 = vcombine.low %v972_v33, %v976_v35  ;;  %v1012_v20 = vld [vmem:[#allocation5 + $0x1948] sm:$0xff] }
 0x22c   :  { %v1016_v21 = vld [vmem:[#allocation5 + $0x1968] sm:$0xff] }
 0x22d   :  { %5376 = vmatpush1.bf16.msra.mxu0 %v17390_v42  ;;  %5663 = vmatpush1.bf16.msra.mxu1 %v17392_v43  ;;  %v979_v42 = vld [vmem:[#allocation5 + $0x1840] sm:$0xff]  ;;  %v17488_v32 = vcombine.low %v1012_v20, %v1016_v21 }
 0x22e   :  { %5377 = vmatprep.subr.bf16.mxu0 %v17399_v44  ;;  %5664 = vmatprep.subr.bf16.mxu1 %v17401_v45  ;;  %v983_v43 = vld [vmem:[#allocation5 + $0x1860] sm:$0xff]  ;;  %v20128_v44 = vpack.c.bf16 %v187_v37, %v187_v37  ;;  %v980_v45 = vld [vmem:[#allocation5 + $0x1848] sm:$0xff] }
 0x22f   :  { %v17455_v50 = vcombine.high %v979_v42, %v983_v43  ;;  %v17454_v58 = vcombine.low %v979_v42, %v983_v43  ;;  %v17456_v59 = vcombine.low %v980_v45, %v984_v46  ;;  %v210_v42 = vld [vmem:[#allocation5 + $0x38] sm:$0xff] }
 0x230   :  { %v189_v43 = vld [vmem:[#allocation2 + $0x60] sm:$0xff] }
 0x231   :  { %5378 = vmatpush1.bf16.msra.mxu0 %v17398_v51  ;;  %5665 = vmatpush1.bf16.msra.mxu1 %v17400_v52  ;;  %v17457_v51 = vcombine.high %v980_v45, %v984_v46  ;;  %v987_v52 = vld [vmem:[#allocation5 + $0x1880] sm:$0xff] }
 0x232   :  { %5379 = vmatprep.subr.bf16.mxu0 %v17407_v53  ;;  %5666 = vmatprep.subr.bf16.mxu1 %v17409_v55  ;;  %v991_v53 = vld [vmem:[#allocation5 + $0x18a0] sm:$0xff]  ;;  %v988_v55 = vld [vmem:[#allocation5 + $0x1888] sm:$0xff] }
 0x233   :  { %v17463_v60 = vcombine.high %v987_v52, %v991_v53  ;;  %v17462_v4 = vcombine.low %v987_v52, %v991_v53  ;;  %v17464_v5 = vcombine.low %v988_v55, %v992_v56  ;;  %v20138_v52 = vpack.c.bf16 %v189_v43, %v189_v43  ;;  %v214_v53 = vld [vmem:[#allocation5 + $0x58] sm:$0xff] }
 0x235   :  { %5380 = vmatpush1.bf16.msra.mxu0 %v17406_v61  ;;  %5667 = vmatpush1.bf16.msra.mxu1 %v17408_v62  ;;  %v17465_v61 = vcombine.high %v988_v55, %v992_v56  ;;  %v995_v62 = vld [vmem:[#allocation5 + $0x18c0] sm:$0xff]  ;;  %v218_v55 = vld [vmem:[#allocation5 + $0x78] sm:$0xff] }
 0x236   :  { %5381 = vmatprep.subr.bf16.mxu0 %v17415_v63  ;;  %5668 = vmatprep.subr.bf16.mxu1 %v17417_v0  ;;  %v999_v63 = vld [vmem:[#allocation5 + $0x18e0] sm:$0xff]  ;;  %v19881_v0 = vmov 0  }
 0x237   :  { %v17470_v13 = vcombine.low %v995_v62, %v999_v63 }
 0x239   :  { %5382 = vmatpush1.bf16.msra.mxu0 %v17414_v6  ;;  %5669 = vmatpush1.bf16.msra.mxu1 %v17416_v7  ;;  %v17471_v6 = vcombine.high %v995_v62, %v999_v63  ;;  %v17473_v7 = vcombine.high %v996_v2, %v1000_v3  ;;  %v225_v62 = vld [vmem:[#allocation5 + $0xb0] sm:$0xff]  ;;  %v222_v63 = vld [vmem:[#allocation5 + $0x98] sm:$0xff] }
 0x23a   :  { %5383 = vmatprep.subr.bf16.mxu0 %v17423_v8  ;;  %5670 = vmatprep.subr.bf16.mxu1 %v17425_v9  ;;  %v1003_v8 = vld [vmem:[#allocation5 + $0x1900] sm:$0xff]  ;;  %v226_v2 = vld [vmem:[#allocation5 + $0xb8] sm:$0xff] }
 0x23b   :  { %v1007_v9 = vld [vmem:[#allocation5 + $0x1920] sm:$0xff] }
 0x23c   :  { %v17478_v22 = vcombine.low %v1003_v8, %v1007_v9 }
 0x23d   :  { %5384 = vmatpush1.bf16.msra.mxu0 %v17422_v16  ;;  %5671 = vmatpush1.bf16.msra.mxu1 %v17424_v17  ;;  %v17479_v16 = vcombine.high %v1003_v8, %v1007_v9  ;;  %v17481_v17 = vcombine.high %v1004_v10, %v1008_v11  ;;  %v233_v8 = vld [vmem:[#allocation5 + $0xf0] sm:$0xff]  ;;  %v230_v9 = vld [vmem:[#allocation5 + $0xd8] sm:$0xff] }
 0x23e   :  { %5385 = vmatprep.subr.bf16.mxu0 %v17431_v18  ;;  %5672 = vmatprep.subr.bf16.mxu1 %v17433_v19  ;;  %v1011_v18 = vld [vmem:[#allocation5 + $0x1940] sm:$0xff]  ;;  %v234_v10 = vld [vmem:[#allocation5 + $0xf8] sm:$0xff] }
 0x23f   :  { %v1015_v19 = vld [vmem:[#allocation5 + $0x1960] sm:$0xff] }
 0x240   :  { %v17486_v31 = vcombine.low %v1011_v18, %v1015_v19 }
 0x241   :  { %5386 = vmatpush1.bf16.msra.mxu0 %v17430_v27  ;;  %5673 = vmatpush1.bf16.msra.mxu1 %v17432_v28  ;;  %v17487_v27 = vcombine.high %v1011_v18, %v1015_v19  ;;  %v17489_v28 = vcombine.high %v1012_v20, %v1016_v21  ;;  %v241_v18 = vld [vmem:[#allocation5 + $0x130] sm:$0xff]  ;;  %v238_v19 = vld [vmem:[#allocation5 + $0x118] sm:$0xff] }
 0x242   :  { %5387 = vmatprep.subr.bf16.mxu0 %v17439_v29  ;;  %5674 = vmatprep.subr.bf16.mxu1 %v17441_v30  ;;  %v1019_v29 = vld [vmem:[#allocation5 + $0x1980] sm:$0xff]  ;;  %v1020_v30 = vld [vmem:[#allocation5 + $0x1988] sm:$0xff]  ;;  %v242_v20 = vld [vmem:[#allocation5 + $0x138] sm:$0xff] }
 0x243   :  { %v17495_v33 = vcombine.high %v1019_v29, %v1019_v29  ;;  %v17494_v35 = vcombine.low %v1019_v29, %v1019_v29  ;;  %v17496_v37 = vcombine.low %v1020_v30, %v1020_v30  ;;  %v246_v29 = vld [vmem:[#allocation5 + $0x158] sm:$0xff] }
 0x245   :  { %5388 = vmatpush1.bf16.msra.mxu0 %v17438_v36  ;;  %5675 = vmatpush1.bf16.msra.mxu1 %v17440_v38  ;;  %v17497_v36 = vcombine.high %v1020_v30, %v1020_v30  ;;  %v205_v38 = vld [vmem:[#allocation5 + $0x10] sm:$0xff]  ;;  %v5129_v45 = vsel %vm5127_vm0, %v17494_v35, 0  ;;  %v250_v30 = vld [vmem:[#allocation5 + $0x178] sm:$0xff] }
 0x246   :  { %5398 = vmatprep.subr.bf16.mxu0 %v17447_v40  ;;  %5685 = vmatprep.subr.bf16.mxu1 %v17449_v41  ;;  %v209_v40 = vld [vmem:[#allocation5 + $0x30] sm:$0xff]  ;;  %v206_v41 = vld [vmem:[#allocation5 + $0x18] sm:$0xff]  ;;  %v16725_v35 = vcombine.high %v246_v29, %v250_v30 }
 0x247   :  { %v16683_v46 = vcombine.high %v205_v38, %v209_v40  ;;  %v16682_v56 = vcombine.low %v205_v38, %v209_v40  ;;  %v254_v38 = vld [vmem:[#allocation5 + $0x198] sm:$0xff] }
 0x248   :  { %5390 = vmatmul.mubr.bf16.vlgmr.msra.gmra.mrb[0].mxu0 %v20128_v44  ;;  %5677 = vmatmul.mubr.bf16.vlgmr.msra.gmra.mrb[0].mxu1 %v20128_v44  ;;  %v258_v40 = vld [vmem:[#allocation5 + $0x1b8] sm:$0xff] }
 0x249   :  { %5399 = vmatpush1.bf16.msra.mxu0 %v17446_v47  ;;  %5686 = vmatpush1.bf16.msra.mxu1 %v17448_v49  ;;  %v5135_v47 = vsel %vm5127_vm0, %v17496_v37, 0  ;;  %v16685_v49 = vcombine.high %v206_v41, %v210_v42  ;;  %v257_v37 = vld [vmem:[#allocation5 + $0x1b0] sm:$0xff] }
 0x24a   :  { %5400 = vmatprep.subr.bf16.mxu0 %v17455_v50  ;;  %5687 = vmatprep.subr.bf16.mxu1 %v17457_v51  ;;  %v213_v50 = vld [vmem:[#allocation5 + $0x50] sm:$0xff] }
 0x24b   :  { %5430 = vmatprep.mubr.bf16.mxu0 %v19881_v0  ;;  %5717 = vmatprep.mubr.bf16.mxu1 %v19881_v0  ;;  %v217_v51 = vld [vmem:[#allocation5 + $0x70] sm:$0xff] }
 0x24c   :  { %v16690_v3 = vcombine.low %v213_v50, %v217_v51 }
 0x24d   :  { %5401 = vmatpush1.bf16.msra.mxu0 %v17454_v58  ;;  %5688 = vmatpush1.bf16.msra.mxu1 %v17456_v59  ;;  %v16684_v58 = vcombine.low %v206_v41, %v210_v42  ;;  %v16691_v59 = vcombine.high %v213_v50, %v217_v51  ;;  %v16724_v42 = vcombine.low %v246_v29, %v250_v30  ;;  %v266_v50 = vld [vmem:[#allocation5 + $0x1f8] sm:$0xff] }
 0x24e   :  { %5402 = vmatprep.subr.bf16.mxu0 %v17463_v60  ;;  %5689 = vmatprep.subr.bf16.mxu1 %v17465_v61  ;;  %v16693_v60 = vcombine.high %v214_v53, %v218_v55  ;;  %v221_v61 = vld [vmem:[#allocation5 + $0x90] sm:$0xff] }
 0x24f   :  { %v16698_v11 = vcombine.low %v221_v61, %v225_v62 }
 0x251   :  { %5403 = vmatpush1.bf16.msra.mxu0 %v17462_v4  ;;  %5690 = vmatpush1.bf16.msra.mxu1 %v17464_v5  ;;  %v16692_v4 = vcombine.low %v214_v53, %v218_v55  ;;  %v16699_v5 = vcombine.high %v221_v61, %v225_v62  ;;  %v16732_v53 = vcombine.low %v254_v38, %v258_v40  ;;  %v274_v61 = vld [vmem:[#allocation5 + $0x238] sm:$0xff] }
 0x252   :  { %5404 = vmatprep.subr.bf16.mxu0 %v17471_v6  ;;  %5691 = vmatprep.subr.bf16.mxu1 %v17473_v7  ;;  %v16701_v6 = vcombine.high %v222_v63, %v226_v2  ;;  %v229_v7 = vld [vmem:[#allocation5 + $0xd0] sm:$0xff] }
 0x253   :  { %v16706_v21 = vcombine.low %v229_v7, %v233_v8 }
 0x255   :  { %5405 = vmatpush1.bf16.msra.mxu0 %v17470_v13  ;;  %5692 = vmatpush1.bf16.msra.mxu1 %v17472_v15  ;;  %v16700_v13 = vcombine.low %v222_v63, %v226_v2  ;;  %v16707_v15 = vcombine.high %v229_v7, %v233_v8  ;;  %v282_v7 = vld [vmem:[#allocation5 + $0x278] sm:$0xff] }
 0x256   :  { %5406 = vmatprep.subr.bf16.mxu0 %v17479_v16  ;;  %5693 = vmatprep.subr.bf16.mxu1 %v17481_v17  ;;  %v16709_v16 = vcombine.high %v230_v9, %v234_v10  ;;  %v237_v17 = vld [vmem:[#allocation5 + $0x110] sm:$0xff] }
 0x259   :  { %5407 = vmatpush1.bf16.msra.mxu0 %v17478_v22  ;;  %5694 = vmatpush1.bf16.msra.mxu1 %v17480_v24  ;;  %v16708_v22 = vcombine.low %v230_v9, %v234_v10  ;;  %v16715_v24 = vcombine.high %v237_v17, %v241_v18 }
 0x25a   :  { %5408 = vmatprep.subr.bf16.mxu0 %v17487_v27  ;;  %5695 = vmatprep.subr.bf16.mxu1 %v17489_v28  ;;  %v245_v27 = vld [vmem:[#allocation5 + $0x150] sm:$0xff] }
 0x25b   :  { %v249_v28 = vld [vmem:[#allocation5 + $0x170] sm:$0xff] }
 0x25c   :  { %v16722_v41 = vcombine.low %v245_v27, %v249_v28 }
 0x25d   :  { %5409 = vmatpush1.bf16.msra.mxu0 %v17486_v31  ;;  %5696 = vmatpush1.bf16.msra.mxu1 %v17488_v32  ;;  %v16714_v31 = vcombine.low %v237_v17, %v241_v18  ;;  %v16716_v32 = vcombine.low %v238_v19, %v242_v20  ;;  %v290_v17 = vld [vmem:[#allocation5 + $0x2b8] sm:$0xff] }
 0x25e   :  { %17502 = vmatprep.subr.msk.bf16.mxu0 %vm5127_vm0, %v17495_v33  ;;  %17504 = vmatprep.subr.msk.bf16.mxu1 %vm5127_vm0, %v17497_v36  ;;  %v16723_v33 = vcombine.high %v245_v27, %v249_v28  ;;  %v253_v36 = vld [vmem:[#allocation5 + $0x190] sm:$0xff]  ;;  %v298_v27 = vld [vmem:[#allocation5 + $0x2f8] sm:$0xff] }
 0x25f   :  { %v16731_v43 = vcombine.high %v253_v36, %v257_v37  ;;  %v16730_v51 = vcombine.low %v253_v36, %v257_v37  ;;  %v306_v36 = vld [vmem:[#allocation5 + $0x338] sm:$0xff] }
 0x261   :  { %5411 = vmatpush1.bf16.msra.mxu0 %v5129_v45  ;;  %5698 = vmatpush1.bf16.msra.mxu1 %v5135_v47  ;;  %v16733_v45 = vcombine.high %v254_v38, %v258_v40  ;;  %v265_v47 = vld [vmem:[#allocation5 + $0x1f0] sm:$0xff] }
 0x262   :  { %5726 = vmatprep.subr.bf16.mxu0 %v16683_v46  ;;  %6013 = vmatprep.subr.bf16.mxu1 %v16685_v49  ;;  %v261_v46 = vld [vmem:[#allocation5 + $0x1d0] sm:$0xff]  ;;  %v262_v49 = vld [vmem:[#allocation5 + $0x1d8] sm:$0xff] }
 0x263   :  { %v16739_v55 = vcombine.high %v261_v46, %v265_v47  ;;  %v16738_v62 = vcombine.low %v261_v46, %v265_v47  ;;  %v16740_v63 = vcombine.low %v262_v49, %v266_v50  ;;  %v314_v46 = vld [vmem:[#allocation5 + $0x378] sm:$0xff] }
 0x264   :  { %17503 = vmatmul.mubr.msk.bf16.vlgmr.msra.gmra.mrb[0].mxu0 %vm5123_vm1, %v20138_v52  ;;  %17505 = vmatmul.mubr.msk.bf16.vlgmr.msra.gmra.mrb[0].mxu1 %vm5123_vm1, %v20138_v52 }
 0x265   :  { %5727 = vmatpush1.bf16.msra.mxu0 %v16682_v56  ;;  %6014 = vmatpush1.bf16.msra.mxu1 %v16684_v58  ;;  %v16741_v56 = vcombine.high %v262_v49, %v266_v50  ;;  %v269_v58 = vld [vmem:[#allocation5 + $0x210] sm:$0xff] }
 0x266   :  { %5728 = vmatprep.subr.bf16.mxu0 %v16691_v59  ;;  %6015 = vmatprep.subr.bf16.mxu1 %v16693_v60  ;;  %v273_v59 = vld [vmem:[#allocation5 + $0x230] sm:$0xff]  ;;  %v270_v60 = vld [vmem:[#allocation5 + $0x218] sm:$0xff] }
 0x267   :  { %5758 = vmatprep.mubr.bf16.mxu0 %v20084_v57  ;;  %6045 = vmatprep.mubr.bf16.mxu1 %v20084_v57  ;;  %v16717_v57 = vcombine.high %v238_v19, %v242_v20  ;;  %v16747_v2 = vcombine.high %v269_v58, %v273_v59  ;;  %v16746_v8 = vcombine.low %v269_v58, %v273_v59  ;;  %v322_v58 = vld [vmem:[#allocation5 + $0x3b8] sm:$0xff] }
 0x268   :  { %v16748_v9 = vcombine.low %v270_v60, %v274_v61 }
 0x269   :  { %5729 = vmatpush1.bf16.msra.mxu0 %v16690_v3  ;;  %6016 = vmatpush1.bf16.msra.mxu1 %v16692_v4  ;;  %v16749_v3 = vcombine.high %v270_v60, %v274_v61  ;;  %v277_v4 = vld [vmem:[#allocation5 + $0x250] sm:$0xff] }
 0x26a   :  { %5730 = vmatprep.subr.bf16.mxu0 %v16699_v5  ;;  %6017 = vmatprep.subr.bf16.mxu1 %v16701_v6  ;;  %v281_v5 = vld [vmem:[#allocation5 + $0x270] sm:$0xff]  ;;  %v278_v6 = vld [vmem:[#allocation5 + $0x258] sm:$0xff] }
 0x26b   :  { %v16755_v10 = vcombine.high %v277_v4, %v281_v5  ;;  %v16754_v18 = vcombine.low %v277_v4, %v281_v5  ;;  %v16756_v19 = vcombine.low %v278_v6, %v282_v7  ;;  %v330_v4 = vld [vmem:[#allocation5 + $0x3f8] sm:$0xff] }
 0x26d   :  { %5731 = vmatpush1.bf16.msra.mxu0 %v16698_v11  ;;  %6018 = vmatpush1.bf16.msra.mxu1 %v16700_v13  ;;  %v16757_v11 = vcombine.high %v278_v6, %v282_v7  ;;  %v285_v13 = vld [vmem:[#allocation5 + $0x290] sm:$0xff] }
 0x26e   :  { %5732 = vmatprep.subr.bf16.mxu0 %v16707_v15  ;;  %6019 = vmatprep.subr.bf16.mxu1 %v16709_v16  ;;  %v289_v15 = vld [vmem:[#allocation5 + $0x2b0] sm:$0xff]  ;;  %v286_v16 = vld [vmem:[#allocation5 + $0x298] sm:$0xff] }
 0x26f   :  { %v16763_v20 = vcombine.high %v285_v13, %v289_v15  ;;  %v16762_v28 = vcombine.low %v285_v13, %v289_v15  ;;  %v16764_v29 = vcombine.low %v286_v16, %v290_v17  ;;  %v338_v13 = vld [vmem:[#allocation5 + $0x438] sm:$0xff] }
 0x271   :  { %5733 = vmatpush1.bf16.msra.mxu0 %v16706_v21  ;;  %6020 = vmatpush1.bf16.msra.mxu1 %v16708_v22  ;;  %v16765_v21 = vcombine.high %v286_v16, %v290_v17  ;;  %v293_v22 = vld [vmem:[#allocation5 + $0x2d0] sm:$0xff] }
 0x272   :  { %5734 = vmatprep.subr.bf16.mxu0 %v16715_v24  ;;  %6021 = vmatprep.subr.bf16.mxu1 %v16717_v57  ;;  %v297_v24 = vld [vmem:[#allocation5 + $0x2f0] sm:$0xff]  ;;  %v294_v57 = vld [vmem:[#allocation5 + $0x2d8] sm:$0xff] }
 0x273   :  { %v16771_v30 = vcombine.high %v293_v22, %v297_v24  ;;  %v16770_v37 = vcombine.low %v293_v22, %v297_v24  ;;  %v16772_v38 = vcombine.low %v294_v57, %v298_v27  ;;  %v346_v22 = vld [vmem:[#allocation5 + $0x478] sm:$0xff] }
 0x275   :  { %5735 = vmatpush1.bf16.msra.mxu0 %v16714_v31  ;;  %6022 = vmatpush1.bf16.msra.mxu1 %v16716_v32  ;;  %v16773_v31 = vcombine.high %v294_v57, %v298_v27  ;;  %v301_v32 = vld [vmem:[#allocation5 + $0x310] sm:$0xff] }
 0x276   :  { %5736 = vmatprep.subr.bf16.mxu0 %v16723_v33  ;;  %6023 = vmatprep.subr.bf16.mxu1 %v16725_v35  ;;  %v305_v33 = vld [vmem:[#allocation5 + $0x330] sm:$0xff]  ;;  %v302_v35 = vld [vmem:[#allocation5 + $0x318] sm:$0xff] }
 0x277   :  { %v16779_v40 = vcombine.high %v301_v32, %v305_v33  ;;  %v16778_v47 = vcombine.low %v301_v32, %v305_v33  ;;  %v16780_v49 = vcombine.low %v302_v35, %v306_v36  ;;  %v354_v32 = vld [vmem:[#allocation5 + $0x4b8] sm:$0xff] }
 0x279   :  { %5737 = vmatpush1.bf16.msra.mxu0 %v16722_v41  ;;  %6024 = vmatpush1.bf16.msra.mxu1 %v16724_v42  ;;  %v16781_v41 = vcombine.high %v302_v35, %v306_v36  ;;  %v309_v42 = vld [vmem:[#allocation5 + $0x350] sm:$0xff] }
 0x27a   :  { %5738 = vmatprep.subr.bf16.mxu0 %v16731_v43  ;;  %6025 = vmatprep.subr.bf16.mxu1 %v16733_v45  ;;  %v313_v43 = vld [vmem:[#allocation5 + $0x370] sm:$0xff]  ;;  %v310_v45 = vld [vmem:[#allocation5 + $0x358] sm:$0xff] }
 0x27b   :  { %v16787_v50 = vcombine.high %v309_v42, %v313_v43  ;;  %v16786_v59 = vcombine.low %v309_v42, %v313_v43  ;;  %v16788_v60 = vcombine.low %v310_v45, %v314_v46  ;;  %v362_v42 = vld [vmem:[#allocation5 + $0x4f8] sm:$0xff] }
 0x27d   :  { %5739 = vmatpush1.bf16.msra.mxu0 %v16730_v51  ;;  %6026 = vmatpush1.bf16.msra.mxu1 %v16732_v53  ;;  %v16789_v51 = vcombine.high %v310_v45, %v314_v46  ;;  %v317_v53 = vld [vmem:[#allocation5 + $0x390] sm:$0xff] }
 0x27e   :  { %5740 = vmatprep.subr.bf16.mxu0 %v16739_v55  ;;  %6027 = vmatprep.subr.bf16.mxu1 %v16741_v56  ;;  %v321_v55 = vld [vmem:[#allocation5 + $0x3b0] sm:$0xff]  ;;  %v318_v56 = vld [vmem:[#allocation5 + $0x398] sm:$0xff] }
 0x27f   :  { %v16795_v61 = vcombine.high %v317_v53, %v321_v55  ;;  %v16794_v5 = vcombine.low %v317_v53, %v321_v55  ;;  %v16796_v6 = vcombine.low %v318_v56, %v322_v58 }
 0x281   :  { %5741 = vmatpush1.bf16.msra.mxu0 %v16738_v62  ;;  %6028 = vmatpush1.bf16.msra.mxu1 %v16740_v63  ;;  %v16797_v62 = vcombine.high %v318_v56, %v322_v58  ;;  %v325_v63 = vld [vmem:[#allocation5 + $0x3d0] sm:$0xff] }
 0x282   :  { %5742 = vmatprep.subr.bf16.mxu0 %v16747_v2  ;;  %6029 = vmatprep.subr.bf16.mxu1 %v16749_v3  ;;  %v329_v2 = vld [vmem:[#allocation5 + $0x3f0] sm:$0xff]  ;;  %v326_v3 = vld [vmem:[#allocation5 + $0x3d8] sm:$0xff] }
 0x283   :  { %v16803_v7 = vcombine.high %v325_v63, %v329_v2  ;;  %v16802_v15 = vcombine.low %v325_v63, %v329_v2  ;;  %v16804_v16 = vcombine.low %v326_v3, %v330_v4  ;;  %v373_v58 = vld [vmem:[#allocation5 + $0x550] sm:$0xff] }
 0x285   :  { %5743 = vmatpush1.bf16.msra.mxu0 %v16746_v8  ;;  %6030 = vmatpush1.bf16.msra.mxu1 %v16748_v9  ;;  %v16805_v8 = vcombine.high %v326_v3, %v330_v4  ;;  %v333_v9 = vld [vmem:[#allocation5 + $0x410] sm:$0xff] }
 0x286   :  { %5744 = vmatprep.subr.bf16.mxu0 %v16755_v10  ;;  %6031 = vmatprep.subr.bf16.mxu1 %v16757_v11  ;;  %v337_v10 = vld [vmem:[#allocation5 + $0x430] sm:$0xff]  ;;  %v334_v11 = vld [vmem:[#allocation5 + $0x418] sm:$0xff] }
 0x287   :  { %v16811_v17 = vcombine.high %v333_v9, %v337_v10  ;;  %v16810_v24 = vcombine.low %v333_v9, %v337_v10  ;;  %v16812_v57 = vcombine.low %v334_v11, %v338_v13  ;;  %v381_v4 = vld [vmem:[#allocation5 + $0x590] sm:$0xff] }
 0x289   :  { %5745 = vmatpush1.bf16.msra.mxu0 %v16754_v18  ;;  %6032 = vmatpush1.bf16.msra.mxu1 %v16756_v19  ;;  %v16813_v18 = vcombine.high %v334_v11, %v338_v13  ;;  %v341_v19 = vld [vmem:[#allocation5 + $0x450] sm:$0xff] }
 0x28a   :  { %5746 = vmatprep.subr.bf16.mxu0 %v16763_v20  ;;  %6033 = vmatprep.subr.bf16.mxu1 %v16765_v21  ;;  %v345_v20 = vld [vmem:[#allocation5 + $0x470] sm:$0xff]  ;;  %v342_v21 = vld [vmem:[#allocation5 + $0x458] sm:$0xff] }
 0x28b   :  { %v16819_v27 = vcombine.high %v341_v19, %v345_v20  ;;  %v16818_v33 = vcombine.low %v341_v19, %v345_v20  ;;  %v16820_v35 = vcombine.low %v342_v21, %v346_v22  ;;  %v389_v13 = vld [vmem:[#allocation5 + $0x5d0] sm:$0xff] }
 0x28d   :  { %5747 = vmatpush1.bf16.msra.mxu0 %v16762_v28  ;;  %6034 = vmatpush1.bf16.msra.mxu1 %v16764_v29  ;;  %v16821_v28 = vcombine.high %v342_v21, %v346_v22  ;;  %v349_v29 = vld [vmem:[#allocation5 + $0x490] sm:$0xff] }
 0x28e   :  { %5748 = vmatprep.subr.bf16.mxu0 %v16771_v30  ;;  %6035 = vmatprep.subr.bf16.mxu1 %v16773_v31  ;;  %v353_v30 = vld [vmem:[#allocation5 + $0x4b0] sm:$0xff]  ;;  %v350_v31 = vld [vmem:[#allocation5 + $0x498] sm:$0xff] }
 0x28f   :  { %v16827_v36 = vcombine.high %v349_v29, %v353_v30  ;;  %v16826_v43 = vcombine.low %v349_v29, %v353_v30  ;;  %v397_v22 = vld [vmem:[#allocation5 + $0x610] sm:$0xff] }
 0x291   :  { %5749 = vmatpush1.bf16.msra.mxu0 %v16770_v37  ;;  %6036 = vmatpush1.bf16.msra.mxu1 %v16772_v38  ;;  %v16829_v37 = vcombine.high %v350_v31, %v354_v32  ;;  %v357_v38 = vld [vmem:[#allocation5 + $0x4d0] sm:$0xff] }
 0x292   :  { %5750 = vmatprep.subr.bf16.mxu0 %v16779_v40  ;;  %6037 = vmatprep.subr.bf16.mxu1 %v16781_v41  ;;  %v361_v40 = vld [vmem:[#allocation5 + $0x4f0] sm:$0xff]  ;;  %v358_v41 = vld [vmem:[#allocation5 + $0x4d8] sm:$0xff] }
 0x293   :  { %v16835_v45 = vcombine.high %v357_v38, %v361_v40  ;;  %v16837_v46 = vcombine.high %v358_v41, %v362_v42  ;;  %v16834_v53 = vcombine.low %v357_v38, %v361_v40  ;;  %v16836_v55 = vcombine.low %v358_v41, %v362_v42  ;;  %v413_v42 = vld [vmem:[#allocation5 + $0x690] sm:$0xff] }
 0x295   :  { %5751 = vmatpush1.bf16.msra.mxu0 %v16778_v47  ;;  %6038 = vmatpush1.bf16.msra.mxu1 %v16780_v49  ;;  %v365_v47 = vld [vmem:[#allocation5 + $0x510] sm:$0xff] }
 0x296   :  { %5752 = vmatprep.subr.bf16.mxu0 %v16787_v50  ;;  %6039 = vmatprep.subr.bf16.mxu1 %v16789_v51  ;;  %v369_v49 = vld [vmem:[#allocation5 + $0x530] sm:$0xff]  ;;  %v366_v50 = vld [vmem:[#allocation5 + $0x518] sm:$0xff] }
 0x297   :  { %v370_v51 = vld [vmem:[#allocation5 + $0x538] sm:$0xff]  ;;  %v16843_v56 = vcombine.high %v365_v47, %v369_v49 }
 0x298   :  { %v16844_v63 = vcombine.low %v366_v50, %v370_v51 }
 0x299   :  { %5753 = vmatpush1.bf16.msra.mxu0 %v16786_v59  ;;  %6040 = vmatpush1.bf16.msra.mxu1 %v16788_v60  ;;  %v377_v59 = vld [vmem:[#allocation5 + $0x570] sm:$0xff]  ;;  %v374_v60 = vld [vmem:[#allocation5 + $0x558] sm:$0xff] }
 0x29a   :  { %5754 = vmatprep.subr.bf16.mxu0 %v16795_v61  ;;  %6041 = vmatprep.subr.bf16.mxu1 %v16797_v62  ;;  %v378_v61 = vld [vmem:[#allocation5 + $0x578] sm:$0xff]  ;;  %v16842_v62 = vcombine.low %v365_v47, %v369_v49  ;;  %v16851_v2 = vcombine.high %v373_v58, %v377_v59 }
 0x29b   :  { %v16853_v3 = vcombine.high %v374_v60, %v378_v61  ;;  %v16852_v9 = vcombine.low %v374_v60, %v378_v61  ;;  %v429_v61 = vld [vmem:[#allocation5 + $0x710] sm:$0xff] }
 0x29d   :  { %5755 = vmatpush1.bf16.msra.mxu0 %v16794_v5  ;;  %6042 = vmatpush1.bf16.msra.mxu1 %v16796_v6  ;;  %v385_v5 = vld [vmem:[#allocation5 + $0x5b0] sm:$0xff]  ;;  %v382_v6 = vld [vmem:[#allocation5 + $0x598] sm:$0xff] }
 0x29e   :  { %5756 = vmatprep.subr.bf16.mxu0 %v16803_v7  ;;  %6043 = vmatprep.subr.bf16.mxu1 %v16805_v8  ;;  %v386_v7 = vld [vmem:[#allocation5 + $0x5b8] sm:$0xff]  ;;  %v16850_v8 = vcombine.low %v373_v58, %v377_v59  ;;  %v16859_v10 = vcombine.high %v381_v4, %v385_v5 }
 0x29f   :  { %v16861_v11 = vcombine.high %v382_v6, %v386_v7  ;;  %v16860_v19 = vcombine.low %v382_v6, %v386_v7  ;;  %v437_v7 = vld [vmem:[#allocation5 + $0x750] sm:$0xff] }
 0x2a1   :  { %5757 = vmatpush1.bf16.msra.mxu0 %v16802_v15  ;;  %6044 = vmatpush1.bf16.msra.mxu1 %v16804_v16  ;;  %v393_v15 = vld [vmem:[#allocation5 + $0x5f0] sm:$0xff]  ;;  %v390_v16 = vld [vmem:[#allocation5 + $0x5d8] sm:$0xff] }
 0x2a2   :  { %5767 = vmatprep.subr.bf16.mxu0 %v16811_v17  ;;  %6054 = vmatprep.subr.bf16.mxu1 %v16813_v18  ;;  %v394_v17 = vld [vmem:[#allocation5 + $0x5f8] sm:$0xff]  ;;  %v16858_v18 = vcombine.low %v381_v4, %v385_v5  ;;  %v16867_v20 = vcombine.high %v389_v13, %v393_v15 }
 0x2a3   :  { %v16869_v21 = vcombine.high %v390_v16, %v394_v17  ;;  %v16868_v29 = vcombine.low %v390_v16, %v394_v17  ;;  %v445_v17 = vld [vmem:[#allocation5 + $0x790] sm:$0xff] }
 0x2a4   :  { %5759 = vmatmul.mubr.bf16.vlgmr.msra.gmra.mrb[4].mxu0 %v20088_v12  ;;  %6046 = vmatmul.mubr.bf16.vlgmr.msra.gmra.mrb[4].mxu1 %v20088_v12  ;;  %v16828_v12 = vcombine.low %v350_v31, %v354_v32  ;;  %v405_v32 = vld [vmem:[#allocation5 + $0x650] sm:$0xff] }
 0x2a5   :  { %5768 = vmatpush1.bf16.msra.mxu0 %v16810_v24  ;;  %6055 = vmatpush1.bf16.msra.mxu1 %v16812_v57  ;;  %v401_v24 = vld [vmem:[#allocation5 + $0x630] sm:$0xff]  ;;  %v398_v57 = vld [vmem:[#allocation5 + $0x618] sm:$0xff] }
 0x2a6   :  { %5769 = vmatprep.subr.bf16.mxu0 %v16819_v27  ;;  %6056 = vmatprep.subr.bf16.mxu1 %v16821_v28  ;;  %v402_v27 = vld [vmem:[#allocation5 + $0x638] sm:$0xff]  ;;  %v16866_v28 = vcombine.low %v389_v13, %v393_v15  ;;  %v16875_v30 = vcombine.high %v397_v22, %v401_v24 }
 0x2a7   :  { %5799 = vmatprep.mubr.bf16.mxu0 %v20090_v23  ;;  %6086 = vmatprep.mubr.bf16.mxu1 %v20090_v23  ;;  %v16845_v23 = vcombine.high %v366_v50, %v370_v51  ;;  %v16877_v31 = vcombine.high %v398_v57, %v402_v27  ;;  %v16876_v38 = vcombine.low %v398_v57, %v402_v27  ;;  %v421_v51 = vld [vmem:[#allocation5 + $0x6d0] sm:$0xff] }
 0x2a8   :  { %v453_v27 = vld [vmem:[#allocation5 + $0x7d0] sm:$0xff] }
 0x2a9   :  { %5770 = vmatpush1.bf16.msra.mxu0 %v16818_v33  ;;  %6057 = vmatpush1.bf16.msra.mxu1 %v16820_v35  ;;  %v409_v33 = vld [vmem:[#allocation5 + $0x670] sm:$0xff]  ;;  %v406_v35 = vld [vmem:[#allocation5 + $0x658] sm:$0xff] }
 0x2aa   :  { %5771 = vmatprep.subr.bf16.mxu0 %v16827_v36  ;;  %6058 = vmatprep.subr.bf16.mxu1 %v16829_v37  ;;  %v410_v36 = vld [vmem:[#allocation5 + $0x678] sm:$0xff]  ;;  %v16874_v37 = vcombine.low %v397_v22, %v401_v24  ;;  %v16883_v40 = vcombine.high %v405_v32, %v409_v33 }
 0x2ab   :  { %v16885_v41 = vcombine.high %v406_v35, %v410_v36  ;;  %v16884_v47 = vcombine.low %v406_v35, %v410_v36  ;;  %v461_v36 = vld [vmem:[#allocation5 + $0x810] sm:$0xff] }
 0x2ad   :  { %5772 = vmatpush1.bf16.msra.mxu0 %v16826_v43  ;;  %6059 = vmatpush1.bf16.msra.mxu1 %v16828_v12  ;;  %v417_v43 = vld [vmem:[#allocation5 + $0x6b0] sm:$0xff]  ;;  %v414_v12 = vld [vmem:[#allocation5 + $0x698] sm:$0xff] }
 0x2ae   :  { %5773 = vmatprep.subr.bf16.mxu0 %v16835_v45  ;;  %6060 = vmatprep.subr.bf16.mxu1 %v16837_v46  ;;  %v418_v45 = vld [vmem:[#allocation5 + $0x6b8] sm:$0xff]  ;;  %v16882_v46 = vcombine.low %v405_v32, %v409_v33  ;;  %v16891_v49 = vcombine.high %v413_v42, %v417_v43 }
 0x2af   :  { %v16893_v50 = vcombine.high %v414_v12, %v418_v45  ;;  %v16892_v58 = vcombine.low %v414_v12, %v418_v45  ;;  %v469_v45 = vld [vmem:[#allocation5 + $0x850] sm:$0xff] }
 0x2b1   :  { %5774 = vmatpush1.bf16.msra.mxu0 %v16834_v53  ;;  %6061 = vmatpush1.bf16.msra.mxu1 %v16836_v55  ;;  %v425_v53 = vld [vmem:[#allocation5 + $0x6f0] sm:$0xff]  ;;  %v422_v55 = vld [vmem:[#allocation5 + $0x6d8] sm:$0xff] }
 0x2b2   :  { %5775 = vmatprep.subr.bf16.mxu0 %v16843_v56  ;;  %6062 = vmatprep.subr.bf16.mxu1 %v16845_v23  ;;  %v426_v56 = vld [vmem:[#allocation5 + $0x6f8] sm:$0xff]  ;;  %v16890_v23 = vcombine.low %v413_v42, %v417_v43  ;;  %v16899_v59 = vcombine.high %v421_v51, %v425_v53 }
 0x2b3   :  { %v16901_v60 = vcombine.high %v422_v55, %v426_v56  ;;  %v16900_v4 = vcombine.low %v422_v55, %v426_v56  ;;  %v477_v56 = vld [vmem:[#allocation5 + $0x890] sm:$0xff] }
 0x2b5   :  { %5776 = vmatpush1.bf16.msra.mxu0 %v16842_v62  ;;  %6063 = vmatpush1.bf16.msra.mxu1 %v16844_v63  ;;  %v433_v62 = vld [vmem:[#allocation5 + $0x730] sm:$0xff]  ;;  %v430_v63 = vld [vmem:[#allocation5 + $0x718] sm:$0xff] }
 0x2b6   :  { %5777 = vmatprep.subr.bf16.mxu0 %v16851_v2  ;;  %6064 = vmatprep.subr.bf16.mxu1 %v16853_v3  ;;  %v434_v2 = vld [vmem:[#allocation5 + $0x738] sm:$0xff]  ;;  %v16898_v3 = vcombine.low %v421_v51, %v425_v53  ;;  %v16907_v5 = vcombine.high %v429_v61, %v433_v62 }
 0x2b7   :  { %v16909_v6 = vcombine.high %v430_v63, %v434_v2  ;;  %v16908_v13 = vcombine.low %v430_v63, %v434_v2  ;;  %v485_v2 = vld [vmem:[#allocation5 + $0x8d0] sm:$0xff] }
 0x2b9   :  { %5778 = vmatpush1.bf16.msra.mxu0 %v16850_v8  ;;  %6065 = vmatpush1.bf16.msra.mxu1 %v16852_v9  ;;  %v441_v8 = vld [vmem:[#allocation5 + $0x770] sm:$0xff]  ;;  %v438_v9 = vld [vmem:[#allocation5 + $0x758] sm:$0xff] }
 0x2ba   :  { %5779 = vmatprep.subr.bf16.mxu0 %v16859_v10  ;;  %6066 = vmatprep.subr.bf16.mxu1 %v16861_v11  ;;  %v442_v10 = vld [vmem:[#allocation5 + $0x778] sm:$0xff]  ;;  %v16906_v11 = vcombine.low %v429_v61, %v433_v62  ;;  %v16915_v15 = vcombine.high %v437_v7, %v441_v8 }
 0x2bb   :  { %v16917_v16 = vcombine.high %v438_v9, %v442_v10  ;;  %v16916_v22 = vcombine.low %v438_v9, %v442_v10  ;;  %v493_v9 = vld [vmem:[#allocation5 + $0x910] sm:$0xff] }
 0x2bc   :  { %v497_v10 = vld [vmem:[#allocation5 + $0x930] sm:$0xff] }
 0x2bd   :  { %5780 = vmatpush1.bf16.msra.mxu0 %v16858_v18  ;;  %6067 = vmatpush1.bf16.msra.mxu1 %v16860_v19  ;;  %v449_v18 = vld [vmem:[#allocation5 + $0x7b0] sm:$0xff]  ;;  %v446_v19 = vld [vmem:[#allocation5 + $0x798] sm:$0xff] }
 0x2be   :  { %5781 = vmatprep.subr.bf16.mxu0 %v16867_v20  ;;  %6068 = vmatprep.subr.bf16.mxu1 %v16869_v21  ;;  %v450_v20 = vld [vmem:[#allocation5 + $0x7b8] sm:$0xff]  ;;  %v16914_v21 = vcombine.low %v437_v7, %v441_v8  ;;  %v16923_v24 = vcombine.high %v445_v17, %v449_v18 }
 0x2bf   :  { %v16925_v57 = vcombine.high %v446_v19, %v450_v20  ;;  %v16924_v32 = vcombine.low %v446_v19, %v450_v20  ;;  %v505_v19 = vld [vmem:[#allocation5 + $0x970] sm:$0xff]  ;;  %v502_v20 = vld [vmem:[#allocation5 + $0x958] sm:$0xff] }
 0x2c1   :  { %5782 = vmatpush1.bf16.msra.mxu0 %v16866_v28  ;;  %6069 = vmatpush1.bf16.msra.mxu1 %v16868_v29  ;;  %v457_v28 = vld [vmem:[#allocation5 + $0x7f0] sm:$0xff]  ;;  %v454_v29 = vld [vmem:[#allocation5 + $0x7d8] sm:$0xff] }
 0x2c2   :  { %5783 = vmatprep.subr.bf16.mxu0 %v16875_v30  ;;  %6070 = vmatprep.subr.bf16.mxu1 %v16877_v31  ;;  %v458_v30 = vld [vmem:[#allocation5 + $0x7f8] sm:$0xff]  ;;  %v16922_v31 = vcombine.low %v445_v17, %v449_v18  ;;  %v16931_v33 = vcombine.high %v453_v27, %v457_v28  ;;  %v16971_v17 = vcombine.high %v493_v9, %v497_v10  ;;  %v501_v18 = vld [vmem:[#allocation5 + $0x950] sm:$0xff] }
 0x2c3   :  { %v16933_v35 = vcombine.high %v454_v29, %v458_v30  ;;  %v16932_v42 = vcombine.low %v454_v29, %v458_v30  ;;  %v513_v29 = vld [vmem:[#allocation5 + $0x9b0] sm:$0xff]  ;;  %v510_v30 = vld [vmem:[#allocation5 + $0x998] sm:$0xff] }
 0x2c5   :  { %5784 = vmatpush1.bf16.msra.mxu0 %v16874_v37  ;;  %6071 = vmatpush1.bf16.msra.mxu1 %v16876_v38  ;;  %v465_v37 = vld [vmem:[#allocation5 + $0x830] sm:$0xff]  ;;  %v462_v38 = vld [vmem:[#allocation5 + $0x818] sm:$0xff] }
 0x2c6   :  { %5785 = vmatprep.subr.bf16.mxu0 %v16883_v40  ;;  %6072 = vmatprep.subr.bf16.mxu1 %v16885_v41  ;;  %v466_v40 = vld [vmem:[#allocation5 + $0x838] sm:$0xff]  ;;  %v16930_v41 = vcombine.low %v453_v27, %v457_v28  ;;  %v16939_v43 = vcombine.high %v461_v36, %v465_v37  ;;  %v509_v28 = vld [vmem:[#allocation5 + $0x990] sm:$0xff] }
 0x2c7   :  { %v16941_v12 = vcombine.high %v462_v38, %v466_v40  ;;  %v16940_v51 = vcombine.low %v462_v38, %v466_v40  ;;  %v521_v38 = vld [vmem:[#allocation5 + $0x9f0] sm:$0xff]  ;;  %v518_v40 = vld [vmem:[#allocation5 + $0x9d8] sm:$0xff] }
 0x2c9   :  { %5786 = vmatpush1.bf16.msra.mxu0 %v16882_v46  ;;  %6073 = vmatpush1.bf16.msra.mxu1 %v16884_v47  ;;  %v473_v46 = vld [vmem:[#allocation5 + $0x870] sm:$0xff]  ;;  %v470_v47 = vld [vmem:[#allocation5 + $0x858] sm:$0xff] }
 0x2ca   :  { %5787 = vmatprep.subr.bf16.mxu0 %v16891_v49  ;;  %6074 = vmatprep.subr.bf16.mxu1 %v16893_v50  ;;  %v474_v49 = vld [vmem:[#allocation5 + $0x878] sm:$0xff]  ;;  %v16938_v50 = vcombine.low %v461_v36, %v465_v37  ;;  %v16947_v53 = vcombine.high %v469_v45, %v473_v46  ;;  %v517_v37 = vld [vmem:[#allocation5 + $0x9d0] sm:$0xff] }
 0x2cb   :  { %v16949_v55 = vcombine.high %v470_v47, %v474_v49  ;;  %v16948_v61 = vcombine.low %v470_v47, %v474_v49  ;;  %v529_v47 = vld [vmem:[#allocation5 + $0xa30] sm:$0xff]  ;;  %v526_v49 = vld [vmem:[#allocation5 + $0xa18] sm:$0xff] }
 0x2cd   :  { %5788 = vmatpush1.bf16.msra.mxu0 %v16890_v23  ;;  %6075 = vmatpush1.bf16.msra.mxu1 %v16892_v58  ;;  %v481_v23 = vld [vmem:[#allocation5 + $0x8b0] sm:$0xff]  ;;  %v478_v58 = vld [vmem:[#allocation5 + $0x898] sm:$0xff] }
 0x2ce   :  { %5789 = vmatprep.subr.bf16.mxu0 %v16899_v59  ;;  %6076 = vmatprep.subr.bf16.mxu1 %v16901_v60  ;;  %v482_v59 = vld [vmem:[#allocation5 + $0x8b8] sm:$0xff]  ;;  %v16946_v60 = vcombine.low %v469_v45, %v473_v46  ;;  %v16955_v62 = vcombine.high %v477_v56, %v481_v23  ;;  %v525_v46 = vld [vmem:[#allocation5 + $0xa10] sm:$0xff] }
 0x2cf   :  { %v16957_v63 = vcombine.high %v478_v58, %v482_v59 }
 0x2d1   :  { %5790 = vmatpush1.bf16.msra.mxu0 %v16898_v3  ;;  %6077 = vmatpush1.bf16.msra.mxu1 %v16900_v4  ;;  %v489_v3 = vld [vmem:[#allocation5 + $0x8f0] sm:$0xff]  ;;  %v486_v4 = vld [vmem:[#allocation5 + $0x8d8] sm:$0xff] }
 0x2d2   :  { %5791 = vmatprep.subr.bf16.mxu0 %v16907_v5  ;;  %6078 = vmatprep.subr.bf16.mxu1 %v16909_v6  ;;  %v490_v5 = vld [vmem:[#allocation5 + $0x8f8] sm:$0xff]  ;;  %v16954_v6 = vcombine.low %v477_v56, %v481_v23  ;;  %v16963_v7 = vcombine.high %v485_v2, %v489_v3  ;;  %v533_v23 = vld [vmem:[#allocation5 + $0xa50] sm:$0xff] }
 0x2d3   :  { %v16965_v8 = vcombine.high %v486_v4, %v490_v5 }
 0x2d5   :  { %5792 = vmatpush1.bf16.msra.mxu0 %v16906_v11  ;;  %6079 = vmatpush1.bf16.msra.mxu1 %v16908_v13  ;;  %v494_v11 = vld [vmem:[#allocation5 + $0x918] sm:$0xff] }
 0x2d6   :  { %5793 = vmatprep.subr.bf16.mxu0 %v16915_v15  ;;  %6080 = vmatprep.subr.bf16.mxu1 %v16917_v16  ;;  %v498_v13 = vld [vmem:[#allocation5 + $0x938] sm:$0xff]  ;;  %v16962_v15 = vcombine.low %v485_v2, %v489_v3  ;;  %v16964_v16 = vcombine.low %v486_v4, %v490_v5  ;;  %v541_v3 = vld [vmem:[#allocation5 + $0xa90] sm:$0xff] }
 0x2d7   :  { %v545_v4 = vld [vmem:[#allocation5 + $0xab0] sm:$0xff]  ;;  %v542_v5 = vld [vmem:[#allocation5 + $0xa98] sm:$0xff] }
 0x2d9   :  { %5794 = vmatpush1.bf16.msra.mxu0 %v16914_v21  ;;  %6081 = vmatpush1.bf16.msra.mxu1 %v16916_v22  ;;  %v506_v21 = vld [vmem:[#allocation5 + $0x978] sm:$0xff]  ;;  %v16970_v22 = vcombine.low %v493_v9, %v497_v10  ;;  %v549_v10 = vld [vmem:[#allocation5 + $0xad0] sm:$0xff] }
 0x2da   :  { %5795 = vmatprep.subr.bf16.mxu0 %v16923_v24  ;;  %6082 = vmatprep.subr.bf16.mxu1 %v16925_v57  ;;  %v16972_v24 = vcombine.low %v494_v11, %v498_v13  ;;  %v16979_v57 = vcombine.high %v501_v18, %v505_v19  ;;  %v16981_v27 = vcombine.high %v502_v20, %v506_v21 }
 0x2dd   :  { %5796 = vmatpush1.bf16.msra.mxu0 %v16922_v31  ;;  %6083 = vmatpush1.bf16.msra.mxu1 %v16924_v32  ;;  %v514_v31 = vld [vmem:[#allocation5 + $0x9b8] sm:$0xff]  ;;  %v16978_v32 = vcombine.low %v501_v18, %v505_v19  ;;  %v557_v19 = vld [vmem:[#allocation5 + $0xb10] sm:$0xff] }
 0x2de   :  { %5797 = vmatprep.subr.bf16.mxu0 %v16931_v33  ;;  %6084 = vmatprep.subr.bf16.mxu1 %v16933_v35  ;;  %v16980_v33 = vcombine.low %v502_v20, %v506_v21  ;;  %v16987_v35 = vcombine.high %v509_v28, %v513_v29  ;;  %v16989_v36 = vcombine.high %v510_v30, %v514_v31  ;;  %v561_v20 = vld [vmem:[#allocation5 + $0xb30] sm:$0xff]  ;;  %v558_v21 = vld [vmem:[#allocation5 + $0xb18] sm:$0xff] }
 0x2e1   :  { %5798 = vmatpush1.bf16.msra.mxu0 %v16930_v41  ;;  %6085 = vmatpush1.bf16.msra.mxu1 %v16932_v42  ;;  %v522_v41 = vld [vmem:[#allocation5 + $0x9f8] sm:$0xff]  ;;  %v16986_v42 = vcombine.low %v509_v28, %v513_v29  ;;  %v565_v29 = vld [vmem:[#allocation5 + $0xb50] sm:$0xff] }
 0x2e2   :  { %5808 = vmatprep.subr.bf16.mxu0 %v16939_v43  ;;  %6095 = vmatprep.subr.bf16.mxu1 %v16941_v12  ;;  %v16988_v43 = vcombine.low %v510_v30, %v514_v31  ;;  %v16995_v12 = vcombine.high %v517_v37, %v521_v38  ;;  %v16997_v45 = vcombine.high %v518_v40, %v522_v41  ;;  %v569_v30 = vld [vmem:[#allocation5 + $0xb70] sm:$0xff]  ;;  %v566_v31 = vld [vmem:[#allocation5 + $0xb58] sm:$0xff] }
 0x2e4   :  { %5800 = vmatmul.mubr.bf16.vlgmr.msra.gmra.mrb[4].mxu0 %v20096_v25  ;;  %6087 = vmatmul.mubr.bf16.vlgmr.msra.gmra.mrb[4].mxu1 %v20096_v25  ;;  %v16956_v25 = vcombine.low %v478_v58, %v482_v59  ;;  %v537_v58 = vld [vmem:[#allocation5 + $0xa70] sm:$0xff]  ;;  %v534_v59 = vld [vmem:[#allocation5 + $0xa58] sm:$0xff] }
 0x2e5   :  { %5809 = vmatpush1.bf16.msra.mxu0 %v16938_v50  ;;  %6096 = vmatpush1.bf16.msra.mxu1 %v16940_v51  ;;  %v530_v50 = vld [vmem:[#allocation5 + $0xa38] sm:$0xff]  ;;  %v16994_v51 = vcombine.low %v517_v37, %v521_v38  ;;  %v573_v38 = vld [vmem:[#allocation5 + $0xb90] sm:$0xff] }
 0x2e6   :  { %5810 = vmatprep.subr.bf16.mxu0 %v16947_v53  ;;  %6097 = vmatprep.subr.bf16.mxu1 %v16949_v55  ;;  %v16996_v53 = vcombine.low %v518_v40, %v522_v41  ;;  %v17003_v55 = vcombine.high %v525_v46, %v529_v47  ;;  %v17005_v56 = vcombine.high %v526_v49, %v530_v50  ;;  %v577_v40 = vld [vmem:[#allocation5 + $0xbb0] sm:$0xff]  ;;  %v574_v41 = vld [vmem:[#allocation5 + $0xb98] sm:$0xff] }
 0x2e7   :  { %5840 = vmatprep.mubr.bf16.mxu0 %v20098_v34  ;;  %6127 = vmatprep.mubr.bf16.mxu1 %v20098_v34  ;;  %v16973_v34 = vcombine.high %v494_v11, %v498_v13  ;;  %v553_v11 = vld [vmem:[#allocation5 + $0xaf0] sm:$0xff]  ;;  %v550_v13 = vld [vmem:[#allocation5 + $0xad8] sm:$0xff] }
 0x2e9   :  { %5811 = vmatpush1.bf16.msra.mxu0 %v16946_v60  ;;  %6098 = vmatpush1.bf16.msra.mxu1 %v16948_v61  ;;  %v538_v60 = vld [vmem:[#allocation5 + $0xa78] sm:$0xff]  ;;  %v17002_v61 = vcombine.low %v525_v46, %v529_v47  ;;  %v581_v47 = vld [vmem:[#allocation5 + $0xbd0] sm:$0xff] }
 0x2ea   :  { %5812 = vmatprep.subr.bf16.mxu0 %v16955_v62  ;;  %6099 = vmatprep.subr.bf16.mxu1 %v16957_v63  ;;  %v17004_v62 = vcombine.low %v526_v49, %v530_v50  ;;  %v17011_v63 = vcombine.high %v533_v23, %v537_v58  ;;  %v17013_v2 = vcombine.high %v534_v59, %v538_v60  ;;  %v585_v49 = vld [vmem:[#allocation5 + $0xbf0] sm:$0xff]  ;;  %v582_v50 = vld [vmem:[#allocation5 + $0xbd8] sm:$0xff] }
 0x2ed   :  { %5813 = vmatpush1.bf16.msra.mxu0 %v16954_v6  ;;  %6100 = vmatpush1.bf16.msra.mxu1 %v16956_v25  ;;  %v546_v6 = vld [vmem:[#allocation5 + $0xab8] sm:$0xff]  ;;  %v17010_v25 = vcombine.low %v533_v23, %v537_v58  ;;  %v589_v58 = vld [vmem:[#allocation5 + $0xc10] sm:$0xff] }
 0x2ee   :  { %5814 = vmatprep.subr.bf16.mxu0 %v16963_v7  ;;  %6101 = vmatprep.subr.bf16.mxu1 %v16965_v8  ;;  %v17012_v7 = vcombine.low %v534_v59, %v538_v60  ;;  %v17019_v8 = vcombine.high %v541_v3, %v545_v4  ;;  %v17021_v9 = vcombine.high %v542_v5, %v546_v6  ;;  %v593_v59 = vld [vmem:[#allocation5 + $0xc30] sm:$0xff]  ;;  %v590_v60 = vld [vmem:[#allocation5 + $0xc18] sm:$0xff] }
 0x2f1   :  { %5815 = vmatpush1.bf16.msra.mxu0 %v16962_v15  ;;  %6102 = vmatpush1.bf16.msra.mxu1 %v16964_v16  ;;  %v554_v15 = vld [vmem:[#allocation5 + $0xaf8] sm:$0xff]  ;;  %v17018_v16 = vcombine.low %v541_v3, %v545_v4  ;;  %v597_v4 = vld [vmem:[#allocation5 + $0xc50] sm:$0xff] }
 0x2f2   :  { %5816 = vmatprep.subr.bf16.mxu0 %v16971_v17  ;;  %6103 = vmatprep.subr.bf16.mxu1 %v16973_v34  ;;  %v17020_v17 = vcombine.low %v542_v5, %v546_v6  ;;  %v17027_v34 = vcombine.high %v549_v10, %v553_v11  ;;  %v17029_v18 = vcombine.high %v550_v13, %v554_v15  ;;  %v601_v5 = vld [vmem:[#allocation5 + $0xc70] sm:$0xff]  ;;  %v598_v6 = vld [vmem:[#allocation5 + $0xc58] sm:$0xff] }
 0x2f5   :  { %5817 = vmatpush1.bf16.msra.mxu0 %v16970_v22  ;;  %6104 = vmatpush1.bf16.msra.mxu1 %v16972_v24  ;;  %v562_v22 = vld [vmem:[#allocation5 + $0xb38] sm:$0xff]  ;;  %v17026_v24 = vcombine.low %v549_v10, %v553_v11  ;;  %v605_v11 = vld [vmem:[#allocation5 + $0xc90] sm:$0xff] }
 0x2f6   :  { %5818 = vmatprep.subr.bf16.mxu0 %v16979_v57  ;;  %6105 = vmatprep.subr.bf16.mxu1 %v16981_v27  ;;  %v17028_v57 = vcombine.low %v550_v13, %v554_v15  ;;  %v17035_v27 = vcombine.high %v557_v19, %v561_v20  ;;  %v17037_v28 = vcombine.high %v558_v21, %v562_v22  ;;  %v609_v13 = vld [vmem:[#allocation5 + $0xcb0] sm:$0xff]  ;;  %v606_v15 = vld [vmem:[#allocation5 + $0xc98] sm:$0xff] }
 0x2f9   :  { %5819 = vmatpush1.bf16.msra.mxu0 %v16978_v32  ;;  %6106 = vmatpush1.bf16.msra.mxu1 %v16980_v33  ;;  %v570_v32 = vld [vmem:[#allocation5 + $0xb78] sm:$0xff]  ;;  %v17034_v33 = vcombine.low %v557_v19, %v561_v20  ;;  %v17083_v19 = vcombine.high %v605_v11, %v609_v13 }
 0x2fa   :  { %5820 = vmatprep.subr.bf16.mxu0 %v16987_v35  ;;  %6107 = vmatprep.subr.bf16.mxu1 %v16989_v36  ;;  %v17036_v35 = vcombine.low %v558_v21, %v562_v22  ;;  %v17043_v36 = vcombine.high %v565_v29, %v569_v30  ;;  %v17045_v37 = vcombine.high %v566_v31, %v570_v32  ;;  %v613_v21 = vld [vmem:[#allocation5 + $0xcd0] sm:$0xff] }
 0x2fb   :  { %v617_v22 = vld [vmem:[#allocation5 + $0xcf0] sm:$0xff] }
 0x2fd   :  { %5821 = vmatpush1.bf16.msra.mxu0 %v16986_v42  ;;  %6108 = vmatpush1.bf16.msra.mxu1 %v16988_v43  ;;  %v578_v42 = vld [vmem:[#allocation5 + $0xbb8] sm:$0xff]  ;;  %v17042_v43 = vcombine.low %v565_v29, %v569_v30  ;;  %v17091_v29 = vcombine.high %v613_v21, %v617_v22 }
 0x2fe   :  { %5822 = vmatprep.subr.bf16.mxu0 %v16995_v12  ;;  %6109 = vmatprep.subr.bf16.mxu1 %v16997_v45  ;;  %v17044_v12 = vcombine.low %v566_v31, %v570_v32  ;;  %v17051_v45 = vcombine.high %v573_v38, %v577_v40  ;;  %v17053_v46 = vcombine.high %v574_v41, %v578_v42  ;;  %v621_v31 = vld [vmem:[#allocation5 + $0xd10] sm:$0xff] }
 0x2ff   :  { %v625_v32 = vld [vmem:[#allocation5 + $0xd30] sm:$0xff] }
 0x301   :  { %5823 = vmatpush1.bf16.msra.mxu0 %v16994_v51  ;;  %6110 = vmatpush1.bf16.msra.mxu1 %v16996_v53  ;;  %v586_v51 = vld [vmem:[#allocation5 + $0xbf8] sm:$0xff]  ;;  %v17050_v53 = vcombine.low %v573_v38, %v577_v40  ;;  %v6300_v38 = vld [vmem:[#allocation7] sm:$0xff] }
 0x302   :  { %5824 = vmatprep.subr.bf16.mxu0 %v17003_v55  ;;  %6111 = vmatprep.subr.bf16.mxu1 %v17005_v56  ;;  %v17052_v55 = vcombine.low %v574_v41, %v578_v42  ;;  %v17059_v56 = vcombine.high %v581_v47, %v585_v49  ;;  %v17061_v23 = vcombine.high %v582_v50, %v586_v51 }
 0x303   :  { %v17099_v42 = vcombine.high %v621_v31, %v625_v32 }
 0x305   :  { %5825 = vmatpush1.bf16.msra.mxu0 %v17002_v61  ;;  %6112 = vmatpush1.bf16.msra.mxu1 %v17004_v62  ;;  %v594_v61 = vld [vmem:[#allocation5 + $0xc38] sm:$0xff]  ;;  %v17058_v62 = vcombine.low %v581_v47, %v585_v49  ;;  %v633_v47 = vld [vmem:[#allocation5 + $0xd70] sm:$0xff] }
 0x306   :  { %5826 = vmatprep.subr.bf16.mxu0 %v17011_v63  ;;  %6113 = vmatprep.subr.bf16.mxu1 %v17013_v2  ;;  %v17060_v63 = vcombine.low %v582_v50, %v586_v51  ;;  %v17067_v2 = vcombine.high %v589_v58, %v593_v59  ;;  %v17069_v3 = vcombine.high %v590_v60, %v594_v61  ;;  %v630_v51 = vld [vmem:[#allocation5 + $0xd58] sm:$0xff] }
 0x309   :  { %5827 = vmatpush1.bf16.msra.mxu0 %v17010_v25  ;;  %6114 = vmatpush1.bf16.msra.mxu1 %v17012_v7  ;;  %v602_v25 = vld [vmem:[#allocation5 + $0xc78] sm:$0xff]  ;;  %v17066_v7 = vcombine.low %v589_v58, %v593_v59 }
 0x30a   :  { %5828 = vmatprep.subr.bf16.mxu0 %v17019_v8  ;;  %6115 = vmatprep.subr.bf16.mxu1 %v17021_v9  ;;  %v17068_v8 = vcombine.low %v590_v60, %v594_v61  ;;  %v17075_v9 = vcombine.high %v597_v4, %v601_v5  ;;  %v17077_v10 = vcombine.high %v598_v6, %v602_v25 }
 0x30d   :  { %5829 = vmatpush1.bf16.msra.mxu0 %v17018_v16  ;;  %6116 = vmatpush1.bf16.msra.mxu1 %v17020_v17  ;;  %v610_v16 = vld [vmem:[#allocation5 + $0xcb8] sm:$0xff]  ;;  %v6304_v17 = vlaneseq }
 0x30e   :  { %5830 = vmatprep.subr.bf16.mxu0 %v17027_v34  ;;  %6117 = vmatprep.subr.bf16.mxu1 %v17029_v18  ;;  %v17074_v34 = vcombine.low %v597_v4, %v601_v5  ;;  %v17076_v18 = vcombine.low %v598_v6, %v602_v25  ;;  %v17085_v20 = vcombine.high %v606_v15, %v610_v16  ;;  %v638_v5 = vld [vmem:[#allocation5 + $0xd98] sm:$0xff] }
 0x30f   :  { %v642_v6 = vld [vmem:[#allocation5 + $0xdb8] sm:$0xff] }
 0x311   :  { %5831 = vmatpush1.bf16.msra.mxu0 %v17026_v24  ;;  %6118 = vmatpush1.bf16.msra.mxu1 %v17028_v57  ;;  %v614_v24 = vld [vmem:[#allocation5 + $0xcd8] sm:$0xff] }
 0x312   :  { %5832 = vmatprep.subr.bf16.mxu0 %v17035_v27  ;;  %6119 = vmatprep.subr.bf16.mxu1 %v17037_v28  ;;  %v618_v57 = vld [vmem:[#allocation5 + $0xcf8] sm:$0xff]  ;;  %v20157_v27 = vshrl.u32 %v6304_v17, 7  ;;  %v17082_v28 = vcombine.low %v605_v11, %v609_v13  ;;  %v645_v17 = vld [vmem:[#allocation5 + $0xdd0] sm:$0xff] }
 0x313   :  { %v17093_v30 = vcombine.high %v614_v24, %v618_v57  ;;  %v17092_v41 = vcombine.low %v614_v24, %v618_v57  ;;  %v650_v24 = vld [vmem:[#allocation5 + $0xdf8] sm:$0xff] }
 0x314   :  { %v20167_v40 = vsub.s32 6, %v20157_v27  ;;  %v20177_v50 = vsub.s32 7, %v20157_v27 }
 0x315   :  { %5833 = vmatpush1.bf16.msra.mxu0 %v17034_v33  ;;  %6120 = vmatpush1.bf16.msra.mxu1 %v17036_v35  ;;  %v622_v33 = vld [vmem:[#allocation5 + $0xd18] sm:$0xff] }
 0x316   :  { %5834 = vmatprep.subr.bf16.mxu0 %v17043_v36  ;;  %6121 = vmatprep.subr.bf16.mxu1 %v17045_v37  ;;  %v626_v35 = vld [vmem:[#allocation5 + $0xd38] sm:$0xff]  ;;  %v20161_v36 = vsub.s32 0, %v20157_v27  ;;  %v17090_v37 = vcombine.low %v613_v21, %v617_v22  ;;  %v6399_v4 = vrot.slane %v6300_v38, %v20177_v50 }
 0x317   :  { %v17100_v58 = vcombine.low %v622_v33, %v626_v35  ;;  %v646_v22 = vld [vmem:[#allocation5 + $0xdd8] sm:$0xff] }
 0x318   :  { %v6307_v49 = vrot.slane %v6300_v38, %v20161_v36 }
 0x319   :  { %5835 = vmatpush1.bf16.msra.mxu0 %v17042_v43  ;;  %6122 = vmatpush1.bf16.msra.mxu1 %v17044_v12  ;;  %v20170_v43 = vsub.s32 1, %v20157_v27  ;;  %v17101_v12 = vcombine.high %v622_v33, %v626_v35 }
 0x31a   :  { %5836 = vmatprep.subr.bf16.mxu0 %v17051_v45  ;;  %6123 = vmatprep.subr.bf16.mxu1 %v17053_v46  ;;  %v20173_v45 = vsub.s32 5, %v20157_v27  ;;  %v629_v46 = vld [vmem:[#allocation5 + $0xd50] sm:$0xff] }
 0x31b   :  { %v6387_v59 = vrot.slane %v6300_v38, %v20170_v43  ;;  %v17107_v60 = vcombine.high %v629_v46, %v633_v47  ;;  %v6439_v21 = vrot.slane %v6399_v4, %v20170_v43  ;;  %v669_v4 = vld [vmem:[#allocation5 + $0xe90] sm:$0xff] }
 0x31c   :  { %v6395_v61 = vrot.slane %v6300_v38, %v20173_v45 }
 0x31d   :  { %5837 = vmatpush1.bf16.msra.mxu0 %v17050_v53  ;;  %6124 = vmatpush1.bf16.msra.mxu1 %v17052_v55  ;;  %v634_v53 = vld [vmem:[#allocation5 + $0xd78] sm:$0xff]  ;;  %v17098_v55 = vcombine.low %v621_v31, %v625_v32 }
 0x31e   :  { %5838 = vmatprep.subr.bf16.mxu0 %v17059_v56  ;;  %6125 = vmatprep.subr.bf16.mxu1 %v17061_v23  ;;  %v6319_v23 = vrot.slane %v6300_v38, %v20167_v40 }
 0x321   :  { %5839 = vmatpush1.bf16.msra.mxu0 %v17058_v62  ;;  %6126 = vmatpush1.bf16.msra.mxu1 %v17060_v63  ;;  %v17109_v62 = vcombine.high %v630_v51, %v634_v53  ;;  %v637_v63 = vld [vmem:[#allocation5 + $0xd90] sm:$0xff] }
 0x322   :  { %5849 = vmatprep.subr.bf16.mxu0 %v17067_v2  ;;  %6136 = vmatprep.subr.bf16.mxu1 %v17069_v3  ;;  %v641_v2 = vld [vmem:[#allocation5 + $0xdb0] sm:$0xff]  ;;  %v6347_v3 = vrot.slane %v6307_v49, %v20161_v36  ;;  %v654_v49 = vld [vmem:[#allocation5 + $0xe18] sm:$0xff] }
 0x323   :  { %v17115_v11 = vcombine.high %v637_v63, %v641_v2 }
 0x324   :  { %5841 = vmatmul.mubr.bf16.vlgmr.msra.gmra.mrb[4].mxu0 %v20104_v39  ;;  %6128 = vmatmul.mubr.bf16.vlgmr.msra.gmra.mrb[4].mxu1 %v20104_v39  ;;  %v17084_v39 = vcombine.low %v606_v15, %v610_v16  ;;  %v6435_v15 = vrot.slane %v6395_v61, %v20170_v43  ;;  %v17117_v16 = vcombine.high %v638_v5, %v642_v6  ;;  %v666_v61 = vld [vmem:[#allocation5 + $0xe78] sm:$0xff] }
 0x325   :  { %5850 = vmatpush1.bf16.msra.mxu0 %v17066_v7  ;;  %6137 = vmatpush1.bf16.msra.mxu1 %v17068_v8  ;;  %v6359_v7 = vrot.slane %v6319_v23, %v20161_v36  ;;  %v17106_v8 = vcombine.low %v629_v46, %v633_v47  ;;  %v657_v46 = vld [vmem:[#allocation5 + $0xe30] sm:$0xff] }
 0x326   :  { %5851 = vmatprep.subr.bf16.mxu0 %v17075_v9  ;;  %6138 = vmatprep.subr.bf16.mxu1 %v17077_v10  ;;  %v6427_v9 = vrot.slane %v6387_v59, %v20170_v43  ;;  %v17108_v10 = vcombine.low %v630_v51, %v634_v53  ;;  %v658_v51 = vld [vmem:[#allocation5 + $0xe38] sm:$0xff]  ;;  %v665_v59 = vld [vmem:[#allocation5 + $0xe70] sm:$0xff] }
 0x327   :  { %5881 = vmatprep.mubr.bf16.mxu0 %v20106_v48  ;;  %6168 = vmatprep.mubr.bf16.mxu1 %v20106_v48  ;;  %v20164_v48 = vsub.s32 4, %v20157_v27  ;;  %v17133_v23 = vcombine.high %v654_v49, %v658_v51 }
 0x329   :  { %5852 = vmatpush1.bf16.msra.mxu0 %v17074_v34  ;;  %6139 = vmatpush1.bf16.msra.mxu1 %v17076_v18  ;;  %v6315_v56 = vrot.slane %v6300_v38, %v20164_v48  ;;  %v649_v34 = vld [vmem:[#allocation5 + $0xdf0] sm:$0xff] }
 0x32a   :  { %5853 = vmatprep.subr.bf16.mxu0 %v17083_v19  ;;  %6140 = vmatprep.subr.bf16.mxu1 %v17085_v20  ;;  %v17122_v53 = vcombine.low %v645_v17, %v649_v34 }
 0x32b   :  { %v6355_v25 = vrot.slane %v6315_v56, %v20161_v36 }
 0x32d   :  { %5854 = vmatpush1.bf16.msra.mxu0 %v17082_v28  ;;  %6141 = vmatpush1.bf16.msra.mxu1 %v17084_v39 }
 0x32e   :  { %5855 = vmatprep.subr.bf16.mxu0 %v17091_v29  ;;  %6142 = vmatprep.subr.bf16.mxu1 %v17093_v30  ;;  %v17114_v29 = vcombine.low %v637_v63, %v641_v2  ;;  %v17116_v30 = vcombine.low %v638_v5, %v642_v6  ;;  %v17132_v63 = vcombine.low %v654_v49, %v658_v51  ;;  %v673_v5 = vld [vmem:[#allocation5 + $0xeb0] sm:$0xff]  ;;  %v670_v6 = vld [vmem:[#allocation5 + $0xe98] sm:$0xff] }
 0x32f   :  { %v701_v49 = vld [vmem:[#allocation5 + $0xf90] sm:$0xff] }
 0x330   :  { %v705_v51 = vld [vmem:[#allocation5 + $0xfb0] sm:$0xff] }
 0x331   :  { %5856 = vmatpush1.bf16.msra.mxu0 %v17090_v37  ;;  %6143 = vmatpush1.bf16.msra.mxu1 %v17092_v41  ;;  %v17123_v37 = vcombine.high %v645_v17, %v649_v34  ;;  %v17146_v17 = vcombine.low %v669_v4, %v673_v5 }
 0x332   :  { %5857 = vmatprep.subr.bf16.mxu0 %v17099_v42  ;;  %6144 = vmatprep.subr.bf16.mxu1 %v17101_v12  ;;  %v17125_v42 = vcombine.high %v646_v22, %v650_v24  ;;  %v653_v12 = vld [vmem:[#allocation5 + $0xe10] sm:$0xff] }
 0x333   :  { %v17131_v56 = vcombine.high %v653_v12, %v657_v46 }
 0x335   :  { %5858 = vmatpush1.bf16.msra.mxu0 %v17098_v55  ;;  %6145 = vmatpush1.bf16.msra.mxu1 %v17100_v58  ;;  %v17124_v55 = vcombine.low %v646_v22, %v650_v24  ;;  %v661_v58 = vld [vmem:[#allocation5 + $0xe50] sm:$0xff]  ;;  %v686_v24 = vld [vmem:[#allocation5 + $0xf18] sm:$0xff] }
 0x336   :  { %5859 = vmatprep.subr.bf16.mxu0 %v17107_v60  ;;  %6146 = vmatprep.subr.bf16.mxu1 %v17109_v62  ;;  %v662_v60 = vld [vmem:[#allocation5 + $0xe58] sm:$0xff]  ;;  %v17130_v62 = vcombine.low %v653_v12, %v657_v46  ;;  %v17139_v2 = vcombine.high %v661_v58, %v665_v59  ;;  %v689_v22 = vld [vmem:[#allocation5 + $0xf30] sm:$0xff] }
 0x337   :  { %v5432_v13 = vpop.f32.mrb[0].mxu0  ;;  %v5719_v19 = vpop.f32.mrb[0].mxu1 }
 0x338   :  { %v6376_v18 = vmul.f32 %v6347_v3, %v5432_v13  ;;  %v20189_v20 = vpop.f32.mrb[1].mxu0  ;;  %v6378_v57 = vmul.f32 %v6355_v25, %v5719_v19  ;;  %v5721_v28 = vpop.f32.mrb[1].mxu1  ;;  %v17141_v3 = vcombine.high %v662_v60, %v666_v61  ;;  %v674_v25 = vld [vmem:[#allocation5 + $0xeb8] sm:$0xff]  ;;  %v681_v13 = vld [vmem:[#allocation5 + $0xef0] sm:$0xff] }
 0x339   :  { %v5436_v39 = vpop.f32.mrb[2].mxu0  ;;  %5860 = vmatpush1.bf16.msra.mxu0 %v17106_v8  ;;  %v6379_v32 = vmul.f32 %v6359_v7, %v5721_v28  ;;  %v5723_v33 = vpop.f32.mrb[2].mxu1  ;;  %6147 = vmatpush1.bf16.msra.mxu1 %v17108_v10  ;;  %v17138_v7 = vcombine.low %v661_v58, %v665_v59  ;;  %v17140_v8 = vcombine.low %v662_v60, %v666_v61  ;;  %v709_v60 = vld [vmem:[#allocation5 + $0xfd0] sm:$0xff] }
 0x33a   :  { %v20192_v31 = vadd.f32 %v6427_v9, %v6376_v18  ;;  %v5437_v35 = vpop.f32.mrb[3].mxu0  ;;  %5861 = vmatprep.subr.bf16.mxu0 %v17115_v11  ;;  %v20194_v38 = vadd.f32 %v6435_v15, %v6378_v57  ;;  %v5724_v41 = vpop.f32.mrb[3].mxu1  ;;  %6148 = vmatprep.subr.bf16.mxu1 %v17117_v16  ;;  %v17147_v9 = vcombine.high %v669_v4, %v673_v5  ;;  %v677_v11 = vld [vmem:[#allocation5 + $0xed0] sm:$0xff]  ;;  %v678_v15 = vld [vmem:[#allocation5 + $0xed8] sm:$0xff] }
 0x33b   :  { %v20196_v47 = vadd.f32 %v6439_v21, %v6379_v32  ;;  %v17149_v10 = vcombine.high %v670_v6, %v674_v25  ;;  %v682_v16 = vld [vmem:[#allocation5 + $0xef8] sm:$0xff]  ;;  %v17148_v34 = vcombine.low %v670_v6, %v674_v25  ;;  %v17155_v18 = vcombine.high %v677_v11, %v681_v13  ;;  %v685_v21 = vld [vmem:[#allocation5 + $0xf10] sm:$0xff] }
 0x33c   :  { %v17157_v19 = vcombine.high %v678_v15, %v682_v16  ;;  %v690_v57 = vld [vmem:[#allocation5 + $0xf38] sm:$0xff]  ;;  %v17154_v28 = vcombine.low %v677_v11, %v681_v13  ;;  %v17156_v39 = vcombine.low %v678_v15, %v682_v16  ;;  %v693_v32 = vld [vmem:[#allocation5 + $0xf50] sm:$0xff]  ;;  %v17162_v41 = vcombine.low %v685_v21, %v689_v22 }
 0x33d   :  { %5862 = vmatpush1.bf16.msra.mxu0 %v17114_v29  ;;  %6149 = vmatpush1.bf16.msra.mxu1 %v17116_v30  ;;  %v17163_v29 = vcombine.high %v685_v21, %v689_v22  ;;  %v17165_v30 = vcombine.high %v686_v24, %v690_v57  ;;  %v697_v33 = vld [vmem:[#allocation5 + $0xf70] sm:$0xff]  ;;  %v694_v35 = vld [vmem:[#allocation5 + $0xf58] sm:$0xff]  ;;  %v17179_v58 = vcombine.high %v701_v49, %v705_v51 }
 0x33e   :  { %5863 = vmatprep.subr.bf16.mxu0 %v17123_v37  ;;  %6150 = vmatprep.subr.bf16.mxu1 %v17125_v42  ;;  %v698_v37 = vld [vmem:[#allocation5 + $0xf78] sm:$0xff]  ;;  %v17164_v42 = vcombine.low %v686_v24, %v690_v57  ;;  %v17171_v12 = vcombine.high %v693_v32, %v697_v33  ;;  %v713_v61 = vld [vmem:[#allocation5 + $0xff0] sm:$0xff] }
 0x33f   :  { %v17173_v46 = vcombine.high %v694_v35, %v698_v37  ;;  %v17187_v4 = vcombine.high %v709_v60, %v713_v61  ;;  %v717_v6 = vld [vmem:[#allocation5 + $0x1010] sm:$0xff] }
 0x340   :  { %v721_v25 = vld [vmem:[#allocation5 + $0x1030] sm:$0xff] }
 0x341   :  { %5864 = vmatpush1.bf16.msra.mxu0 %v17122_v53  ;;  %6151 = vmatpush1.bf16.msra.mxu1 %v17124_v55  ;;  %v702_v53 = vld [vmem:[#allocation5 + $0xf98] sm:$0xff]  ;;  %v17195_v11 = vcombine.high %v717_v6, %v721_v25  ;;  %v725_v15 = vld [vmem:[#allocation5 + $0x1050] sm:$0xff] }
 0x342   :  { %5865 = vmatprep.subr.bf16.mxu0 %v17131_v56  ;;  %6152 = vmatprep.subr.bf16.mxu1 %v17133_v23  ;;  %v706_v55 = vld [vmem:[#allocation5 + $0xfb8] sm:$0xff]  ;;  %v17170_v56 = vcombine.low %v693_v32, %v697_v33  ;;  %v17172_v23 = vcombine.low %v694_v35, %v698_v37  ;;  %v729_v16 = vld [vmem:[#allocation5 + $0x1070] sm:$0xff] }
 0x343   :  { %v17181_v59 = vcombine.high %v702_v53, %v706_v55  ;;  %v17203_v21 = vcombine.high %v725_v15, %v729_v16  ;;  %v733_v24 = vld [vmem:[#allocation5 + $0x1090] sm:$0xff] }
 0x344   :  { %v737_v57 = vld [vmem:[#allocation5 + $0x10b0] sm:$0xff] }
 0x345   :  { %5866 = vmatpush1.bf16.msra.mxu0 %v17130_v62  ;;  %6153 = vmatpush1.bf16.msra.mxu1 %v17132_v63  ;;  %v710_v62 = vld [vmem:[#allocation5 + $0xfd8] sm:$0xff]  ;;  %v17211_v32 = vcombine.high %v733_v24, %v737_v57  ;;  %v741_v35 = vld [vmem:[#allocation5 + $0x10d0] sm:$0xff] }
 0x346   :  { %5867 = vmatprep.subr.bf16.mxu0 %v17139_v2  ;;  %6154 = vmatprep.subr.bf16.mxu1 %v17141_v3  ;;  %v714_v63 = vld [vmem:[#allocation5 + $0xff8] sm:$0xff]  ;;  %v17178_v2 = vcombine.low %v701_v49, %v705_v51  ;;  %v17180_v3 = vcombine.low %v702_v53, %v706_v55  ;;  %v745_v37 = vld [vmem:[#allocation5 + $0x10f0] sm:$0xff] }
 0x347   :  { %v17189_v5 = vcombine.high %v710_v62, %v714_v63  ;;  %v749_v51 = vld [vmem:[#allocation5 + $0x1110] sm:$0xff]  ;;  %v750_v55 = vld [vmem:[#allocation5 + $0x1118] sm:$0xff] }
 0x348   :  { %v753_v53 = vld [vmem:[#allocation5 + $0x1130] sm:$0xff] }
 0x349   :  { %5868 = vmatpush1.bf16.msra.mxu0 %v17138_v7  ;;  %6155 = vmatpush1.bf16.msra.mxu1 %v17140_v8  ;;  %v718_v7 = vld [vmem:[#allocation5 + $0x1018] sm:$0xff] }
 0x34a   :  { %5869 = vmatprep.subr.bf16.mxu0 %v17147_v9  ;;  %6156 = vmatprep.subr.bf16.mxu1 %v17149_v10  ;;  %v722_v8 = vld [vmem:[#allocation5 + $0x1038] sm:$0xff]  ;;  %v17186_v9 = vcombine.low %v709_v60, %v713_v61  ;;  %v17188_v10 = vcombine.low %v710_v62, %v714_v63  ;;  %v757_v60 = vld [vmem:[#allocation5 + $0x1150] sm:$0xff] }
 0x34b   :  { %v17197_v13 = vcombine.high %v718_v7, %v722_v8  ;;  %v761_v61 = vld [vmem:[#allocation5 + $0x1170] sm:$0xff]  ;;  %v758_v62 = vld [vmem:[#allocation5 + $0x1158] sm:$0xff] }
 0x34c   :  { %v762_v63 = vld [vmem:[#allocation5 + $0x1178] sm:$0xff] }
 0x34d   :  { %5870 = vmatpush1.bf16.msra.mxu0 %v17146_v17  ;;  %6157 = vmatpush1.bf16.msra.mxu1 %v17148_v34  ;;  %v726_v17 = vld [vmem:[#allocation5 + $0x1058] sm:$0xff] }
 0x34e   :  { %5871 = vmatprep.subr.bf16.mxu0 %v17155_v18  ;;  %6158 = vmatprep.subr.bf16.mxu1 %v17157_v19  ;;  %v730_v34 = vld [vmem:[#allocation5 + $0x1078] sm:$0xff]  ;;  %v17194_v18 = vcombine.low %v717_v6, %v721_v25  ;;  %v17196_v19 = vcombine.low %v718_v7, %v722_v8  ;;  %v765_v6 = vld [vmem:[#allocation5 + $0x1190] sm:$0xff] }
 0x34f   :  { %v17205_v22 = vcombine.high %v726_v17, %v730_v34  ;;  %v769_v25 = vld [vmem:[#allocation5 + $0x11b0] sm:$0xff]  ;;  %v766_v7 = vld [vmem:[#allocation5 + $0x1198] sm:$0xff] }
 0x350   :  { %v770_v8 = vld [vmem:[#allocation5 + $0x11b8] sm:$0xff] }
 0x351   :  { %5872 = vmatpush1.bf16.msra.mxu0 %v17154_v28  ;;  %6159 = vmatpush1.bf16.msra.mxu1 %v17156_v39  ;;  %v734_v28 = vld [vmem:[#allocation5 + $0x1098] sm:$0xff] }
 0x352   :  { %5873 = vmatprep.subr.bf16.mxu0 %v17163_v29  ;;  %6160 = vmatprep.subr.bf16.mxu1 %v17165_v30  ;;  %v738_v39 = vld [vmem:[#allocation5 + $0x10b8] sm:$0xff]  ;;  %v17202_v29 = vcombine.low %v725_v15, %v729_v16  ;;  %v17204_v30 = vcombine.low %v726_v17, %v730_v34  ;;  %v773_v15 = vld [vmem:[#allocation5 + $0x11d0] sm:$0xff] }
 0x353   :  { %v17213_v33 = vcombine.high %v734_v28, %v738_v39  ;;  %v777_v16 = vld [vmem:[#allocation5 + $0x11f0] sm:$0xff]  ;;  %v774_v17 = vld [vmem:[#allocation5 + $0x11d8] sm:$0xff] }
 0x354   :  { %v778_v34 = vld [vmem:[#allocation5 + $0x11f8] sm:$0xff] }
 0x355   :  { %5874 = vmatpush1.bf16.msra.mxu0 %v17162_v41  ;;  %6161 = vmatpush1.bf16.msra.mxu1 %v17164_v42  ;;  %v742_v41 = vld [vmem:[#allocation5 + $0x10d8] sm:$0xff] }
 0x356   :  { %5875 = vmatprep.subr.bf16.mxu0 %v17171_v12  ;;  %6162 = vmatprep.subr.bf16.mxu1 %v17173_v46  ;;  %v746_v42 = vld [vmem:[#allocation5 + $0x10f8] sm:$0xff]  ;;  %v17210_v12 = vcombine.low %v733_v24, %v737_v57  ;;  %v17219_v46 = vcombine.high %v741_v35, %v745_v37  ;;  %v781_v24 = vld [vmem:[#allocation5 + $0x1210] sm:$0xff] }
 0x357   :  { %v17221_v49 = vcombine.high %v742_v41, %v746_v42  ;;  %v785_v57 = vld [vmem:[#allocation5 + $0x1230] sm:$0xff] }
 0x359   :  { %5876 = vmatpush1.bf16.msra.mxu0 %v17170_v56  ;;  %6163 = vmatpush1.bf16.msra.mxu1 %v17172_v23  ;;  %v754_v56 = vld [vmem:[#allocation5 + $0x1138] sm:$0xff]  ;;  %v17218_v23 = vcombine.low %v741_v35, %v745_v37  ;;  %v789_v35 = vld [vmem:[#allocation5 + $0x1250] sm:$0xff] }
 0x35a   :  { %5877 = vmatprep.subr.bf16.mxu0 %v17179_v58  ;;  %6164 = vmatprep.subr.bf16.mxu1 %v17181_v59  ;;  %v17220_v58 = vcombine.low %v742_v41, %v746_v42  ;;  %v17227_v59 = vcombine.high %v749_v51, %v753_v53  ;;  %v793_v37 = vld [vmem:[#allocation5 + $0x1270] sm:$0xff]  ;;  %v790_v41 = vld [vmem:[#allocation5 + $0x1258] sm:$0xff] }
 0x35b   :  { %v794_v42 = vld [vmem:[#allocation5 + $0x1278] sm:$0xff] }
 0x35d   :  { %5878 = vmatpush1.bf16.msra.mxu0 %v17178_v2  ;;  %6165 = vmatpush1.bf16.msra.mxu1 %v17180_v3  ;;  %v17226_v2 = vcombine.low %v749_v51, %v753_v53  ;;  %v17228_v3 = vcombine.low %v750_v55, %v754_v56  ;;  %v797_v51 = vld [vmem:[#allocation5 + $0x1290] sm:$0xff] }
 0x35e   :  { %5879 = vmatprep.subr.bf16.mxu0 %v17187_v4  ;;  %6166 = vmatprep.subr.bf16.mxu1 %v17189_v5  ;;  %v17235_v4 = vcombine.high %v757_v60, %v761_v61  ;;  %v17237_v5 = vcombine.high %v758_v62, %v762_v63  ;;  %v801_v53 = vld [vmem:[#allocation5 + $0x12b0] sm:$0xff] }
 0x361   :  { %5880 = vmatpush1.bf16.msra.mxu0 %v17186_v9  ;;  %6167 = vmatpush1.bf16.msra.mxu1 %v17188_v10  ;;  %v17234_v9 = vcombine.low %v757_v60, %v761_v61  ;;  %v17236_v10 = vcombine.low %v758_v62, %v762_v63  ;;  %v805_v60 = vld [vmem:[#allocation5 + $0x12d0] sm:$0xff]  ;;  %v806_v62 = vld [vmem:[#allocation5 + $0x12d8] sm:$0xff] }
 0x362   :  { %5890 = vmatprep.subr.bf16.mxu0 %v17195_v11  ;;  %6177 = vmatprep.subr.bf16.mxu1 %v17197_v13  ;;  %v17243_v11 = vcombine.high %v765_v6, %v769_v25  ;;  %v17245_v13 = vcombine.high %v766_v7, %v770_v8  ;;  %v809_v61 = vld [vmem:[#allocation5 + $0x12f0] sm:$0xff]  ;;  %v810_v63 = vld [vmem:[#allocation5 + $0x12f8] sm:$0xff] }
 0x364   :  { %5882 = vmatmul.mubr.bf16.vlgmr.msra.gmra.mrb[4].mxu0 %v20112_v54  ;;  %6169 = vmatmul.mubr.bf16.vlgmr.msra.gmra.mrb[4].mxu1 %v20112_v54  ;;  %v17212_v54 = vcombine.low %v734_v28, %v738_v39  ;;  %v782_v28 = vld [vmem:[#allocation5 + $0x1218] sm:$0xff] }
 0x365   :  { %5891 = vmatpush1.bf16.msra.mxu0 %v17194_v18  ;;  %6178 = vmatpush1.bf16.msra.mxu1 %v17196_v19  ;;  %v17242_v18 = vcombine.low %v765_v6, %v769_v25  ;;  %v17244_v19 = vcombine.low %v766_v7, %v770_v8  ;;  %v786_v39 = vld [vmem:[#allocation5 + $0x1238] sm:$0xff]  ;;  %v813_v6 = vld [vmem:[#allocation5 + $0x1310] sm:$0xff] }
 0x366   :  { %5892 = vmatprep.subr.bf16.mxu0 %v17203_v21  ;;  %6179 = vmatprep.subr.bf16.mxu1 %v17205_v22  ;;  %v17251_v21 = vcombine.high %v773_v15, %v777_v16  ;;  %v17253_v22 = vcombine.high %v774_v17, %v778_v34  ;;  %v817_v25 = vld [vmem:[#allocation5 + $0x1330] sm:$0xff]  ;;  %v814_v7 = vld [vmem:[#allocation5 + $0x1318] sm:$0xff] }
 0x367   :  { %5922 = vmatprep.mubr.bf16.mxu0 %v20114_v1  ;;  %6209 = vmatprep.mubr.bf16.mxu1 %v20114_v1  ;;  %v17229_v1 = vcombine.high %v750_v55, %v754_v56  ;;  %v798_v55 = vld [vmem:[#allocation5 + $0x1298] sm:$0xff] }
 0x368   :  { %v802_v56 = vld [vmem:[#allocation5 + $0x12b8] sm:$0xff] }
 0x369   :  { %5893 = vmatpush1.bf16.msra.mxu0 %v17202_v29  ;;  %6180 = vmatpush1.bf16.msra.mxu1 %v17204_v30  ;;  %v17250_v29 = vcombine.low %v773_v15, %v777_v16  ;;  %v17252_v30 = vcombine.low %v774_v17, %v778_v34  ;;  %v818_v8 = vld [vmem:[#allocation5 + $0x1338] sm:$0xff]  ;;  %v821_v15 = vld [vmem:[#allocation5 + $0x1350] sm:$0xff] }
 0x36a   :  { %5894 = vmatprep.subr.bf16.mxu0 %v17211_v32  ;;  %6181 = vmatprep.subr.bf16.mxu1 %v17213_v33  ;;  %v17259_v32 = vcombine.high %v781_v24, %v785_v57  ;;  %v17261_v33 = vcombine.high %v782_v28, %v786_v39  ;;  %v825_v16 = vld [vmem:[#allocation5 + $0x1370] sm:$0xff]  ;;  %v822_v17 = vld [vmem:[#allocation5 + $0x1358] sm:$0xff] }
 0x36b   :  { %v826_v34 = vld [vmem:[#allocation5 + $0x1378] sm:$0xff] }
 0x36d   :  { %5895 = vmatpush1.bf16.msra.mxu0 %v17210_v12  ;;  %6182 = vmatpush1.bf16.msra.mxu1 %v17212_v54  ;;  %v17258_v12 = vcombine.low %v781_v24, %v785_v57  ;;  %v17260_v54 = vcombine.low %v782_v28, %v786_v39  ;;  %v829_v24 = vld [vmem:[#allocation5 + $0x1390] sm:$0xff]  ;;  %v830_v28 = vld [vmem:[#allocation5 + $0x1398] sm:$0xff] }
 0x36e   :  { %5896 = vmatprep.subr.bf16.mxu0 %v17219_v46  ;;  %6183 = vmatprep.subr.bf16.mxu1 %v17221_v49  ;;  %v17267_v46 = vcombine.high %v789_v35, %v793_v37  ;;  %v17269_v49 = vcombine.high %v790_v41, %v794_v42  ;;  %v833_v57 = vld [vmem:[#allocation5 + $0x13b0] sm:$0xff]  ;;  %v834_v39 = vld [vmem:[#allocation5 + $0x13b8] sm:$0xff] }
 0x371   :  { %5897 = vmatpush1.bf16.msra.mxu0 %v17218_v23  ;;  %6184 = vmatpush1.bf16.msra.mxu1 %v17220_v58  ;;  %v17266_v23 = vcombine.low %v789_v35, %v793_v37  ;;  %v17268_v58 = vcombine.low %v790_v41, %v794_v42  ;;  %v837_v35 = vld [vmem:[#allocation5 + $0x13d0] sm:$0xff]  ;;  %v838_v41 = vld [vmem:[#allocation5 + $0x13d8] sm:$0xff] }
 0x372   :  { %5898 = vmatprep.subr.bf16.mxu0 %v17227_v59  ;;  %6185 = vmatprep.subr.bf16.mxu1 %v17229_v1  ;;  %v17275_v59 = vcombine.high %v797_v51, %v801_v53  ;;  %v17277_v1 = vcombine.high %v798_v55, %v802_v56  ;;  %v841_v37 = vld [vmem:[#allocation5 + $0x13f0] sm:$0xff]  ;;  %v842_v42 = vld [vmem:[#allocation5 + $0x13f8] sm:$0xff] }
 0x375   :  { %5899 = vmatpush1.bf16.msra.mxu0 %v17226_v2  ;;  %6186 = vmatpush1.bf16.msra.mxu1 %v17228_v3  ;;  %v17274_v2 = vcombine.low %v797_v51, %v801_v53  ;;  %v17276_v3 = vcombine.low %v798_v55, %v802_v56  ;;  %v845_v51 = vld [vmem:[#allocation5 + $0x1410] sm:$0xff]  ;;  %v846_v55 = vld [vmem:[#allocation5 + $0x1418] sm:$0xff] }
 0x376   :  { %5900 = vmatprep.subr.bf16.mxu0 %v17235_v4  ;;  %6187 = vmatprep.subr.bf16.mxu1 %v17237_v5  ;;  %v17283_v4 = vcombine.high %v805_v60, %v809_v61  ;;  %v17285_v5 = vcombine.high %v806_v62, %v810_v63  ;;  %v849_v53 = vld [vmem:[#allocation5 + $0x1430] sm:$0xff]  ;;  %v850_v56 = vld [vmem:[#allocation5 + $0x1438] sm:$0xff] }
 0x379   :  { %5901 = vmatpush1.bf16.msra.mxu0 %v17234_v9  ;;  %6188 = vmatpush1.bf16.msra.mxu1 %v17236_v10  ;;  %v17282_v9 = vcombine.low %v805_v60, %v809_v61  ;;  %v17284_v10 = vcombine.low %v806_v62, %v810_v63  ;;  %v853_v60 = vld [vmem:[#allocation5 + $0x1450] sm:$0xff]  ;;  %v854_v62 = vld [vmem:[#allocation5 + $0x1458] sm:$0xff] }
 0x37a   :  { %5902 = vmatprep.subr.bf16.mxu0 %v17243_v11  ;;  %6189 = vmatprep.subr.bf16.mxu1 %v17245_v13  ;;  %v17291_v11 = vcombine.high %v813_v6, %v817_v25  ;;  %v17293_v13 = vcombine.high %v814_v7, %v818_v8  ;;  %v857_v61 = vld [vmem:[#allocation5 + $0x1470] sm:$0xff]  ;;  %v858_v63 = vld [vmem:[#allocation5 + $0x1478] sm:$0xff] }
 0x37d   :  { %5903 = vmatpush1.bf16.msra.mxu0 %v17242_v18  ;;  %6190 = vmatpush1.bf16.msra.mxu1 %v17244_v19  ;;  %v17290_v18 = vcombine.low %v813_v6, %v817_v25  ;;  %v17292_v19 = vcombine.low %v814_v7, %v818_v8  ;;  %v861_v6 = vld [vmem:[#allocation5 + $0x1490] sm:$0xff]  ;;  %v862_v7 = vld [vmem:[#allocation5 + $0x1498] sm:$0xff] }
 0x37e   :  { %5904 = vmatprep.subr.bf16.mxu0 %v17251_v21  ;;  %6191 = vmatprep.subr.bf16.mxu1 %v17253_v22  ;;  %v17299_v21 = vcombine.high %v821_v15, %v825_v16  ;;  %v17301_v22 = vcombine.high %v822_v17, %v826_v34  ;;  %v865_v25 = vld [vmem:[#allocation5 + $0x14b0] sm:$0xff]  ;;  %v866_v8 = vld [vmem:[#allocation5 + $0x14b8] sm:$0xff] }
 0x381   :  { %5905 = vmatpush1.bf16.msra.mxu0 %v17250_v29  ;;  %6192 = vmatpush1.bf16.msra.mxu1 %v17252_v30  ;;  %v17298_v29 = vcombine.low %v821_v15, %v825_v16  ;;  %v17300_v30 = vcombine.low %v822_v17, %v826_v34  ;;  %v869_v15 = vld [vmem:[#allocation5 + $0x14d0] sm:$0xff]  ;;  %v870_v17 = vld [vmem:[#allocation5 + $0x14d8] sm:$0xff] }
 0x382   :  { %5906 = vmatprep.subr.bf16.mxu0 %v17259_v32  ;;  %6193 = vmatprep.subr.bf16.mxu1 %v17261_v33  ;;  %v17307_v32 = vcombine.high %v829_v24, %v833_v57  ;;  %v17309_v33 = vcombine.high %v830_v28, %v834_v39  ;;  %v873_v16 = vld [vmem:[#allocation5 + $0x14f0] sm:$0xff]  ;;  %v874_v34 = vld [vmem:[#allocation5 + $0x14f8] sm:$0xff] }
 0x385   :  { %5907 = vmatpush1.bf16.msra.mxu0 %v17258_v12  ;;  %6194 = vmatpush1.bf16.msra.mxu1 %v17260_v54  ;;  %v17306_v12 = vcombine.low %v829_v24, %v833_v57  ;;  %v17308_v54 = vcombine.low %v830_v28, %v834_v39  ;;  %v881_v24 = vld [vmem:[#allocation5 + $0x1530] sm:$0xff]  ;;  %v878_v57 = vld [vmem:[#allocation5 + $0x1518] sm:$0xff]  ;;  %v17346_v39 = vcombine.low %v869_v15, %v873_v16 }
 0x386   :  { %5908 = vmatprep.subr.bf16.mxu0 %v17267_v46  ;;  %6195 = vmatprep.subr.bf16.mxu1 %v17269_v49  ;;  %v17315_v46 = vcombine.high %v837_v35, %v841_v37  ;;  %v17317_v49 = vcombine.high %v838_v41, %v842_v42  ;;  %v882_v28 = vld [vmem:[#allocation5 + $0x1538] sm:$0xff] }
 0x389   :  { %5909 = vmatpush1.bf16.msra.mxu0 %v17266_v23  ;;  %6196 = vmatpush1.bf16.msra.mxu1 %v17268_v58  ;;  %v17314_v23 = vcombine.low %v837_v35, %v841_v37  ;;  %v17316_v58 = vcombine.low %v838_v41, %v842_v42  ;;  %v886_v35 = vld [vmem:[#allocation5 + $0x1558] sm:$0xff]  ;;  %v17356_v42 = vcombine.low %v878_v57, %v882_v28 }
 0x38a   :  { %5910 = vmatprep.subr.bf16.mxu0 %v17275_v59  ;;  %6197 = vmatprep.subr.bf16.mxu1 %v17277_v1  ;;  %v17323_v59 = vcombine.high %v845_v51, %v849_v53  ;;  %v17325_v1 = vcombine.high %v846_v55, %v850_v56  ;;  %v890_v37 = vld [vmem:[#allocation5 + $0x1578] sm:$0xff] }
 0x38d   :  { %5911 = vmatpush1.bf16.msra.mxu0 %v17274_v2  ;;  %6198 = vmatpush1.bf16.msra.mxu1 %v17276_v3  ;;  %v17322_v2 = vcombine.low %v845_v51, %v849_v53  ;;  %v17324_v3 = vcombine.low %v846_v55, %v850_v56  ;;  %v894_v51 = vld [vmem:[#allocation5 + $0x1598] sm:$0xff]  ;;  %v17364_v56 = vcombine.low %v886_v35, %v890_v37 }
 0x38e   :  { %5912 = vmatprep.subr.bf16.mxu0 %v17283_v4  ;;  %6199 = vmatprep.subr.bf16.mxu1 %v17285_v5  ;;  %v17331_v4 = vcombine.high %v853_v60, %v857_v61  ;;  %v17333_v5 = vcombine.high %v854_v62, %v858_v63  ;;  %v898_v53 = vld [vmem:[#allocation5 + $0x15b8] sm:$0xff] }
 0x391   :  { %5913 = vmatpush1.bf16.msra.mxu0 %v17282_v9  ;;  %6200 = vmatpush1.bf16.msra.mxu1 %v17284_v10  ;;  %v17330_v9 = vcombine.low %v853_v60, %v857_v61  ;;  %v17332_v10 = vcombine.low %v854_v62, %v858_v63  ;;  %v902_v60 = vld [vmem:[#allocation5 + $0x15d8] sm:$0xff]  ;;  %v17372_v63 = vcombine.low %v894_v51, %v898_v53 }
 0x392   :  { %5914 = vmatprep.subr.bf16.mxu0 %v17291_v11  ;;  %6201 = vmatprep.subr.bf16.mxu1 %v17293_v13  ;;  %v17339_v11 = vcombine.high %v861_v6, %v865_v25  ;;  %v17341_v13 = vcombine.high %v862_v7, %v866_v8  ;;  %v906_v61 = vld [vmem:[#allocation5 + $0x15f8] sm:$0xff] }
 0x395   :  { %5915 = vmatpush1.bf16.msra.mxu0 %v17290_v18  ;;  %6202 = vmatpush1.bf16.msra.mxu1 %v17292_v19  ;;  %v17338_v18 = vcombine.low %v861_v6, %v865_v25  ;;  %v17347_v19 = vcombine.high %v869_v15, %v873_v16  ;;  %v910_v6 = vld [vmem:[#allocation5 + $0x1618] sm:$0xff] }
 0x396   :  { %5916 = vmatprep.subr.bf16.mxu0 %v17299_v21  ;;  %6203 = vmatprep.subr.bf16.mxu1 %v17301_v22  ;;  %v17349_v21 = vcombine.high %v870_v17, %v874_v34  ;;  %v877_v22 = vld [vmem:[#allocation5 + $0x1510] sm:$0xff]  ;;  %v914_v25 = vld [vmem:[#allocation5 + $0x1638] sm:$0xff] }
 0x397   :  { %v17354_v41 = vcombine.low %v877_v22, %v881_v24  ;;  %v918_v15 = vld [vmem:[#allocation5 + $0x1658] sm:$0xff] }
 0x398   :  { %v922_v16 = vld [vmem:[#allocation5 + $0x1678] sm:$0xff] }
 0x399   :  { %5917 = vmatpush1.bf16.msra.mxu0 %v17298_v29  ;;  %6204 = vmatpush1.bf16.msra.mxu1 %v17300_v30  ;;  %v17348_v29 = vcombine.low %v870_v17, %v874_v34  ;;  %v17355_v30 = vcombine.high %v877_v22, %v881_v24  ;;  %v17388_v34 = vcombine.low %v910_v6, %v914_v25  ;;  %v926_v22 = vld [vmem:[#allocation5 + $0x1698] sm:$0xff] }
 0x39a   :  { %5918 = vmatprep.subr.bf16.mxu0 %v17307_v32  ;;  %6205 = vmatprep.subr.bf16.mxu1 %v17309_v33  ;;  %v885_v32 = vld [vmem:[#allocation5 + $0x1550] sm:$0xff]  ;;  %v930_v24 = vld [vmem:[#allocation5 + $0x16b8] sm:$0xff] }
 0x39b   :  { %v889_v33 = vld [vmem:[#allocation5 + $0x1570] sm:$0xff] }
 0x39c   :  { %v17362_v55 = vcombine.low %v885_v32, %v889_v33 }
 0x39d   :  { %5919 = vmatpush1.bf16.msra.mxu0 %v17306_v12  ;;  %6206 = vmatpush1.bf16.msra.mxu1 %v17308_v54  ;;  %v17363_v12 = vcombine.high %v885_v32, %v889_v33  ;;  %v17365_v54 = vcombine.high %v886_v35, %v890_v37  ;;  %v934_v32 = vld [vmem:[#allocation5 + $0x16d8] sm:$0xff]  ;;  %v17404_v37 = vcombine.low %v926_v22, %v930_v24 }
 0x39e   :  { %5920 = vmatprep.subr.bf16.mxu0 %v17315_v46  ;;  %6207 = vmatprep.subr.bf16.mxu1 %v17317_v49  ;;  %v893_v46 = vld [vmem:[#allocation5 + $0x1590] sm:$0xff]  ;;  %v938_v33 = vld [vmem:[#allocation5 + $0x16f8] sm:$0xff] }
 0x39f   :  { %v897_v49 = vld [vmem:[#allocation5 + $0x15b0] sm:$0xff] }
 0x3a0   :  { %v17370_v62 = vcombine.low %v893_v46, %v897_v49 }
 0x3a1   :  { %5921 = vmatpush1.bf16.msra.mxu0 %v17314_v23  ;;  %6208 = vmatpush1.bf16.msra.mxu1 %v17316_v58  ;;  %v17371_v23 = vcombine.high %v893_v46, %v897_v49  ;;  %v17373_v58 = vcombine.high %v894_v51, %v898_v53  ;;  %v942_v46 = vld [vmem:[#allocation5 + $0x1718] sm:$0xff]  ;;  %v17412_v53 = vcombine.low %v934_v32, %v938_v33 }
 0x3a2   :  { %5931 = vmatprep.subr.bf16.mxu0 %v17323_v59  ;;  %6218 = vmatprep.subr.bf16.mxu1 %v17325_v1  ;;  %v901_v59 = vld [vmem:[#allocation5 + $0x15d0] sm:$0xff]  ;;  %v946_v49 = vld [vmem:[#allocation5 + $0x1738] sm:$0xff] }
 0x3a3   :  { %v905_v1 = vld [vmem:[#allocation5 + $0x15f0] sm:$0xff] }
 0x3a4   :  { %5923 = vmatmul.mubr.bf16.vlgmr.msra.gmra.mrb[4].mxu0 %v20120_v14  ;;  %6210 = vmatmul.mubr.bf16.vlgmr.msra.gmra.mrb[4].mxu1 %v20120_v14  ;;  %v17340_v14 = vcombine.low %v862_v7, %v866_v8  ;;  %v17378_v7 = vcombine.low %v901_v59, %v905_v1  ;;  %v17380_v8 = vcombine.low %v902_v60, %v906_v61 }
 0x3a5   :  { %5932 = vmatpush1.bf16.msra.mxu0 %v17322_v2  ;;  %6219 = vmatpush1.bf16.msra.mxu1 %v17324_v3  ;;  %v17379_v2 = vcombine.high %v901_v59, %v905_v1  ;;  %v17381_v3 = vcombine.high %v902_v60, %v906_v61  ;;  %v950_v59 = vld [vmem:[#allocation5 + $0x1758] sm:$0xff]  ;;  %v17420_v61 = vcombine.low %v942_v46, %v946_v49 }
 0x3a6   :  { %5933 = vmatprep.subr.bf16.mxu0 %v17331_v4  ;;  %6220 = vmatprep.subr.bf16.mxu1 %v17333_v5  ;;  %v909_v4 = vld [vmem:[#allocation5 + $0x1610] sm:$0xff]  ;;  %v954_v1 = vld [vmem:[#allocation5 + $0x1778] sm:$0xff] }
 0x3a7   :  { %5963 = vmatprep.mubr.bf16.mxu0 %v20122_v26  ;;  %6250 = vmatprep.mubr.bf16.mxu1 %v20122_v26  ;;  %v17357_v26 = vcombine.high %v878_v57, %v882_v28  ;;  %v913_v5 = vld [vmem:[#allocation5 + $0x1630] sm:$0xff]  ;;  %v17396_v28 = vcombine.low %v918_v15, %v922_v16 }
 0x3a8   :  { %v17386_v17 = vcombine.low %v909_v4, %v913_v5 }
 0x3a9   :  { %5934 = vmatpush1.bf16.msra.mxu0 %v17330_v9  ;;  %6221 = vmatpush1.bf16.msra.mxu1 %v17332_v10  ;;  %v17387_v9 = vcombine.high %v909_v4, %v913_v5  ;;  %v17389_v10 = vcombine.high %v910_v6, %v914_v25  ;;  %v958_v4 = vld [vmem:[#allocation5 + $0x1798] sm:$0xff]  ;;  %v17428_v25 = vcombine.low %v950_v59, %v954_v1 }
 0x3aa   :  { %5935 = vmatprep.subr.bf16.mxu0 %v17339_v11  ;;  %6222 = vmatprep.subr.bf16.mxu1 %v17341_v13  ;;  %v917_v11 = vld [vmem:[#allocation5 + $0x1650] sm:$0xff]  ;;  %v962_v5 = vld [vmem:[#allocation5 + $0x17b8] sm:$0xff] }
 0x3ab   :  { %v921_v13 = vld [vmem:[#allocation5 + $0x1670] sm:$0xff] }
 0x3ac   :  { %v17394_v57 = vcombine.low %v917_v11, %v921_v13 }
 0x3ad   :  { %5936 = vmatpush1.bf16.msra.mxu0 %v17338_v18  ;;  %6223 = vmatpush1.bf16.msra.mxu1 %v17340_v14  ;;  %v17395_v18 = vcombine.high %v917_v11, %v921_v13  ;;  %v17397_v14 = vcombine.high %v918_v15, %v922_v16  ;;  %v966_v11 = vld [vmem:[#allocation5 + $0x17d8] sm:$0xff]  ;;  %v17436_v16 = vcombine.low %v958_v4, %v962_v5 }
 0x3ae   :  { %5937 = vmatprep.subr.bf16.mxu0 %v17347_v19  ;;  %6224 = vmatprep.subr.bf16.mxu1 %v17349_v21  ;;  %v925_v19 = vld [vmem:[#allocation5 + $0x1690] sm:$0xff]  ;;  %v970_v13 = vld [vmem:[#allocation5 + $0x17f8] sm:$0xff] }
 0x3af   :  { %v929_v21 = vld [vmem:[#allocation5 + $0x16b0] sm:$0xff] }
 0x3b0   :  { %v17402_v35 = vcombine.low %v925_v19, %v929_v21 }
 0x3b1   :  { %5938 = vmatpush1.bf16.msra.mxu0 %v17346_v39  ;;  %6225 = vmatpush1.bf16.msra.mxu1 %v17348_v29  ;;  %v17403_v39 = vcombine.high %v925_v19, %v929_v21  ;;  %v17405_v29 = vcombine.high %v926_v22, %v930_v24  ;;  %v974_v19 = vld [vmem:[#allocation5 + $0x1818] sm:$0xff]  ;;  %v17444_v24 = vcombine.low %v966_v11, %v970_v13 }
 0x3b2   :  { %5939 = vmatprep.subr.bf16.mxu0 %v17355_v30  ;;  %6226 = vmatprep.subr.bf16.mxu1 %v17357_v26  ;;  %v933_v30 = vld [vmem:[#allocation5 + $0x16d0] sm:$0xff]  ;;  %v978_v21 = vld [vmem:[#allocation5 + $0x1838] sm:$0xff] }
 0x3b3   :  { %v937_v26 = vld [vmem:[#allocation5 + $0x16f0] sm:$0xff] }
 0x3b4   :  { %v17410_v51 = vcombine.low %v933_v30, %v937_v26 }
 0x3b5   :  { %5940 = vmatpush1.bf16.msra.mxu0 %v17354_v41  ;;  %6227 = vmatpush1.bf16.msra.mxu1 %v17356_v42  ;;  %v17411_v41 = vcombine.high %v933_v30, %v937_v26  ;;  %v17413_v42 = vcombine.high %v934_v32, %v938_v33  ;;  %v982_v30 = vld [vmem:[#allocation5 + $0x1858] sm:$0xff]  ;;  %v17452_v33 = vcombine.low %v974_v19, %v978_v21 }
 0x3b6   :  { %5941 = vmatprep.subr.bf16.mxu0 %v17363_v12  ;;  %6228 = vmatprep.subr.bf16.mxu1 %v17365_v54  ;;  %v941_v12 = vld [vmem:[#allocation5 + $0x1710] sm:$0xff]  ;;  %v986_v26 = vld [vmem:[#allocation5 + $0x1878] sm:$0xff] }
 0x3b7   :  { %v945_v54 = vld [vmem:[#allocation5 + $0x1730] sm:$0xff] }
 0x3b8   :  { %v17418_v60 = vcombine.low %v941_v12, %v945_v54 }
 0x3b9   :  { %5942 = vmatpush1.bf16.msra.mxu0 %v17362_v55  ;;  %6229 = vmatpush1.bf16.msra.mxu1 %v17364_v56  ;;  %v17419_v55 = vcombine.high %v941_v12, %v945_v54  ;;  %v17421_v56 = vcombine.high %v942_v46, %v946_v49  ;;  %v990_v12 = vld [vmem:[#allocation5 + $0x1898] sm:$0xff]  ;;  %v17460_v49 = vcombine.low %v982_v30, %v986_v26 }
 0x3ba   :  { %5943 = vmatprep.subr.bf16.mxu0 %v17371_v23  ;;  %6230 = vmatprep.subr.bf16.mxu1 %v17373_v58  ;;  %v949_v23 = vld [vmem:[#allocation5 + $0x1750] sm:$0xff]  ;;  %v994_v54 = vld [vmem:[#allocation5 + $0x18b8] sm:$0xff] }
 0x3bb   :  { %v953_v58 = vld [vmem:[#allocation5 + $0x1770] sm:$0xff] }
 0x3bc   :  { %v17426_v6 = vcombine.low %v949_v23, %v953_v58 }
 0x3bd   :  { %5944 = vmatpush1.bf16.msra.mxu0 %v17370_v62  ;;  %6231 = vmatpush1.bf16.msra.mxu1 %v17372_v63  ;;  %v17427_v62 = vcombine.high %v949_v23, %v953_v58  ;;  %v17429_v63 = vcombine.high %v950_v59, %v954_v1  ;;  %v20210_v23 = vsub.s32 2, %v20157_v27  ;;  %v998_v58 = vld [vmem:[#allocation5 + $0x18d8] sm:$0xff]  ;;  %v17468_v1 = vcombine.low %v990_v12, %v994_v54 }
 0x3be   :  { %5945 = vmatprep.subr.bf16.mxu0 %v17379_v2  ;;  %6232 = vmatprep.subr.bf16.mxu1 %v17381_v3  ;;  %v957_v2 = vld [vmem:[#allocation5 + $0x1790] sm:$0xff]  ;;  %v1002_v59 = vld [vmem:[#allocation5 + $0x18f8] sm:$0xff] }
 0x3bf   :  { %v961_v3 = vld [vmem:[#allocation5 + $0x17b0] sm:$0xff] }
 0x3c0   :  { %v17434_v15 = vcombine.low %v957_v2, %v961_v3 }
 0x3c1   :  { %5946 = vmatpush1.bf16.msra.mxu0 %v17378_v7  ;;  %6233 = vmatpush1.bf16.msra.mxu1 %v17380_v8  ;;  %v17435_v7 = vcombine.high %v957_v2, %v961_v3  ;;  %v17437_v8 = vcombine.high %v958_v4, %v962_v5  ;;  %v19585_v2 = vld [vmem:[#allocation7] sm:$0xff]  ;;  %v20215_v4 = vsub.s32 3, %v20157_v27  ;;  %v1006_v5 = vld [vmem:[#allocation5 + $0x1918] sm:$0xff] }
 0x3c2   :  { %5947 = vmatprep.subr.bf16.mxu0 %v17387_v9  ;;  %6234 = vmatprep.subr.bf16.mxu1 %v17389_v10  ;;  %v965_v9 = vld [vmem:[#allocation5 + $0x17d0] sm:$0xff]  ;;  %v6311_v3 = vrot.slane %v19585_v2, %v20210_v23 }
 0x3c3   :  { %v969_v10 = vld [vmem:[#allocation5 + $0x17f0] sm:$0xff] }
 0x3c4   :  { %v17442_v22 = vcombine.low %v965_v9, %v969_v10 }
 0x3c5   :  { %5948 = vmatpush1.bf16.msra.mxu0 %v17386_v17  ;;  %6235 = vmatpush1.bf16.msra.mxu1 %v17388_v34  ;;  %v17443_v17 = vcombine.high %v965_v9, %v969_v10  ;;  %v17445_v34 = vcombine.high %v966_v11, %v970_v13  ;;  %v1013_v9 = vld [vmem:[#allocation5 + $0x1950] sm:$0xff]  ;;  %v6351_v11 = vrot.slane %v6311_v3, %v20161_v36 }
 0x3c6   :  { %5949 = vmatprep.subr.bf16.mxu0 %v17395_v18  ;;  %6236 = vmatprep.subr.bf16.mxu1 %v17397_v14  ;;  %v973_v18 = vld [vmem:[#allocation5 + $0x1810] sm:$0xff]  ;;  %v6391_v13 = vrot.slane %v19585_v2, %v20215_v4 }
 0x3c7   :  { %v977_v14 = vld [vmem:[#allocation5 + $0x1830] sm:$0xff] }
 0x3c8   :  { %v17450_v32 = vcombine.low %v973_v18, %v977_v14  ;;  %v1017_v10 = vld [vmem:[#allocation5 + $0x1970] sm:$0xff] }
 0x3c9   :  { %5950 = vmatpush1.bf16.msra.mxu0 %v17394_v57  ;;  %6237 = vmatpush1.bf16.msra.mxu1 %v17396_v28  ;;  %v17451_v57 = vcombine.high %v973_v18, %v977_v14  ;;  %v17453_v28 = vcombine.high %v974_v19, %v978_v21  ;;  %v1021_v14 = vld [vmem:[#allocation5 + $0x1990] sm:$0xff]  ;;  %v6377_v19 = vmul.f32 %v6351_v11, %v20189_v20 }
 0x3ca   :  { %5951 = vmatprep.subr.bf16.mxu0 %v17403_v39  ;;  %6238 = vmatprep.subr.bf16.mxu1 %v17405_v29  ;;  %v981_v39 = vld [vmem:[#allocation5 + $0x1850] sm:$0xff]  ;;  %v6431_v21 = vrot.slane %v6391_v13, %v20170_v43 }
 0x3cb   :  { %v985_v29 = vld [vmem:[#allocation5 + $0x1870] sm:$0xff] }
 0x3cc   :  { %v17458_v46 = vcombine.low %v981_v39, %v985_v29  ;;  %v6512_v11 = vld [vmem:[#allocation8 + $0x100] sm:$0xff] }
 0x3cd   :  { %5952 = vmatpush1.bf16.msra.mxu0 %v17402_v35  ;;  %6239 = vmatpush1.bf16.msra.mxu1 %v17404_v37  ;;  %v17459_v35 = vcombine.high %v981_v39, %v985_v29  ;;  %v17461_v37 = vcombine.high %v982_v30, %v986_v26  ;;  %v17498_v39 = vcombine.low %v1021_v14, %v1021_v14  ;;  %v6480_v26 = vld [vmem:[#allocation8] sm:$0xff] }
 0x3ce   :  { %5953 = vmatprep.subr.bf16.mxu0 %v17411_v41  ;;  %6240 = vmatprep.subr.bf16.mxu1 %v17413_v42  ;;  %v989_v41 = vld [vmem:[#allocation5 + $0x1890] sm:$0xff] }
 0x3cf   :  { %v993_v42 = vld [vmem:[#allocation5 + $0x18b0] sm:$0xff]  ;;  %v5141_v20 = vsel %vm5127_vm0, %v17498_v39, 0 }
 0x3d0   :  { %v6516_v13 = vld [vmem:[#allocation8 + $0x120] sm:$0xff] }
 0x3d1   :  { %5954 = vmatpush1.bf16.msra.mxu0 %v17410_v51  ;;  %6241 = vmatpush1.bf16.msra.mxu1 %v17412_v53  ;;  %v17467_v51 = vcombine.high %v989_v41, %v993_v42  ;;  %v17469_v53 = vcombine.high %v990_v12, %v994_v54 }
 0x3d2   :  { %5955 = vmatprep.subr.bf16.mxu0 %v17419_v55  ;;  %6242 = vmatprep.subr.bf16.mxu1 %v17421_v56  ;;  %v997_v55 = vld [vmem:[#allocation5 + $0x18d0] sm:$0xff] }
 0x3d3   :  { %v1001_v56 = vld [vmem:[#allocation5 + $0x18f0] sm:$0xff] }
 0x3d5   :  { %5956 = vmatpush1.bf16.msra.mxu0 %v17418_v60  ;;  %6243 = vmatpush1.bf16.msra.mxu1 %v17420_v61  ;;  %v17475_v60 = vcombine.high %v997_v55, %v1001_v56  ;;  %v17477_v61 = vcombine.high %v998_v58, %v1002_v59 }
 0x3d6   :  { %5957 = vmatprep.subr.bf16.mxu0 %v17427_v62  ;;  %6244 = vmatprep.subr.bf16.mxu1 %v17429_v63  ;;  %v1005_v62 = vld [vmem:[#allocation5 + $0x1910] sm:$0xff] }
 0x3d7   :  { %v1009_v63 = vld [vmem:[#allocation5 + $0x1930] sm:$0xff] }
 0x3d8   :  { %v17482_v27 = vcombine.low %v1005_v62, %v1009_v63 }
 0x3d9   :  { %5958 = vmatpush1.bf16.msra.mxu0 %v17426_v6  ;;  %6245 = vmatpush1.bf16.msra.mxu1 %v17428_v25  ;;  %v1010_v6 = vld [vmem:[#allocation5 + $0x1938] sm:$0xff]  ;;  %v17476_v25 = vcombine.low %v998_v58, %v1002_v59  ;;  %v6496_v59 = vld [vmem:[#allocation8 + $0x80] sm:$0xff] }
 0x3da   :  { %5959 = vmatprep.subr.bf16.mxu0 %v17435_v7  ;;  %6246 = vmatprep.subr.bf16.mxu1 %v17437_v8  ;;  %v17483_v7 = vcombine.high %v1005_v62, %v1009_v63  ;;  %v17485_v8 = vcombine.high %v1006_v5, %v1010_v6  ;;  %v6501_v62 = vld [vmem:[#allocation8 + $0xa8] sm:$0xff] }
 0x3dd   :  { %5960 = vmatpush1.bf16.msra.mxu0 %v17434_v15  ;;  %6247 = vmatpush1.bf16.msra.mxu1 %v17436_v16  ;;  %v1014_v15 = vld [vmem:[#allocation5 + $0x1958] sm:$0xff] }
 0x3de   :  { %5961 = vmatprep.subr.bf16.mxu0 %v17443_v17  ;;  %6248 = vmatprep.subr.bf16.mxu1 %v17445_v34  ;;  %v1018_v16 = vld [vmem:[#allocation5 + $0x1978] sm:$0xff]  ;;  %v17484_v17 = vcombine.low %v1006_v5, %v1010_v6  ;;  %v17491_v34 = vcombine.high %v1013_v9, %v1017_v10  ;;  %v6504_v6 = vld [vmem:[#allocation8 + $0xc0] sm:$0xff] }
 0x3df   :  { %v17493_v18 = vcombine.high %v1014_v15, %v1018_v16 }
 0x3e1   :  { %5962 = vmatpush1.bf16.msra.mxu0 %v17442_v22  ;;  %6249 = vmatpush1.bf16.msra.mxu1 %v17444_v24  ;;  %v1022_v22 = vld [vmem:[#allocation5 + $0x1998] sm:$0xff]  ;;  %v17490_v24 = vcombine.low %v1013_v9, %v1017_v10 }
 0x3e2   :  { %5972 = vmatprep.subr.bf16.mxu0 %v17451_v57  ;;  %6259 = vmatprep.subr.bf16.mxu1 %v17453_v28  ;;  %v17492_v57 = vcombine.low %v1014_v15, %v1018_v16  ;;  %v17499_v28 = vcombine.high %v1021_v14, %v1021_v14  ;;  %v17501_v29 = vcombine.high %v1022_v22, %v1022_v22  ;;  %v6513_v15 = vld [vmem:[#allocation8 + $0x108] sm:$0xff]  ;;  %v6520_v14 = vld [vmem:[#allocation8 + $0x140] sm:$0xff] }
 0x3e3   :  { %v17500_v30 = vcombine.low %v1022_v22, %v1022_v22  ;;  %v6517_v16 = vld [vmem:[#allocation8 + $0x128] sm:$0xff] }
 0x3e4   :  { %5964 = vmatmul.mubr.bf16.vlgmr.msra.gmra.mrb[4].mxu0 %v20128_v44  ;;  %6251 = vmatmul.mubr.bf16.vlgmr.msra.gmra.mrb[4].mxu1 %v20128_v44  ;;  %v17466_v44 = vcombine.low %v989_v41, %v993_v42  ;;  %v6525_v22 = vld [vmem:[#allocation8 + $0x168] sm:$0xff] }
 0x3e5   :  { %5973 = vmatpush1.bf16.msra.mxu0 %v17450_v32  ;;  %6260 = vmatpush1.bf16.msra.mxu1 %v17452_v33  ;;  %v6484_v32 = vld [vmem:[#allocation8 + $0x20] sm:$0xff]  ;;  %v6457_v33 = vadd.f32 %v6431_v21, %v6377_v19  ;;  %v5147_v42 = vsel %vm5127_vm0, %v17500_v30, 0  ;;  %v6521_v21 = vld [vmem:[#allocation8 + $0x148] sm:$0xff] }
 0x3e6   :  { %5974 = vmatprep.subr.bf16.mxu0 %v17459_v35  ;;  %6261 = vmatprep.subr.bf16.mxu1 %v17461_v37  ;;  %v6481_v35 = vld [vmem:[#allocation8 + $0x8] sm:$0xff]  ;;  %v17511_v41 = vcombine.high %v6480_v26, %v6484_v32  ;;  %v6524_v19 = vld [vmem:[#allocation8 + $0x160] sm:$0xff]  ;;  %v17553_v39 = vcombine.high %v6521_v21, %v6525_v22 }
 0x3e7   :  { %6004 = vmatprep.mubr.bf16.mxu0 %v19881_v0  ;;  %6291 = vmatprep.mubr.bf16.mxu1 %v19881_v0  ;;  %v17474_v0 = vcombine.low %v997_v55, %v1001_v56  ;;  %v6485_v37 = vld [vmem:[#allocation8 + $0x28] sm:$0xff]  ;;  %v6465_v54 = vmax.f32 %v6457_v33, 0.0  ;;  %v6532_v30 = vld [vmem:[#allocation8 + $0x1a0] sm:$0xff]  ;;  %v17550_v33 = vcombine.low %v6520_v14, %v6524_v19 }
 0x3e8   :  { %v17513_v12 = vcombine.high %v6481_v35, %v6485_v37  ;;  %v6493_v55 = vld [vmem:[#allocation8 + $0x68] sm:$0xff]  ;;  %v17512_v56 = vcombine.low %v6481_v35, %v6485_v37  ;;  %v17552_v35 = vcombine.low %v6521_v21, %v6525_v22 }
 0x3e9   :  { %5975 = vmatpush1.bf16.msra.mxu0 %v17458_v46  ;;  %6262 = vmatpush1.bf16.msra.mxu1 %v17460_v49  ;;  %v6488_v46 = vld [vmem:[#allocation8 + $0x40] sm:$0xff] }
 0x3ea   :  { %5976 = vmatprep.subr.bf16.mxu0 %v17467_v51  ;;  %6263 = vmatprep.subr.bf16.mxu1 %v17469_v53  ;;  %v6492_v49 = vld [vmem:[#allocation8 + $0x60] sm:$0xff]  ;;  %v17510_v51 = vcombine.low %v6480_v26, %v6484_v32  ;;  %v6489_v53 = vld [vmem:[#allocation8 + $0x48] sm:$0xff] }
 0x3eb   :  { %v17519_v58 = vcombine.high %v6488_v46, %v6492_v49  ;;  %v17518_v63 = vcombine.low %v6488_v46, %v6492_v49  ;;  %v17520_v2 = vcombine.low %v6489_v53, %v6493_v55  ;;  %v6529_v26 = vld [vmem:[#allocation8 + $0x188] sm:$0xff] }
 0x3ec   :  { %v6533_v32 = vld [vmem:[#allocation8 + $0x1a8] sm:$0xff] }
 0x3ed   :  { %5977 = vmatpush1.bf16.msra.mxu0 %v17466_v44  ;;  %6264 = vmatpush1.bf16.msra.mxu1 %v17468_v1  ;;  %v6500_v44 = vld [vmem:[#allocation8 + $0xa0] sm:$0xff]  ;;  %v20225_v1 = vpack.c.bf16 %v6465_v54, %v6465_v54  ;;  %v6541_v54 = vld [vmem:[#allocation8 + $0x1e8] sm:$0xff]  ;;  %v17560_v49 = vcombine.low %v6529_v26, %v6533_v32 }
 0x3ee   :  { %5978 = vmatprep.subr.bf16.mxu0 %v17475_v60  ;;  %6265 = vmatprep.subr.bf16.mxu1 %v17477_v61  ;;  %v17521_v60 = vcombine.high %v6489_v53, %v6493_v55  ;;  %v6497_v61 = vld [vmem:[#allocation8 + $0x88] sm:$0xff]  ;;  %v17527_v3 = vcombine.high %v6496_v59, %v6500_v44  ;;  %v6544_v55 = vld [vmem:[#allocation8 + $0x200] sm:$0xff] }
 0x3ef   :  { %v17529_v5 = vcombine.high %v6497_v61, %v6501_v62 }
 0x3f1   :  { %5979 = vmatpush1.bf16.msra.mxu0 %v17474_v0  ;;  %6266 = vmatpush1.bf16.msra.mxu1 %v17476_v25  ;;  %v6508_v0 = vld [vmem:[#allocation8 + $0xe0] sm:$0xff]  ;;  %v6505_v25 = vld [vmem:[#allocation8 + $0xc8] sm:$0xff] }
 0x3f2   :  { %5980 = vmatprep.subr.bf16.mxu0 %v17483_v7  ;;  %6267 = vmatprep.subr.bf16.mxu1 %v17485_v8  ;;  %v6509_v7 = vld [vmem:[#allocation8 + $0xe8] sm:$0xff]  ;;  %v17526_v8 = vcombine.low %v6496_v59, %v6500_v44  ;;  %v17535_v9 = vcombine.high %v6504_v6, %v6508_v0 }
 0x3f3   :  { %v17537_v10 = vcombine.high %v6505_v25, %v6509_v7  ;;  %v6549_v59 = vld [vmem:[#allocation8 + $0x228] sm:$0xff] }
 0x3f5   :  { %5981 = vmatpush1.bf16.msra.mxu0 %v17482_v27  ;;  %6268 = vmatpush1.bf16.msra.mxu1 %v17484_v17  ;;  %v17534_v27 = vcombine.low %v6504_v6, %v6508_v0  ;;  %v17536_v17 = vcombine.low %v6505_v25, %v6509_v7 }
 0x3f6   :  { %5982 = vmatprep.subr.bf16.mxu0 %v17491_v34  ;;  %6269 = vmatprep.subr.bf16.mxu1 %v17493_v18  ;;  %v17543_v34 = vcombine.high %v6512_v11, %v6516_v13  ;;  %v17545_v18 = vcombine.high %v6513_v15, %v6517_v16 }
 0x3f9   :  { %5983 = vmatpush1.bf16.msra.mxu0 %v17490_v24  ;;  %6270 = vmatpush1.bf16.msra.mxu1 %v17492_v57  ;;  %v17542_v24 = vcombine.low %v6512_v11, %v6516_v13  ;;  %v17544_v57 = vcombine.low %v6513_v15, %v6517_v16 }
 0x3fa   :  { %17506 = vmatprep.subr.msk.bf16.mxu0 %vm5127_vm0, %v17499_v28  ;;  %17508 = vmatprep.subr.msk.bf16.mxu1 %vm5127_vm0, %v17501_v29  ;;  %v17551_v28 = vcombine.high %v6520_v14, %v6524_v19  ;;  %v6528_v29 = vld [vmem:[#allocation8 + $0x180] sm:$0xff] }
 0x3fb   :  { %v17559_v37 = vcombine.high %v6528_v29, %v6532_v30  ;;  %v17558_v46 = vcombine.low %v6528_v29, %v6532_v30 }
 0x3fd   :  { %5985 = vmatpush1.bf16.msra.mxu0 %v5141_v20  ;;  %6272 = vmatpush1.bf16.msra.mxu1 %v5147_v42  ;;  %v17561_v20 = vcombine.high %v6529_v26, %v6533_v32  ;;  %v6540_v42 = vld [vmem:[#allocation8 + $0x1e0] sm:$0xff] }
 0x3fe   :  { %9552 = vmatprep.subr.bf16.mxu0 %v17511_v41  ;;  %9716 = vmatprep.subr.bf16.mxu1 %v17513_v12  ;;  %v6536_v41 = vld [vmem:[#allocation8 + $0x1c0] sm:$0xff]  ;;  %v6537_v12 = vld [vmem:[#allocation8 + $0x1c8] sm:$0xff] }
 0x3ff   :  { %v17569_v53 = vcombine.high %v6537_v12, %v6541_v54  ;;  %v17566_v44 = vcombine.low %v6536_v41, %v6540_v42 }
 0x400   :  { %17507 = vmatmul.mubr.msk.bf16.vlgmr.msra.gmra.mrb[4].mxu0 %vm5123_vm1, %v20138_v52  ;;  %17509 = vmatmul.mubr.msk.bf16.vlgmr.msra.gmra.mrb[4].mxu1 %vm5123_vm1, %v20138_v52  ;;  %v17528_v52 = vcombine.low %v6497_v61, %v6501_v62 }
 0x401   :  { %9553 = vmatpush1.bf16.msra.mxu0 %v17510_v51  ;;  %9584 = vmatprep.mubr.bf16.mxu0 %v20225_v1  ;;  %v17567_v51 = vcombine.high %v6536_v41, %v6540_v42 }
 0x402   :  { %9717 = vmatpush1.bf16.msra.mxu1 %v17512_v56  ;;  %9748 = vmatprep.mubr.bf16.mxu1 %v20225_v1  ;;  %v6548_v56 = vld [vmem:[#allocation8 + $0x220] sm:$0xff] }
 0x403   :  { %9554 = vmatprep.subr.bf16.mxu0 %v17519_v58  ;;  %9718 = vmatprep.subr.bf16.mxu1 %v17521_v60  ;;  %v6545_v58 = vld [vmem:[#allocation8 + $0x208] sm:$0xff]  ;;  %v17568_v60 = vcombine.low %v6537_v12, %v6541_v54  ;;  %v17575_v61 = vcombine.high %v6544_v55, %v6548_v56  ;;  %v17574_v6 = vcombine.low %v6544_v55, %v6548_v56 }
 0x404   :  { %v17577_v62 = vcombine.high %v6545_v58, %v6549_v59  ;;  %v17576_v0 = vcombine.low %v6545_v58, %v6549_v59 }
 0x405   :  { %9555 = vmatpush1.bf16.msra.mxu0 %v17518_v63  ;;  %v6552_v63 = vld [vmem:[#allocation8 + $0x240] sm:$0xff] }
 0x406   :  { %9719 = vmatpush1.bf16.msra.mxu1 %v17520_v2  ;;  %9556 = vmatprep.subr.bf16.mxu0 %v17527_v3  ;;  %v6556_v2 = vld [vmem:[#allocation8 + $0x260] sm:$0xff]  ;;  %v6553_v3 = vld [vmem:[#allocation8 + $0x248] sm:$0xff] }
 0x407   :  { %9720 = vmatprep.subr.bf16.mxu1 %v17529_v5  ;;  %v6557_v5 = vld [vmem:[#allocation8 + $0x268] sm:$0xff]  ;;  %v17583_v25 = vcombine.high %v6552_v63, %v6556_v2  ;;  %v17582_v11 = vcombine.low %v6552_v63, %v6556_v2 }
 0x408   :  { %v17585_v7 = vcombine.high %v6553_v3, %v6557_v5  ;;  %v17584_v13 = vcombine.low %v6553_v3, %v6557_v5 }
 0x409   :  { %9557 = vmatpush1.bf16.msra.mxu0 %v17526_v8  ;;  %v6560_v8 = vld [vmem:[#allocation8 + $0x280] sm:$0xff] }
 0x40a   :  { %9721 = vmatpush1.bf16.msra.mxu1 %v17528_v52  ;;  %9558 = vmatprep.subr.bf16.mxu0 %v17535_v9  ;;  %v6564_v52 = vld [vmem:[#allocation8 + $0x2a0] sm:$0xff]  ;;  %v6561_v9 = vld [vmem:[#allocation8 + $0x288] sm:$0xff] }
 0x40b   :  { %9722 = vmatprep.subr.bf16.mxu1 %v17537_v10  ;;  %v6565_v10 = vld [vmem:[#allocation8 + $0x2a8] sm:$0xff]  ;;  %v17591_v15 = vcombine.high %v6560_v8, %v6564_v52  ;;  %v17590_v14 = vcombine.low %v6560_v8, %v6564_v52  ;;  %v6464_v52 = vmax.f32 %v20192_v31, 0.0 }
 0x40c   :  { %v17593_v16 = vcombine.high %v6561_v9, %v6565_v10  ;;  %v17592_v19 = vcombine.low %v6561_v9, %v6565_v10 }
 0x40d   :  { %9559 = vmatpush1.bf16.msra.mxu0 %v17534_v27  ;;  %v6568_v27 = vld [vmem:[#allocation8 + $0x2c0] sm:$0xff] }
 0x40e   :  { %9723 = vmatpush1.bf16.msra.mxu1 %v17536_v17  ;;  %9560 = vmatprep.subr.bf16.mxu0 %v17543_v34  ;;  %v6572_v17 = vld [vmem:[#allocation8 + $0x2e0] sm:$0xff]  ;;  %v6569_v34 = vld [vmem:[#allocation8 + $0x2c8] sm:$0xff] }
 0x40f   :  { %9724 = vmatprep.subr.bf16.mxu1 %v17545_v18  ;;  %v6573_v18 = vld [vmem:[#allocation8 + $0x2e8] sm:$0xff]  ;;  %v17599_v21 = vcombine.high %v6568_v27, %v6572_v17  ;;  %v17598_v29 = vcombine.low %v6568_v27, %v6572_v17 }
 0x410   :  { %v17601_v22 = vcombine.high %v6569_v34, %v6573_v18  ;;  %v17600_v30 = vcombine.low %v6569_v34, %v6573_v18  ;;  %v6617_v17 = vld [vmem:[#allocation8 + $0x448] sm:$0xff]  ;;  %v20235_v18 = vpack.c.bf16 %v6464_v52, %v6464_v52 }
 0x411   :  { %9561 = vmatpush1.bf16.msra.mxu0 %v17542_v24  ;;  %v6576_v24 = vld [vmem:[#allocation8 + $0x300] sm:$0xff]  ;;  %v6621_v34 = vld [vmem:[#allocation8 + $0x468] sm:$0xff] }
 0x412   :  { %9725 = vmatpush1.bf16.msra.mxu1 %v17544_v57  ;;  %9562 = vmatprep.subr.bf16.mxu0 %v17551_v28  ;;  %v6580_v57 = vld [vmem:[#allocation8 + $0x320] sm:$0xff]  ;;  %v6577_v28 = vld [vmem:[#allocation8 + $0x308] sm:$0xff] }
 0x413   :  { %9726 = vmatprep.subr.bf16.mxu1 %v17553_v39  ;;  %v6581_v39 = vld [vmem:[#allocation8 + $0x328] sm:$0xff]  ;;  %v17607_v26 = vcombine.high %v6576_v24, %v6580_v57  ;;  %v17606_v41 = vcombine.low %v6576_v24, %v6580_v57 }
 0x414   :  { %v17609_v32 = vcombine.high %v6577_v28, %v6581_v39  ;;  %v17608_v42 = vcombine.low %v6577_v28, %v6581_v39  ;;  %v6625_v24 = vld [vmem:[#allocation8 + $0x488] sm:$0xff]  ;;  %v17648_v39 = vcombine.low %v6617_v17, %v6621_v34 }
 0x415   :  { %9563 = vmatpush1.bf16.msra.mxu0 %v17550_v33  ;;  %v6584_v33 = vld [vmem:[#allocation8 + $0x340] sm:$0xff]  ;;  %v6629_v57 = vld [vmem:[#allocation8 + $0x4a8] sm:$0xff] }
 0x416   :  { %9727 = vmatpush1.bf16.msra.mxu1 %v17552_v35  ;;  %9564 = vmatprep.subr.bf16.mxu0 %v17559_v37  ;;  %v6588_v35 = vld [vmem:[#allocation8 + $0x360] sm:$0xff]  ;;  %v6585_v37 = vld [vmem:[#allocation8 + $0x348] sm:$0xff] }
 0x417   :  { %9728 = vmatprep.subr.bf16.mxu1 %v17561_v20  ;;  %v6589_v20 = vld [vmem:[#allocation8 + $0x368] sm:$0xff]  ;;  %v17615_v12 = vcombine.high %v6584_v33, %v6588_v35  ;;  %v17614_v55 = vcombine.low %v6584_v33, %v6588_v35 }
 0x418   :  { %v17617_v54 = vcombine.high %v6585_v37, %v6589_v20  ;;  %v17616_v56 = vcombine.low %v6585_v37, %v6589_v20  ;;  %v6633_v33 = vld [vmem:[#allocation8 + $0x4c8] sm:$0xff]  ;;  %v17656_v20 = vcombine.low %v6625_v24, %v6629_v57 }
 0x419   :  { %9565 = vmatpush1.bf16.msra.mxu0 %v17558_v46  ;;  %v6592_v46 = vld [vmem:[#allocation8 + $0x380] sm:$0xff]  ;;  %v6637_v35 = vld [vmem:[#allocation8 + $0x4e8] sm:$0xff] }
 0x41a   :  { %9729 = vmatpush1.bf16.msra.mxu1 %v17560_v49  ;;  %9566 = vmatprep.subr.bf16.mxu0 %v17567_v51  ;;  %v6596_v49 = vld [vmem:[#allocation8 + $0x3a0] sm:$0xff]  ;;  %v6593_v51 = vld [vmem:[#allocation8 + $0x388] sm:$0xff] }
 0x41b   :  { %9730 = vmatprep.subr.bf16.mxu1 %v17569_v53  ;;  %v6597_v53 = vld [vmem:[#allocation8 + $0x3a8] sm:$0xff]  ;;  %v17623_v58 = vcombine.high %v6592_v46, %v6596_v49  ;;  %v17622_v63 = vcombine.low %v6592_v46, %v6596_v49 }
 0x41c   :  { %v17625_v59 = vcombine.high %v6593_v51, %v6597_v53  ;;  %v17624_v2 = vcombine.low %v6593_v51, %v6597_v53  ;;  %v6641_v46 = vld [vmem:[#allocation8 + $0x508] sm:$0xff]  ;;  %v17664_v53 = vcombine.low %v6633_v33, %v6637_v35 }
 0x41d   :  { %9567 = vmatpush1.bf16.msra.mxu0 %v17566_v44  ;;  %v6600_v44 = vld [vmem:[#allocation8 + $0x3c0] sm:$0xff]  ;;  %v6645_v49 = vld [vmem:[#allocation8 + $0x528] sm:$0xff] }
 0x41e   :  { %9731 = vmatpush1.bf16.msra.mxu1 %v17568_v60  ;;  %9568 = vmatprep.subr.bf16.mxu0 %v17575_v61  ;;  %v6604_v60 = vld [vmem:[#allocation8 + $0x3e0] sm:$0xff]  ;;  %v6601_v61 = vld [vmem:[#allocation8 + $0x3c8] sm:$0xff] }
 0x41f   :  { %9732 = vmatprep.subr.bf16.mxu1 %v17577_v62  ;;  %v6605_v62 = vld [vmem:[#allocation8 + $0x3e8] sm:$0xff]  ;;  %v17631_v3 = vcombine.high %v6600_v44, %v6604_v60  ;;  %v17630_v8 = vcombine.low %v6600_v44, %v6604_v60 }
 0x420   :  { %v17633_v5 = vcombine.high %v6601_v61, %v6605_v62  ;;  %v17632_v9 = vcombine.low %v6601_v61, %v6605_v62  ;;  %v6649_v44 = vld [vmem:[#allocation8 + $0x548] sm:$0xff]  ;;  %v17672_v62 = vcombine.low %v6641_v46, %v6645_v49 }
 0x421   :  { %9569 = vmatpush1.bf16.msra.mxu0 %v17574_v6  ;;  %v6608_v6 = vld [vmem:[#allocation8 + $0x400] sm:$0xff]  ;;  %v6653_v60 = vld [vmem:[#allocation8 + $0x568] sm:$0xff] }
 0x422   :  { %9733 = vmatpush1.bf16.msra.mxu1 %v17576_v0  ;;  %9570 = vmatprep.subr.bf16.mxu0 %v17583_v25  ;;  %v6612_v0 = vld [vmem:[#allocation8 + $0x420] sm:$0xff]  ;;  %v6609_v25 = vld [vmem:[#allocation8 + $0x408] sm:$0xff] }
 0x423   :  { %9734 = vmatprep.subr.bf16.mxu1 %v17585_v7  ;;  %v6613_v7 = vld [vmem:[#allocation8 + $0x428] sm:$0xff]  ;;  %v17639_v10 = vcombine.high %v6608_v6, %v6612_v0  ;;  %v17638_v27 = vcombine.low %v6608_v6, %v6612_v0 }
 0x424   :  { %v6657_v6 = vld [vmem:[#allocation8 + $0x588] sm:$0xff] }
 0x425   :  { %9571 = vmatpush1.bf16.msra.mxu0 %v17582_v11  ;;  %v17641_v11 = vcombine.high %v6609_v25, %v6613_v7  ;;  %v6661_v0 = vld [vmem:[#allocation8 + $0x5a8] sm:$0xff] }
 0x426   :  { %9735 = vmatpush1.bf16.msra.mxu1 %v17584_v13  ;;  %9572 = vmatprep.subr.bf16.mxu0 %v17591_v15  ;;  %v6467_v13 = vmax.f32 %v20196_v47, 0.0  ;;  %v6616_v15 = vld [vmem:[#allocation8 + $0x440] sm:$0xff]  ;;  %v17649_v47 = vcombine.high %v6617_v17, %v6621_v34  ;;  %v17689_v52 = vcombine.high %v6657_v6, %v6661_v0 }
 0x427   :  { %9736 = vmatprep.subr.bf16.mxu1 %v17593_v16  ;;  %v6620_v16 = vld [vmem:[#allocation8 + $0x460] sm:$0xff] }
 0x428   :  { %v17647_v31 = vcombine.high %v6616_v15, %v6620_v16  ;;  %v17646_v28 = vcombine.low %v6616_v15, %v6620_v16  ;;  %v17688_v16 = vcombine.low %v6657_v6, %v6661_v0  ;;  %v6672_v34 = vld [vmem:[#allocation8 + $0x600] sm:$0xff] }
 0x429   :  { %9573 = vmatpush1.bf16.msra.mxu0 %v17590_v14  ;;  %v17640_v14 = vcombine.low %v6609_v25, %v6613_v7  ;;  %v17680_v7 = vcombine.low %v6649_v44, %v6653_v60 }
 0x42a   :  { %9737 = vmatpush1.bf16.msra.mxu1 %v17592_v19  ;;  %9574 = vmatprep.subr.bf16.mxu0 %v17599_v21  ;;  %v6624_v19 = vld [vmem:[#allocation8 + $0x480] sm:$0xff] }
 0x42b   :  { %9738 = vmatprep.subr.bf16.mxu1 %v17601_v22  ;;  %v6628_v21 = vld [vmem:[#allocation8 + $0x4a0] sm:$0xff]  ;;  %v20237_v22 = vpack.c.bf16 %v6467_v13, %v6467_v13  ;;  %v6669_v13 = vld [vmem:[#allocation8 + $0x5e8] sm:$0xff] }
 0x42c   :  { %v17654_v37 = vcombine.low %v6624_v19, %v6628_v21 }
 0x42d   :  { %9575 = vmatpush1.bf16.msra.mxu0 %v17598_v29  ;;  %v17655_v29 = vcombine.high %v6624_v19, %v6628_v21  ;;  %v6677_v19 = vld [vmem:[#allocation8 + $0x628] sm:$0xff] }
 0x42e   :  { %9739 = vmatpush1.bf16.msra.mxu1 %v17600_v30  ;;  %9576 = vmatprep.subr.bf16.mxu0 %v17607_v26  ;;  %v17657_v30 = vcombine.high %v6625_v24, %v6629_v57  ;;  %v6632_v26 = vld [vmem:[#allocation8 + $0x4c0] sm:$0xff] }
 0x42f   :  { %9740 = vmatprep.subr.bf16.mxu1 %v17609_v32  ;;  %v6636_v32 = vld [vmem:[#allocation8 + $0x4e0] sm:$0xff] }
 0x430   :  { %v17662_v51 = vcombine.low %v6632_v26, %v6636_v32 }
 0x431   :  { %9577 = vmatpush1.bf16.msra.mxu0 %v17606_v41  ;;  %v17663_v41 = vcombine.high %v6632_v26, %v6636_v32 }
 0x432   :  { %9741 = vmatpush1.bf16.msra.mxu1 %v17608_v42  ;;  %9578 = vmatprep.subr.bf16.mxu0 %v17615_v12  ;;  %v17665_v42 = vcombine.high %v6633_v33, %v6637_v35  ;;  %v6640_v12 = vld [vmem:[#allocation8 + $0x500] sm:$0xff] }
 0x433   :  { %9742 = vmatprep.subr.bf16.mxu1 %v17617_v54  ;;  %v6644_v54 = vld [vmem:[#allocation8 + $0x520] sm:$0xff] }
 0x434   :  { %v17670_v61 = vcombine.low %v6640_v12, %v6644_v54 }
 0x435   :  { %9579 = vmatpush1.bf16.msra.mxu0 %v17614_v55  ;;  %v17671_v55 = vcombine.high %v6640_v12, %v6644_v54 }
 0x436   :  { %9743 = vmatpush1.bf16.msra.mxu1 %v17616_v56  ;;  %9580 = vmatprep.subr.bf16.mxu0 %v17623_v58  ;;  %v17673_v56 = vcombine.high %v6641_v46, %v6645_v49  ;;  %v6648_v58 = vld [vmem:[#allocation8 + $0x540] sm:$0xff] }
 0x437   :  { %9744 = vmatprep.subr.bf16.mxu1 %v17625_v59  ;;  %v6652_v59 = vld [vmem:[#allocation8 + $0x560] sm:$0xff] }
 0x438   :  { %v17678_v25 = vcombine.low %v6648_v58, %v6652_v59 }
 0x439   :  { %9581 = vmatpush1.bf16.msra.mxu0 %v17622_v63  ;;  %v17679_v63 = vcombine.high %v6648_v58, %v6652_v59 }
 0x43a   :  { %9745 = vmatpush1.bf16.msra.mxu1 %v17624_v2  ;;  %9582 = vmatprep.subr.bf16.mxu0 %v17631_v3  ;;  %v17681_v2 = vcombine.high %v6649_v44, %v6653_v60  ;;  %v6656_v3 = vld [vmem:[#allocation8 + $0x580] sm:$0xff] }
 0x43b   :  { %9746 = vmatprep.subr.bf16.mxu1 %v17633_v5  ;;  %v6660_v5 = vld [vmem:[#allocation8 + $0x5a0] sm:$0xff] }
 0x43c   :  { %v17686_v15 = vcombine.low %v6656_v3, %v6660_v5 }
 0x43d   :  { %9583 = vmatpush1.bf16.msra.mxu0 %v17630_v8  ;;  %v17687_v8 = vcombine.high %v6656_v3, %v6660_v5 }
 0x43e   :  { %9747 = vmatpush1.bf16.msra.mxu1 %v17632_v9  ;;  %9593 = vmatprep.subr.bf16.mxu0 %v17639_v10  ;;  %v6664_v9 = vld [vmem:[#allocation8 + $0x5c0] sm:$0xff] }
 0x43f   :  { %9757 = vmatprep.subr.bf16.mxu1 %v17641_v11  ;;  %v6668_v10 = vld [vmem:[#allocation8 + $0x5e0] sm:$0xff]  ;;  %v6665_v11 = vld [vmem:[#allocation8 + $0x5c8] sm:$0xff] }
 0x440   :  { %9585 = vmatmul.mubr.bf16.vlgmr.msra.gmra.mrb[8].mxu0 %v20235_v18  ;;  %v17697_v17 = vcombine.high %v6665_v11, %v6669_v13  ;;  %v17694_v21 = vcombine.low %v6664_v9, %v6668_v10 }
 0x441   :  { %9749 = vmatmul.mubr.bf16.vlgmr.msra.gmra.mrb[8].mxu1 %v20235_v18  ;;  %9594 = vmatpush1.bf16.msra.mxu0 %v17638_v27  ;;  %v17695_v27 = vcombine.high %v6664_v9, %v6668_v10 }
 0x442   :  { %9625 = vmatprep.mubr.bf16.mxu0 %v20237_v22  ;;  %9758 = vmatpush1.bf16.msra.mxu1 %v17640_v14  ;;  %v6676_v14 = vld [vmem:[#allocation8 + $0x620] sm:$0xff] }
 0x443   :  { %9789 = vmatprep.mubr.bf16.mxu1 %v20237_v22  ;;  %9595 = vmatprep.subr.bf16.mxu0 %v17647_v31  ;;  %v6673_v31 = vld [vmem:[#allocation8 + $0x608] sm:$0xff]  ;;  %v17703_v24 = vcombine.high %v6672_v34, %v6676_v14  ;;  %v17702_v26 = vcombine.low %v6672_v34, %v6676_v14 }
 0x444   :  { %9759 = vmatprep.subr.bf16.mxu1 %v17649_v47  ;;  %v17696_v47 = vcombine.low %v6665_v11, %v6669_v13  ;;  %v17705_v57 = vcombine.high %v6673_v31, %v6677_v19  ;;  %v17704_v32 = vcombine.low %v6673_v31, %v6677_v19 }
 0x445   :  { %9596 = vmatpush1.bf16.msra.mxu0 %v17646_v28  ;;  %v6680_v28 = vld [vmem:[#allocation8 + $0x640] sm:$0xff] }
 0x446   :  { %9760 = vmatpush1.bf16.msra.mxu1 %v17648_v39  ;;  %9597 = vmatprep.subr.bf16.mxu0 %v17655_v29  ;;  %v6684_v39 = vld [vmem:[#allocation8 + $0x660] sm:$0xff]  ;;  %v6681_v29 = vld [vmem:[#allocation8 + $0x648] sm:$0xff] }
 0x447   :  { %9761 = vmatprep.subr.bf16.mxu1 %v17657_v30  ;;  %v6685_v30 = vld [vmem:[#allocation8 + $0x668] sm:$0xff]  ;;  %v17711_v33 = vcombine.high %v6680_v28, %v6684_v39  ;;  %v17710_v12 = vcombine.low %v6680_v28, %v6684_v39 }
 0x448   :  { %v17713_v35 = vcombine.high %v6681_v29, %v6685_v30  ;;  %v17712_v54 = vcombine.low %v6681_v29, %v6685_v30 }
 0x449   :  { %9598 = vmatpush1.bf16.msra.mxu0 %v17654_v37  ;;  %v6688_v37 = vld [vmem:[#allocation8 + $0x680] sm:$0xff] }
 0x44a   :  { %9762 = vmatpush1.bf16.msra.mxu1 %v17656_v20  ;;  %9599 = vmatprep.subr.bf16.mxu0 %v17663_v41  ;;  %v6692_v20 = vld [vmem:[#allocation8 + $0x6a0] sm:$0xff]  ;;  %v6689_v41 = vld [vmem:[#allocation8 + $0x688] sm:$0xff] }
 0x44b   :  { %9763 = vmatprep.subr.bf16.mxu1 %v17665_v42  ;;  %v6693_v42 = vld [vmem:[#allocation8 + $0x6a8] sm:$0xff]  ;;  %v17719_v46 = vcombine.high %v6688_v37, %v6692_v20  ;;  %v17718_v58 = vcombine.low %v6688_v37, %v6692_v20  ;;  %v6466_v20 = vmax.f32 %v20194_v38, 0.0 }
 0x44c   :  { %v17721_v49 = vcombine.high %v6689_v41, %v6693_v42  ;;  %v17720_v59 = vcombine.low %v6689_v41, %v6693_v42 }
 0x44d   :  { %9600 = vmatpush1.bf16.msra.mxu0 %v17662_v51  ;;  %v6696_v51 = vld [vmem:[#allocation8 + $0x6c0] sm:$0xff] }
 0x44e   :  { %9764 = vmatpush1.bf16.msra.mxu1 %v17664_v53  ;;  %9601 = vmatprep.subr.bf16.mxu0 %v17671_v55  ;;  %v6700_v53 = vld [vmem:[#allocation8 + $0x6e0] sm:$0xff]  ;;  %v6697_v55 = vld [vmem:[#allocation8 + $0x6c8] sm:$0xff] }
 0x44f   :  { %9765 = vmatprep.subr.bf16.mxu1 %v17673_v56  ;;  %v6701_v56 = vld [vmem:[#allocation8 + $0x6e8] sm:$0xff]  ;;  %v17727_v44 = vcombine.high %v6696_v51, %v6700_v53  ;;  %v17726_v3 = vcombine.low %v6696_v51, %v6700_v53 }
 0x450   :  { %v17729_v60 = vcombine.high %v6697_v55, %v6701_v56  ;;  %v17728_v5 = vcombine.low %v6697_v55, %v6701_v56  ;;  %v6749_v51 = vld [vmem:[#allocation8 + $0x868] sm:$0xff]  ;;  %v20244_v55 = vpack.c.bf16 %v6466_v20, %v6466_v20  ;;  %v6792_v20 = vld [vmem:[#allocation8 + $0x9c0] sm:$0xff] }
 0x451   :  { %9602 = vmatpush1.bf16.msra.mxu0 %v17670_v61  ;;  %v6704_v61 = vld [vmem:[#allocation8 + $0x700] sm:$0xff] }
 0x452   :  { %9766 = vmatpush1.bf16.msra.mxu1 %v17672_v62  ;;  %9603 = vmatprep.subr.bf16.mxu0 %v17679_v63  ;;  %v6708_v62 = vld [vmem:[#allocation8 + $0x720] sm:$0xff]  ;;  %v6705_v63 = vld [vmem:[#allocation8 + $0x708] sm:$0xff] }
 0x453   :  { %9767 = vmatprep.subr.bf16.mxu1 %v17681_v2  ;;  %v6709_v2 = vld [vmem:[#allocation8 + $0x728] sm:$0xff]  ;;  %v17735_v6 = vcombine.high %v6704_v61, %v6708_v62  ;;  %v17734_v9 = vcombine.low %v6704_v61, %v6708_v62 }
 0x454   :  { %v17737_v0 = vcombine.high %v6705_v63, %v6709_v2  ;;  %v17736_v10 = vcombine.low %v6705_v63, %v6709_v2  ;;  %v6757_v61 = vld [vmem:[#allocation8 + $0x8a8] sm:$0xff] }
 0x455   :  { %9604 = vmatpush1.bf16.msra.mxu0 %v17678_v25  ;;  %v6712_v25 = vld [vmem:[#allocation8 + $0x740] sm:$0xff] }
 0x456   :  { %9768 = vmatpush1.bf16.msra.mxu1 %v17680_v7  ;;  %9605 = vmatprep.subr.bf16.mxu0 %v17687_v8  ;;  %v6716_v7 = vld [vmem:[#allocation8 + $0x760] sm:$0xff]  ;;  %v6713_v8 = vld [vmem:[#allocation8 + $0x748] sm:$0xff] }
 0x457   :  { %9769 = vmatprep.subr.bf16.mxu1 %v17689_v52  ;;  %v6717_v52 = vld [vmem:[#allocation8 + $0x768] sm:$0xff]  ;;  %v17743_v11 = vcombine.high %v6712_v25, %v6716_v7  ;;  %v17742_v34 = vcombine.low %v6712_v25, %v6716_v7 }
 0x458   :  { %v17745_v13 = vcombine.high %v6713_v8, %v6717_v52  ;;  %v17744_v14 = vcombine.low %v6713_v8, %v6717_v52  ;;  %v6765_v25 = vld [vmem:[#allocation8 + $0x8e8] sm:$0xff] }
 0x459   :  { %9606 = vmatpush1.bf16.msra.mxu0 %v17686_v15  ;;  %v6720_v15 = vld [vmem:[#allocation8 + $0x780] sm:$0xff] }
 0x45a   :  { %9770 = vmatpush1.bf16.msra.mxu1 %v17688_v16  ;;  %9607 = vmatprep.subr.bf16.mxu0 %v17695_v27  ;;  %v6724_v16 = vld [vmem:[#allocation8 + $0x7a0] sm:$0xff]  ;;  %v6721_v27 = vld [vmem:[#allocation8 + $0x788] sm:$0xff] }
 0x45b   :  { %9771 = vmatprep.subr.bf16.mxu1 %v17697_v17  ;;  %v6725_v17 = vld [vmem:[#allocation8 + $0x7a8] sm:$0xff]  ;;  %v17751_v31 = vcombine.high %v6720_v15, %v6724_v16  ;;  %v17750_v28 = vcombine.low %v6720_v15, %v6724_v16 }
 0x45c   :  { %v17753_v19 = vcombine.high %v6721_v27, %v6725_v17  ;;  %v17752_v39 = vcombine.low %v6721_v27, %v6725_v17  ;;  %v6773_v15 = vld [vmem:[#allocation8 + $0x928] sm:$0xff] }
 0x45d   :  { %9608 = vmatpush1.bf16.msra.mxu0 %v17694_v21  ;;  %v6728_v21 = vld [vmem:[#allocation8 + $0x7c0] sm:$0xff] }
 0x45e   :  { %9772 = vmatpush1.bf16.msra.mxu1 %v17696_v47  ;;  %9609 = vmatprep.subr.bf16.mxu0 %v17703_v24  ;;  %v6732_v47 = vld [vmem:[#allocation8 + $0x7e0] sm:$0xff]  ;;  %v6729_v24 = vld [vmem:[#allocation8 + $0x7c8] sm:$0xff] }
 0x45f   :  { %9773 = vmatprep.subr.bf16.mxu1 %v17705_v57  ;;  %v6733_v57 = vld [vmem:[#allocation8 + $0x7e8] sm:$0xff]  ;;  %v17759_v29 = vcombine.high %v6728_v21, %v6732_v47  ;;  %v17758_v37 = vcombine.low %v6728_v21, %v6732_v47 }
 0x460   :  { %v17761_v30 = vcombine.high %v6729_v24, %v6733_v57  ;;  %v17760_v41 = vcombine.low %v6729_v24, %v6733_v57  ;;  %v6781_v21 = vld [vmem:[#allocation8 + $0x968] sm:$0xff] }
 0x461   :  { %9610 = vmatpush1.bf16.msra.mxu0 %v17702_v26  ;;  %v6736_v26 = vld [vmem:[#allocation8 + $0x800] sm:$0xff] }
 0x462   :  { %9774 = vmatpush1.bf16.msra.mxu1 %v17704_v32  ;;  %9611 = vmatprep.subr.bf16.mxu0 %v17711_v33  ;;  %v6740_v32 = vld [vmem:[#allocation8 + $0x820] sm:$0xff]  ;;  %v6737_v33 = vld [vmem:[#allocation8 + $0x808] sm:$0xff] }
 0x463   :  { %9775 = vmatprep.subr.bf16.mxu1 %v17713_v35  ;;  %v6741_v35 = vld [vmem:[#allocation8 + $0x828] sm:$0xff]  ;;  %v17767_v42 = vcombine.high %v6736_v26, %v6740_v32  ;;  %v17766_v53 = vcombine.low %v6736_v26, %v6740_v32 }
 0x464   :  { %v17768_v56 = vcombine.low %v6737_v33, %v6741_v35  ;;  %v6789_v26 = vld [vmem:[#allocation8 + $0x9a8] sm:$0xff] }
 0x465   :  { %9612 = vmatpush1.bf16.msra.mxu0 %v17710_v12  ;;  %v17769_v12 = vcombine.high %v6737_v33, %v6741_v35 }
 0x466   :  { %9776 = vmatpush1.bf16.msra.mxu1 %v17712_v54  ;;  %9613 = vmatprep.subr.bf16.mxu0 %v17719_v46  ;;  %v6744_v54 = vld [vmem:[#allocation8 + $0x840] sm:$0xff] }
 0x467   :  { %9777 = vmatprep.subr.bf16.mxu1 %v17721_v49  ;;  %v6748_v46 = vld [vmem:[#allocation8 + $0x860] sm:$0xff]  ;;  %v6745_v49 = vld [vmem:[#allocation8 + $0x848] sm:$0xff] }
 0x468   :  { %v17777_v38 = vcombine.high %v6745_v49, %v6749_v51  ;;  %v17774_v62 = vcombine.low %v6744_v54, %v6748_v46  ;;  %v17776_v63 = vcombine.low %v6745_v49, %v6749_v51 }
 0x469   :  { %9614 = vmatpush1.bf16.msra.mxu0 %v17718_v58  ;;  %v17775_v58 = vcombine.high %v6744_v54, %v6748_v46 }
 0x46a   :  { %9778 = vmatpush1.bf16.msra.mxu1 %v17720_v59  ;;  %9615 = vmatprep.subr.bf16.mxu0 %v17727_v44  ;;  %v6752_v59 = vld [vmem:[#allocation8 + $0x880] sm:$0xff] }
 0x46b   :  { %9779 = vmatprep.subr.bf16.mxu1 %v17729_v60  ;;  %v6756_v44 = vld [vmem:[#allocation8 + $0x8a0] sm:$0xff]  ;;  %v6753_v60 = vld [vmem:[#allocation8 + $0x888] sm:$0xff] }
 0x46c   :  { %v17783_v2 = vcombine.high %v6752_v59, %v6756_v44  ;;  %v17782_v7 = vcombine.low %v6752_v59, %v6756_v44  ;;  %v17784_v8 = vcombine.low %v6753_v60, %v6757_v61 }
 0x46d   :  { %9616 = vmatpush1.bf16.msra.mxu0 %v17726_v3  ;;  %v17785_v3 = vcombine.high %v6753_v60, %v6757_v61 }
 0x46e   :  { %9780 = vmatpush1.bf16.msra.mxu1 %v17728_v5  ;;  %9617 = vmatprep.subr.bf16.mxu0 %v17735_v6  ;;  %v6760_v5 = vld [vmem:[#allocation8 + $0x8c0] sm:$0xff] }
 0x46f   :  { %9781 = vmatprep.subr.bf16.mxu1 %v17737_v0  ;;  %v6764_v6 = vld [vmem:[#allocation8 + $0x8e0] sm:$0xff]  ;;  %v6761_v0 = vld [vmem:[#allocation8 + $0x8c8] sm:$0xff] }
 0x470   :  { %v17791_v52 = vcombine.high %v6760_v5, %v6764_v6  ;;  %v17790_v16 = vcombine.low %v6760_v5, %v6764_v6  ;;  %v17792_v27 = vcombine.low %v6761_v0, %v6765_v25 }
 0x471   :  { %9618 = vmatpush1.bf16.msra.mxu0 %v17734_v9  ;;  %v17793_v9 = vcombine.high %v6761_v0, %v6765_v25 }
 0x472   :  { %9782 = vmatpush1.bf16.msra.mxu1 %v17736_v10  ;;  %9619 = vmatprep.subr.bf16.mxu0 %v17743_v11  ;;  %v6768_v10 = vld [vmem:[#allocation8 + $0x900] sm:$0xff] }
 0x473   :  { %9783 = vmatprep.subr.bf16.mxu1 %v17745_v13  ;;  %v6772_v11 = vld [vmem:[#allocation8 + $0x920] sm:$0xff]  ;;  %v6769_v13 = vld [vmem:[#allocation8 + $0x908] sm:$0xff] }
 0x474   :  { %v17799_v17 = vcombine.high %v6768_v10, %v6772_v11  ;;  %v17798_v47 = vcombine.low %v6768_v10, %v6772_v11  ;;  %v17800_v24 = vcombine.low %v6769_v13, %v6773_v15 }
 0x475   :  { %9620 = vmatpush1.bf16.msra.mxu0 %v17742_v34  ;;  %v17801_v34 = vcombine.high %v6769_v13, %v6773_v15 }
 0x476   :  { %9784 = vmatpush1.bf16.msra.mxu1 %v17744_v14  ;;  %9621 = vmatprep.subr.bf16.mxu0 %v17751_v31  ;;  %v6776_v14 = vld [vmem:[#allocation8 + $0x940] sm:$0xff] }
 0x477   :  { %9785 = vmatprep.subr.bf16.mxu1 %v17753_v19  ;;  %v6780_v31 = vld [vmem:[#allocation8 + $0x960] sm:$0xff]  ;;  %v6777_v19 = vld [vmem:[#allocation8 + $0x948] sm:$0xff] }
 0x478   :  { %v17807_v57 = vcombine.high %v6776_v14, %v6780_v31  ;;  %v17806_v32 = vcombine.low %v6776_v14, %v6780_v31  ;;  %v17808_v33 = vcombine.low %v6777_v19, %v6781_v21 }
 0x479   :  { %9622 = vmatpush1.bf16.msra.mxu0 %v17750_v28  ;;  %v17809_v28 = vcombine.high %v6777_v19, %v6781_v21 }
 0x47a   :  { %9786 = vmatpush1.bf16.msra.mxu1 %v17752_v39  ;;  %9623 = vmatprep.subr.bf16.mxu0 %v17759_v29  ;;  %v6784_v39 = vld [vmem:[#allocation8 + $0x980] sm:$0xff] }
 0x47b   :  { %9787 = vmatprep.subr.bf16.mxu1 %v17761_v30  ;;  %v6788_v29 = vld [vmem:[#allocation8 + $0x9a0] sm:$0xff]  ;;  %v6785_v30 = vld [vmem:[#allocation8 + $0x988] sm:$0xff] }
 0x47c   :  { %v17815_v35 = vcombine.high %v6784_v39, %v6788_v29  ;;  %v17814_v54 = vcombine.low %v6784_v39, %v6788_v29  ;;  %v17816_v46 = vcombine.low %v6785_v30, %v6789_v26 }
 0x47d   :  { %9624 = vmatpush1.bf16.msra.mxu0 %v17758_v37  ;;  %v17817_v37 = vcombine.high %v6785_v30, %v6789_v26 }
 0x47e   :  { %9788 = vmatpush1.bf16.msra.mxu1 %v17760_v41  ;;  %9634 = vmatprep.subr.bf16.mxu0 %v17767_v42  ;;  %v6796_v41 = vld [vmem:[#allocation8 + $0x9e0] sm:$0xff]  ;;  %v6793_v42 = vld [vmem:[#allocation8 + $0x9c8] sm:$0xff] }
 0x47f   :  { %9798 = vmatprep.subr.bf16.mxu1 %v17769_v12  ;;  %v6797_v12 = vld [vmem:[#allocation8 + $0x9e8] sm:$0xff]  ;;  %v17823_v49 = vcombine.high %v6792_v20, %v6796_v41  ;;  %v17822_v59 = vcombine.low %v6792_v20, %v6796_v41 }
 0x480   :  { %9626 = vmatmul.mubr.bf16.vlgmr.msra.gmra.mrb[8].mxu0 %v20244_v55  ;;  %v17825_v51 = vcombine.high %v6793_v42, %v6797_v12  ;;  %v17824_v44 = vcombine.low %v6793_v42, %v6797_v12 }
 0x481   :  { %9790 = vmatmul.mubr.bf16.vlgmr.msra.gmra.mrb[8].mxu1 %v20244_v55  ;;  %9635 = vmatpush1.bf16.msra.mxu0 %v17766_v53  ;;  %v6800_v53 = vld [vmem:[#allocation8 + $0xa00] sm:$0xff] }
 0x482   :  { %9799 = vmatpush1.bf16.msra.mxu1 %v17768_v56  ;;  %9636 = vmatprep.subr.bf16.mxu0 %v17775_v58  ;;  %v6804_v56 = vld [vmem:[#allocation8 + $0xa20] sm:$0xff]  ;;  %v6801_v58 = vld [vmem:[#allocation8 + $0xa08] sm:$0xff] }
 0x483   :  { %9800 = vmatprep.subr.bf16.mxu1 %v17777_v38  ;;  %v6805_v38 = vld [vmem:[#allocation8 + $0xa28] sm:$0xff]  ;;  %v17831_v60 = vcombine.high %v6800_v53, %v6804_v56  ;;  %v17830_v5 = vcombine.low %v6800_v53, %v6804_v56 }
 0x484   :  { %v17833_v61 = vcombine.high %v6801_v58, %v6805_v38  ;;  %v17832_v6 = vcombine.low %v6801_v58, %v6805_v38 }
 0x485   :  { %9637 = vmatpush1.bf16.msra.mxu0 %v17774_v62  ;;  %v6808_v62 = vld [vmem:[#allocation8 + $0xa40] sm:$0xff] }
 0x486   :  { %9801 = vmatpush1.bf16.msra.mxu1 %v17776_v63  ;;  %9638 = vmatprep.subr.bf16.mxu0 %v17783_v2  ;;  %v6812_v63 = vld [vmem:[#allocation8 + $0xa60] sm:$0xff]  ;;  %v6809_v2 = vld [vmem:[#allocation8 + $0xa48] sm:$0xff] }
 0x487   :  { %9802 = vmatprep.subr.bf16.mxu1 %v17785_v3  ;;  %v6813_v3 = vld [vmem:[#allocation8 + $0xa68] sm:$0xff]  ;;  %v17839_v0 = vcombine.high %v6808_v62, %v6812_v63  ;;  %v17838_v10 = vcombine.low %v6808_v62, %v6812_v63 }
 0x488   :  { %v17841_v25 = vcombine.high %v6809_v2, %v6813_v3  ;;  %v17840_v11 = vcombine.low %v6809_v2, %v6813_v3 }
 0x489   :  { %9639 = vmatpush1.bf16.msra.mxu0 %v17782_v7  ;;  %v6816_v7 = vld [vmem:[#allocation8 + $0xa80] sm:$0xff] }
 0x48a   :  { %9803 = vmatpush1.bf16.msra.mxu1 %v17784_v8  ;;  %9640 = vmatprep.subr.bf16.mxu0 %v17791_v52  ;;  %v6820_v8 = vld [vmem:[#allocation8 + $0xaa0] sm:$0xff]  ;;  %v6817_v52 = vld [vmem:[#allocation8 + $0xa88] sm:$0xff] }
 0x48b   :  { %9804 = vmatprep.subr.bf16.mxu1 %v17793_v9  ;;  %v6821_v9 = vld [vmem:[#allocation8 + $0xaa8] sm:$0xff]  ;;  %v17847_v13 = vcombine.high %v6816_v7, %v6820_v8  ;;  %v17846_v14 = vcombine.low %v6816_v7, %v6820_v8 }
 0x48c   :  { %v17849_v15 = vcombine.high %v6817_v52, %v6821_v9  ;;  %v17848_v31 = vcombine.low %v6817_v52, %v6821_v9 }
 0x48d   :  { %9641 = vmatpush1.bf16.msra.mxu0 %v17790_v16  ;;  %v6824_v16 = vld [vmem:[#allocation8 + $0xac0] sm:$0xff] }
 0x48e   :  { %9805 = vmatpush1.bf16.msra.mxu1 %v17792_v27  ;;  %9642 = vmatprep.subr.bf16.mxu0 %v17799_v17  ;;  %v6828_v27 = vld [vmem:[#allocation8 + $0xae0] sm:$0xff]  ;;  %v6825_v17 = vld [vmem:[#allocation8 + $0xac8] sm:$0xff] }
 0x48f   :  { %9806 = vmatprep.subr.bf16.mxu1 %v17801_v34  ;;  %v6829_v34 = vld [vmem:[#allocation8 + $0xae8] sm:$0xff]  ;;  %v17855_v19 = vcombine.high %v6824_v16, %v6828_v27  ;;  %v17854_v39 = vcombine.low %v6824_v16, %v6828_v27 }
 0x490   :  { %v17857_v21 = vcombine.high %v6825_v17, %v6829_v34  ;;  %v17856_v29 = vcombine.low %v6825_v17, %v6829_v34 }
 0x491   :  { %9643 = vmatpush1.bf16.msra.mxu0 %v17798_v47  ;;  %v6832_v47 = vld [vmem:[#allocation8 + $0xb00] sm:$0xff] }
 0x492   :  { %9807 = vmatpush1.bf16.msra.mxu1 %v17800_v24  ;;  %9644 = vmatprep.subr.bf16.mxu0 %v17807_v57  ;;  %v6836_v24 = vld [vmem:[#allocation8 + $0xb20] sm:$0xff]  ;;  %v6833_v57 = vld [vmem:[#allocation8 + $0xb08] sm:$0xff] }
 0x493   :  { %9808 = vmatprep.subr.bf16.mxu1 %v17809_v28  ;;  %v6837_v28 = vld [vmem:[#allocation8 + $0xb28] sm:$0xff]  ;;  %v17863_v30 = vcombine.high %v6832_v47, %v6836_v24  ;;  %v17862_v20 = vcombine.low %v6832_v47, %v6836_v24 }
 0x494   :  { %v17865_v26 = vcombine.high %v6833_v57, %v6837_v28  ;;  %v17864_v41 = vcombine.low %v6833_v57, %v6837_v28 }
 0x495   :  { %9645 = vmatpush1.bf16.msra.mxu0 %v17806_v32  ;;  %v6840_v32 = vld [vmem:[#allocation8 + $0xb40] sm:$0xff] }
 0x496   :  { %9809 = vmatpush1.bf16.msra.mxu1 %v17808_v33  ;;  %9646 = vmatprep.subr.bf16.mxu0 %v17815_v35  ;;  %v6844_v33 = vld [vmem:[#allocation8 + $0xb60] sm:$0xff]  ;;  %v6841_v35 = vld [vmem:[#allocation8 + $0xb48] sm:$0xff] }
 0x497   :  { %9810 = vmatprep.subr.bf16.mxu1 %v17817_v37  ;;  %v6845_v37 = vld [vmem:[#allocation8 + $0xb68] sm:$0xff]  ;;  %v17871_v42 = vcombine.high %v6840_v32, %v6844_v33  ;;  %v17870_v53 = vcombine.low %v6840_v32, %v6844_v33 }
 0x498   :  { %v17873_v12 = vcombine.high %v6841_v35, %v6845_v37  ;;  %v17872_v56 = vcombine.low %v6841_v35, %v6845_v37 }
 0x499   :  { %9647 = vmatpush1.bf16.msra.mxu0 %v17814_v54  ;;  %v6848_v54 = vld [vmem:[#allocation8 + $0xb80] sm:$0xff] }
 0x49a   :  { %9811 = vmatpush1.bf16.msra.mxu1 %v17816_v46  ;;  %9648 = vmatprep.subr.bf16.mxu0 %v17823_v49  ;;  %v6852_v46 = vld [vmem:[#allocation8 + $0xba0] sm:$0xff]  ;;  %v6849_v49 = vld [vmem:[#allocation8 + $0xb88] sm:$0xff] }
 0x49b   :  { %9812 = vmatprep.subr.bf16.mxu1 %v17825_v51  ;;  %v6853_v51 = vld [vmem:[#allocation8 + $0xba8] sm:$0xff]  ;;  %v17879_v58 = vcombine.high %v6848_v54, %v6852_v46  ;;  %v17878_v62 = vcombine.low %v6848_v54, %v6852_v46 }
 0x49c   :  { %v17881_v38 = vcombine.high %v6849_v49, %v6853_v51  ;;  %v17880_v63 = vcombine.low %v6849_v49, %v6853_v51 }
 0x49d   :  { %9649 = vmatpush1.bf16.msra.mxu0 %v17822_v59  ;;  %v6856_v59 = vld [vmem:[#allocation8 + $0xbc0] sm:$0xff] }
 0x49e   :  { %9813 = vmatpush1.bf16.msra.mxu1 %v17824_v44  ;;  %9650 = vmatprep.subr.bf16.mxu0 %v17831_v60  ;;  %v6860_v44 = vld [vmem:[#allocation8 + $0xbe0] sm:$0xff]  ;;  %v6857_v60 = vld [vmem:[#allocation8 + $0xbc8] sm:$0xff] }
 0x49f   :  { %9814 = vmatprep.subr.bf16.mxu1 %v17833_v61  ;;  %v6861_v61 = vld [vmem:[#allocation8 + $0xbe8] sm:$0xff]  ;;  %v17887_v2 = vcombine.high %v6856_v59, %v6860_v44  ;;  %v17886_v7 = vcombine.low %v6856_v59, %v6860_v44  ;;  %v6876_v44 = vld [vmem:[#allocation8 + $0xc60] sm:$0xff] }
 0x4a0   :  { %v17889_v3 = vcombine.high %v6857_v60, %v6861_v61  ;;  %v17888_v8 = vcombine.low %v6857_v60, %v6861_v61  ;;  %v6873_v60 = vld [vmem:[#allocation8 + $0xc48] sm:$0xff] }
 0x4a1   :  { %9651 = vmatpush1.bf16.msra.mxu0 %v17830_v5  ;;  %v20248_v5 = vld [vmem:[#allocation8 + $0xc00] sm:$0xff]  ;;  %v6877_v61 = vld [vmem:[#allocation8 + $0xc68] sm:$0xff] }
 0x4a2   :  { %9815 = vmatpush1.bf16.msra.mxu1 %v17832_v6  ;;  %9652 = vmatprep.subr.bf16.mxu0 %v17839_v0  ;;  %v20250_v6 = vld [vmem:[#allocation8 + $0xc20] sm:$0xff]  ;;  %v20252_v0 = vld [vmem:[#allocation8 + $0xc08] sm:$0xff] }
 0x4a3   :  { %9816 = vmatprep.subr.bf16.mxu1 %v17841_v25  ;;  %v20254_v25 = vld [vmem:[#allocation8 + $0xc28] sm:$0xff]  ;;  %v17895_v52 = vcombine.high %v20248_v5, %v20250_v6 }
 0x4a4   :  { %v17897_v9 = vcombine.high %v20252_v0, %v20254_v25 }
 0x4a5   :  { %9653 = vmatpush1.bf16.msra.mxu0 %v17838_v10  ;;  %v6301_v10 = vld [vmem:[#allocation7 + $0x8] sm:$0xff] }
 0x4a6   :  { %9817 = vmatpush1.bf16.msra.mxu1 %v17840_v11  ;;  %9654 = vmatprep.subr.bf16.mxu0 %v17847_v13  ;;  %v6323_v11 = vrot.slane %v6301_v10, %v20161_v36  ;;  %v6331_v13 = vrot.slane %v6301_v10, %v20164_v48  ;;  %v6403_v16 = vrot.slane %v6301_v10, %v20170_v43 }
 0x4a7   :  { %9818 = vmatprep.subr.bf16.mxu1 %v17849_v15  ;;  %v6327_v15 = vrot.slane %v6301_v10, %v20210_v23  ;;  %v6335_v27 = vrot.slane %v6301_v10, %v20167_v40  ;;  %v6411_v17 = vrot.slane %v6301_v10, %v20173_v45  ;;  %v6407_v34 = vrot.slane %v6301_v10, %v20215_v4 }
 0x4a8   :  { %v6443_v47 = vrot.slane %v6403_v16, %v20170_v43  ;;  %v6892_v16 = vld [vmem:[#allocation8 + $0xce0] sm:$0xff] }
 0x4a9   :  { %9655 = vmatpush1.bf16.msra.mxu0 %v17846_v14  ;;  %v6363_v14 = vrot.slane %v6323_v11, %v20161_v36  ;;  %v6375_v24 = vrot.slane %v6335_v27, %v20161_v36  ;;  %v6451_v28 = vrot.slane %v6411_v17, %v20170_v43  ;;  %v6885_v11 = vld [vmem:[#allocation8 + $0xca8] sm:$0xff] }
 0x4aa   :  { %9819 = vmatpush1.bf16.msra.mxu1 %v17848_v31  ;;  %9656 = vmatprep.subr.bf16.mxu0 %v17855_v19  ;;  %v6415_v31 = vrot.slane %v6301_v10, %v20177_v50  ;;  %v6371_v19 = vrot.slane %v6331_v13, %v20161_v36  ;;  %v6881_v10 = vld [vmem:[#allocation8 + $0xc88] sm:$0xff] }
 0x4ab   :  { %9820 = vmatprep.subr.bf16.mxu1 %v17857_v21  ;;  %v6367_v21 = vrot.slane %v6327_v15, %v20161_v36  ;;  %v6888_v15 = vld [vmem:[#allocation8 + $0xcc0] sm:$0xff]  ;;  %v6889_v27 = vld [vmem:[#allocation8 + $0xcc8] sm:$0xff] }
 0x4ac   :  { %v6455_v32 = vrot.slane %v6415_v31, %v20170_v43  ;;  %v6893_v17 = vld [vmem:[#allocation8 + $0xce8] sm:$0xff]  ;;  %v17919_v31 = vcombine.high %v6888_v15, %v6892_v16 }
 0x4ad   :  { %9657 = vmatpush1.bf16.msra.mxu0 %v17854_v39  ;;  %v6447_v39 = vrot.slane %v6407_v34, %v20170_v43 }
 0x4ae   :  { %9821 = vmatpush1.bf16.msra.mxu1 %v17856_v29  ;;  %9658 = vmatprep.subr.bf16.mxu0 %v17863_v30 }
 0x4af   :  { %9822 = vmatprep.subr.bf16.mxu1 %v17865_v26 }
 0x4b1   :  { %9659 = vmatpush1.bf16.msra.mxu0 %v17862_v20 }
 0x4b2   :  { %9823 = vmatpush1.bf16.msra.mxu1 %v17864_v41  ;;  %9660 = vmatprep.subr.bf16.mxu0 %v17871_v42 }
 0x4b3   :  { %9824 = vmatprep.subr.bf16.mxu1 %v17873_v12 }
 0x4b5   :  { %9661 = vmatpush1.bf16.msra.mxu0 %v17870_v53 }
 0x4b6   :  { %9825 = vmatpush1.bf16.msra.mxu1 %v17872_v56  ;;  %9662 = vmatprep.subr.bf16.mxu0 %v17879_v58 }
 0x4b7   :  { %9826 = vmatprep.subr.bf16.mxu1 %v17881_v38  ;;  %v6872_v38 = vld [vmem:[#allocation8 + $0xc40] sm:$0xff] }
 0x4b9   :  { %9663 = vmatpush1.bf16.msra.mxu0 %v17878_v62 }
 0x4ba   :  { %9827 = vmatpush1.bf16.msra.mxu1 %v17880_v63  ;;  %9664 = vmatprep.subr.bf16.mxu0 %v17887_v2  ;;  %v17894_v63 = vcombine.low %v20248_v5, %v20250_v6  ;;  %v17896_v2 = vcombine.low %v20252_v0, %v20254_v25  ;;  %v17902_v5 = vcombine.low %v6872_v38, %v6876_v44 }
 0x4bb   :  { %9828 = vmatprep.subr.bf16.mxu1 %v17889_v3  ;;  %v17904_v6 = vcombine.low %v6873_v60, %v6877_v61  ;;  %v17913_v25 = vcombine.high %v6881_v10, %v6885_v11 }
 0x4bd   :  { %9665 = vmatpush1.bf16.msra.mxu0 %v17886_v7  ;;  %v6880_v7 = vld [vmem:[#allocation8 + $0xc80] sm:$0xff] }
 0x4be   :  { %9829 = vmatpush1.bf16.msra.mxu1 %v17888_v8  ;;  %9675 = vmatprep.subr.bf16.mxu0 %v17895_v52  ;;  %v17903_v8 = vcombine.high %v6872_v38, %v6876_v44  ;;  %v17905_v52 = vcombine.high %v6873_v60, %v6877_v61  ;;  %v6924_v44 = vld [vmem:[#allocation8 + $0xde0] sm:$0xff]  ;;  %v6921_v60 = vld [vmem:[#allocation8 + $0xdc8] sm:$0xff] }
 0x4bf   :  { %9839 = vmatprep.subr.bf16.mxu1 %v17897_v9  ;;  %v6884_v9 = vld [vmem:[#allocation8 + $0xca0] sm:$0xff]  ;;  %v6925_v61 = vld [vmem:[#allocation8 + $0xde8] sm:$0xff] }
 0x4c0   :  { %v17911_v0 = vcombine.high %v6880_v7, %v6884_v9  ;;  %v17910_v34 = vcombine.low %v6880_v7, %v6884_v9  ;;  %v6932_v9 = vld [vmem:[#allocation8 + $0xe20] sm:$0xff] }
 0x4d3   :  { %v6006_v57 = vpop.f32.mrb[4].mxu0  ;;  %v6293_v30 = vpop.f32.mrb[4].mxu1 }
 0x4d4   :  { %v6380_v29 = vmul.f32 %v6363_v14, %v6006_v57  ;;  %v6008_v26 = vpop.f32.mrb[5].mxu0  ;;  %v6382_v33 = vmul.f32 %v6371_v19, %v6293_v30  ;;  %v6295_v37 = vpop.f32.mrb[5].mxu1  ;;  %v17912_v14 = vcombine.low %v6881_v10, %v6885_v11  ;;  %v17921_v19 = vcombine.high %v6889_v27, %v6893_v17  ;;  %v6901_v57 = vld [vmem:[#allocation8 + $0xd28] sm:$0xff] }
 0x4d5   :  { %v6381_v35 = vmul.f32 %v6367_v21, %v6008_v26  ;;  %v6010_v20 = vpop.f32.mrb[6].mxu0  ;;  %v6383_v42 = vmul.f32 %v6375_v24, %v6295_v37  ;;  %v6297_v12 = vpop.f32.mrb[6].mxu1  ;;  %v6896_v21 = vld [vmem:[#allocation8 + $0xd00] sm:$0xff]  ;;  %v6897_v24 = vld [vmem:[#allocation8 + $0xd08] sm:$0xff] }
 0x4d6   :  { %v6460_v41 = vadd.f32 %v6443_v47, %v6380_v29  ;;  %v6011_v54 = vpop.f32.mrb[7].mxu0  ;;  %v20276_v46 = vadd.f32 %v6451_v28, %v6382_v33  ;;  %v6298_v51 = vpop.f32.mrb[7].mxu1  ;;  %v6900_v47 = vld [vmem:[#allocation8 + $0xd20] sm:$0xff]  ;;  %v17918_v28 = vcombine.low %v6888_v15, %v6892_v16  ;;  %v17929_v30 = vcombine.high %v6897_v24, %v6901_v57  ;;  %v6905_v33 = vld [vmem:[#allocation8 + $0xd48] sm:$0xff] }
 0x4d7   :  { %v6461_v49 = vadd.f32 %v6447_v39, %v6381_v35  ;;  %v6463_v56 = vadd.f32 %v6455_v32, %v6383_v42  ;;  %v17920_v39 = vcombine.low %v6889_v27, %v6893_v17  ;;  %v17927_v29 = vcombine.high %v6896_v21, %v6900_v47  ;;  %v6904_v26 = vld [vmem:[#allocation8 + $0xd40] sm:$0xff]  ;;  %v6909_v35 = vld [vmem:[#allocation8 + $0xd68] sm:$0xff] }
 0x4d8   :  { %v6468_v53 = vmax.f32 %v6460_v41, 0.0  ;;  %v6908_v32 = vld [vmem:[#allocation8 + $0xd60] sm:$0xff]  ;;  %v17926_v37 = vcombine.low %v6896_v21, %v6900_v47  ;;  %v17928_v20 = vcombine.low %v6897_v24, %v6901_v57  ;;  %v17937_v42 = vcombine.high %v6905_v33, %v6909_v35  ;;  %v6917_v51 = vld [vmem:[#allocation8 + $0xda8] sm:$0xff] }
 0x4d9   :  { %v6469_v58 = vmax.f32 %v6461_v49, 0.0  ;;  %v6471_v59 = vmax.f32 %v6463_v56, 0.0  ;;  %v17935_v41 = vcombine.high %v6904_v26, %v6908_v32  ;;  %v6912_v12 = vld [vmem:[#allocation8 + $0xd80] sm:$0xff]  ;;  %v6913_v49 = vld [vmem:[#allocation8 + $0xd88] sm:$0xff]  ;;  %v17936_v56 = vcombine.low %v6905_v33, %v6909_v35 }
 0x4da   :  { %v20284_v3 = vpack.c.bf16 %v6468_v53, %v6468_v53  ;;  %v6916_v54 = vld [vmem:[#allocation8 + $0xda0] sm:$0xff]  ;;  %v17934_v53 = vcombine.low %v6904_v26, %v6908_v32  ;;  %v17945_v38 = vcombine.high %v6913_v49, %v6917_v51  ;;  %v6929_v10 = vld [vmem:[#allocation8 + $0xe08] sm:$0xff] }
 0x4db   :  { %v20278_v62 = vpack.c.bf16 %v6469_v58, %v6469_v58  ;;  %v20288_v13 = vpack.c.bf16 %v6471_v59, %v6471_v59  ;;  %v17943_v58 = vcombine.high %v6912_v12, %v6916_v54  ;;  %v6920_v59 = vld [vmem:[#allocation8 + $0xdc0] sm:$0xff]  ;;  %v6933_v11 = vld [vmem:[#allocation8 + $0xe28] sm:$0xff] }
 0x4dc   :  { %v17951_v7 = vcombine.high %v6920_v59, %v6924_v44  ;;  %v6936_v15 = vld [vmem:[#allocation8 + $0xe40] sm:$0xff]  ;;  %v6937_v27 = vld [vmem:[#allocation8 + $0xe48] sm:$0xff] }
 0x4dd   :  { %9666 = vmatprep.mubr.bf16.mxu0 %v20278_v62  ;;  %9830 = vmatprep.mubr.bf16.mxu1 %v20278_v62  ;;  %v6940_v16 = vld [vmem:[#allocation8 + $0xe60] sm:$0xff]  ;;  %v6941_v17 = vld [vmem:[#allocation8 + $0xe68] sm:$0xff] }
 0x4de   :  { %9667 = vmatmul.mubr.bf16.vlgmr.msra.gmra.mrb[8].mxu0 %v20284_v3  ;;  %9831 = vmatmul.mubr.bf16.vlgmr.msra.gmra.mrb[8].mxu1 %v20284_v3  ;;  %v6944_v21 = vld [vmem:[#allocation8 + $0xe80] sm:$0xff]  ;;  %v6945_v24 = vld [vmem:[#allocation8 + $0xe88] sm:$0xff] }
 0x4df   :  { %9676 = vmatpush1.bf16.msra.mxu0 %v17894_v63  ;;  %9840 = vmatpush1.bf16.msra.mxu1 %v17896_v2  ;;  %v17942_v63 = vcombine.low %v6912_v12, %v6916_v54  ;;  %v17944_v2 = vcombine.low %v6913_v49, %v6917_v51  ;;  %v6948_v47 = vld [vmem:[#allocation8 + $0xea0] sm:$0xff]  ;;  %v6949_v57 = vld [vmem:[#allocation8 + $0xea8] sm:$0xff] }
 0x4e0   :  { %9707 = vmatprep.mubr.bf16.mxu0 %v20288_v13  ;;  %9871 = vmatprep.mubr.bf16.mxu1 %v20288_v13  ;;  %v6952_v26 = vld [vmem:[#allocation8 + $0xec0] sm:$0xff]  ;;  %v6953_v33 = vld [vmem:[#allocation8 + $0xec8] sm:$0xff] }
 0x4e1   :  { %9677 = vmatprep.subr.bf16.mxu0 %v17903_v8  ;;  %9841 = vmatprep.subr.bf16.mxu1 %v17905_v52  ;;  %v17953_v8 = vcombine.high %v6921_v60, %v6925_v61  ;;  %v6928_v52 = vld [vmem:[#allocation8 + $0xe00] sm:$0xff]  ;;  %v6957_v35 = vld [vmem:[#allocation8 + $0xee8] sm:$0xff] }
 0x4e2   :  { %v6956_v32 = vld [vmem:[#allocation8 + $0xee0] sm:$0xff]  ;;  %v6961_v49 = vld [vmem:[#allocation8 + $0xf08] sm:$0xff] }
 0x4e3   :  { %9678 = vmatpush1.bf16.msra.mxu0 %v17902_v5  ;;  %9842 = vmatpush1.bf16.msra.mxu1 %v17904_v6  ;;  %v17950_v5 = vcombine.low %v6920_v59, %v6924_v44  ;;  %v17952_v6 = vcombine.low %v6921_v60, %v6925_v61  ;;  %v6960_v12 = vld [vmem:[#allocation8 + $0xf00] sm:$0xff]  ;;  %v6965_v51 = vld [vmem:[#allocation8 + $0xf28] sm:$0xff] }
 0x4e4   :  { %9679 = vmatprep.subr.bf16.mxu0 %v17911_v0  ;;  %9843 = vmatprep.subr.bf16.mxu1 %v17913_v25  ;;  %v17959_v0 = vcombine.high %v6928_v52, %v6932_v9  ;;  %v17961_v25 = vcombine.high %v6929_v10, %v6933_v11  ;;  %v6964_v54 = vld [vmem:[#allocation8 + $0xf20] sm:$0xff]  ;;  %v6969_v60 = vld [vmem:[#allocation8 + $0xf48] sm:$0xff] }
 0x4e5   :  { %v6968_v59 = vld [vmem:[#allocation8 + $0xf40] sm:$0xff]  ;;  %v6973_v61 = vld [vmem:[#allocation8 + $0xf68] sm:$0xff] }
 0x4e6   :  { %v6972_v44 = vld [vmem:[#allocation8 + $0xf60] sm:$0xff] }
 0x4e7   :  { %9680 = vmatpush1.bf16.msra.mxu0 %v17910_v34  ;;  %9844 = vmatpush1.bf16.msra.mxu1 %v17912_v14  ;;  %v17958_v34 = vcombine.low %v6928_v52, %v6932_v9  ;;  %v17960_v14 = vcombine.low %v6929_v10, %v6933_v11  ;;  %v6976_v52 = vld [vmem:[#allocation8 + $0xf80] sm:$0xff]  ;;  %v6977_v10 = vld [vmem:[#allocation8 + $0xf88] sm:$0xff] }
 0x4e8   :  { %9681 = vmatprep.subr.bf16.mxu0 %v17919_v31  ;;  %9845 = vmatprep.subr.bf16.mxu1 %v17921_v19  ;;  %v17967_v31 = vcombine.high %v6936_v15, %v6940_v16  ;;  %v17969_v19 = vcombine.high %v6937_v27, %v6941_v17  ;;  %v6980_v9 = vld [vmem:[#allocation8 + $0xfa0] sm:$0xff]  ;;  %v6981_v11 = vld [vmem:[#allocation8 + $0xfa8] sm:$0xff] }
 0x4eb   :  { %9682 = vmatpush1.bf16.msra.mxu0 %v17918_v28  ;;  %9846 = vmatpush1.bf16.msra.mxu1 %v17920_v39  ;;  %v17966_v28 = vcombine.low %v6936_v15, %v6940_v16  ;;  %v17968_v39 = vcombine.low %v6937_v27, %v6941_v17  ;;  %v6984_v15 = vld [vmem:[#allocation8 + $0xfc0] sm:$0xff]  ;;  %v6985_v27 = vld [vmem:[#allocation8 + $0xfc8] sm:$0xff] }
 0x4ec   :  { %9683 = vmatprep.subr.bf16.mxu0 %v17927_v29  ;;  %9847 = vmatprep.subr.bf16.mxu1 %v17929_v30  ;;  %v17975_v29 = vcombine.high %v6944_v21, %v6948_v47  ;;  %v17977_v30 = vcombine.high %v6945_v24, %v6949_v57  ;;  %v6988_v16 = vld [vmem:[#allocation8 + $0xfe0] sm:$0xff]  ;;  %v6989_v17 = vld [vmem:[#allocation8 + $0xfe8] sm:$0xff] }
 0x4ef   :  { %9684 = vmatpush1.bf16.msra.mxu0 %v17926_v37  ;;  %9848 = vmatpush1.bf16.msra.mxu1 %v17928_v20  ;;  %v17974_v37 = vcombine.low %v6944_v21, %v6948_v47  ;;  %v17976_v20 = vcombine.low %v6945_v24, %v6949_v57  ;;  %v6482_v21 = vld [vmem:[#allocation8 + $0x10] sm:$0xff]  ;;  %v6483_v24 = vld [vmem:[#allocation8 + $0x18] sm:$0xff] }
 0x4f0   :  { %9685 = vmatprep.subr.bf16.mxu0 %v17935_v41  ;;  %9849 = vmatprep.subr.bf16.mxu1 %v17937_v42  ;;  %v17983_v41 = vcombine.high %v6952_v26, %v6956_v32  ;;  %v17985_v42 = vcombine.high %v6953_v33, %v6957_v35  ;;  %v6486_v47 = vld [vmem:[#allocation8 + $0x30] sm:$0xff]  ;;  %v6487_v57 = vld [vmem:[#allocation8 + $0x38] sm:$0xff] }
 0x4f3   :  { %9686 = vmatpush1.bf16.msra.mxu0 %v17934_v53  ;;  %9850 = vmatpush1.bf16.msra.mxu1 %v17936_v56  ;;  %v17982_v53 = vcombine.low %v6952_v26, %v6956_v32  ;;  %v17984_v56 = vcombine.low %v6953_v33, %v6957_v35  ;;  %v17517_v26 = vcombine.high %v6483_v24, %v6487_v57  ;;  %v6490_v32 = vld [vmem:[#allocation8 + $0x50] sm:$0xff]  ;;  %v6491_v35 = vld [vmem:[#allocation8 + $0x58] sm:$0xff] }
 0x4f4   :  { %9687 = vmatprep.subr.bf16.mxu0 %v17943_v58  ;;  %9851 = vmatprep.subr.bf16.mxu1 %v17945_v38  ;;  %v17991_v58 = vcombine.high %v6960_v12, %v6964_v54  ;;  %v17993_v38 = vcombine.high %v6961_v49, %v6965_v51  ;;  %v6494_v33 = vld [vmem:[#allocation8 + $0x70] sm:$0xff] }
 0x4f7   :  { %9688 = vmatpush1.bf16.msra.mxu0 %v17942_v63  ;;  %9852 = vmatpush1.bf16.msra.mxu1 %v17944_v2  ;;  %v17990_v63 = vcombine.low %v6960_v12, %v6964_v54  ;;  %v17992_v2 = vcombine.low %v6961_v49, %v6965_v51  ;;  %v17523_v12 = vcombine.high %v6490_v32, %v6494_v33  ;;  %v6498_v49 = vld [vmem:[#allocation8 + $0x90] sm:$0xff]  ;;  %v6499_v51 = vld [vmem:[#allocation8 + $0x98] sm:$0xff] }
 0x4f8   :  { %9689 = vmatprep.subr.bf16.mxu0 %v17951_v7  ;;  %9853 = vmatprep.subr.bf16.mxu1 %v17953_v8  ;;  %v17999_v7 = vcombine.high %v6968_v59, %v6972_v44  ;;  %v18001_v8 = vcombine.high %v6969_v60, %v6973_v61 }
 0x4fb   :  { %9690 = vmatpush1.bf16.msra.mxu0 %v17950_v5  ;;  %9854 = vmatpush1.bf16.msra.mxu1 %v17952_v6  ;;  %v17998_v5 = vcombine.low %v6968_v59, %v6972_v44  ;;  %v18000_v6 = vcombine.low %v6969_v60, %v6973_v61  ;;  %v6506_v44 = vld [vmem:[#allocation8 + $0xd0] sm:$0xff]  ;;  %v6507_v61 = vld [vmem:[#allocation8 + $0xd8] sm:$0xff] }
 0x4fc   :  { %9691 = vmatprep.subr.bf16.mxu0 %v17959_v0  ;;  %9855 = vmatprep.subr.bf16.mxu1 %v17961_v25  ;;  %v18007_v0 = vcombine.high %v6976_v52, %v6980_v9  ;;  %v18009_v25 = vcombine.high %v6977_v10, %v6981_v11  ;;  %v6510_v60 = vld [vmem:[#allocation8 + $0xf0] sm:$0xff] }
 0x4ff   :  { %9692 = vmatpush1.bf16.msra.mxu0 %v17958_v34  ;;  %9856 = vmatpush1.bf16.msra.mxu1 %v17960_v14  ;;  %v18006_v34 = vcombine.low %v6976_v52, %v6980_v9  ;;  %v18008_v14 = vcombine.low %v6977_v10, %v6981_v11  ;;  %v6514_v9 = vld [vmem:[#allocation8 + $0x110] sm:$0xff]  ;;  %v6519_v11 = vld [vmem:[#allocation8 + $0x138] sm:$0xff] }
 0x500   :  { %9693 = vmatprep.subr.bf16.mxu0 %v17967_v31  ;;  %9857 = vmatprep.subr.bf16.mxu1 %v17969_v19  ;;  %v18015_v31 = vcombine.high %v6984_v15, %v6988_v16  ;;  %v18017_v19 = vcombine.high %v6985_v27, %v6989_v17  ;;  %v6518_v10 = vld [vmem:[#allocation8 + $0x130] sm:$0xff] }
 0x503   :  { %9694 = vmatpush1.bf16.msra.mxu0 %v17966_v28  ;;  %9858 = vmatpush1.bf16.msra.mxu1 %v17968_v39  ;;  %v18014_v28 = vcombine.low %v6984_v15, %v6988_v16  ;;  %v18016_v39 = vcombine.low %v6985_v27, %v6989_v17  ;;  %v6522_v15 = vld [vmem:[#allocation8 + $0x150] sm:$0xff]  ;;  %v6523_v27 = vld [vmem:[#allocation8 + $0x158] sm:$0xff] }
 0x504   :  { %9695 = vmatprep.subr.bf16.mxu0 %v17975_v29  ;;  %9859 = vmatprep.subr.bf16.mxu1 %v17977_v30  ;;  %v6470_v29 = vmax.f32 %v20276_v46, 0.0  ;;  %v17515_v30 = vcombine.high %v6482_v21, %v6486_v47  ;;  %v6502_v46 = vld [vmem:[#allocation8 + $0xb0] sm:$0xff]  ;;  %v6527_v17 = vld [vmem:[#allocation8 + $0x178] sm:$0xff] }
 0x505   :  { %v6526_v16 = vld [vmem:[#allocation8 + $0x170] sm:$0xff] }
 0x507   :  { %9696 = vmatpush1.bf16.msra.mxu0 %v17974_v37  ;;  %9860 = vmatpush1.bf16.msra.mxu1 %v17976_v20  ;;  %v6495_v37 = vld [vmem:[#allocation8 + $0x78] sm:$0xff]  ;;  %v17514_v20 = vcombine.low %v6482_v21, %v6486_v47  ;;  %v6530_v21 = vld [vmem:[#allocation8 + $0x190] sm:$0xff] }
 0x508   :  { %9697 = vmatprep.subr.bf16.mxu0 %v17983_v41  ;;  %9861 = vmatprep.subr.bf16.mxu1 %v17985_v42  ;;  %v20295_v41 = vpack.c.bf16 %v6470_v29, %v6470_v29  ;;  %v17516_v42 = vcombine.low %v6483_v24, %v6487_v57  ;;  %v17525_v54 = vcombine.high %v6491_v35, %v6495_v37  ;;  %v6534_v47 = vld [vmem:[#allocation8 + $0x1b0] sm:$0xff]  ;;  %v6531_v24 = vld [vmem:[#allocation8 + $0x198] sm:$0xff] }
 0x509   :  { %v6535_v57 = vld [vmem:[#allocation8 + $0x1b8] sm:$0xff]  ;;  %v17563_v29 = vcombine.high %v6530_v21, %v6534_v47 }
 0x50b   :  { %9698 = vmatpush1.bf16.msra.mxu0 %v17982_v53  ;;  %9862 = vmatpush1.bf16.msra.mxu1 %v17984_v56  ;;  %v6503_v53 = vld [vmem:[#allocation8 + $0xb8] sm:$0xff]  ;;  %v17522_v56 = vcombine.low %v6490_v32, %v6494_v33  ;;  %v6542_v32 = vld [vmem:[#allocation8 + $0x1f0] sm:$0xff] }
 0x50c   :  { %9699 = vmatprep.subr.bf16.mxu0 %v17991_v58  ;;  %9863 = vmatprep.subr.bf16.mxu1 %v17993_v38  ;;  %v17524_v58 = vcombine.low %v6491_v35, %v6495_v37  ;;  %v17531_v38 = vcombine.high %v6498_v49, %v6502_v46  ;;  %v17533_v59 = vcombine.high %v6499_v51, %v6503_v53  ;;  %v6539_v33 = vld [vmem:[#allocation8 + $0x1d8] sm:$0xff] }
 0x50d   :  { %v6543_v35 = vld [vmem:[#allocation8 + $0x1f8] sm:$0xff]  ;;  %v17562_v37 = vcombine.low %v6530_v21, %v6534_v47  ;;  %v6582_v21 = vld [vmem:[#allocation8 + $0x330] sm:$0xff] }
 0x50e   :  { %v6579_v47 = vld [vmem:[#allocation8 + $0x318] sm:$0xff] }
 0x50f   :  { %9700 = vmatpush1.bf16.msra.mxu0 %v17990_v63  ;;  %9864 = vmatpush1.bf16.msra.mxu1 %v17992_v2  ;;  %v6511_v63 = vld [vmem:[#allocation8 + $0xf8] sm:$0xff]  ;;  %v17530_v2 = vcombine.low %v6498_v49, %v6502_v46  ;;  %v6550_v49 = vld [vmem:[#allocation8 + $0x230] sm:$0xff] }
 0x510   :  { %9701 = vmatprep.subr.bf16.mxu0 %v17999_v7  ;;  %9865 = vmatprep.subr.bf16.mxu1 %v18001_v8  ;;  %v17532_v7 = vcombine.low %v6499_v51, %v6503_v53  ;;  %v17539_v8 = vcombine.high %v6506_v44, %v6510_v60  ;;  %v17541_v52 = vcombine.high %v6507_v61, %v6511_v63  ;;  %v6547_v46 = vld [vmem:[#allocation8 + $0x218] sm:$0xff] }
 0x511   :  { %v6551_v51 = vld [vmem:[#allocation8 + $0x238] sm:$0xff] }
 0x513   :  { %9702 = vmatpush1.bf16.msra.mxu0 %v17998_v5  ;;  %9866 = vmatpush1.bf16.msra.mxu1 %v18000_v6  ;;  %v17538_v5 = vcombine.low %v6506_v44, %v6510_v60  ;;  %v17540_v6 = vcombine.low %v6507_v61, %v6511_v63  ;;  %v6558_v44 = vld [vmem:[#allocation8 + $0x270] sm:$0xff]  ;;  %v6555_v60 = vld [vmem:[#allocation8 + $0x258] sm:$0xff] }
 0x514   :  { %9703 = vmatprep.subr.bf16.mxu0 %v18007_v0  ;;  %9867 = vmatprep.subr.bf16.mxu1 %v18009_v25  ;;  %v17547_v0 = vcombine.high %v6514_v9, %v6518_v10  ;;  %v6559_v61 = vld [vmem:[#allocation8 + $0x278] sm:$0xff] }
 0x517   :  { %9704 = vmatpush1.bf16.msra.mxu0 %v18006_v34  ;;  %9868 = vmatpush1.bf16.msra.mxu1 %v18008_v14  ;;  %v17546_v34 = vcombine.low %v6514_v9, %v6518_v10  ;;  %v6566_v9 = vld [vmem:[#allocation8 + $0x2b0] sm:$0xff]  ;;  %v6563_v10 = vld [vmem:[#allocation8 + $0x298] sm:$0xff] }
 0x518   :  { %9705 = vmatprep.subr.bf16.mxu0 %v18015_v31  ;;  %9869 = vmatprep.subr.bf16.mxu1 %v18017_v19  ;;  %v17555_v31 = vcombine.high %v6522_v15, %v6526_v16  ;;  %v17557_v19 = vcombine.high %v6523_v27, %v6527_v17 }
 0x51b   :  { %9706 = vmatpush1.bf16.msra.mxu0 %v18014_v28  ;;  %9870 = vmatpush1.bf16.msra.mxu1 %v18016_v39  ;;  %v17554_v28 = vcombine.low %v6522_v15, %v6526_v16  ;;  %v17556_v39 = vcombine.low %v6523_v27, %v6527_v17  ;;  %v6574_v15 = vld [vmem:[#allocation8 + $0x2f0] sm:$0xff]  ;;  %v6571_v16 = vld [vmem:[#allocation8 + $0x2d8] sm:$0xff] }
 0x51c   :  { %9880 = vmatprep.subr.bf16.mxu0 %v17515_v30  ;;  %10044 = vmatprep.subr.bf16.mxu1 %v17517_v26  ;;  %v17565_v30 = vcombine.high %v6531_v24, %v6535_v57  ;;  %v6538_v26 = vld [vmem:[#allocation8 + $0x1d0] sm:$0xff]  ;;  %v6575_v27 = vld [vmem:[#allocation8 + $0x2f8] sm:$0xff] }
 0x51d   :  { %v17570_v53 = vcombine.low %v6538_v26, %v6542_v32 }
 0x51e   :  { %9708 = vmatmul.mubr.bf16.vlgmr.msra.gmra.mrb[8].mxu0 %v20295_v41  ;;  %9872 = vmatmul.mubr.bf16.vlgmr.msra.gmra.mrb[8].mxu1 %v20295_v41 }
 0x51f   :  { %9881 = vmatpush1.bf16.msra.mxu0 %v17514_v20  ;;  %9912 = vmatprep.mubr.bf16.mxu0 %v20225_v1  ;;  %v17564_v20 = vcombine.low %v6531_v24, %v6535_v57  ;;  %v6583_v24 = vld [vmem:[#allocation8 + $0x338] sm:$0xff] }
 0x520   :  { %10045 = vmatpush1.bf16.msra.mxu1 %v17516_v42  ;;  %10076 = vmatprep.mubr.bf16.mxu1 %v20225_v1  ;;  %v6515_v1 = vld [vmem:[#allocation8 + $0x118] sm:$0xff]  ;;  %v17571_v42 = vcombine.high %v6538_v26, %v6542_v32  ;;  %v6590_v26 = vld [vmem:[#allocation8 + $0x370] sm:$0xff] }
 0x521   :  { %9882 = vmatprep.subr.bf16.mxu0 %v17523_v12  ;;  %10046 = vmatprep.subr.bf16.mxu1 %v17525_v54  ;;  %v17549_v25 = vcombine.high %v6515_v1, %v6519_v11  ;;  %v17548_v14 = vcombine.low %v6515_v1, %v6519_v11  ;;  %v17573_v12 = vcombine.high %v6539_v33, %v6543_v35  ;;  %v6546_v54 = vld [vmem:[#allocation8 + $0x210] sm:$0xff]  ;;  %v6567_v1 = vld [vmem:[#allocation8 + $0x2b8] sm:$0xff] }
 0x522   :  { %v17578_v63 = vcombine.low %v6546_v54, %v6550_v49  ;;  %v6587_v32 = vld [vmem:[#allocation8 + $0x358] sm:$0xff] }
 0x523   :  { %9883 = vmatpush1.bf16.msra.mxu0 %v17522_v56  ;;  %v17572_v56 = vcombine.low %v6539_v33, %v6543_v35  ;;  %v6591_v33 = vld [vmem:[#allocation8 + $0x378] sm:$0xff] }
 0x524   :  { %10047 = vmatpush1.bf16.msra.mxu1 %v17524_v58  ;;  %9884 = vmatprep.subr.bf16.mxu0 %v17531_v38  ;;  %v17579_v58 = vcombine.high %v6546_v54, %v6550_v49  ;;  %v17581_v38 = vcombine.high %v6547_v46, %v6551_v51  ;;  %v6598_v54 = vld [vmem:[#allocation8 + $0x3b0] sm:$0xff]  ;;  %v6595_v49 = vld [vmem:[#allocation8 + $0x398] sm:$0xff] }
 0x525   :  { %10048 = vmatprep.subr.bf16.mxu1 %v17533_v59  ;;  %v6554_v59 = vld [vmem:[#allocation8 + $0x250] sm:$0xff] }
 0x526   :  { %v17586_v11 = vcombine.low %v6554_v59, %v6558_v44 }
 0x527   :  { %9885 = vmatpush1.bf16.msra.mxu0 %v17530_v2  ;;  %v17580_v2 = vcombine.low %v6547_v46, %v6551_v51  ;;  %v6599_v46 = vld [vmem:[#allocation8 + $0x3b8] sm:$0xff] }
 0x528   :  { %10049 = vmatpush1.bf16.msra.mxu1 %v17532_v7  ;;  %9886 = vmatprep.subr.bf16.mxu0 %v17539_v8  ;;  %v17587_v7 = vcombine.high %v6554_v59, %v6558_v44  ;;  %v17589_v8 = vcombine.high %v6555_v60, %v6559_v61  ;;  %v6606_v59 = vld [vmem:[#allocation8 + $0x3f0] sm:$0xff]  ;;  %v6603_v44 = vld [vmem:[#allocation8 + $0x3d8] sm:$0xff] }
 0x529   :  { %10050 = vmatprep.subr.bf16.mxu1 %v17541_v52  ;;  %v6562_v52 = vld [vmem:[#allocation8 + $0x290] sm:$0xff] }
 0x52a   :  { %v17594_v17 = vcombine.low %v6562_v52, %v6566_v9 }
 0x52b   :  { %9887 = vmatpush1.bf16.msra.mxu0 %v17538_v5  ;;  %v17588_v5 = vcombine.low %v6555_v60, %v6559_v61  ;;  %v6607_v60 = vld [vmem:[#allocation8 + $0x3f8] sm:$0xff] }
 0x52c   :  { %10051 = vmatpush1.bf16.msra.mxu1 %v17540_v6  ;;  %9888 = vmatprep.subr.bf16.mxu0 %v17547_v0  ;;  %v17595_v6 = vcombine.high %v6562_v52, %v6566_v9  ;;  %v17597_v0 = vcombine.high %v6563_v10, %v6567_v1  ;;  %v6614_v52 = vld [vmem:[#allocation8 + $0x430] sm:$0xff]  ;;  %v6611_v9 = vld [vmem:[#allocation8 + $0x418] sm:$0xff] }
 0x52d   :  { %10052 = vmatprep.subr.bf16.mxu1 %v17549_v25  ;;  %v6570_v25 = vld [vmem:[#allocation8 + $0x2d0] sm:$0xff] }
 0x52e   :  { %v17602_v57 = vcombine.low %v6570_v25, %v6574_v15 }
 0x52f   :  { %9889 = vmatpush1.bf16.msra.mxu0 %v17546_v34  ;;  %v17596_v34 = vcombine.low %v6563_v10, %v6567_v1  ;;  %v6615_v10 = vld [vmem:[#allocation8 + $0x438] sm:$0xff] }
 0x530   :  { %10053 = vmatpush1.bf16.msra.mxu1 %v17548_v14  ;;  %9890 = vmatprep.subr.bf16.mxu0 %v17555_v31  ;;  %v17603_v14 = vcombine.high %v6570_v25, %v6574_v15  ;;  %v17605_v31 = vcombine.high %v6571_v16, %v6575_v27  ;;  %v6622_v25 = vld [vmem:[#allocation8 + $0x470] sm:$0xff] }
 0x531   :  { %10054 = vmatprep.subr.bf16.mxu1 %v17557_v19  ;;  %v6578_v19 = vld [vmem:[#allocation8 + $0x310] sm:$0xff] }
 0x532   :  { %v17610_v35 = vcombine.low %v6578_v19, %v6582_v21 }
 0x533   :  { %9891 = vmatpush1.bf16.msra.mxu0 %v17554_v28  ;;  %v17604_v28 = vcombine.low %v6571_v16, %v6575_v27  ;;  %v6619_v16 = vld [vmem:[#allocation8 + $0x458] sm:$0xff] }
 0x534   :  { %10055 = vmatpush1.bf16.msra.mxu1 %v17556_v39  ;;  %9892 = vmatprep.subr.bf16.mxu0 %v17563_v29  ;;  %v17611_v39 = vcombine.high %v6578_v19, %v6582_v21  ;;  %v17613_v29 = vcombine.high %v6579_v47, %v6583_v24  ;;  %v6623_v27 = vld [vmem:[#allocation8 + $0x478] sm:$0xff] }
 0x535   :  { %10056 = vmatprep.subr.bf16.mxu1 %v17565_v30  ;;  %v6586_v30 = vld [vmem:[#allocation8 + $0x350] sm:$0xff]  ;;  %v17653_v19 = vcombine.high %v6619_v16, %v6623_v27  ;;  %v6627_v21 = vld [vmem:[#allocation8 + $0x498] sm:$0xff] }
 0x536   :  { %v17618_v51 = vcombine.low %v6586_v30, %v6590_v26 }
 0x537   :  { %9893 = vmatpush1.bf16.msra.mxu0 %v17562_v37  ;;  %v17612_v37 = vcombine.low %v6579_v47, %v6583_v24  ;;  %v6631_v47 = vld [vmem:[#allocation8 + $0x4b8] sm:$0xff] }
 0x538   :  { %10057 = vmatpush1.bf16.msra.mxu1 %v17564_v20  ;;  %9894 = vmatprep.subr.bf16.mxu0 %v17571_v42  ;;  %v17619_v20 = vcombine.high %v6586_v30, %v6590_v26  ;;  %v17621_v42 = vcombine.high %v6587_v32, %v6591_v33  ;;  %v6638_v30 = vld [vmem:[#allocation8 + $0x4f0] sm:$0xff]  ;;  %v6635_v26 = vld [vmem:[#allocation8 + $0x4d8] sm:$0xff] }
 0x539   :  { %10058 = vmatprep.subr.bf16.mxu1 %v17573_v12  ;;  %v6594_v12 = vld [vmem:[#allocation8 + $0x390] sm:$0xff] }
 0x53a   :  { %v17626_v61 = vcombine.low %v6594_v12, %v6598_v54 }
 0x53b   :  { %9895 = vmatpush1.bf16.msra.mxu0 %v17570_v53  ;;  %v17620_v53 = vcombine.low %v6587_v32, %v6591_v33  ;;  %v6639_v32 = vld [vmem:[#allocation8 + $0x4f8] sm:$0xff] }
 0x53c   :  { %10059 = vmatpush1.bf16.msra.mxu1 %v17572_v56  ;;  %9896 = vmatprep.subr.bf16.mxu0 %v17579_v58  ;;  %v17627_v56 = vcombine.high %v6594_v12, %v6598_v54  ;;  %v17629_v58 = vcombine.high %v6595_v49, %v6599_v46  ;;  %v6643_v12 = vld [vmem:[#allocation8 + $0x518] sm:$0xff] }
 0x53d   :  { %10060 = vmatprep.subr.bf16.mxu1 %v17581_v38  ;;  %v6602_v38 = vld [vmem:[#allocation8 + $0x3d0] sm:$0xff]  ;;  %v6647_v54 = vld [vmem:[#allocation8 + $0x538] sm:$0xff] }
 0x53e   :  { %v17634_v1 = vcombine.low %v6602_v38, %v6606_v59 }
 0x53f   :  { %9897 = vmatpush1.bf16.msra.mxu0 %v17578_v63  ;;  %v17628_v63 = vcombine.low %v6595_v49, %v6599_v46  ;;  %v17668_v49 = vcombine.low %v6635_v26, %v6639_v32 }
 0x540   :  { %10061 = vmatpush1.bf16.msra.mxu1 %v17580_v2  ;;  %9898 = vmatprep.subr.bf16.mxu0 %v17587_v7  ;;  %v17635_v2 = vcombine.high %v6602_v38, %v6606_v59  ;;  %v17637_v7 = vcombine.high %v6603_v44, %v6607_v60  ;;  %v6655_v38 = vld [vmem:[#allocation8 + $0x578] sm:$0xff] }
 0x541   :  { %10062 = vmatprep.subr.bf16.mxu1 %v17589_v8  ;;  %v6610_v8 = vld [vmem:[#allocation8 + $0x410] sm:$0xff] }
 0x542   :  { %v17642_v15 = vcombine.low %v6610_v8, %v6614_v52 }
 0x543   :  { %9899 = vmatpush1.bf16.msra.mxu0 %v17586_v11  ;;  %v17636_v11 = vcombine.low %v6603_v44, %v6607_v60  ;;  %v17676_v44 = vcombine.low %v6643_v12, %v6647_v54 }
 0x544   :  { %10063 = vmatpush1.bf16.msra.mxu1 %v17588_v5  ;;  %9900 = vmatprep.subr.bf16.mxu0 %v17595_v6  ;;  %v17643_v5 = vcombine.high %v6610_v8, %v6614_v52  ;;  %v17645_v6 = vcombine.high %v6611_v9, %v6615_v10  ;;  %v6663_v8 = vld [vmem:[#allocation8 + $0x5b8] sm:$0xff] }
 0x545   :  { %10064 = vmatprep.subr.bf16.mxu1 %v17597_v0  ;;  %v6618_v0 = vld [vmem:[#allocation8 + $0x450] sm:$0xff] }
 0x546   :  { %v17650_v24 = vcombine.low %v6618_v0, %v6622_v25 }
 0x547   :  { %9901 = vmatpush1.bf16.msra.mxu0 %v17594_v17  ;;  %v17644_v17 = vcombine.low %v6611_v9, %v6615_v10 }
 0x548   :  { %10065 = vmatpush1.bf16.msra.mxu1 %v17596_v34  ;;  %9902 = vmatprep.subr.bf16.mxu0 %v17603_v14  ;;  %v17651_v34 = vcombine.high %v6618_v0, %v6622_v25  ;;  %v6626_v14 = vld [vmem:[#allocation8 + $0x490] sm:$0xff]  ;;  %v6671_v0 = vld [vmem:[#allocation8 + $0x5f8] sm:$0xff] }
 0x549   :  { %10066 = vmatprep.subr.bf16.mxu1 %v17605_v31  ;;  %v6630_v31 = vld [vmem:[#allocation8 + $0x4b0] sm:$0xff] }
 0x54a   :  { %v17658_v33 = vcombine.low %v6626_v14, %v6630_v31 }
 0x54b   :  { %9903 = vmatpush1.bf16.msra.mxu0 %v17602_v57  ;;  %v17652_v57 = vcombine.low %v6619_v16, %v6623_v27 }
 0x54c   :  { %10067 = vmatpush1.bf16.msra.mxu1 %v17604_v28  ;;  %9904 = vmatprep.subr.bf16.mxu0 %v17611_v39  ;;  %v17659_v28 = vcombine.high %v6626_v14, %v6630_v31  ;;  %v17661_v39 = vcombine.high %v6627_v21, %v6631_v47  ;;  %v6675_v14 = vld [vmem:[#allocation8 + $0x618] sm:$0xff] }
 0x54d   :  { %10068 = vmatprep.subr.bf16.mxu1 %v17613_v29  ;;  %v6634_v29 = vld [vmem:[#allocation8 + $0x4d0] sm:$0xff]  ;;  %v6679_v31 = vld [vmem:[#allocation8 + $0x638] sm:$0xff] }
 0x54f   :  { %9905 = vmatpush1.bf16.msra.mxu0 %v17610_v35  ;;  %v17667_v35 = vcombine.high %v6634_v29, %v6638_v30 }
 0x550   :  { %10069 = vmatpush1.bf16.msra.mxu1 %v17612_v37  ;;  %9906 = vmatprep.subr.bf16.mxu0 %v17619_v20  ;;  %v17669_v37 = vcombine.high %v6635_v26, %v6639_v32  ;;  %v6642_v20 = vld [vmem:[#allocation8 + $0x510] sm:$0xff]  ;;  %v17708_v26 = vcombine.low %v6675_v14, %v6679_v31 }
 0x551   :  { %10070 = vmatprep.subr.bf16.mxu1 %v17621_v42  ;;  %v6646_v42 = vld [vmem:[#allocation8 + $0x530] sm:$0xff] }
 0x552   :  { %v17675_v46 = vcombine.high %v6642_v20, %v6646_v42  ;;  %v17674_v59 = vcombine.low %v6642_v20, %v6646_v42  ;;  %v6695_v20 = vld [vmem:[#allocation8 + $0x6b8] sm:$0xff] }
 0x553   :  { %9907 = vmatpush1.bf16.msra.mxu0 %v17618_v51  ;;  %v17677_v51 = vcombine.high %v6643_v12, %v6647_v54 }
 0x554   :  { %10071 = vmatpush1.bf16.msra.mxu1 %v17620_v53  ;;  %9908 = vmatprep.subr.bf16.mxu0 %v17627_v56  ;;  %v6650_v53 = vld [vmem:[#allocation8 + $0x550] sm:$0xff] }
 0x555   :  { %10072 = vmatprep.subr.bf16.mxu1 %v17629_v58  ;;  %v6654_v56 = vld [vmem:[#allocation8 + $0x570] sm:$0xff]  ;;  %v6651_v58 = vld [vmem:[#allocation8 + $0x558] sm:$0xff] }
 0x556   :  { %v17683_v60 = vcombine.high %v6650_v53, %v6654_v56  ;;  %v17682_v52 = vcombine.low %v6650_v53, %v6654_v56  ;;  %v17684_v9 = vcombine.low %v6651_v58, %v6655_v38  ;;  %v6703_v53 = vld [vmem:[#allocation8 + $0x6f8] sm:$0xff] }
 0x557   :  { %9909 = vmatpush1.bf16.msra.mxu0 %v17626_v61  ;;  %v17685_v61 = vcombine.high %v6651_v58, %v6655_v38 }
 0x558   :  { %10073 = vmatpush1.bf16.msra.mxu1 %v17628_v63  ;;  %9910 = vmatprep.subr.bf16.mxu0 %v17635_v2  ;;  %v6658_v63 = vld [vmem:[#allocation8 + $0x590] sm:$0xff] }
 0x559   :  { %10074 = vmatprep.subr.bf16.mxu1 %v17637_v7  ;;  %v6662_v2 = vld [vmem:[#allocation8 + $0x5b0] sm:$0xff]  ;;  %v6659_v7 = vld [vmem:[#allocation8 + $0x598] sm:$0xff] }
 0x55a   :  { %v17691_v10 = vcombine.high %v6658_v63, %v6662_v2  ;;  %v17690_v25 = vcombine.low %v6658_v63, %v6662_v2  ;;  %v6711_v63 = vld [vmem:[#allocation8 + $0x738] sm:$0xff] }
 0x55b   :  { %9911 = vmatpush1.bf16.msra.mxu0 %v17634_v1  ;;  %v17693_v1 = vcombine.high %v6659_v7, %v6663_v8 }
 0x55c   :  { %10075 = vmatpush1.bf16.msra.mxu1 %v17636_v11  ;;  %9921 = vmatprep.subr.bf16.mxu0 %v17643_v5  ;;  %v6666_v11 = vld [vmem:[#allocation8 + $0x5d0] sm:$0xff] }
 0x55d   :  { %10085 = vmatprep.subr.bf16.mxu1 %v17645_v6  ;;  %v6670_v5 = vld [vmem:[#allocation8 + $0x5f0] sm:$0xff]  ;;  %v6667_v6 = vld [vmem:[#allocation8 + $0x5d8] sm:$0xff] }
 0x55e   :  { %9913 = vmatmul.mubr.bf16.vlgmr.msra.gmra.mrb[12].mxu0 %v20235_v18  ;;  %v17699_v16 = vcombine.high %v6666_v11, %v6670_v5  ;;  %v17701_v27 = vcombine.high %v6667_v6, %v6671_v0 }
 0x55f   :  { %10077 = vmatmul.mubr.bf16.vlgmr.msra.gmra.mrb[12].mxu1 %v20235_v18  ;;  %9922 = vmatpush1.bf16.msra.mxu0 %v17642_v15  ;;  %v17660_v18 = vcombine.low %v6627_v21, %v6631_v47  ;;  %v17692_v15 = vcombine.low %v6659_v7, %v6663_v8  ;;  %v17700_v21 = vcombine.low %v6667_v6, %v6671_v0 }
 0x560   :  { %9953 = vmatprep.mubr.bf16.mxu0 %v20237_v22  ;;  %10086 = vmatpush1.bf16.msra.mxu1 %v17644_v17  ;;  %v6674_v17 = vld [vmem:[#allocation8 + $0x610] sm:$0xff] }
 0x561   :  { %10117 = vmatprep.mubr.bf16.mxu1 %v20237_v22  ;;  %9923 = vmatprep.subr.bf16.mxu0 %v17651_v34  ;;  %v17666_v22 = vcombine.low %v6634_v29, %v6638_v30  ;;  %v6678_v34 = vld [vmem:[#allocation8 + $0x630] sm:$0xff]  ;;  %v6687_v29 = vld [vmem:[#allocation8 + $0x678] sm:$0xff] }
 0x562   :  { %10087 = vmatprep.subr.bf16.mxu1 %v17653_v19  ;;  %v17698_v19 = vcombine.low %v6666_v11, %v6670_v5  ;;  %v17707_v47 = vcombine.high %v6674_v17, %v6678_v34  ;;  %v17706_v30 = vcombine.low %v6674_v17, %v6678_v34  ;;  %v6719_v11 = vld [vmem:[#allocation8 + $0x778] sm:$0xff] }
 0x563   :  { %9924 = vmatpush1.bf16.msra.mxu0 %v17650_v24  ;;  %v17709_v24 = vcombine.high %v6675_v14, %v6679_v31  ;;  %v6727_v17 = vld [vmem:[#allocation8 + $0x7b8] sm:$0xff] }
 0x564   :  { %10088 = vmatpush1.bf16.msra.mxu1 %v17652_v57  ;;  %9925 = vmatprep.subr.bf16.mxu0 %v17659_v28  ;;  %v6682_v57 = vld [vmem:[#allocation8 + $0x650] sm:$0xff] }
 0x565   :  { %10089 = vmatprep.subr.bf16.mxu1 %v17661_v39  ;;  %v6686_v28 = vld [vmem:[#allocation8 + $0x670] sm:$0xff]  ;;  %v6683_v39 = vld [vmem:[#allocation8 + $0x658] sm:$0xff] }
 0x566   :  { %v17715_v32 = vcombine.high %v6682_v57, %v6686_v28  ;;  %v17714_v42 = vcombine.low %v6682_v57, %v6686_v28  ;;  %v17716_v12 = vcombine.low %v6683_v39, %v6687_v29  ;;  %v6735_v57 = vld [vmem:[#allocation8 + $0x7f8] sm:$0xff] }
 0x567   :  { %9926 = vmatpush1.bf16.msra.mxu0 %v17658_v33  ;;  %v17717_v33 = vcombine.high %v6683_v39, %v6687_v29 }
 0x568   :  { %10090 = vmatpush1.bf16.msra.mxu1 %v17660_v18  ;;  %9927 = vmatprep.subr.bf16.mxu0 %v17667_v35  ;;  %v6690_v18 = vld [vmem:[#allocation8 + $0x690] sm:$0xff] }
 0x569   :  { %10091 = vmatprep.subr.bf16.mxu1 %v17669_v37  ;;  %v6694_v35 = vld [vmem:[#allocation8 + $0x6b0] sm:$0xff]  ;;  %v6691_v37 = vld [vmem:[#allocation8 + $0x698] sm:$0xff] }
 0x56a   :  { %v17723_v54 = vcombine.high %v6690_v18, %v6694_v35  ;;  %v17722_v56 = vcombine.low %v6690_v18, %v6694_v35  ;;  %v17724_v58 = vcombine.low %v6691_v37, %v6695_v20  ;;  %v6743_v18 = vld [vmem:[#allocation8 + $0x838] sm:$0xff] }
 0x56b   :  { %9928 = vmatpush1.bf16.msra.mxu0 %v17666_v22  ;;  %v17725_v22 = vcombine.high %v6691_v37, %v6695_v20 }
 0x56c   :  { %10092 = vmatpush1.bf16.msra.mxu1 %v17668_v49  ;;  %9929 = vmatprep.subr.bf16.mxu0 %v17675_v46  ;;  %v6698_v49 = vld [vmem:[#allocation8 + $0x6d0] sm:$0xff] }
 0x56d   :  { %10093 = vmatprep.subr.bf16.mxu1 %v17677_v51  ;;  %v6702_v46 = vld [vmem:[#allocation8 + $0x6f0] sm:$0xff]  ;;  %v6699_v51 = vld [vmem:[#allocation8 + $0x6d8] sm:$0xff] }
 0x56e   :  { %v17731_v38 = vcombine.high %v6698_v49, %v6702_v46  ;;  %v17730_v2 = vcombine.low %v6698_v49, %v6702_v46  ;;  %v17732_v7 = vcombine.low %v6699_v51, %v6703_v53  ;;  %v6747_v49 = vld [vmem:[#allocation8 + $0x858] sm:$0xff] }
 0x56f   :  { %9930 = vmatpush1.bf16.msra.mxu0 %v17674_v59  ;;  %v17733_v59 = vcombine.high %v6699_v51, %v6703_v53  ;;  %v6751_v46 = vld [vmem:[#allocation8 + $0x878] sm:$0xff] }
 0x570   :  { %10094 = vmatpush1.bf16.msra.mxu1 %v17676_v44  ;;  %9931 = vmatprep.subr.bf16.mxu0 %v17683_v60  ;;  %v6706_v44 = vld [vmem:[#allocation8 + $0x710] sm:$0xff] }
 0x571   :  { %10095 = vmatprep.subr.bf16.mxu1 %v17685_v61  ;;  %v6710_v60 = vld [vmem:[#allocation8 + $0x730] sm:$0xff]  ;;  %v6707_v61 = vld [vmem:[#allocation8 + $0x718] sm:$0xff] }
 0x572   :  { %v17739_v8 = vcombine.high %v6706_v44, %v6710_v60  ;;  %v17738_v5 = vcombine.low %v6706_v44, %v6710_v60  ;;  %v17740_v6 = vcombine.low %v6707_v61, %v6711_v63  ;;  %v6759_v44 = vld [vmem:[#allocation8 + $0x8b8] sm:$0xff] }
 0x573   :  { %9932 = vmatpush1.bf16.msra.mxu0 %v17682_v52  ;;  %v17741_v52 = vcombine.high %v6707_v61, %v6711_v63  ;;  %v17780_v61 = vcombine.low %v6747_v49, %v6751_v46 }
 0x574   :  { %10096 = vmatpush1.bf16.msra.mxu1 %v17684_v9  ;;  %9933 = vmatprep.subr.bf16.mxu0 %v17691_v10  ;;  %v6714_v9 = vld [vmem:[#allocation8 + $0x750] sm:$0xff] }
 0x575   :  { %10097 = vmatprep.subr.bf16.mxu1 %v17693_v1  ;;  %v6718_v10 = vld [vmem:[#allocation8 + $0x770] sm:$0xff]  ;;  %v6715_v1 = vld [vmem:[#allocation8 + $0x758] sm:$0xff] }
 0x576   :  { %v17747_v0 = vcombine.high %v6714_v9, %v6718_v10  ;;  %v17746_v34 = vcombine.low %v6714_v9, %v6718_v10  ;;  %v17748_v14 = vcombine.low %v6715_v1, %v6719_v11  ;;  %v6767_v9 = vld [vmem:[#allocation8 + $0x8f8] sm:$0xff] }
 0x577   :  { %9934 = vmatpush1.bf16.msra.mxu0 %v17690_v25  ;;  %v17749_v25 = vcombine.high %v6715_v1, %v6719_v11 }
 0x578   :  { %10098 = vmatpush1.bf16.msra.mxu1 %v17692_v15  ;;  %9935 = vmatprep.subr.bf16.mxu0 %v17699_v16  ;;  %v6722_v15 = vld [vmem:[#allocation8 + $0x790] sm:$0xff] }
 0x579   :  { %10099 = vmatprep.subr.bf16.mxu1 %v17701_v27  ;;  %v6726_v16 = vld [vmem:[#allocation8 + $0x7b0] sm:$0xff]  ;;  %v6723_v27 = vld [vmem:[#allocation8 + $0x798] sm:$0xff] }
 0x57a   :  { %v17755_v31 = vcombine.high %v6722_v15, %v6726_v16  ;;  %v17754_v28 = vcombine.low %v6722_v15, %v6726_v16  ;;  %v17756_v39 = vcombine.low %v6723_v27, %v6727_v17 }
 0x57b   :  { %9936 = vmatpush1.bf16.msra.mxu0 %v17698_v19  ;;  %v17757_v19 = vcombine.high %v6723_v27, %v6727_v17  ;;  %v6778_v17 = vld [vmem:[#allocation8 + $0x950] sm:$0xff] }
 0x57c   :  { %10100 = vmatpush1.bf16.msra.mxu1 %v17700_v21  ;;  %9937 = vmatprep.subr.bf16.mxu0 %v17707_v47  ;;  %v6730_v21 = vld [vmem:[#allocation8 + $0x7d0] sm:$0xff] }
 0x57d   :  { %10101 = vmatprep.subr.bf16.mxu1 %v17709_v24  ;;  %v6734_v47 = vld [vmem:[#allocation8 + $0x7f0] sm:$0xff]  ;;  %v6731_v24 = vld [vmem:[#allocation8 + $0x7d8] sm:$0xff] }
 0x57e   :  { %v17763_v29 = vcombine.high %v6730_v21, %v6734_v47  ;;  %v17762_v35 = vcombine.low %v6730_v21, %v6734_v47  ;;  %v17764_v37 = vcombine.low %v6731_v24, %v6735_v57 }
 0x57f   :  { %9938 = vmatpush1.bf16.msra.mxu0 %v17706_v30  ;;  %v17765_v30 = vcombine.high %v6731_v24, %v6735_v57  ;;  %v6786_v57 = vld [vmem:[#allocation8 + $0x990] sm:$0xff] }
 0x580   :  { %10102 = vmatpush1.bf16.msra.mxu1 %v17708_v26  ;;  %9939 = vmatprep.subr.bf16.mxu0 %v17715_v32  ;;  %v6738_v26 = vld [vmem:[#allocation8 + $0x810] sm:$0xff] }
 0x581   :  { %10103 = vmatprep.subr.bf16.mxu1 %v17717_v33  ;;  %v6742_v32 = vld [vmem:[#allocation8 + $0x830] sm:$0xff]  ;;  %v6739_v33 = vld [vmem:[#allocation8 + $0x818] sm:$0xff] }
 0x582   :  { %v17771_v20 = vcombine.high %v6738_v26, %v6742_v32  ;;  %v17772_v51 = vcombine.low %v6739_v33, %v6743_v18 }
 0x583   :  { %9940 = vmatpush1.bf16.msra.mxu0 %v17714_v42  ;;  %v17773_v42 = vcombine.high %v6739_v33, %v6743_v18  ;;  %v6794_v18 = vld [vmem:[#allocation8 + $0x9d0] sm:$0xff] }
 0x584   :  { %10104 = vmatpush1.bf16.msra.mxu1 %v17716_v12  ;;  %9941 = vmatprep.subr.bf16.mxu0 %v17723_v54  ;;  %v6746_v12 = vld [vmem:[#allocation8 + $0x850] sm:$0xff] }
 0x585   :  { %10105 = vmatprep.subr.bf16.mxu1 %v17725_v22  ;;  %v6750_v54 = vld [vmem:[#allocation8 + $0x870] sm:$0xff]  ;;  %v17770_v22 = vcombine.low %v6738_v26, %v6742_v32 }
 0x586   :  { %v17779_v53 = vcombine.high %v6746_v12, %v6750_v54  ;;  %v17778_v60 = vcombine.low %v6746_v12, %v6750_v54 }
 0x587   :  { %9942 = vmatpush1.bf16.msra.mxu0 %v17722_v56  ;;  %v6754_v56 = vld [vmem:[#allocation8 + $0x890] sm:$0xff] }
 0x588   :  { %10106 = vmatpush1.bf16.msra.mxu1 %v17724_v58  ;;  %9943 = vmatprep.subr.bf16.mxu0 %v17731_v38  ;;  %v6758_v58 = vld [vmem:[#allocation8 + $0x8b0] sm:$0xff]  ;;  %v17781_v38 = vcombine.high %v6747_v49, %v6751_v46 }
 0x589   :  { %10107 = vmatprep.subr.bf16.mxu1 %v17733_v59  ;;  %v6755_v59 = vld [vmem:[#allocation8 + $0x898] sm:$0xff]  ;;  %v17787_v63 = vcombine.high %v6754_v56, %v6758_v58  ;;  %v17786_v10 = vcombine.low %v6754_v56, %v6758_v58  ;;  %v6802_v49 = vld [vmem:[#allocation8 + $0xa10] sm:$0xff] }
 0x58a   :  { %v6806_v46 = vld [vmem:[#allocation8 + $0xa30] sm:$0xff] }
 0x58b   :  { %9944 = vmatpush1.bf16.msra.mxu0 %v17730_v2  ;;  %v17789_v2 = vcombine.high %v6755_v59, %v6759_v44 }
 0x58c   :  { %10108 = vmatpush1.bf16.msra.mxu1 %v17732_v7  ;;  %9945 = vmatprep.subr.bf16.mxu0 %v17739_v8  ;;  %v6762_v7 = vld [vmem:[#allocation8 + $0x8d0] sm:$0xff] }
 0x58d   :  { %10109 = vmatprep.subr.bf16.mxu1 %v17741_v52  ;;  %v6766_v8 = vld [vmem:[#allocation8 + $0x8f0] sm:$0xff]  ;;  %v6763_v52 = vld [vmem:[#allocation8 + $0x8d8] sm:$0xff] }
 0x58e   :  { %v17795_v1 = vcombine.high %v6762_v7, %v6766_v8  ;;  %v17797_v11 = vcombine.high %v6763_v52, %v6767_v9  ;;  %v17796_v15 = vcombine.low %v6763_v52, %v6767_v9  ;;  %v6818_v9 = vld [vmem:[#allocation8 + $0xa90] sm:$0xff] }
 0x58f   :  { %9946 = vmatpush1.bf16.msra.mxu0 %v17738_v5  ;;  %v6770_v5 = vld [vmem:[#allocation8 + $0x910] sm:$0xff] }
 0x590   :  { %10110 = vmatpush1.bf16.msra.mxu1 %v17740_v6  ;;  %9947 = vmatprep.subr.bf16.mxu0 %v17747_v0  ;;  %v6774_v6 = vld [vmem:[#allocation8 + $0x930] sm:$0xff]  ;;  %v6771_v0 = vld [vmem:[#allocation8 + $0x918] sm:$0xff] }
 0x591   :  { %10111 = vmatprep.subr.bf16.mxu1 %v17749_v25  ;;  %v6775_v25 = vld [vmem:[#allocation8 + $0x938] sm:$0xff]  ;;  %v17803_v16 = vcombine.high %v6770_v5, %v6774_v6 }
 0x592   :  { %v17805_v27 = vcombine.high %v6771_v0, %v6775_v25  ;;  %v17804_v21 = vcombine.low %v6771_v0, %v6775_v25  ;;  %v6826_v25 = vld [vmem:[#allocation8 + $0xad0] sm:$0xff] }
 0x593   :  { %9948 = vmatpush1.bf16.msra.mxu0 %v17746_v34  ;;  %v6782_v34 = vld [vmem:[#allocation8 + $0x970] sm:$0xff] }
 0x594   :  { %10112 = vmatpush1.bf16.msra.mxu1 %v17748_v14  ;;  %9949 = vmatprep.subr.bf16.mxu0 %v17755_v31  ;;  %v6779_v14 = vld [vmem:[#allocation8 + $0x958] sm:$0xff]  ;;  %v17811_v47 = vcombine.high %v6778_v17, %v6782_v34 }
 0x595   :  { %10113 = vmatprep.subr.bf16.mxu1 %v17757_v19  ;;  %v6783_v31 = vld [vmem:[#allocation8 + $0x978] sm:$0xff]  ;;  %v17802_v19 = vcombine.low %v6770_v5, %v6774_v6 }
 0x596   :  { %v17813_v24 = vcombine.high %v6779_v14, %v6783_v31  ;;  %v17812_v26 = vcombine.low %v6779_v14, %v6783_v31  ;;  %v6834_v31 = vld [vmem:[#allocation8 + $0xb10] sm:$0xff] }
 0x597   :  { %9950 = vmatpush1.bf16.msra.mxu0 %v17754_v28  ;;  %v6790_v28 = vld [vmem:[#allocation8 + $0x9b0] sm:$0xff] }
 0x598   :  { %10114 = vmatpush1.bf16.msra.mxu1 %v17756_v39  ;;  %9951 = vmatprep.subr.bf16.mxu0 %v17763_v29  ;;  %v6787_v39 = vld [vmem:[#allocation8 + $0x998] sm:$0xff]  ;;  %v17819_v32 = vcombine.high %v6786_v57, %v6790_v28 }
 0x599   :  { %10115 = vmatprep.subr.bf16.mxu1 %v17765_v30  ;;  %v6791_v29 = vld [vmem:[#allocation8 + $0x9b8] sm:$0xff]  ;;  %v17810_v30 = vcombine.low %v6778_v17, %v6782_v34 }
 0x59a   :  { %v17821_v33 = vcombine.high %v6787_v39, %v6791_v29  ;;  %v17820_v12 = vcombine.low %v6787_v39, %v6791_v29  ;;  %v6842_v29 = vld [vmem:[#allocation8 + $0xb50] sm:$0xff] }
 0x59b   :  { %9952 = vmatpush1.bf16.msra.mxu0 %v17762_v35  ;;  %v6798_v35 = vld [vmem:[#allocation8 + $0x9f0] sm:$0xff] }
 0x59c   :  { %10116 = vmatpush1.bf16.msra.mxu1 %v17764_v37  ;;  %9962 = vmatprep.subr.bf16.mxu0 %v17771_v20  ;;  %v6795_v37 = vld [vmem:[#allocation8 + $0x9d8] sm:$0xff]  ;;  %v17827_v54 = vcombine.high %v6794_v18, %v6798_v35  ;;  %v17826_v56 = vcombine.low %v6794_v18, %v6798_v35 }
 0x59d   :  { %10126 = vmatprep.subr.bf16.mxu1 %v17773_v42  ;;  %v6799_v20 = vld [vmem:[#allocation8 + $0x9f8] sm:$0xff]  ;;  %v17818_v42 = vcombine.low %v6786_v57, %v6790_v28 }
 0x59e   :  { %9954 = vmatmul.mubr.bf16.vlgmr.msra.gmra.mrb[12].mxu0 %v20244_v55  ;;  %v17828_v58 = vcombine.low %v6795_v37, %v6799_v20 }
 0x59f   :  { %10118 = vmatmul.mubr.bf16.vlgmr.msra.gmra.mrb[12].mxu1 %v20244_v55  ;;  %9963 = vmatpush1.bf16.msra.mxu0 %v17770_v22  ;;  %v17788_v55 = vcombine.low %v6755_v59, %v6759_v44  ;;  %v17829_v22 = vcombine.high %v6795_v37, %v6799_v20  ;;  %v6810_v44 = vld [vmem:[#allocation8 + $0xa50] sm:$0xff] }
 0x5a0   :  { %9994 = vmatprep.mubr.bf16.mxu0 %v20278_v62  ;;  %10127 = vmatpush1.bf16.msra.mxu1 %v17772_v51  ;;  %v6803_v51 = vld [vmem:[#allocation8 + $0xa18] sm:$0xff]  ;;  %v6850_v20 = vld [vmem:[#allocation8 + $0xb90] sm:$0xff] }
 0x5a1   :  { %10158 = vmatprep.mubr.bf16.mxu1 %v20278_v62  ;;  %9964 = vmatprep.subr.bf16.mxu0 %v17779_v53  ;;  %v17794_v62 = vcombine.low %v6762_v7, %v6766_v8  ;;  %v6807_v53 = vld [vmem:[#allocation8 + $0xa38] sm:$0xff] }
 0x5a2   :  { %10128 = vmatprep.subr.bf16.mxu1 %v17781_v38  ;;  %v17835_v38 = vcombine.high %v6802_v49, %v6806_v46  ;;  %v17837_v59 = vcombine.high %v6803_v51, %v6807_v53  ;;  %v17836_v7 = vcombine.low %v6803_v51, %v6807_v53  ;;  %v6858_v53 = vld [vmem:[#allocation8 + $0xbd0] sm:$0xff] }
 0x5a3   :  { %9965 = vmatpush1.bf16.msra.mxu0 %v17778_v60  ;;  %v6814_v60 = vld [vmem:[#allocation8 + $0xa70] sm:$0xff] }
 0x5a4   :  { %10129 = vmatpush1.bf16.msra.mxu1 %v17780_v61  ;;  %9966 = vmatprep.subr.bf16.mxu0 %v17787_v63  ;;  %v6811_v61 = vld [vmem:[#allocation8 + $0xa58] sm:$0xff]  ;;  %v17843_v8 = vcombine.high %v6810_v44, %v6814_v60 }
 0x5a5   :  { %10130 = vmatprep.subr.bf16.mxu1 %v17789_v2  ;;  %v6815_v63 = vld [vmem:[#allocation8 + $0xa78] sm:$0xff]  ;;  %v17834_v2 = vcombine.low %v6802_v49, %v6806_v46 }
 0x5a6   :  { %v17845_v52 = vcombine.high %v6811_v61, %v6815_v63  ;;  %v17844_v5 = vcombine.low %v6811_v61, %v6815_v63  ;;  %v6866_v63 = vld [vmem:[#allocation8 + $0xc10] sm:$0xff] }
 0x5a7   :  { %9967 = vmatpush1.bf16.msra.mxu0 %v17786_v10  ;;  %v6822_v10 = vld [vmem:[#allocation8 + $0xab0] sm:$0xff] }
 0x5a8   :  { %10131 = vmatpush1.bf16.msra.mxu1 %v17788_v55  ;;  %9968 = vmatprep.subr.bf16.mxu0 %v17795_v1  ;;  %v6819_v55 = vld [vmem:[#allocation8 + $0xa98] sm:$0xff]  ;;  %v17851_v6 = vcombine.high %v6818_v9, %v6822_v10 }
 0x5a9   :  { %10132 = vmatprep.subr.bf16.mxu1 %v17797_v11  ;;  %v6823_v1 = vld [vmem:[#allocation8 + $0xab8] sm:$0xff]  ;;  %v17842_v11 = vcombine.low %v6810_v44, %v6814_v60 }
 0x5aa   :  { %v17853_v0 = vcombine.high %v6819_v55, %v6823_v1  ;;  %v17852_v17 = vcombine.low %v6819_v55, %v6823_v1  ;;  %v6874_v1 = vld [vmem:[#allocation8 + $0xc50] sm:$0xff] }
 0x5ab   :  { %9969 = vmatpush1.bf16.msra.mxu0 %v17794_v62  ;;  %v6830_v62 = vld [vmem:[#allocation8 + $0xaf0] sm:$0xff] }
 0x5ac   :  { %10133 = vmatpush1.bf16.msra.mxu1 %v17796_v15  ;;  %9970 = vmatprep.subr.bf16.mxu0 %v17803_v16  ;;  %v6827_v15 = vld [vmem:[#allocation8 + $0xad8] sm:$0xff]  ;;  %v17859_v34 = vcombine.high %v6826_v25, %v6830_v62 }
 0x5ad   :  { %10134 = vmatprep.subr.bf16.mxu1 %v17805_v27  ;;  %v6831_v16 = vld [vmem:[#allocation8 + $0xaf8] sm:$0xff]  ;;  %v17850_v27 = vcombine.low %v6818_v9, %v6822_v10 }
 0x5ae   :  { %v17861_v14 = vcombine.high %v6827_v15, %v6831_v16  ;;  %v17860_v57 = vcombine.low %v6827_v15, %v6831_v16  ;;  %v6882_v15 = vld [vmem:[#allocation8 + $0xc90] sm:$0xff] }
 0x5af   :  { %9971 = vmatpush1.bf16.msra.mxu0 %v17802_v19  ;;  %v6838_v19 = vld [vmem:[#allocation8 + $0xb30] sm:$0xff] }
 0x5b0   :  { %10135 = vmatpush1.bf16.msra.mxu1 %v17804_v21  ;;  %9972 = vmatprep.subr.bf16.mxu0 %v17811_v47  ;;  %v6835_v21 = vld [vmem:[#allocation8 + $0xb18] sm:$0xff]  ;;  %v17867_v28 = vcombine.high %v6834_v31, %v6838_v19  ;;  %v6886_v16 = vld [vmem:[#allocation8 + $0xcb0] sm:$0xff] }
 0x5b1   :  { %10136 = vmatprep.subr.bf16.mxu1 %v17813_v24  ;;  %v6839_v47 = vld [vmem:[#allocation8 + $0xb38] sm:$0xff]  ;;  %v17858_v24 = vcombine.low %v6826_v25, %v6830_v62 }
 0x5b2   :  { %v17869_v39 = vcombine.high %v6835_v21, %v6839_v47  ;;  %v17868_v18 = vcombine.low %v6835_v21, %v6839_v47  ;;  %v6890_v47 = vld [vmem:[#allocation8 + $0xcd0] sm:$0xff] }
 0x5b3   :  { %9973 = vmatpush1.bf16.msra.mxu0 %v17810_v30  ;;  %v6846_v30 = vld [vmem:[#allocation8 + $0xb70] sm:$0xff] }
 0x5b4   :  { %10137 = vmatpush1.bf16.msra.mxu1 %v17812_v26  ;;  %9974 = vmatprep.subr.bf16.mxu0 %v17819_v32  ;;  %v6843_v26 = vld [vmem:[#allocation8 + $0xb58] sm:$0xff]  ;;  %v17875_v35 = vcombine.high %v6842_v29, %v6846_v30 }
 0x5b5   :  { %10138 = vmatprep.subr.bf16.mxu1 %v17821_v33  ;;  %v6847_v32 = vld [vmem:[#allocation8 + $0xb78] sm:$0xff]  ;;  %v17866_v33 = vcombine.low %v6834_v31, %v6838_v19  ;;  %v17915_v19 = vcombine.high %v6882_v15, %v6886_v16 }
 0x5b6   :  { %v17877_v37 = vcombine.high %v6843_v26, %v6847_v32  ;;  %v17876_v49 = vcombine.low %v6843_v26, %v6847_v32  ;;  %v6898_v26 = vld [vmem:[#allocation8 + $0xd10] sm:$0xff] }
 0x5b7   :  { %9975 = vmatpush1.bf16.msra.mxu0 %v17818_v42  ;;  %v6854_v42 = vld [vmem:[#allocation8 + $0xbb0] sm:$0xff] }
 0x5b8   :  { %10139 = vmatpush1.bf16.msra.mxu1 %v17820_v12  ;;  %9976 = vmatprep.subr.bf16.mxu0 %v17827_v54  ;;  %v6851_v12 = vld [vmem:[#allocation8 + $0xb98] sm:$0xff]  ;;  %v17883_v46 = vcombine.high %v6850_v20, %v6854_v42  ;;  %v6902_v32 = vld [vmem:[#allocation8 + $0xd30] sm:$0xff] }
 0x5b9   :  { %10140 = vmatprep.subr.bf16.mxu1 %v17829_v22  ;;  %v6855_v54 = vld [vmem:[#allocation8 + $0xbb8] sm:$0xff]  ;;  %v17874_v22 = vcombine.low %v6842_v29, %v6846_v30 }
 0x5ba   :  { %v17885_v51 = vcombine.high %v6851_v12, %v6855_v54  ;;  %v17884_v44 = vcombine.low %v6851_v12, %v6855_v54  ;;  %v6906_v12 = vld [vmem:[#allocation8 + $0xd50] sm:$0xff] }
 0x5bb   :  { %9977 = vmatpush1.bf16.msra.mxu0 %v17826_v56  ;;  %v6862_v56 = vld [vmem:[#allocation8 + $0xbf0] sm:$0xff] }
 0x5bc   :  { %10141 = vmatpush1.bf16.msra.mxu1 %v17828_v58  ;;  %9978 = vmatprep.subr.bf16.mxu0 %v17835_v38  ;;  %v6859_v58 = vld [vmem:[#allocation8 + $0xbd8] sm:$0xff]  ;;  %v17891_v60 = vcombine.high %v6858_v53, %v6862_v56  ;;  %v6910_v54 = vld [vmem:[#allocation8 + $0xd70] sm:$0xff] }
 0x5bd   :  { %10142 = vmatprep.subr.bf16.mxu1 %v17837_v59  ;;  %v6863_v38 = vld [vmem:[#allocation8 + $0xbf8] sm:$0xff]  ;;  %v17882_v59 = vcombine.low %v6850_v20, %v6854_v42  ;;  %v17931_v20 = vcombine.high %v6898_v26, %v6902_v32 }
 0x5be   :  { %v17893_v61 = vcombine.high %v6859_v58, %v6863_v38  ;;  %v17892_v9 = vcombine.low %v6859_v58, %v6863_v38 }
 0x5bf   :  { %9979 = vmatpush1.bf16.msra.mxu0 %v17834_v2  ;;  %v6870_v2 = vld [vmem:[#allocation8 + $0xc30] sm:$0xff] }
 0x5c0   :  { %10143 = vmatpush1.bf16.msra.mxu1 %v17836_v7  ;;  %9980 = vmatprep.subr.bf16.mxu0 %v17843_v8  ;;  %v6867_v7 = vld [vmem:[#allocation8 + $0xc18] sm:$0xff]  ;;  %v17899_v10 = vcombine.high %v6866_v63, %v6870_v2 }
 0x5c1   :  { %10144 = vmatprep.subr.bf16.mxu1 %v17845_v52  ;;  %v6871_v8 = vld [vmem:[#allocation8 + $0xc38] sm:$0xff]  ;;  %v17890_v52 = vcombine.low %v6858_v53, %v6862_v56  ;;  %v17930_v53 = vcombine.low %v6898_v26, %v6902_v32 }
 0x5c2   :  { %v17901_v55 = vcombine.high %v6867_v7, %v6871_v8  ;;  %v17900_v25 = vcombine.low %v6867_v7, %v6871_v8 }
 0x5c3   :  { %9981 = vmatpush1.bf16.msra.mxu0 %v17842_v11  ;;  %v6878_v11 = vld [vmem:[#allocation8 + $0xc70] sm:$0xff] }
 0x5c4   :  { %10145 = vmatpush1.bf16.msra.mxu1 %v17844_v5  ;;  %9982 = vmatprep.subr.bf16.mxu0 %v17851_v6  ;;  %v17898_v5 = vcombine.low %v6866_v63, %v6870_v2  ;;  %v6875_v6 = vld [vmem:[#allocation8 + $0xc58] sm:$0xff]  ;;  %v17907_v62 = vcombine.high %v6874_v1, %v6878_v11  ;;  %v6914_v63 = vld [vmem:[#allocation8 + $0xd90] sm:$0xff] }
 0x5c5   :  { %10146 = vmatprep.subr.bf16.mxu1 %v17853_v0  ;;  %v6879_v0 = vld [vmem:[#allocation8 + $0xc78] sm:$0xff]  ;;  %v6918_v2 = vld [vmem:[#allocation8 + $0xdb0] sm:$0xff] }
 0x5c6   :  { %v17908_v31 = vcombine.low %v6875_v6, %v6879_v0 }
 0x5c7   :  { %9983 = vmatpush1.bf16.msra.mxu0 %v17850_v27  ;;  %v17909_v27 = vcombine.high %v6875_v6, %v6879_v0  ;;  %v17947_v6 = vcombine.high %v6914_v63, %v6918_v2 }
 0x5c8   :  { %10147 = vmatpush1.bf16.msra.mxu1 %v17852_v17  ;;  %9984 = vmatprep.subr.bf16.mxu0 %v17859_v34  ;;  %v6883_v17 = vld [vmem:[#allocation8 + $0xc98] sm:$0xff] }
 0x5c9   :  { %10148 = vmatprep.subr.bf16.mxu1 %v17861_v14  ;;  %v6887_v34 = vld [vmem:[#allocation8 + $0xcb8] sm:$0xff]  ;;  %v17906_v14 = vcombine.low %v6874_v1, %v6878_v11  ;;  %v17938_v1 = vcombine.low %v6906_v12, %v6910_v54 }
 0x5ca   :  { %v17917_v21 = vcombine.high %v6883_v17, %v6887_v34 }
 0x5cb   :  { %9985 = vmatpush1.bf16.msra.mxu0 %v17858_v24  ;;  %v6894_v24 = vld [vmem:[#allocation8 + $0xcf0] sm:$0xff] }
 0x5cc   :  { %10149 = vmatpush1.bf16.msra.mxu1 %v17860_v57  ;;  %9986 = vmatprep.subr.bf16.mxu0 %v17867_v28  ;;  %v6891_v57 = vld [vmem:[#allocation8 + $0xcd8] sm:$0xff]  ;;  %v17923_v29 = vcombine.high %v6890_v47, %v6894_v24 }
 0x5cd   :  { %10150 = vmatprep.subr.bf16.mxu1 %v17869_v39  ;;  %v6895_v28 = vld [vmem:[#allocation8 + $0xcf8] sm:$0xff]  ;;  %v17914_v39 = vcombine.low %v6882_v15, %v6886_v16  ;;  %v6922_v16 = vld [vmem:[#allocation8 + $0xdd0] sm:$0xff] }
 0x5ce   :  { %v17925_v30 = vcombine.high %v6891_v57, %v6895_v28 }
 0x5cf   :  { %9987 = vmatpush1.bf16.msra.mxu0 %v17866_v33  ;;  %v6899_v33 = vld [vmem:[#allocation8 + $0xd18] sm:$0xff] }
 0x5d0   :  { %10151 = vmatpush1.bf16.msra.mxu1 %v17868_v18  ;;  %9988 = vmatprep.subr.bf16.mxu0 %v17875_v35  ;;  %v6903_v18 = vld [vmem:[#allocation8 + $0xd38] sm:$0xff]  ;;  %v20313_v35 = vld [vmem:[#allocation10] sm:$0xff] }
 0x5d1   :  { %10152 = vmatprep.subr.bf16.mxu1 %v17877_v37  ;;  %v17924_v37 = vcombine.low %v6891_v57, %v6895_v28  ;;  %v17933_v42 = vcombine.high %v6899_v33, %v6903_v18  ;;  %v10295_v56 = vrot.slane %v20313_v35, %v20170_v43  ;;  %v10227_v58 = vrot.slane %v20313_v35, %v20167_v40 }
 0x5d2   :  { %v17932_v38 = vcombine.low %v6899_v33, %v6903_v18  ;;  %v17946_v28 = vcombine.low %v6914_v63, %v6918_v2  ;;  %v6947_v63 = vld [vmem:[#allocation8 + $0xe98] sm:$0xff] }
 0x5d3   :  { %9989 = vmatpush1.bf16.msra.mxu0 %v17874_v22  ;;  %v10215_v22 = vrot.slane %v20313_v35, %v20161_v36  ;;  %v6951_v2 = vld [vmem:[#allocation8 + $0xeb8] sm:$0xff] }
 0x5d4   :  { %10153 = vmatpush1.bf16.msra.mxu1 %v17876_v49  ;;  %9990 = vmatprep.subr.bf16.mxu0 %v17883_v46  ;;  %v10223_v49 = vrot.slane %v20313_v35, %v20164_v48  ;;  %v6907_v46 = vld [vmem:[#allocation8 + $0xd58] sm:$0xff] }
 0x5d5   :  { %10154 = vmatprep.subr.bf16.mxu1 %v17885_v51  ;;  %v6911_v51 = vld [vmem:[#allocation8 + $0xd78] sm:$0xff]  ;;  %v10255_v7 = vrot.slane %v10215_v22, %v20161_v36 }
 0x5d6   :  { %v10263_v8 = vrot.slane %v10223_v49, %v20161_v36 }
 0x5d7   :  { %9991 = vmatpush1.bf16.msra.mxu0 %v17882_v59  ;;  %v10303_v59 = vrot.slane %v20313_v35, %v20173_v45 }
 0x5d8   :  { %10155 = vmatpush1.bf16.msra.mxu1 %v17884_v44  ;;  %9992 = vmatprep.subr.bf16.mxu0 %v17891_v60  ;;  %v17939_v44 = vcombine.high %v6906_v12, %v6910_v54  ;;  %v10307_v60 = vrot.slane %v20313_v35, %v20177_v50 }
 0x5d9   :  { %10156 = vmatprep.subr.bf16.mxu1 %v17893_v61  ;;  %v17941_v61 = vcombine.high %v6907_v46, %v6911_v51  ;;  %v10343_v11 = vrot.slane %v10303_v59, %v20170_v43 }
 0x5db   :  { %9993 = vmatpush1.bf16.msra.mxu0 %v17890_v52  ;;  %v6915_v52 = vld [vmem:[#allocation8 + $0xd98] sm:$0xff] }
 0x5dc   :  { %10157 = vmatpush1.bf16.msra.mxu1 %v17892_v9  ;;  %10003 = vmatprep.subr.bf16.mxu0 %v17899_v10  ;;  %v6919_v9 = vld [vmem:[#allocation8 + $0xdb8] sm:$0xff]  ;;  %v10335_v10 = vrot.slane %v10295_v56, %v20170_v43 }
 0x5dd   :  { %10167 = vmatprep.subr.bf16.mxu1 %v17901_v55  ;;  %v10267_v55 = vrot.slane %v10227_v58, %v20161_v36  ;;  %v17949_v15 = vcombine.high %v6915_v52, %v6919_v9  ;;  %v6943_v56 = vld [vmem:[#allocation8 + $0xe78] sm:$0xff] }
 0x5de   :  { %9995 = vmatmul.mubr.bf16.vlgmr.msra.gmra.mrb[12].mxu0 %v20284_v3 }
 0x5df   :  { %10159 = vmatmul.mubr.bf16.vlgmr.msra.gmra.mrb[12].mxu1 %v20284_v3  ;;  %10004 = vmatpush1.bf16.msra.mxu0 %v17898_v5  ;;  %v17916_v3 = vcombine.low %v6883_v17, %v6887_v34  ;;  %v17940_v5 = vcombine.low %v6907_v46, %v6911_v51  ;;  %v6938_v46 = vld [vmem:[#allocation8 + $0xe50] sm:$0xff] }
 0x5e0   :  { %10035 = vmatprep.mubr.bf16.mxu0 %v20288_v13  ;;  %10168 = vmatpush1.bf16.msra.mxu1 %v17900_v25  ;;  %v6942_v51 = vld [vmem:[#allocation8 + $0xe70] sm:$0xff] }
 0x5e1   :  { %10199 = vmatprep.mubr.bf16.mxu1 %v20288_v13  ;;  %10005 = vmatprep.subr.bf16.mxu0 %v17907_v62  ;;  %v17922_v13 = vcombine.low %v6890_v47, %v6894_v24  ;;  %v10347_v62 = vrot.slane %v10307_v60, %v20170_v43  ;;  %v17971_v59 = vcombine.high %v6938_v46, %v6942_v51  ;;  %v6946_v60 = vld [vmem:[#allocation8 + $0xe90] sm:$0xff] }
 0x5e2   :  { %10169 = vmatprep.subr.bf16.mxu1 %v17909_v27  ;;  %v6926_v27 = vld [vmem:[#allocation8 + $0xdf0] sm:$0xff] }
 0x5e3   :  { %10006 = vmatpush1.bf16.msra.mxu0 %v17906_v14  ;;  %v17955_v32 = vcombine.high %v6922_v16, %v6926_v27  ;;  %v17954_v12 = vcombine.low %v6922_v16, %v6926_v27  ;;  %v6963_v16 = vld [vmem:[#allocation8 + $0xf18] sm:$0xff] }
 0x5e4   :  { %10170 = vmatpush1.bf16.msra.mxu1 %v17908_v31  ;;  %10007 = vmatprep.subr.bf16.mxu0 %v17915_v19  ;;  %v6923_v19 = vld [vmem:[#allocation8 + $0xdd8] sm:$0xff] }
 0x5e5   :  { %10171 = vmatprep.subr.bf16.mxu1 %v17917_v21  ;;  %v6927_v21 = vld [vmem:[#allocation8 + $0xdf8] sm:$0xff] }
 0x5e6   :  { %v17957_v18 = vcombine.high %v6923_v19, %v6927_v21  ;;  %v17956_v54 = vcombine.low %v6923_v19, %v6927_v21  ;;  %v6967_v27 = vld [vmem:[#allocation8 + $0xf38] sm:$0xff]  ;;  %v6970_v21 = vld [vmem:[#allocation8 + $0xf50] sm:$0xff] }
 0x5e7   :  { %10008 = vmatpush1.bf16.msra.mxu0 %v17914_v39  ;;  %v17948_v39 = vcombine.low %v6915_v52, %v6919_v9  ;;  %v17981_v9 = vcombine.high %v6947_v63, %v6951_v2  ;;  %v17997_v19 = vcombine.high %v6963_v16, %v6967_v27 }
 0x5e8   :  { %10172 = vmatpush1.bf16.msra.mxu1 %v17916_v3  ;;  %10009 = vmatprep.subr.bf16.mxu0 %v17923_v29 }
 0x5e9   :  { %10173 = vmatprep.subr.bf16.mxu1 %v17925_v30 }
 0x5eb   :  { %10010 = vmatpush1.bf16.msra.mxu0 %v17922_v13  ;;  %v6930_v13 = vld [vmem:[#allocation8 + $0xe10] sm:$0xff] }
 0x5ec   :  { %10174 = vmatpush1.bf16.msra.mxu1 %v17924_v37  ;;  %10011 = vmatprep.subr.bf16.mxu0 %v17931_v20  ;;  %v6934_v37 = vld [vmem:[#allocation8 + $0xe30] sm:$0xff]  ;;  %v6931_v20 = vld [vmem:[#allocation8 + $0xe18] sm:$0xff] }
 0x5ed   :  { %10175 = vmatprep.subr.bf16.mxu1 %v17933_v42  ;;  %v6935_v42 = vld [vmem:[#allocation8 + $0xe38] sm:$0xff]  ;;  %v17963_v22 = vcombine.high %v6930_v13, %v6934_v37  ;;  %v17962_v58 = vcombine.low %v6930_v13, %v6934_v37  ;;  %v6982_v13 = vld [vmem:[#allocation8 + $0xfb0] sm:$0xff] }
 0x5ee   :  { %v17965_v49 = vcombine.high %v6931_v20, %v6935_v42 }
 0x5ef   :  { %10012 = vmatpush1.bf16.msra.mxu0 %v17930_v53  ;;  %v6939_v53 = vld [vmem:[#allocation8 + $0xe58] sm:$0xff] }
 0x5f0   :  { %10176 = vmatpush1.bf16.msra.mxu1 %v17932_v38  ;;  %10013 = vmatprep.subr.bf16.mxu0 %v17939_v44  ;;  %v17964_v38 = vcombine.low %v6931_v20, %v6935_v42  ;;  %v17973_v44 = vcombine.high %v6939_v53, %v6943_v56  ;;  %v10299_v20 = vrot.slane %v20313_v35, %v20215_v4  ;;  %v6979_v42 = vld [vmem:[#allocation8 + $0xf98] sm:$0xff] }
 0x5f1   :  { %v9709_v0 = vpop.f32.mrb[8].mxu0  ;;  %v9873_v25 = vpop.f32.mrb[8].mxu1  ;;  %10177 = vmatprep.subr.bf16.mxu1 %v17941_v61  ;;  %v6950_v61 = vld [vmem:[#allocation8 + $0xeb0] sm:$0xff] }
 0x5f2   :  { %v10284_v17 = vmul.f32 %v10255_v7, %v9709_v0  ;;  %v10286_v34 = vmul.f32 %v10263_v8, %v9873_v25  ;;  %v20333_v14 = vpop.f32.mrb[9].mxu0  ;;  %v9875_v31 = vpop.f32.mrb[9].mxu1  ;;  %v17970_v7 = vcombine.low %v6938_v46, %v6942_v51  ;;  %v17972_v8 = vcombine.low %v6939_v53, %v6943_v56  ;;  %v6986_v51 = vld [vmem:[#allocation8 + $0xfd0] sm:$0xff] }
 0x5f3   :  { %v10287_v47 = vmul.f32 %v10267_v55, %v9875_v31  ;;  %v9713_v24 = vpop.f32.mrb[10].mxu0  ;;  %v9877_v57 = vpop.f32.mrb[10].mxu1  ;;  %10014 = vmatpush1.bf16.msra.mxu0 %v17938_v1  ;;  %v17979_v52 = vcombine.high %v6946_v60, %v6950_v61  ;;  %v6958_v55 = vld [vmem:[#allocation8 + $0xef0] sm:$0xff]  ;;  %v6955_v1 = vld [vmem:[#allocation8 + $0xed8] sm:$0xff] }
 0x5f4   :  { %v20335_v3 = vadd.f32 %v10335_v10, %v10284_v17  ;;  %v20337_v29 = vadd.f32 %v10343_v11, %v10286_v34  ;;  %10178 = vmatpush1.bf16.msra.mxu1 %v17940_v5  ;;  %v9714_v30 = vpop.f32.mrb[11].mxu0  ;;  %v9878_v26 = vpop.f32.mrb[11].mxu1  ;;  %10015 = vmatprep.subr.bf16.mxu0 %v17947_v6  ;;  %v6954_v10 = vld [vmem:[#allocation8 + $0xed0] sm:$0xff]  ;;  %v6959_v11 = vld [vmem:[#allocation8 + $0xef8] sm:$0xff]  ;;  %v17978_v5 = vcombine.low %v6946_v60, %v6950_v61 }
 0x5f5   :  { %v20339_v33 = vadd.f32 %v10347_v62, %v10287_v47  ;;  %10179 = vmatprep.subr.bf16.mxu1 %v17949_v15  ;;  %v17980_v6 = vcombine.low %v6947_v63, %v6951_v2  ;;  %v17987_v0 = vcombine.high %v6954_v10, %v6958_v55  ;;  %v17989_v25 = vcombine.high %v6955_v1, %v6959_v11  ;;  %v6962_v62 = vld [vmem:[#allocation8 + $0xf10] sm:$0xff]  ;;  %v6971_v57 = vld [vmem:[#allocation8 + $0xf58] sm:$0xff] }
 0x5f6   :  { %v6966_v15 = vld [vmem:[#allocation8 + $0xf30] sm:$0xff]  ;;  %v17986_v17 = vcombine.low %v6954_v10, %v6958_v55  ;;  %v17988_v34 = vcombine.low %v6955_v1, %v6959_v11  ;;  %v10219_v24 = vrot.slane %v20313_v35, %v20210_v23  ;;  %v17996_v30 = vcombine.low %v6963_v16, %v6967_v27 }
 0x5f7   :  { %10016 = vmatpush1.bf16.msra.mxu0 %v17946_v28  ;;  %v17995_v31 = vcombine.high %v6962_v62, %v6966_v15  ;;  %v6974_v47 = vld [vmem:[#allocation8 + $0xf70] sm:$0xff]  ;;  %v6975_v28 = vld [vmem:[#allocation8 + $0xf78] sm:$0xff] }
 0x5f8   :  { %10180 = vmatpush1.bf16.msra.mxu1 %v17948_v39  ;;  %10017 = vmatprep.subr.bf16.mxu0 %v17955_v32  ;;  %v17994_v39 = vcombine.low %v6962_v62, %v6966_v15  ;;  %v18003_v26 = vcombine.high %v6970_v21, %v6974_v47  ;;  %v18005_v32 = vcombine.high %v6971_v57, %v6975_v28  ;;  %v6990_v53 = vld [vmem:[#allocation8 + $0xff0] sm:$0xff] }
 0x5f9   :  { %10181 = vmatprep.subr.bf16.mxu1 %v17957_v18  ;;  %v6978_v18 = vld [vmem:[#allocation8 + $0xf90] sm:$0xff]  ;;  %v10259_v37 = vrot.slane %v10219_v24, %v20161_v36  ;;  %v18019_v60 = vcombine.high %v6986_v51, %v6990_v53 }
 0x5fa   :  { %v18010_v35 = vcombine.low %v6978_v18, %v6982_v13  ;;  %v10388_v63 = vld [vmem:[#allocation11] sm:$0xff] }
 0x5fb   :  { %10018 = vmatpush1.bf16.msra.mxu0 %v17954_v12  ;;  %v6983_v12 = vld [vmem:[#allocation8 + $0xfb8] sm:$0xff]  ;;  %v10285_v56 = vmul.f32 %v10259_v37, %v20333_v14  ;;  %v10392_v2 = vld [vmem:[#allocation11 + $0x20] sm:$0xff] }
 0x5fc   :  { %10182 = vmatpush1.bf16.msra.mxu1 %v17956_v54  ;;  %10019 = vmatprep.subr.bf16.mxu0 %v17963_v22  ;;  %v18002_v54 = vcombine.low %v6970_v21, %v6974_v47  ;;  %v18004_v22 = vcombine.low %v6971_v57, %v6975_v28  ;;  %v18013_v46 = vcombine.high %v6979_v42, %v6983_v12  ;;  %v10396_v11 = vld [vmem:[#allocation11 + $0x40] sm:$0xff] }
 0x5fd   :  { %10183 = vmatprep.subr.bf16.mxu1 %v17965_v49  ;;  %v18011_v49 = vcombine.high %v6978_v18, %v6982_v13  ;;  %v18023_v10 = vcombine.high %v10388_v63, %v10392_v2  ;;  %v10404_v16 = vld [vmem:[#allocation11 + $0x80] sm:$0xff] }
 0x5fe   :  { %v10408_v27 = vld [vmem:[#allocation11 + $0xa0] sm:$0xff] }
 0x5ff   :  { %10020 = vmatpush1.bf16.msra.mxu0 %v17962_v58  ;;  %v10339_v58 = vrot.slane %v10299_v20, %v20170_v43  ;;  %v18039_v24 = vcombine.high %v10404_v16, %v10408_v27  ;;  %v10412_v28 = vld [vmem:[#allocation11 + $0xc0] sm:$0xff] }
 0x600   :  { %10184 = vmatpush1.bf16.msra.mxu1 %v17964_v38  ;;  %10021 = vmatprep.subr.bf16.mxu0 %v17971_v59  ;;  %v6987_v38 = vld [vmem:[#allocation8 + $0xfd8] sm:$0xff]  ;;  %v10420_v37 = vld [vmem:[#allocation11 + $0x100] sm:$0xff] }
 0x601   :  { %10185 = vmatprep.subr.bf16.mxu1 %v17973_v44  ;;  %v6991_v59 = vld [vmem:[#allocation8 + $0xff8] sm:$0xff]  ;;  %v18012_v44 = vcombine.low %v6979_v42, %v6983_v12  ;;  %v10424_v20 = vld [vmem:[#allocation11 + $0x120] sm:$0xff] }
 0x602   :  { %v18021_v61 = vcombine.high %v6987_v38, %v6991_v59  ;;  %v18020_v14 = vcombine.low %v6987_v38, %v6991_v59  ;;  %v10421_v42 = vld [vmem:[#allocation11 + $0x108] sm:$0xff]  ;;  %v18054_v38 = vcombine.low %v10420_v37, %v10424_v20 }
 0x603   :  { %10022 = vmatpush1.bf16.msra.mxu0 %v17970_v7  ;;  %v10365_v7 = vadd.f32 %v10339_v58, %v10285_v56  ;;  %v10425_v12 = vld [vmem:[#allocation11 + $0x128] sm:$0xff] }
 0x604   :  { %10186 = vmatpush1.bf16.msra.mxu1 %v17972_v8  ;;  %10023 = vmatprep.subr.bf16.mxu0 %v17979_v52  ;;  %v10389_v8 = vld [vmem:[#allocation11 + $0x8] sm:$0xff]  ;;  %v18056_v59 = vcombine.low %v10421_v42, %v10425_v12 }
 0x605   :  { %10187 = vmatprep.subr.bf16.mxu1 %v17981_v9  ;;  %v10393_v52 = vld [vmem:[#allocation11 + $0x28] sm:$0xff]  ;;  %v18018_v9 = vcombine.low %v6986_v51, %v6990_v53  ;;  %v10373_v1 = vmax.f32 %v10365_v7, 0.0  ;;  %v10428_v51 = vld [vmem:[#allocation11 + $0x140] sm:$0xff] }
 0x606   :  { %v18025_v55 = vcombine.high %v10389_v8, %v10393_v52  ;;  %v18024_v62 = vcombine.low %v10389_v8, %v10393_v52  ;;  %v10432_v53 = vld [vmem:[#allocation11 + $0x160] sm:$0xff]  ;;  %v10429_v56 = vld [vmem:[#allocation11 + $0x148] sm:$0xff] }
 0x607   :  { %10024 = vmatpush1.bf16.msra.mxu0 %v17978_v5  ;;  %v10400_v5 = vld [vmem:[#allocation11 + $0x60] sm:$0xff]  ;;  %v10433_v58 = vld [vmem:[#allocation11 + $0x168] sm:$0xff]  ;;  %v18062_v7 = vcombine.low %v10428_v51, %v10432_v53 }
 0x608   :  { %10188 = vmatpush1.bf16.msra.mxu1 %v17980_v6  ;;  %10025 = vmatprep.subr.bf16.mxu0 %v17987_v0  ;;  %v18022_v6 = vcombine.low %v10388_v63, %v10392_v2  ;;  %v10397_v0 = vld [vmem:[#allocation11 + $0x48] sm:$0xff]  ;;  %v18031_v15 = vcombine.high %v10396_v11, %v10400_v5  ;;  %v18030_v21 = vcombine.low %v10396_v11, %v10400_v5 }
 0x609   :  { %10189 = vmatprep.subr.bf16.mxu1 %v17989_v25  ;;  %v10401_v25 = vld [vmem:[#allocation11 + $0x68] sm:$0xff]  ;;  %v18064_v8 = vcombine.low %v10429_v56, %v10433_v58 }
 0x60a   :  { %v18032_v47 = vcombine.low %v10397_v0, %v10401_v25  ;;  %v10437_v63 = vld [vmem:[#allocation11 + $0x188] sm:$0xff] }
 0x60b   :  { %10026 = vmatpush1.bf16.msra.mxu0 %v17986_v17  ;;  %v20348_v17 = vpack.c.bf16 %v10373_v1, %v10373_v1  ;;  %v10441_v2 = vld [vmem:[#allocation11 + $0x1a8] sm:$0xff] }
 0x60c   :  { %10190 = vmatpush1.bf16.msra.mxu1 %v17988_v34  ;;  %10027 = vmatprep.subr.bf16.mxu0 %v17995_v31  ;;  %v18033_v34 = vcombine.high %v10397_v0, %v10401_v25  ;;  %v10405_v31 = vld [vmem:[#allocation11 + $0x88] sm:$0xff]  ;;  %v18072_v5 = vcombine.low %v10437_v63, %v10441_v2  ;;  %v10452_v25 = vld [vmem:[#allocation11 + $0x200] sm:$0xff] }
 0x60d   :  { %10191 = vmatprep.subr.bf16.mxu1 %v17997_v19  ;;  %v10409_v19 = vld [vmem:[#allocation11 + $0xa8] sm:$0xff] }
 0x60e   :  { %v18041_v57 = vcombine.high %v10405_v31, %v10409_v19  ;;  %v10449_v1 = vld [vmem:[#allocation11 + $0x1e8] sm:$0xff] }
 0x60f   :  { %10028 = vmatpush1.bf16.msra.mxu0 %v17994_v39  ;;  %v10416_v39 = vld [vmem:[#allocation11 + $0xe0] sm:$0xff] }
 0x610   :  { %10192 = vmatpush1.bf16.msra.mxu1 %v17996_v30  ;;  %10029 = vmatprep.subr.bf16.mxu0 %v18003_v26  ;;  %v10413_v30 = vld [vmem:[#allocation11 + $0xc8] sm:$0xff]  ;;  %v18047_v18 = vcombine.high %v10412_v28, %v10416_v39 }
 0x611   :  { %10193 = vmatprep.subr.bf16.mxu1 %v18005_v32  ;;  %v10417_v26 = vld [vmem:[#allocation11 + $0xe8] sm:$0xff]  ;;  %v18038_v32 = vcombine.low %v10404_v16, %v10408_v27 }
 0x612   :  { %v18049_v13 = vcombine.high %v10413_v30, %v10417_v26  ;;  %v10457_v16 = vld [vmem:[#allocation11 + $0x228] sm:$0xff] }
 0x613   :  { %10030 = vmatpush1.bf16.msra.mxu0 %v18002_v54  ;;  %v18046_v54 = vcombine.low %v10412_v28, %v10416_v39 }
 0x614   :  { %10194 = vmatpush1.bf16.msra.mxu1 %v18004_v22  ;;  %10031 = vmatprep.subr.bf16.mxu0 %v18011_v49  ;;  %v18048_v22 = vcombine.low %v10413_v30, %v10417_v26  ;;  %v18055_v49 = vcombine.high %v10420_v37, %v10424_v20 }
 0x615   :  { %10195 = vmatprep.subr.bf16.mxu1 %v18013_v46  ;;  %v18057_v46 = vcombine.high %v10421_v42, %v10425_v12 }
 0x617   :  { %10032 = vmatpush1.bf16.msra.mxu0 %v18010_v35  ;;  %v18063_v35 = vcombine.high %v10428_v51, %v10432_v53 }
 0x618   :  { %10196 = vmatpush1.bf16.msra.mxu1 %v18012_v44  ;;  %10033 = vmatprep.subr.bf16.mxu0 %v18019_v60  ;;  %v18065_v44 = vcombine.high %v10429_v56, %v10433_v58  ;;  %v10436_v60 = vld [vmem:[#allocation11 + $0x180] sm:$0xff] }
 0x619   :  { %10197 = vmatprep.subr.bf16.mxu1 %v18021_v61  ;;  %v10440_v61 = vld [vmem:[#allocation11 + $0x1a0] sm:$0xff] }
 0x61a   :  { %v18071_v52 = vcombine.high %v10436_v60, %v10440_v61  ;;  %v18070_v11 = vcombine.low %v10436_v60, %v10440_v61 }
 0x61b   :  { %10034 = vmatpush1.bf16.msra.mxu0 %v18018_v9  ;;  %v18073_v9 = vcombine.high %v10437_v63, %v10441_v2 }
 0x61c   :  { %10198 = vmatpush1.bf16.msra.mxu1 %v18020_v14  ;;  %13460 = vmatprep.subr.bf16.mxu0 %v18023_v10  ;;  %v10444_v14 = vld [vmem:[#allocation11 + $0x1c0] sm:$0xff] }
 0x61d   :  { %13624 = vmatprep.subr.bf16.mxu1 %v18025_v55  ;;  %v10448_v10 = vld [vmem:[#allocation11 + $0x1e0] sm:$0xff]  ;;  %v10445_v55 = vld [vmem:[#allocation11 + $0x1c8] sm:$0xff] }
 0x61e   :  { %10036 = vmatmul.mubr.bf16.vlgmr.msra.gmra.mrb[12].mxu0 %v20295_v41  ;;  %v18081_v0 = vcombine.high %v10445_v55, %v10449_v1  ;;  %v18078_v27 = vcombine.low %v10444_v14, %v10448_v10 }
 0x61f   :  { %10200 = vmatmul.mubr.bf16.vlgmr.msra.gmra.mrb[12].mxu1 %v20295_v41  ;;  %13461 = vmatpush1.bf16.msra.mxu0 %v18022_v6  ;;  %v18040_v41 = vcombine.low %v10405_v31, %v10409_v19  ;;  %v18079_v6 = vcombine.high %v10444_v14, %v10448_v10 }
 0x620   :  { %13492 = vmatprep.mubr.bf16.mxu0 %v20348_v17  ;;  %13625 = vmatpush1.bf16.msra.mxu1 %v18024_v62  ;;  %v10456_v62 = vld [vmem:[#allocation11 + $0x220] sm:$0xff] }
 0x621   :  { %13656 = vmatprep.mubr.bf16.mxu1 %v20348_v17  ;;  %13462 = vmatprep.subr.bf16.mxu0 %v18031_v15  ;;  %v10453_v15 = vld [vmem:[#allocation11 + $0x208] sm:$0xff]  ;;  %v18087_v31 = vcombine.high %v10452_v25, %v10456_v62  ;;  %v18086_v28 = vcombine.low %v10452_v25, %v10456_v62 }
 0x622   :  { %13626 = vmatprep.subr.bf16.mxu1 %v18033_v34  ;;  %v18080_v34 = vcombine.low %v10445_v55, %v10449_v1  ;;  %v18089_v19 = vcombine.high %v10453_v15, %v10457_v16  ;;  %v18088_v39 = vcombine.low %v10453_v15, %v10457_v16 }
 0x623   :  { %13463 = vmatpush1.bf16.msra.mxu0 %v18030_v21  ;;  %v10460_v21 = vld [vmem:[#allocation11 + $0x240] sm:$0xff] }
 0x624   :  { %13627 = vmatpush1.bf16.msra.mxu1 %v18032_v47  ;;  %13464 = vmatprep.subr.bf16.mxu0 %v18039_v24  ;;  %v10464_v47 = vld [vmem:[#allocation11 + $0x260] sm:$0xff]  ;;  %v10461_v24 = vld [vmem:[#allocation11 + $0x248] sm:$0xff] }
 0x625   :  { %13628 = vmatprep.subr.bf16.mxu1 %v18041_v57  ;;  %v10465_v57 = vld [vmem:[#allocation11 + $0x268] sm:$0xff]  ;;  %v18095_v30 = vcombine.high %v10460_v21, %v10464_v47  ;;  %v18094_v37 = vcombine.low %v10460_v21, %v10464_v47 }
 0x626   :  { %v18097_v26 = vcombine.high %v10461_v24, %v10465_v57  ;;  %v18096_v20 = vcombine.low %v10461_v24, %v10465_v57 }
 0x627   :  { %13465 = vmatpush1.bf16.msra.mxu0 %v18038_v32  ;;  %v10468_v32 = vld [vmem:[#allocation11 + $0x280] sm:$0xff] }
 0x628   :  { %13629 = vmatpush1.bf16.msra.mxu1 %v18040_v41  ;;  %13466 = vmatprep.subr.bf16.mxu0 %v18047_v18  ;;  %v10472_v41 = vld [vmem:[#allocation11 + $0x2a0] sm:$0xff]  ;;  %v10469_v18 = vld [vmem:[#allocation11 + $0x288] sm:$0xff] }
 0x629   :  { %13630 = vmatprep.subr.bf16.mxu1 %v18049_v13  ;;  %v10473_v13 = vld [vmem:[#allocation11 + $0x2a8] sm:$0xff]  ;;  %v18103_v42 = vcombine.high %v10468_v32, %v10472_v41  ;;  %v18102_v51 = vcombine.low %v10468_v32, %v10472_v41  ;;  %v10372_v41 = vmax.f32 %v20335_v3, 0.0 }
 0x62a   :  { %v18105_v12 = vcombine.high %v10469_v18, %v10473_v13  ;;  %v18104_v53 = vcombine.low %v10469_v18, %v10473_v13 }
 0x62b   :  { %13467 = vmatpush1.bf16.msra.mxu0 %v18046_v54  ;;  %v10476_v54 = vld [vmem:[#allocation11 + $0x2c0] sm:$0xff] }
 0x62c   :  { %13631 = vmatpush1.bf16.msra.mxu1 %v18048_v22  ;;  %13468 = vmatprep.subr.bf16.mxu0 %v18055_v49  ;;  %v10480_v22 = vld [vmem:[#allocation11 + $0x2e0] sm:$0xff]  ;;  %v10477_v49 = vld [vmem:[#allocation11 + $0x2c8] sm:$0xff] }
 0x62d   :  { %13632 = vmatprep.subr.bf16.mxu1 %v18057_v46  ;;  %v10481_v46 = vld [vmem:[#allocation11 + $0x2e8] sm:$0xff]  ;;  %v18111_v56 = vcombine.high %v10476_v54, %v10480_v22  ;;  %v18110_v60 = vcombine.low %v10476_v54, %v10480_v22 }
 0x62e   :  { %v18113_v58 = vcombine.high %v10477_v49, %v10481_v46  ;;  %v18112_v61 = vcombine.low %v10477_v49, %v10481_v46  ;;  %v10525_v22 = vld [vmem:[#allocation11 + $0x448] sm:$0xff]  ;;  %v20356_v46 = vpack.c.bf16 %v10372_v41, %v10372_v41 }
 0x62f   :  { %13469 = vmatpush1.bf16.msra.mxu0 %v18054_v38  ;;  %v10484_v38 = vld [vmem:[#allocation11 + $0x300] sm:$0xff]  ;;  %v10529_v49 = vld [vmem:[#allocation11 + $0x468] sm:$0xff] }
 0x630   :  { %13633 = vmatpush1.bf16.msra.mxu1 %v18056_v59  ;;  %13470 = vmatprep.subr.bf16.mxu0 %v18063_v35  ;;  %v10488_v59 = vld [vmem:[#allocation11 + $0x320] sm:$0xff]  ;;  %v10485_v35 = vld [vmem:[#allocation11 + $0x308] sm:$0xff] }
 0x631   :  { %13634 = vmatprep.subr.bf16.mxu1 %v18065_v44  ;;  %v10489_v44 = vld [vmem:[#allocation11 + $0x328] sm:$0xff]  ;;  %v18119_v63 = vcombine.high %v10484_v38, %v10488_v59  ;;  %v18118_v14 = vcombine.low %v10484_v38, %v10488_v59 }
 0x632   :  { %v18121_v2 = vcombine.high %v10485_v35, %v10489_v44  ;;  %v18120_v10 = vcombine.low %v10485_v35, %v10489_v44  ;;  %v10533_v38 = vld [vmem:[#allocation11 + $0x488] sm:$0xff]  ;;  %v18160_v44 = vcombine.low %v10525_v22, %v10529_v49 }
 0x633   :  { %13471 = vmatpush1.bf16.msra.mxu0 %v18062_v7  ;;  %v10492_v7 = vld [vmem:[#allocation11 + $0x340] sm:$0xff]  ;;  %v10537_v59 = vld [vmem:[#allocation11 + $0x4a8] sm:$0xff] }
 0x634   :  { %13635 = vmatpush1.bf16.msra.mxu1 %v18064_v8  ;;  %13472 = vmatprep.subr.bf16.mxu0 %v18071_v52  ;;  %v10496_v8 = vld [vmem:[#allocation11 + $0x360] sm:$0xff]  ;;  %v10493_v52 = vld [vmem:[#allocation11 + $0x348] sm:$0xff] }
 0x635   :  { %13636 = vmatprep.subr.bf16.mxu1 %v18073_v9  ;;  %v10497_v9 = vld [vmem:[#allocation11 + $0x368] sm:$0xff]  ;;  %v18127_v55 = vcombine.high %v10492_v7, %v10496_v8  ;;  %v18126_v25 = vcombine.low %v10492_v7, %v10496_v8 }
 0x636   :  { %v18129_v1 = vcombine.high %v10493_v52, %v10497_v9  ;;  %v18128_v62 = vcombine.low %v10493_v52, %v10497_v9  ;;  %v10541_v7 = vld [vmem:[#allocation11 + $0x4c8] sm:$0xff]  ;;  %v18168_v9 = vcombine.low %v10533_v38, %v10537_v59 }
 0x637   :  { %13473 = vmatpush1.bf16.msra.mxu0 %v18070_v11  ;;  %v10500_v11 = vld [vmem:[#allocation11 + $0x380] sm:$0xff]  ;;  %v10545_v8 = vld [vmem:[#allocation11 + $0x4e8] sm:$0xff] }
 0x638   :  { %13637 = vmatpush1.bf16.msra.mxu1 %v18072_v5  ;;  %13474 = vmatprep.subr.bf16.mxu0 %v18079_v6  ;;  %v10504_v5 = vld [vmem:[#allocation11 + $0x3a0] sm:$0xff]  ;;  %v10501_v6 = vld [vmem:[#allocation11 + $0x388] sm:$0xff] }
 0x639   :  { %13638 = vmatprep.subr.bf16.mxu1 %v18081_v0  ;;  %v10505_v0 = vld [vmem:[#allocation11 + $0x3a8] sm:$0xff]  ;;  %v18135_v15 = vcombine.high %v10500_v11, %v10504_v5  ;;  %v18134_v21 = vcombine.low %v10500_v11, %v10504_v5 }
 0x63a   :  { %v18137_v16 = vcombine.high %v10501_v6, %v10505_v0  ;;  %v18136_v47 = vcombine.low %v10501_v6, %v10505_v0  ;;  %v10549_v11 = vld [vmem:[#allocation11 + $0x508] sm:$0xff]  ;;  %v18176_v0 = vcombine.low %v10541_v7, %v10545_v8 }
 0x63b   :  { %13475 = vmatpush1.bf16.msra.mxu0 %v18078_v27  ;;  %v10508_v27 = vld [vmem:[#allocation11 + $0x3c0] sm:$0xff]  ;;  %v10553_v5 = vld [vmem:[#allocation11 + $0x528] sm:$0xff] }
 0x63c   :  { %13639 = vmatpush1.bf16.msra.mxu1 %v18080_v34  ;;  %13476 = vmatprep.subr.bf16.mxu0 %v18087_v31  ;;  %v10512_v34 = vld [vmem:[#allocation11 + $0x3e0] sm:$0xff]  ;;  %v10509_v31 = vld [vmem:[#allocation11 + $0x3c8] sm:$0xff] }
 0x63d   :  { %13640 = vmatprep.subr.bf16.mxu1 %v18089_v19  ;;  %v10513_v19 = vld [vmem:[#allocation11 + $0x3e8] sm:$0xff]  ;;  %v18143_v24 = vcombine.high %v10508_v27, %v10512_v34  ;;  %v18142_v32 = vcombine.low %v10508_v27, %v10512_v34 }
 0x63e   :  { %v18145_v57 = vcombine.high %v10509_v31, %v10513_v19  ;;  %v18144_v18 = vcombine.low %v10509_v31, %v10513_v19  ;;  %v10557_v27 = vld [vmem:[#allocation11 + $0x548] sm:$0xff]  ;;  %v18184_v19 = vcombine.low %v10549_v11, %v10553_v5 }
 0x63f   :  { %13477 = vmatpush1.bf16.msra.mxu0 %v18086_v28  ;;  %v10516_v28 = vld [vmem:[#allocation11 + $0x400] sm:$0xff]  ;;  %v10561_v34 = vld [vmem:[#allocation11 + $0x568] sm:$0xff] }
 0x640   :  { %13641 = vmatpush1.bf16.msra.mxu1 %v18088_v39  ;;  %13478 = vmatprep.subr.bf16.mxu0 %v18095_v30  ;;  %v10520_v39 = vld [vmem:[#allocation11 + $0x420] sm:$0xff]  ;;  %v10517_v30 = vld [vmem:[#allocation11 + $0x408] sm:$0xff] }
 0x641   :  { %13642 = vmatprep.subr.bf16.mxu1 %v18097_v26  ;;  %v10521_v26 = vld [vmem:[#allocation11 + $0x428] sm:$0xff]  ;;  %v18151_v13 = vcombine.high %v10516_v28, %v10520_v39  ;;  %v18150_v54 = vcombine.low %v10516_v28, %v10520_v39 }
 0x642   :  { %v10565_v28 = vld [vmem:[#allocation11 + $0x588] sm:$0xff] }
 0x643   :  { %13479 = vmatpush1.bf16.msra.mxu0 %v18094_v37  ;;  %v18153_v37 = vcombine.high %v10517_v30, %v10521_v26  ;;  %v10569_v39 = vld [vmem:[#allocation11 + $0x5a8] sm:$0xff] }
 0x644   :  { %13643 = vmatpush1.bf16.msra.mxu1 %v18096_v20  ;;  %13480 = vmatprep.subr.bf16.mxu0 %v18103_v42  ;;  %v10375_v20 = vmax.f32 %v20339_v33, 0.0  ;;  %v10524_v42 = vld [vmem:[#allocation11 + $0x440] sm:$0xff]  ;;  %v18161_v33 = vcombine.high %v10525_v22, %v10529_v49  ;;  %v18201_v41 = vcombine.high %v10565_v28, %v10569_v39 }
 0x645   :  { %13644 = vmatprep.subr.bf16.mxu1 %v18105_v12  ;;  %v10528_v12 = vld [vmem:[#allocation11 + $0x460] sm:$0xff] }
 0x646   :  { %v18159_v3 = vcombine.high %v10524_v42, %v10528_v12  ;;  %v18158_v35 = vcombine.low %v10524_v42, %v10528_v12  ;;  %v18200_v12 = vcombine.low %v10565_v28, %v10569_v39  ;;  %v10580_v49 = vld [vmem:[#allocation11 + $0x600] sm:$0xff] }
 0x647   :  { %13481 = vmatpush1.bf16.msra.mxu0 %v18102_v51  ;;  %v18152_v51 = vcombine.low %v10517_v30, %v10521_v26  ;;  %v18192_v26 = vcombine.low %v10557_v27, %v10561_v34 }
 0x648   :  { %13645 = vmatpush1.bf16.msra.mxu1 %v18104_v53  ;;  %13482 = vmatprep.subr.bf16.mxu0 %v18111_v56  ;;  %v10532_v53 = vld [vmem:[#allocation11 + $0x480] sm:$0xff] }
 0x649   :  { %13646 = vmatprep.subr.bf16.mxu1 %v18113_v58  ;;  %v10536_v56 = vld [vmem:[#allocation11 + $0x4a0] sm:$0xff]  ;;  %v20358_v58 = vpack.c.bf16 %v10375_v20, %v10375_v20  ;;  %v10577_v20 = vld [vmem:[#allocation11 + $0x5e8] sm:$0xff] }
 0x64a   :  { %v18166_v52 = vcombine.low %v10532_v53, %v10536_v56 }
 0x64b   :  { %13483 = vmatpush1.bf16.msra.mxu0 %v18110_v60  ;;  %v18167_v60 = vcombine.high %v10532_v53, %v10536_v56  ;;  %v10585_v53 = vld [vmem:[#allocation11 + $0x628] sm:$0xff] }
 0x64c   :  { %13647 = vmatpush1.bf16.msra.mxu1 %v18112_v61  ;;  %13484 = vmatprep.subr.bf16.mxu0 %v18119_v63  ;;  %v18169_v61 = vcombine.high %v10533_v38, %v10537_v59  ;;  %v10540_v63 = vld [vmem:[#allocation11 + $0x4c0] sm:$0xff] }
 0x64d   :  { %13648 = vmatprep.subr.bf16.mxu1 %v18121_v2  ;;  %v10544_v2 = vld [vmem:[#allocation11 + $0x4e0] sm:$0xff] }
 0x64e   :  { %v18174_v6 = vcombine.low %v10540_v63, %v10544_v2 }
 0x64f   :  { %13485 = vmatpush1.bf16.msra.mxu0 %v18118_v14  ;;  %v18175_v14 = vcombine.high %v10540_v63, %v10544_v2 }
 0x650   :  { %13649 = vmatpush1.bf16.msra.mxu1 %v18120_v10  ;;  %13486 = vmatprep.subr.bf16.mxu0 %v18127_v55  ;;  %v18177_v10 = vcombine.high %v10541_v7, %v10545_v8  ;;  %v10548_v55 = vld [vmem:[#allocation11 + $0x500] sm:$0xff] }
 0x651   :  { %13650 = vmatprep.subr.bf16.mxu1 %v18129_v1  ;;  %v10552_v1 = vld [vmem:[#allocation11 + $0x520] sm:$0xff] }
 0x652   :  { %v18182_v31 = vcombine.low %v10548_v55, %v10552_v1 }
 0x653   :  { %13487 = vmatpush1.bf16.msra.mxu0 %v18126_v25  ;;  %v18183_v25 = vcombine.high %v10548_v55, %v10552_v1 }
 0x654   :  { %13651 = vmatpush1.bf16.msra.mxu1 %v18128_v62  ;;  %13488 = vmatprep.subr.bf16.mxu0 %v18135_v15  ;;  %v18185_v62 = vcombine.high %v10549_v11, %v10553_v5  ;;  %v10556_v15 = vld [vmem:[#allocation11 + $0x540] sm:$0xff] }
 0x655   :  { %13652 = vmatprep.subr.bf16.mxu1 %v18137_v16  ;;  %v10560_v16 = vld [vmem:[#allocation11 + $0x560] sm:$0xff] }
 0x656   :  { %v18190_v30 = vcombine.low %v10556_v15, %v10560_v16 }
 0x657   :  { %13489 = vmatpush1.bf16.msra.mxu0 %v18134_v21  ;;  %v18191_v21 = vcombine.high %v10556_v15, %v10560_v16 }
 0x658   :  { %13653 = vmatpush1.bf16.msra.mxu1 %v18136_v47  ;;  %13490 = vmatprep.subr.bf16.mxu0 %v18143_v24  ;;  %v18193_v47 = vcombine.high %v10557_v27, %v10561_v34  ;;  %v10564_v24 = vld [vmem:[#allocation11 + $0x580] sm:$0xff] }
 0x659   :  { %13654 = vmatprep.subr.bf16.mxu1 %v18145_v57  ;;  %v10568_v57 = vld [vmem:[#allocation11 + $0x5a0] sm:$0xff] }
 0x65a   :  { %v18198_v42 = vcombine.low %v10564_v24, %v10568_v57 }
 0x65b   :  { %13491 = vmatpush1.bf16.msra.mxu0 %v18142_v32  ;;  %v18199_v32 = vcombine.high %v10564_v24, %v10568_v57 }
 0x65c   :  { %13655 = vmatpush1.bf16.msra.mxu1 %v18144_v18  ;;  %13501 = vmatprep.subr.bf16.mxu0 %v18151_v13  ;;  %v10572_v18 = vld [vmem:[#allocation11 + $0x5c0] sm:$0xff] }
 0x65d   :  { %13665 = vmatprep.subr.bf16.mxu1 %v18153_v37  ;;  %v10576_v13 = vld [vmem:[#allocation11 + $0x5e0] sm:$0xff]  ;;  %v10573_v37 = vld [vmem:[#allocation11 + $0x5c8] sm:$0xff] }
 0x65e   :  { %13493 = vmatmul.mubr.bf16.vlgmr.msra.gmra.mrb[16].mxu0 %v20356_v46  ;;  %v18209_v22 = vcombine.high %v10573_v37, %v10577_v20  ;;  %v18206_v56 = vcombine.low %v10572_v18, %v10576_v13 }
 0x65f   :  { %13657 = vmatmul.mubr.bf16.vlgmr.msra.gmra.mrb[16].mxu1 %v20356_v46  ;;  %13502 = vmatpush1.bf16.msra.mxu0 %v18150_v54  ;;  %v18207_v54 = vcombine.high %v10572_v18, %v10576_v13 }
 0x660   :  { %13533 = vmatprep.mubr.bf16.mxu0 %v20358_v58  ;;  %13666 = vmatpush1.bf16.msra.mxu1 %v18152_v51  ;;  %v10584_v51 = vld [vmem:[#allocation11 + $0x620] sm:$0xff] }
 0x661   :  { %13697 = vmatprep.mubr.bf16.mxu1 %v20358_v58  ;;  %13503 = vmatprep.subr.bf16.mxu0 %v18159_v3  ;;  %v10581_v3 = vld [vmem:[#allocation11 + $0x608] sm:$0xff]  ;;  %v18215_v38 = vcombine.high %v10580_v49, %v10584_v51  ;;  %v18214_v63 = vcombine.low %v10580_v49, %v10584_v51 }
 0x662   :  { %13667 = vmatprep.subr.bf16.mxu1 %v18161_v33  ;;  %v18208_v33 = vcombine.low %v10573_v37, %v10577_v20  ;;  %v18217_v59 = vcombine.high %v10581_v3, %v10585_v53  ;;  %v18216_v2 = vcombine.low %v10581_v3, %v10585_v53 }
 0x663   :  { %13504 = vmatpush1.bf16.msra.mxu0 %v18158_v35  ;;  %v10588_v35 = vld [vmem:[#allocation11 + $0x640] sm:$0xff] }
 0x664   :  { %13668 = vmatpush1.bf16.msra.mxu1 %v18160_v44  ;;  %13505 = vmatprep.subr.bf16.mxu0 %v18167_v60  ;;  %v10592_v44 = vld [vmem:[#allocation11 + $0x660] sm:$0xff]  ;;  %v10589_v60 = vld [vmem:[#allocation11 + $0x648] sm:$0xff] }
 0x665   :  { %13669 = vmatprep.subr.bf16.mxu1 %v18169_v61  ;;  %v10593_v61 = vld [vmem:[#allocation11 + $0x668] sm:$0xff]  ;;  %v18223_v7 = vcombine.high %v10588_v35, %v10592_v44  ;;  %v18222_v55 = vcombine.low %v10588_v35, %v10592_v44 }
 0x666   :  { %v18225_v8 = vcombine.high %v10589_v60, %v10593_v61  ;;  %v18224_v1 = vcombine.low %v10589_v60, %v10593_v61 }
 0x667   :  { %13506 = vmatpush1.bf16.msra.mxu0 %v18166_v52  ;;  %v10596_v52 = vld [vmem:[#allocation11 + $0x680] sm:$0xff] }
 0x668   :  { %13670 = vmatpush1.bf16.msra.mxu1 %v18168_v9  ;;  %13507 = vmatprep.subr.bf16.mxu0 %v18175_v14  ;;  %v10600_v9 = vld [vmem:[#allocation11 + $0x6a0] sm:$0xff]  ;;  %v10597_v14 = vld [vmem:[#allocation11 + $0x688] sm:$0xff] }
 0x669   :  { %13671 = vmatprep.subr.bf16.mxu1 %v18177_v10  ;;  %v10601_v10 = vld [vmem:[#allocation11 + $0x6a8] sm:$0xff]  ;;  %v18231_v11 = vcombine.high %v10596_v52, %v10600_v9  ;;  %v18230_v15 = vcombine.low %v10596_v52, %v10600_v9  ;;  %v10374_v9 = vmax.f32 %v20337_v29, 0.0 }
 0x66a   :  { %v18233_v5 = vcombine.high %v10597_v14, %v10601_v10  ;;  %v18232_v16 = vcombine.low %v10597_v14, %v10601_v10 }
 0x66b   :  { %13508 = vmatpush1.bf16.msra.mxu0 %v18174_v6  ;;  %v10604_v6 = vld [vmem:[#allocation11 + $0x6c0] sm:$0xff] }
 0x66c   :  { %13672 = vmatpush1.bf16.msra.mxu1 %v18176_v0  ;;  %13509 = vmatprep.subr.bf16.mxu0 %v18183_v25  ;;  %v10608_v0 = vld [vmem:[#allocation11 + $0x6e0] sm:$0xff]  ;;  %v10605_v25 = vld [vmem:[#allocation11 + $0x6c8] sm:$0xff] }
 0x66d   :  { %13673 = vmatprep.subr.bf16.mxu1 %v18185_v62  ;;  %v10609_v62 = vld [vmem:[#allocation11 + $0x6e8] sm:$0xff]  ;;  %v18239_v27 = vcombine.high %v10604_v6, %v10608_v0  ;;  %v18238_v24 = vcombine.low %v10604_v6, %v10608_v0 }
 0x66e   :  { %v18241_v34 = vcombine.high %v10605_v25, %v10609_v62  ;;  %v18240_v57 = vcombine.low %v10605_v25, %v10609_v62  ;;  %v10657_v6 = vld [vmem:[#allocation11 + $0x868] sm:$0xff]  ;;  %v20365_v25 = vpack.c.bf16 %v10374_v9, %v10374_v9  ;;  %v10700_v9 = vld [vmem:[#allocation11 + $0x9c0] sm:$0xff] }
 0x66f   :  { %13510 = vmatpush1.bf16.msra.mxu0 %v18182_v31  ;;  %v10612_v31 = vld [vmem:[#allocation11 + $0x700] sm:$0xff] }
 0x670   :  { %13674 = vmatpush1.bf16.msra.mxu1 %v18184_v19  ;;  %13511 = vmatprep.subr.bf16.mxu0 %v18191_v21  ;;  %v10616_v19 = vld [vmem:[#allocation11 + $0x720] sm:$0xff]  ;;  %v10613_v21 = vld [vmem:[#allocation11 + $0x708] sm:$0xff] }
 0x671   :  { %13675 = vmatprep.subr.bf16.mxu1 %v18193_v47  ;;  %v10617_v47 = vld [vmem:[#allocation11 + $0x728] sm:$0xff]  ;;  %v18247_v28 = vcombine.high %v10612_v31, %v10616_v19  ;;  %v18246_v18 = vcombine.low %v10612_v31, %v10616_v19 }
 0x672   :  { %v18249_v39 = vcombine.high %v10613_v21, %v10617_v47  ;;  %v18248_v13 = vcombine.low %v10613_v21, %v10617_v47  ;;  %v10665_v31 = vld [vmem:[#allocation11 + $0x8a8] sm:$0xff] }
 0x673   :  { %13512 = vmatpush1.bf16.msra.mxu0 %v18190_v30  ;;  %v10620_v30 = vld [vmem:[#allocation11 + $0x740] sm:$0xff] }
 0x674   :  { %13676 = vmatpush1.bf16.msra.mxu1 %v18192_v26  ;;  %13513 = vmatprep.subr.bf16.mxu0 %v18199_v32  ;;  %v10624_v26 = vld [vmem:[#allocation11 + $0x760] sm:$0xff]  ;;  %v10621_v32 = vld [vmem:[#allocation11 + $0x748] sm:$0xff] }
 0x675   :  { %13677 = vmatprep.subr.bf16.mxu1 %v18201_v41  ;;  %v10625_v41 = vld [vmem:[#allocation11 + $0x768] sm:$0xff]  ;;  %v18255_v37 = vcombine.high %v10620_v30, %v10624_v26  ;;  %v18254_v49 = vcombine.low %v10620_v30, %v10624_v26 }
 0x676   :  { %v18257_v20 = vcombine.high %v10621_v32, %v10625_v41  ;;  %v18256_v51 = vcombine.low %v10621_v32, %v10625_v41  ;;  %v10673_v30 = vld [vmem:[#allocation11 + $0x8e8] sm:$0xff] }
 0x677   :  { %13514 = vmatpush1.bf16.msra.mxu0 %v18198_v42  ;;  %v10628_v42 = vld [vmem:[#allocation11 + $0x780] sm:$0xff] }
 0x678   :  { %13678 = vmatpush1.bf16.msra.mxu1 %v18200_v12  ;;  %13515 = vmatprep.subr.bf16.mxu0 %v18207_v54  ;;  %v10632_v12 = vld [vmem:[#allocation11 + $0x7a0] sm:$0xff]  ;;  %v10629_v54 = vld [vmem:[#allocation11 + $0x788] sm:$0xff] }
 0x679   :  { %13679 = vmatprep.subr.bf16.mxu1 %v18209_v22  ;;  %v10633_v22 = vld [vmem:[#allocation11 + $0x7a8] sm:$0xff]  ;;  %v18263_v3 = vcombine.high %v10628_v42, %v10632_v12  ;;  %v18262_v35 = vcombine.low %v10628_v42, %v10632_v12 }
 0x67a   :  { %v18265_v53 = vcombine.high %v10629_v54, %v10633_v22  ;;  %v18264_v44 = vcombine.low %v10629_v54, %v10633_v22  ;;  %v10681_v42 = vld [vmem:[#allocation11 + $0x928] sm:$0xff] }
 0x67b   :  { %13516 = vmatpush1.bf16.msra.mxu0 %v18206_v56  ;;  %v10636_v56 = vld [vmem:[#allocation11 + $0x7c0] sm:$0xff] }
 0x67c   :  { %13680 = vmatpush1.bf16.msra.mxu1 %v18208_v33  ;;  %13517 = vmatprep.subr.bf16.mxu0 %v18215_v38  ;;  %v10640_v33 = vld [vmem:[#allocation11 + $0x7e0] sm:$0xff]  ;;  %v10637_v38 = vld [vmem:[#allocation11 + $0x7c8] sm:$0xff] }
 0x67d   :  { %13681 = vmatprep.subr.bf16.mxu1 %v18217_v59  ;;  %v10641_v59 = vld [vmem:[#allocation11 + $0x7e8] sm:$0xff]  ;;  %v18271_v60 = vcombine.high %v10636_v56, %v10640_v33  ;;  %v18270_v52 = vcombine.low %v10636_v56, %v10640_v33 }
 0x67e   :  { %v18273_v61 = vcombine.high %v10637_v38, %v10641_v59  ;;  %v18272_v14 = vcombine.low %v10637_v38, %v10641_v59  ;;  %v10689_v56 = vld [vmem:[#allocation11 + $0x968] sm:$0xff] }
 0x67f   :  { %13518 = vmatpush1.bf16.msra.mxu0 %v18214_v63  ;;  %v10644_v63 = vld [vmem:[#allocation11 + $0x800] sm:$0xff] }
 0x680   :  { %13682 = vmatpush1.bf16.msra.mxu1 %v18216_v2  ;;  %13519 = vmatprep.subr.bf16.mxu0 %v18223_v7  ;;  %v10648_v2 = vld [vmem:[#allocation11 + $0x820] sm:$0xff]  ;;  %v10645_v7 = vld [vmem:[#allocation11 + $0x808] sm:$0xff] }
 0x681   :  { %13683 = vmatprep.subr.bf16.mxu1 %v18225_v8  ;;  %v10649_v8 = vld [vmem:[#allocation11 + $0x828] sm:$0xff]  ;;  %v18279_v10 = vcombine.high %v10644_v63, %v10648_v2  ;;  %v18278_v0 = vcombine.low %v10644_v63, %v10648_v2 }
 0x682   :  { %v18280_v62 = vcombine.low %v10645_v7, %v10649_v8  ;;  %v10697_v63 = vld [vmem:[#allocation11 + $0x9a8] sm:$0xff] }
 0x683   :  { %13520 = vmatpush1.bf16.msra.mxu0 %v18222_v55  ;;  %v18281_v55 = vcombine.high %v10645_v7, %v10649_v8 }
 0x684   :  { %13684 = vmatpush1.bf16.msra.mxu1 %v18224_v1  ;;  %13521 = vmatprep.subr.bf16.mxu0 %v18231_v11  ;;  %v10652_v1 = vld [vmem:[#allocation11 + $0x840] sm:$0xff] }
 0x685   :  { %13685 = vmatprep.subr.bf16.mxu1 %v18233_v5  ;;  %v10656_v11 = vld [vmem:[#allocation11 + $0x860] sm:$0xff]  ;;  %v10653_v5 = vld [vmem:[#allocation11 + $0x848] sm:$0xff] }
 0x686   :  { %v18289_v29 = vcombine.high %v10653_v5, %v10657_v6  ;;  %v18286_v19 = vcombine.low %v10652_v1, %v10656_v11  ;;  %v18288_v21 = vcombine.low %v10653_v5, %v10657_v6 }
 0x687   :  { %13522 = vmatpush1.bf16.msra.mxu0 %v18230_v15  ;;  %v18287_v15 = vcombine.high %v10652_v1, %v10656_v11 }
 0x688   :  { %13686 = vmatpush1.bf16.msra.mxu1 %v18232_v16  ;;  %13523 = vmatprep.subr.bf16.mxu0 %v18239_v27  ;;  %v10660_v16 = vld [vmem:[#allocation11 + $0x880] sm:$0xff] }
 0x689   :  { %13687 = vmatprep.subr.bf16.mxu1 %v18241_v34  ;;  %v10664_v27 = vld [vmem:[#allocation11 + $0x8a0] sm:$0xff]  ;;  %v10661_v34 = vld [vmem:[#allocation11 + $0x888] sm:$0xff] }
 0x68a   :  { %v18295_v47 = vcombine.high %v10660_v16, %v10664_v27  ;;  %v18294_v26 = vcombine.low %v10660_v16, %v10664_v27  ;;  %v18296_v32 = vcombine.low %v10661_v34, %v10665_v31 }
 0x68b   :  { %13524 = vmatpush1.bf16.msra.mxu0 %v18238_v24  ;;  %v18297_v24 = vcombine.high %v10661_v34, %v10665_v31 }
 0x68c   :  { %13688 = vmatpush1.bf16.msra.mxu1 %v18240_v57  ;;  %13525 = vmatprep.subr.bf16.mxu0 %v18247_v28  ;;  %v10668_v57 = vld [vmem:[#allocation11 + $0x8c0] sm:$0xff] }
 0x68d   :  { %13689 = vmatprep.subr.bf16.mxu1 %v18249_v39  ;;  %v10672_v28 = vld [vmem:[#allocation11 + $0x8e0] sm:$0xff]  ;;  %v10669_v39 = vld [vmem:[#allocation11 + $0x8c8] sm:$0xff] }
 0x68e   :  { %v18303_v41 = vcombine.high %v10668_v57, %v10672_v28  ;;  %v18302_v12 = vcombine.low %v10668_v57, %v10672_v28  ;;  %v18304_v54 = vcombine.low %v10669_v39, %v10673_v30 }
 0x68f   :  { %13526 = vmatpush1.bf16.msra.mxu0 %v18246_v18  ;;  %v18305_v18 = vcombine.high %v10669_v39, %v10673_v30 }
 0x690   :  { %13690 = vmatpush1.bf16.msra.mxu1 %v18248_v13  ;;  %13527 = vmatprep.subr.bf16.mxu0 %v18255_v37  ;;  %v10676_v13 = vld [vmem:[#allocation11 + $0x900] sm:$0xff] }
 0x691   :  { %13691 = vmatprep.subr.bf16.mxu1 %v18257_v20  ;;  %v10680_v37 = vld [vmem:[#allocation11 + $0x920] sm:$0xff]  ;;  %v10677_v20 = vld [vmem:[#allocation11 + $0x908] sm:$0xff] }
 0x692   :  { %v18311_v22 = vcombine.high %v10676_v13, %v10680_v37  ;;  %v18310_v33 = vcombine.low %v10676_v13, %v10680_v37  ;;  %v18312_v38 = vcombine.low %v10677_v20, %v10681_v42 }
 0x693   :  { %13528 = vmatpush1.bf16.msra.mxu0 %v18254_v49  ;;  %v18313_v49 = vcombine.high %v10677_v20, %v10681_v42 }
 0x694   :  { %13692 = vmatpush1.bf16.msra.mxu1 %v18256_v51  ;;  %13529 = vmatprep.subr.bf16.mxu0 %v18263_v3  ;;  %v10684_v51 = vld [vmem:[#allocation11 + $0x940] sm:$0xff] }
 0x695   :  { %13693 = vmatprep.subr.bf16.mxu1 %v18265_v53  ;;  %v10688_v3 = vld [vmem:[#allocation11 + $0x960] sm:$0xff]  ;;  %v10685_v53 = vld [vmem:[#allocation11 + $0x948] sm:$0xff] }
 0x696   :  { %v18319_v59 = vcombine.high %v10684_v51, %v10688_v3  ;;  %v18318_v2 = vcombine.low %v10684_v51, %v10688_v3  ;;  %v18320_v7 = vcombine.low %v10685_v53, %v10689_v56 }
 0x697   :  { %13530 = vmatpush1.bf16.msra.mxu0 %v18262_v35  ;;  %v18321_v35 = vcombine.high %v10685_v53, %v10689_v56 }
 0x698   :  { %13694 = vmatpush1.bf16.msra.mxu1 %v18264_v44  ;;  %13531 = vmatprep.subr.bf16.mxu0 %v18271_v60  ;;  %v10692_v44 = vld [vmem:[#allocation11 + $0x980] sm:$0xff] }
 0x699   :  { %13695 = vmatprep.subr.bf16.mxu1 %v18273_v61  ;;  %v10696_v60 = vld [vmem:[#allocation11 + $0x9a0] sm:$0xff]  ;;  %v10693_v61 = vld [vmem:[#allocation11 + $0x988] sm:$0xff] }
 0x69a   :  { %v18327_v8 = vcombine.high %v10692_v44, %v10696_v60  ;;  %v18326_v1 = vcombine.low %v10692_v44, %v10696_v60  ;;  %v18328_v11 = vcombine.low %v10693_v61, %v10697_v63 }
 0x69b   :  { %13532 = vmatpush1.bf16.msra.mxu0 %v18270_v52  ;;  %v18329_v52 = vcombine.high %v10693_v61, %v10697_v63 }
 0x69c   :  { %13696 = vmatpush1.bf16.msra.mxu1 %v18272_v14  ;;  %13542 = vmatprep.subr.bf16.mxu0 %v18279_v10  ;;  %v10704_v14 = vld [vmem:[#allocation11 + $0x9e0] sm:$0xff]  ;;  %v10701_v10 = vld [vmem:[#allocation11 + $0x9c8] sm:$0xff] }
 0x69d   :  { %13706 = vmatprep.subr.bf16.mxu1 %v18281_v55  ;;  %v10705_v55 = vld [vmem:[#allocation11 + $0x9e8] sm:$0xff]  ;;  %v18335_v5 = vcombine.high %v10700_v9, %v10704_v14  ;;  %v18334_v16 = vcombine.low %v10700_v9, %v10704_v14 }
 0x69e   :  { %13534 = vmatmul.mubr.bf16.vlgmr.msra.gmra.mrb[16].mxu0 %v20365_v25  ;;  %v18337_v6 = vcombine.high %v10701_v10, %v10705_v55  ;;  %v18336_v27 = vcombine.low %v10701_v10, %v10705_v55 }
 0x69f   :  { %13698 = vmatmul.mubr.bf16.vlgmr.msra.gmra.mrb[16].mxu1 %v20365_v25  ;;  %13543 = vmatpush1.bf16.msra.mxu0 %v18278_v0  ;;  %v10708_v0 = vld [vmem:[#allocation11 + $0xa00] sm:$0xff] }
 0x6a0   :  { %13707 = vmatpush1.bf16.msra.mxu1 %v18280_v62  ;;  %13544 = vmatprep.subr.bf16.mxu0 %v18287_v15  ;;  %v10712_v62 = vld [vmem:[#allocation11 + $0xa20] sm:$0xff]  ;;  %v10709_v15 = vld [vmem:[#allocation11 + $0xa08] sm:$0xff] }
 0x6a1   :  { %13708 = vmatprep.subr.bf16.mxu1 %v18289_v29  ;;  %v10713_v29 = vld [vmem:[#allocation11 + $0xa28] sm:$0xff]  ;;  %v18343_v34 = vcombine.high %v10708_v0, %v10712_v62  ;;  %v18342_v57 = vcombine.low %v10708_v0, %v10712_v62 }
 0x6a2   :  { %v18345_v31 = vcombine.high %v10709_v15, %v10713_v29  ;;  %v18344_v28 = vcombine.low %v10709_v15, %v10713_v29 }
 0x6a3   :  { %13545 = vmatpush1.bf16.msra.mxu0 %v18286_v19  ;;  %v10716_v19 = vld [vmem:[#allocation11 + $0xa40] sm:$0xff] }
 0x6a4   :  { %13709 = vmatpush1.bf16.msra.mxu1 %v18288_v21  ;;  %13546 = vmatprep.subr.bf16.mxu0 %v18295_v47  ;;  %v10720_v21 = vld [vmem:[#allocation11 + $0xa60] sm:$0xff]  ;;  %v10717_v47 = vld [vmem:[#allocation11 + $0xa48] sm:$0xff] }
 0x6a5   :  { %13710 = vmatprep.subr.bf16.mxu1 %v18297_v24  ;;  %v10721_v24 = vld [vmem:[#allocation11 + $0xa68] sm:$0xff]  ;;  %v18351_v39 = vcombine.high %v10716_v19, %v10720_v21  ;;  %v18350_v13 = vcombine.low %v10716_v19, %v10720_v21 }
 0x6a6   :  { %v18353_v30 = vcombine.high %v10717_v47, %v10721_v24  ;;  %v18352_v37 = vcombine.low %v10717_v47, %v10721_v24 }
 0x6a7   :  { %13547 = vmatpush1.bf16.msra.mxu0 %v18294_v26  ;;  %v10724_v26 = vld [vmem:[#allocation11 + $0xa80] sm:$0xff] }
 0x6a8   :  { %13711 = vmatpush1.bf16.msra.mxu1 %v18296_v32  ;;  %13548 = vmatprep.subr.bf16.mxu0 %v18303_v41  ;;  %v10728_v32 = vld [vmem:[#allocation11 + $0xaa0] sm:$0xff]  ;;  %v10725_v41 = vld [vmem:[#allocation11 + $0xa88] sm:$0xff] }
 0x6a9   :  { %13712 = vmatprep.subr.bf16.mxu1 %v18305_v18  ;;  %v10729_v18 = vld [vmem:[#allocation11 + $0xaa8] sm:$0xff]  ;;  %v18359_v20 = vcombine.high %v10724_v26, %v10728_v32  ;;  %v18358_v51 = vcombine.low %v10724_v26, %v10728_v32 }
 0x6aa   :  { %v18361_v42 = vcombine.high %v10725_v41, %v10729_v18  ;;  %v18360_v3 = vcombine.low %v10725_v41, %v10729_v18 }
 0x6ab   :  { %13549 = vmatpush1.bf16.msra.mxu0 %v18302_v12  ;;  %v10732_v12 = vld [vmem:[#allocation11 + $0xac0] sm:$0xff] }
 0x6ac   :  { %13713 = vmatpush1.bf16.msra.mxu1 %v18304_v54  ;;  %13550 = vmatprep.subr.bf16.mxu0 %v18311_v22  ;;  %v10736_v54 = vld [vmem:[#allocation11 + $0xae0] sm:$0xff]  ;;  %v10733_v22 = vld [vmem:[#allocation11 + $0xac8] sm:$0xff] }
 0x6ad   :  { %13714 = vmatprep.subr.bf16.mxu1 %v18313_v49  ;;  %v10737_v49 = vld [vmem:[#allocation11 + $0xae8] sm:$0xff]  ;;  %v18367_v53 = vcombine.high %v10732_v12, %v10736_v54  ;;  %v18366_v44 = vcombine.low %v10732_v12, %v10736_v54 }
 0x6ae   :  { %v18369_v56 = vcombine.high %v10733_v22, %v10737_v49  ;;  %v18368_v60 = vcombine.low %v10733_v22, %v10737_v49 }
 0x6af   :  { %13551 = vmatpush1.bf16.msra.mxu0 %v18310_v33  ;;  %v10740_v33 = vld [vmem:[#allocation11 + $0xb00] sm:$0xff] }
 0x6b0   :  { %13715 = vmatpush1.bf16.msra.mxu1 %v18312_v38  ;;  %13552 = vmatprep.subr.bf16.mxu0 %v18319_v59  ;;  %v10744_v38 = vld [vmem:[#allocation11 + $0xb20] sm:$0xff]  ;;  %v10741_v59 = vld [vmem:[#allocation11 + $0xb08] sm:$0xff] }
 0x6b1   :  { %13716 = vmatprep.subr.bf16.mxu1 %v18321_v35  ;;  %v10745_v35 = vld [vmem:[#allocation11 + $0xb28] sm:$0xff]  ;;  %v18375_v61 = vcombine.high %v10740_v33, %v10744_v38  ;;  %v18374_v9 = vcombine.low %v10740_v33, %v10744_v38 }
 0x6b2   :  { %v18377_v63 = vcombine.high %v10741_v59, %v10745_v35  ;;  %v18376_v14 = vcombine.low %v10741_v59, %v10745_v35 }
 0x6b3   :  { %13553 = vmatpush1.bf16.msra.mxu0 %v18318_v2  ;;  %v10748_v2 = vld [vmem:[#allocation11 + $0xb40] sm:$0xff] }
 0x6b4   :  { %13717 = vmatpush1.bf16.msra.mxu1 %v18320_v7  ;;  %13554 = vmatprep.subr.bf16.mxu0 %v18327_v8  ;;  %v10752_v7 = vld [vmem:[#allocation11 + $0xb60] sm:$0xff]  ;;  %v10749_v8 = vld [vmem:[#allocation11 + $0xb48] sm:$0xff] }
 0x6b5   :  { %13718 = vmatprep.subr.bf16.mxu1 %v18329_v52  ;;  %v10753_v52 = vld [vmem:[#allocation11 + $0xb68] sm:$0xff]  ;;  %v18383_v10 = vcombine.high %v10748_v2, %v10752_v7  ;;  %v18382_v0 = vcombine.low %v10748_v2, %v10752_v7 }
 0x6b6   :  { %v18385_v55 = vcombine.high %v10749_v8, %v10753_v52  ;;  %v18384_v62 = vcombine.low %v10749_v8, %v10753_v52 }
 0x6b7   :  { %13555 = vmatpush1.bf16.msra.mxu0 %v18326_v1  ;;  %v10756_v1 = vld [vmem:[#allocation11 + $0xb80] sm:$0xff] }
 0x6b8   :  { %13719 = vmatpush1.bf16.msra.mxu1 %v18328_v11  ;;  %13556 = vmatprep.subr.bf16.mxu0 %v18335_v5  ;;  %v10760_v11 = vld [vmem:[#allocation11 + $0xba0] sm:$0xff]  ;;  %v10757_v5 = vld [vmem:[#allocation11 + $0xb88] sm:$0xff] }
 0x6b9   :  { %13720 = vmatprep.subr.bf16.mxu1 %v18337_v6  ;;  %v10761_v6 = vld [vmem:[#allocation11 + $0xba8] sm:$0xff]  ;;  %v18391_v15 = vcombine.high %v10756_v1, %v10760_v11  ;;  %v18390_v19 = vcombine.low %v10756_v1, %v10760_v11 }
 0x6ba   :  { %v18393_v29 = vcombine.high %v10757_v5, %v10761_v6  ;;  %v18392_v21 = vcombine.low %v10757_v5, %v10761_v6 }
 0x6bb   :  { %13557 = vmatpush1.bf16.msra.mxu0 %v18334_v16  ;;  %v10764_v16 = vld [vmem:[#allocation11 + $0xbc0] sm:$0xff] }
 0x6bc   :  { %13721 = vmatpush1.bf16.msra.mxu1 %v18336_v27  ;;  %13558 = vmatprep.subr.bf16.mxu0 %v18343_v34  ;;  %v10768_v27 = vld [vmem:[#allocation11 + $0xbe0] sm:$0xff]  ;;  %v10765_v34 = vld [vmem:[#allocation11 + $0xbc8] sm:$0xff] }
 0x6bd   :  { %13722 = vmatprep.subr.bf16.mxu1 %v18345_v31  ;;  %v10769_v31 = vld [vmem:[#allocation11 + $0xbe8] sm:$0xff]  ;;  %v18399_v47 = vcombine.high %v10764_v16, %v10768_v27  ;;  %v18398_v26 = vcombine.low %v10764_v16, %v10768_v27  ;;  %v10784_v27 = vld [vmem:[#allocation11 + $0xc60] sm:$0xff] }
 0x6be   :  { %v18401_v24 = vcombine.high %v10765_v34, %v10769_v31  ;;  %v18400_v32 = vcombine.low %v10765_v34, %v10769_v31  ;;  %v10781_v34 = vld [vmem:[#allocation11 + $0xc48] sm:$0xff] }
 0x6bf   :  { %13559 = vmatpush1.bf16.msra.mxu0 %v18342_v57  ;;  %v20369_v57 = vld [vmem:[#allocation11 + $0xc00] sm:$0xff]  ;;  %v10785_v31 = vld [vmem:[#allocation11 + $0xc68] sm:$0xff] }
 0x6c0   :  { %13723 = vmatpush1.bf16.msra.mxu1 %v18344_v28  ;;  %13560 = vmatprep.subr.bf16.mxu0 %v18351_v39  ;;  %v20371_v28 = vld [vmem:[#allocation11 + $0xc20] sm:$0xff]  ;;  %v20373_v39 = vld [vmem:[#allocation11 + $0xc08] sm:$0xff] }
 0x6c1   :  { %13724 = vmatprep.subr.bf16.mxu1 %v18353_v30  ;;  %v20375_v30 = vld [vmem:[#allocation11 + $0xc28] sm:$0xff]  ;;  %v18407_v41 = vcombine.high %v20369_v57, %v20371_v28 }
 0x6c2   :  { %v18409_v18 = vcombine.high %v20373_v39, %v20375_v30 }
 0x6c3   :  { %13561 = vmatpush1.bf16.msra.mxu0 %v18350_v13  ;;  %v10209_v13 = vld [vmem:[#allocation10 + $0x8] sm:$0xff] }
 0x6c4   :  { %13725 = vmatpush1.bf16.msra.mxu1 %v18352_v37  ;;  %13562 = vmatprep.subr.bf16.mxu0 %v18359_v20  ;;  %v10231_v37 = vrot.slane %v10209_v13, %v20161_v36  ;;  %v10239_v20 = vrot.slane %v10209_v13, %v20164_v48  ;;  %v10311_v12 = vrot.slane %v10209_v13, %v20170_v43 }
 0x6c5   :  { %13726 = vmatprep.subr.bf16.mxu1 %v18361_v42  ;;  %v10235_v42 = vrot.slane %v10209_v13, %v20210_v23  ;;  %v10243_v54 = vrot.slane %v10209_v13, %v20167_v40  ;;  %v10319_v22 = vrot.slane %v10209_v13, %v20173_v45  ;;  %v10315_v49 = vrot.slane %v10209_v13, %v20215_v4 }
 0x6c6   :  { %v10351_v33 = vrot.slane %v10311_v12, %v20170_v43  ;;  %v10800_v12 = vld [vmem:[#allocation11 + $0xce0] sm:$0xff] }
 0x6c7   :  { %13563 = vmatpush1.bf16.msra.mxu0 %v18358_v51  ;;  %v10271_v51 = vrot.slane %v10231_v37, %v20161_v36  ;;  %v10283_v38 = vrot.slane %v10243_v54, %v20161_v36  ;;  %v10359_v35 = vrot.slane %v10319_v22, %v20170_v43  ;;  %v10793_v37 = vld [vmem:[#allocation11 + $0xca8] sm:$0xff] }
 0x6c8   :  { %13727 = vmatpush1.bf16.msra.mxu1 %v18360_v3  ;;  %13564 = vmatprep.subr.bf16.mxu0 %v18367_v53  ;;  %v10323_v3 = vrot.slane %v10209_v13, %v20177_v50  ;;  %v10279_v53 = vrot.slane %v10239_v20, %v20161_v36  ;;  %v10789_v13 = vld [vmem:[#allocation11 + $0xc88] sm:$0xff] }
 0x6c9   :  { %13728 = vmatprep.subr.bf16.mxu1 %v18369_v56  ;;  %v10275_v56 = vrot.slane %v10235_v42, %v20161_v36  ;;  %v10796_v42 = vld [vmem:[#allocation11 + $0xcc0] sm:$0xff]  ;;  %v10797_v54 = vld [vmem:[#allocation11 + $0xcc8] sm:$0xff] }
 0x6ca   :  { %v10363_v2 = vrot.slane %v10323_v3, %v20170_v43  ;;  %v10801_v22 = vld [vmem:[#allocation11 + $0xce8] sm:$0xff]  ;;  %v18431_v3 = vcombine.high %v10796_v42, %v10800_v12 }
 0x6cb   :  { %13565 = vmatpush1.bf16.msra.mxu0 %v18366_v44  ;;  %v10355_v44 = vrot.slane %v10315_v49, %v20170_v43 }
 0x6cc   :  { %13729 = vmatpush1.bf16.msra.mxu1 %v18368_v60  ;;  %13566 = vmatprep.subr.bf16.mxu0 %v18375_v61 }
 0x6cd   :  { %13730 = vmatprep.subr.bf16.mxu1 %v18377_v63 }
 0x6cf   :  { %13567 = vmatpush1.bf16.msra.mxu0 %v18374_v9 }
 0x6d0   :  { %13731 = vmatpush1.bf16.msra.mxu1 %v18376_v14  ;;  %13568 = vmatprep.subr.bf16.mxu0 %v18383_v10 }
 0x6d1   :  { %13732 = vmatprep.subr.bf16.mxu1 %v18385_v55 }
 0x6d3   :  { %13569 = vmatpush1.bf16.msra.mxu0 %v18382_v0 }
 0x6d4   :  { %13733 = vmatpush1.bf16.msra.mxu1 %v18384_v62  ;;  %13570 = vmatprep.subr.bf16.mxu0 %v18391_v15 }
 0x6d5   :  { %13734 = vmatprep.subr.bf16.mxu1 %v18393_v29  ;;  %v10780_v29 = vld [vmem:[#allocation11 + $0xc40] sm:$0xff] }
 0x6d7   :  { %13571 = vmatpush1.bf16.msra.mxu0 %v18390_v19 }
 0x6d8   :  { %13735 = vmatpush1.bf16.msra.mxu1 %v18392_v21  ;;  %13572 = vmatprep.subr.bf16.mxu0 %v18399_v47  ;;  %v18406_v21 = vcombine.low %v20369_v57, %v20371_v28  ;;  %v18408_v47 = vcombine.low %v20373_v39, %v20375_v30  ;;  %v18414_v57 = vcombine.low %v10780_v29, %v10784_v27 }
 0x6d9   :  { %13736 = vmatprep.subr.bf16.mxu1 %v18401_v24  ;;  %v18416_v28 = vcombine.low %v10781_v34, %v10785_v31  ;;  %v18425_v30 = vcombine.high %v10789_v13, %v10793_v37 }
 0x6db   :  { %13573 = vmatpush1.bf16.msra.mxu0 %v18398_v26  ;;  %v10788_v26 = vld [vmem:[#allocation11 + $0xc80] sm:$0xff] }
 0x6dc   :  { %13737 = vmatpush1.bf16.msra.mxu1 %v18400_v32  ;;  %13583 = vmatprep.subr.bf16.mxu0 %v18407_v41  ;;  %v18415_v32 = vcombine.high %v10780_v29, %v10784_v27  ;;  %v18417_v41 = vcombine.high %v10781_v34, %v10785_v31  ;;  %v10832_v27 = vld [vmem:[#allocation11 + $0xde0] sm:$0xff]  ;;  %v10829_v34 = vld [vmem:[#allocation11 + $0xdc8] sm:$0xff] }
 0x6dd   :  { %13747 = vmatprep.subr.bf16.mxu1 %v18409_v18  ;;  %v10792_v18 = vld [vmem:[#allocation11 + $0xca0] sm:$0xff]  ;;  %v10833_v31 = vld [vmem:[#allocation11 + $0xde8] sm:$0xff] }
 0x6de   :  { %v18423_v39 = vcombine.high %v10788_v26, %v10792_v18  ;;  %v18422_v49 = vcombine.low %v10788_v26, %v10792_v18  ;;  %v10840_v18 = vld [vmem:[#allocation11 + $0xe20] sm:$0xff] }
 0x6f1   :  { %v10037_v59 = vpop.f32.mrb[12].mxu0 }
 0x6f2   :  { %v10288_v60 = vmul.f32 %v10271_v51, %v10037_v59  ;;  %v10201_v61 = vpop.f32.mrb[12].mxu1  ;;  %v10039_v63 = vpop.f32.mrb[13].mxu0  ;;  %v18424_v51 = vcombine.low %v10789_v13, %v10793_v37  ;;  %v10809_v59 = vld [vmem:[#allocation11 + $0xd28] sm:$0xff] }
 0x6f3   :  { %v10290_v7 = vmul.f32 %v10279_v53, %v10201_v61  ;;  %v10289_v8 = vmul.f32 %v10275_v56, %v10039_v63  ;;  %v10203_v52 = vpop.f32.mrb[13].mxu1  ;;  %v10041_v9 = vpop.f32.mrb[14].mxu0  ;;  %v18433_v53 = vcombine.high %v10797_v54, %v10801_v22  ;;  %v10804_v56 = vld [vmem:[#allocation11 + $0xd00] sm:$0xff]  ;;  %v10837_v13 = vld [vmem:[#allocation11 + $0xe08] sm:$0xff] }
 0x6f4   :  { %v10368_v14 = vadd.f32 %v10351_v33, %v10288_v60  ;;  %v10291_v10 = vmul.f32 %v10283_v38, %v10203_v52  ;;  %v10205_v55 = vpop.f32.mrb[14].mxu1  ;;  %v10042_v1 = vpop.f32.mrb[15].mxu0  ;;  %v10808_v33 = vld [vmem:[#allocation11 + $0xd20] sm:$0xff]  ;;  %v10805_v38 = vld [vmem:[#allocation11 + $0xd08] sm:$0xff] }
 0x6f5   :  { %v20397_v11 = vadd.f32 %v10359_v35, %v10290_v7  ;;  %v10369_v5 = vadd.f32 %v10355_v44, %v10289_v8  ;;  %v10206_v6 = vpop.f32.mrb[15].mxu1  ;;  %v18430_v35 = vcombine.low %v10796_v42, %v10800_v12  ;;  %v18432_v44 = vcombine.low %v10797_v54, %v10801_v22  ;;  %v10812_v63 = vld [vmem:[#allocation11 + $0xd40] sm:$0xff]  ;;  %v10813_v7 = vld [vmem:[#allocation11 + $0xd48] sm:$0xff] }
 0x6f6   :  { %v10376_v0 = vmax.f32 %v10368_v14, 0.0  ;;  %v10371_v62 = vadd.f32 %v10363_v2, %v10291_v10  ;;  %v18439_v60 = vcombine.high %v10804_v56, %v10808_v33  ;;  %v18441_v61 = vcombine.high %v10805_v38, %v10809_v59  ;;  %v10816_v2 = vld [vmem:[#allocation11 + $0xd60] sm:$0xff]  ;;  %v10817_v8 = vld [vmem:[#allocation11 + $0xd68] sm:$0xff] }
 0x6f7   :  { %v10377_v15 = vmax.f32 %v10369_v5, 0.0  ;;  %v18438_v52 = vcombine.low %v10804_v56, %v10808_v33  ;;  %v18440_v9 = vcombine.low %v10805_v38, %v10809_v59  ;;  %v18447_v14 = vcombine.high %v10812_v63, %v10816_v2  ;;  %v10820_v55 = vld [vmem:[#allocation11 + $0xd80] sm:$0xff]  ;;  %v10821_v5 = vld [vmem:[#allocation11 + $0xd88] sm:$0xff] }
 0x6f8   :  { %v10379_v16 = vmax.f32 %v10371_v62, 0.0  ;;  %v20405_v24 = vpack.c.bf16 %v10376_v0, %v10376_v0  ;;  %v18449_v10 = vcombine.high %v10813_v7, %v10817_v8  ;;  %v10824_v1 = vld [vmem:[#allocation11 + $0xda0] sm:$0xff]  ;;  %v10825_v6 = vld [vmem:[#allocation11 + $0xda8] sm:$0xff]  ;;  %v18446_v0 = vcombine.low %v10812_v63, %v10816_v2 }
 0x6f9   :  { %v20399_v19 = vpack.c.bf16 %v10377_v15, %v10377_v15  ;;  %v18448_v62 = vcombine.low %v10813_v7, %v10817_v8  ;;  %v18455_v15 = vcombine.high %v10820_v55, %v10824_v1  ;;  %v18457_v29 = vcombine.high %v10821_v5, %v10825_v6  ;;  %v10841_v37 = vld [vmem:[#allocation11 + $0xe28] sm:$0xff]  ;;  %v10844_v42 = vld [vmem:[#allocation11 + $0xe40] sm:$0xff] }
 0x6fa   :  { %v20409_v20 = vpack.c.bf16 %v10379_v16, %v10379_v16  ;;  %v10828_v16 = vld [vmem:[#allocation11 + $0xdc0] sm:$0xff]  ;;  %v10845_v54 = vld [vmem:[#allocation11 + $0xe48] sm:$0xff] }
 0x6fb   :  { %13574 = vmatprep.mubr.bf16.mxu0 %v20399_v19  ;;  %13738 = vmatprep.mubr.bf16.mxu1 %v20399_v19  ;;  %v18463_v26 = vcombine.high %v10828_v16, %v10832_v27  ;;  %v10848_v12 = vld [vmem:[#allocation11 + $0xe60] sm:$0xff]  ;;  %v10849_v22 = vld [vmem:[#allocation11 + $0xe68] sm:$0xff] }
 0x6fc   :  { %13575 = vmatmul.mubr.bf16.vlgmr.msra.gmra.mrb[16].mxu0 %v20405_v24  ;;  %13739 = vmatmul.mubr.bf16.vlgmr.msra.gmra.mrb[16].mxu1 %v20405_v24  ;;  %v10852_v56 = vld [vmem:[#allocation11 + $0xe80] sm:$0xff]  ;;  %v10853_v38 = vld [vmem:[#allocation11 + $0xe88] sm:$0xff] }
 0x6fd   :  { %13584 = vmatpush1.bf16.msra.mxu0 %v18406_v21  ;;  %13748 = vmatpush1.bf16.msra.mxu1 %v18408_v47  ;;  %v18454_v21 = vcombine.low %v10820_v55, %v10824_v1  ;;  %v18456_v47 = vcombine.low %v10821_v5, %v10825_v6  ;;  %v10856_v33 = vld [vmem:[#allocation11 + $0xea0] sm:$0xff]  ;;  %v10857_v59 = vld [vmem:[#allocation11 + $0xea8] sm:$0xff] }
 0x6fe   :  { %13615 = vmatprep.mubr.bf16.mxu0 %v20409_v20  ;;  %13779 = vmatprep.mubr.bf16.mxu1 %v20409_v20  ;;  %v10860_v63 = vld [vmem:[#allocation11 + $0xec0] sm:$0xff]  ;;  %v10861_v7 = vld [vmem:[#allocation11 + $0xec8] sm:$0xff] }
 0x6ff   :  { %13585 = vmatprep.subr.bf16.mxu0 %v18415_v32  ;;  %13749 = vmatprep.subr.bf16.mxu1 %v18417_v41  ;;  %v18465_v32 = vcombine.high %v10829_v34, %v10833_v31  ;;  %v10836_v41 = vld [vmem:[#allocation11 + $0xe00] sm:$0xff]  ;;  %v10865_v8 = vld [vmem:[#allocation11 + $0xee8] sm:$0xff] }
 0x700   :  { %v10864_v2 = vld [vmem:[#allocation11 + $0xee0] sm:$0xff]  ;;  %v10869_v5 = vld [vmem:[#allocation11 + $0xf08] sm:$0xff] }
 0x701   :  { %13586 = vmatpush1.bf16.msra.mxu0 %v18414_v57  ;;  %13750 = vmatpush1.bf16.msra.mxu1 %v18416_v28  ;;  %v18462_v57 = vcombine.low %v10828_v16, %v10832_v27  ;;  %v18464_v28 = vcombine.low %v10829_v34, %v10833_v31  ;;  %v10868_v55 = vld [vmem:[#allocation11 + $0xf00] sm:$0xff]  ;;  %v10873_v6 = vld [vmem:[#allocation11 + $0xf28] sm:$0xff] }
 0x702   :  { %13587 = vmatprep.subr.bf16.mxu0 %v18423_v39  ;;  %13751 = vmatprep.subr.bf16.mxu1 %v18425_v30  ;;  %v18471_v39 = vcombine.high %v10836_v41, %v10840_v18  ;;  %v18473_v30 = vcombine.high %v10837_v13, %v10841_v37  ;;  %v10872_v1 = vld [vmem:[#allocation11 + $0xf20] sm:$0xff]  ;;  %v10877_v34 = vld [vmem:[#allocation11 + $0xf48] sm:$0xff] }
 0x703   :  { %v10876_v16 = vld [vmem:[#allocation11 + $0xf40] sm:$0xff]  ;;  %v10881_v31 = vld [vmem:[#allocation11 + $0xf68] sm:$0xff] }
 0x704   :  { %v10880_v27 = vld [vmem:[#allocation11 + $0xf60] sm:$0xff] }
 0x705   :  { %13588 = vmatpush1.bf16.msra.mxu0 %v18422_v49  ;;  %13752 = vmatpush1.bf16.msra.mxu1 %v18424_v51  ;;  %v18470_v49 = vcombine.low %v10836_v41, %v10840_v18  ;;  %v18472_v51 = vcombine.low %v10837_v13, %v10841_v37  ;;  %v10884_v41 = vld [vmem:[#allocation11 + $0xf80] sm:$0xff]  ;;  %v10885_v13 = vld [vmem:[#allocation11 + $0xf88] sm:$0xff] }
 0x706   :  { %13589 = vmatprep.subr.bf16.mxu0 %v18431_v3  ;;  %13753 = vmatprep.subr.bf16.mxu1 %v18433_v53  ;;  %v18479_v3 = vcombine.high %v10844_v42, %v10848_v12  ;;  %v18481_v53 = vcombine.high %v10845_v54, %v10849_v22  ;;  %v10888_v18 = vld [vmem:[#allocation11 + $0xfa0] sm:$0xff]  ;;  %v10889_v37 = vld [vmem:[#allocation11 + $0xfa8] sm:$0xff] }
 0x709   :  { %13590 = vmatpush1.bf16.msra.mxu0 %v18430_v35  ;;  %13754 = vmatpush1.bf16.msra.mxu1 %v18432_v44  ;;  %v18478_v35 = vcombine.low %v10844_v42, %v10848_v12  ;;  %v18480_v44 = vcombine.low %v10845_v54, %v10849_v22  ;;  %v10892_v42 = vld [vmem:[#allocation11 + $0xfc0] sm:$0xff]  ;;  %v10893_v54 = vld [vmem:[#allocation11 + $0xfc8] sm:$0xff] }
 0x70a   :  { %13591 = vmatprep.subr.bf16.mxu0 %v18439_v60  ;;  %13755 = vmatprep.subr.bf16.mxu1 %v18441_v61  ;;  %v18487_v60 = vcombine.high %v10852_v56, %v10856_v33  ;;  %v18489_v61 = vcombine.high %v10853_v38, %v10857_v59  ;;  %v10896_v12 = vld [vmem:[#allocation11 + $0xfe0] sm:$0xff]  ;;  %v10897_v22 = vld [vmem:[#allocation11 + $0xfe8] sm:$0xff] }
 0x70d   :  { %13592 = vmatpush1.bf16.msra.mxu0 %v18438_v52  ;;  %13756 = vmatpush1.bf16.msra.mxu1 %v18440_v9  ;;  %v18486_v52 = vcombine.low %v10852_v56, %v10856_v33  ;;  %v18488_v9 = vcombine.low %v10853_v38, %v10857_v59  ;;  %v10390_v56 = vld [vmem:[#allocation11 + $0x10] sm:$0xff]  ;;  %v10391_v38 = vld [vmem:[#allocation11 + $0x18] sm:$0xff] }
 0x70e   :  { %13593 = vmatprep.subr.bf16.mxu0 %v18447_v14  ;;  %13757 = vmatprep.subr.bf16.mxu1 %v18449_v10  ;;  %v18495_v14 = vcombine.high %v10860_v63, %v10864_v2  ;;  %v18497_v10 = vcombine.high %v10861_v7, %v10865_v8  ;;  %v10394_v33 = vld [vmem:[#allocation11 + $0x30] sm:$0xff]  ;;  %v10395_v59 = vld [vmem:[#allocation11 + $0x38] sm:$0xff] }
 0x711   :  { %13594 = vmatpush1.bf16.msra.mxu0 %v18446_v0  ;;  %13758 = vmatpush1.bf16.msra.mxu1 %v18448_v62  ;;  %v18494_v0 = vcombine.low %v10860_v63, %v10864_v2  ;;  %v18496_v62 = vcombine.low %v10861_v7, %v10865_v8  ;;  %v18029_v63 = vcombine.high %v10391_v38, %v10395_v59  ;;  %v10398_v2 = vld [vmem:[#allocation11 + $0x50] sm:$0xff]  ;;  %v10399_v8 = vld [vmem:[#allocation11 + $0x58] sm:$0xff] }
 0x712   :  { %13595 = vmatprep.subr.bf16.mxu0 %v18455_v15  ;;  %13759 = vmatprep.subr.bf16.mxu1 %v18457_v29  ;;  %v18503_v15 = vcombine.high %v10868_v55, %v10872_v1  ;;  %v18505_v29 = vcombine.high %v10869_v5, %v10873_v6  ;;  %v10402_v7 = vld [vmem:[#allocation11 + $0x70] sm:$0xff] }
 0x715   :  { %13596 = vmatpush1.bf16.msra.mxu0 %v18454_v21  ;;  %13760 = vmatpush1.bf16.msra.mxu1 %v18456_v47  ;;  %v18502_v21 = vcombine.low %v10868_v55, %v10872_v1  ;;  %v18504_v47 = vcombine.low %v10869_v5, %v10873_v6  ;;  %v18035_v55 = vcombine.high %v10398_v2, %v10402_v7  ;;  %v10406_v5 = vld [vmem:[#allocation11 + $0x90] sm:$0xff]  ;;  %v10407_v6 = vld [vmem:[#allocation11 + $0x98] sm:$0xff] }
 0x716   :  { %13597 = vmatprep.subr.bf16.mxu0 %v18463_v26  ;;  %13761 = vmatprep.subr.bf16.mxu1 %v18465_v32  ;;  %v18511_v26 = vcombine.high %v10876_v16, %v10880_v27  ;;  %v18513_v32 = vcombine.high %v10877_v34, %v10881_v31 }
 0x719   :  { %13598 = vmatpush1.bf16.msra.mxu0 %v18462_v57  ;;  %13762 = vmatpush1.bf16.msra.mxu1 %v18464_v28  ;;  %v18510_v57 = vcombine.low %v10876_v16, %v10880_v27  ;;  %v18512_v28 = vcombine.low %v10877_v34, %v10881_v31  ;;  %v10414_v27 = vld [vmem:[#allocation11 + $0xd0] sm:$0xff]  ;;  %v10415_v31 = vld [vmem:[#allocation11 + $0xd8] sm:$0xff] }
 0x71a   :  { %13599 = vmatprep.subr.bf16.mxu0 %v18471_v39  ;;  %13763 = vmatprep.subr.bf16.mxu1 %v18473_v30  ;;  %v18519_v39 = vcombine.high %v10884_v41, %v10888_v18  ;;  %v18521_v30 = vcombine.high %v10885_v13, %v10889_v37  ;;  %v10418_v34 = vld [vmem:[#allocation11 + $0xf0] sm:$0xff] }
 0x71d   :  { %13600 = vmatpush1.bf16.msra.mxu0 %v18470_v49  ;;  %13764 = vmatpush1.bf16.msra.mxu1 %v18472_v51  ;;  %v18518_v49 = vcombine.low %v10884_v41, %v10888_v18  ;;  %v18520_v51 = vcombine.low %v10885_v13, %v10889_v37  ;;  %v10422_v18 = vld [vmem:[#allocation11 + $0x110] sm:$0xff]  ;;  %v10427_v37 = vld [vmem:[#allocation11 + $0x138] sm:$0xff] }
 0x71e   :  { %13601 = vmatprep.subr.bf16.mxu0 %v18479_v3  ;;  %13765 = vmatprep.subr.bf16.mxu1 %v18481_v53  ;;  %v18527_v3 = vcombine.high %v10892_v42, %v10896_v12  ;;  %v18529_v53 = vcombine.high %v10893_v54, %v10897_v22  ;;  %v10426_v13 = vld [vmem:[#allocation11 + $0x130] sm:$0xff] }
 0x721   :  { %13602 = vmatpush1.bf16.msra.mxu0 %v18478_v35  ;;  %13766 = vmatpush1.bf16.msra.mxu1 %v18480_v44  ;;  %v18526_v35 = vcombine.low %v10892_v42, %v10896_v12  ;;  %v18528_v44 = vcombine.low %v10893_v54, %v10897_v22  ;;  %v10430_v42 = vld [vmem:[#allocation11 + $0x150] sm:$0xff]  ;;  %v10431_v54 = vld [vmem:[#allocation11 + $0x158] sm:$0xff] }
 0x722   :  { %13603 = vmatprep.subr.bf16.mxu0 %v18487_v60  ;;  %13767 = vmatprep.subr.bf16.mxu1 %v18489_v61  ;;  %v10378_v60 = vmax.f32 %v20397_v11, 0.0  ;;  %v18027_v61 = vcombine.high %v10390_v56, %v10394_v33  ;;  %v10410_v11 = vld [vmem:[#allocation11 + $0xb0] sm:$0xff]  ;;  %v10435_v22 = vld [vmem:[#allocation11 + $0x178] sm:$0xff] }
 0x723   :  { %v10434_v12 = vld [vmem:[#allocation11 + $0x170] sm:$0xff] }
 0x725   :  { %13604 = vmatpush1.bf16.msra.mxu0 %v18486_v52  ;;  %13768 = vmatpush1.bf16.msra.mxu1 %v18488_v9  ;;  %v10403_v52 = vld [vmem:[#allocation11 + $0x78] sm:$0xff]  ;;  %v18026_v9 = vcombine.low %v10390_v56, %v10394_v33  ;;  %v10438_v56 = vld [vmem:[#allocation11 + $0x190] sm:$0xff] }
 0x726   :  { %13605 = vmatprep.subr.bf16.mxu0 %v18495_v14  ;;  %13769 = vmatprep.subr.bf16.mxu1 %v18497_v10  ;;  %v20416_v14 = vpack.c.bf16 %v10378_v60, %v10378_v60  ;;  %v18028_v10 = vcombine.low %v10391_v38, %v10395_v59  ;;  %v18037_v1 = vcombine.high %v10399_v8, %v10403_v52  ;;  %v10442_v33 = vld [vmem:[#allocation11 + $0x1b0] sm:$0xff]  ;;  %v10439_v38 = vld [vmem:[#allocation11 + $0x198] sm:$0xff] }
 0x727   :  { %v10443_v59 = vld [vmem:[#allocation11 + $0x1b8] sm:$0xff]  ;;  %v18075_v60 = vcombine.high %v10438_v56, %v10442_v33 }
 0x729   :  { %13606 = vmatpush1.bf16.msra.mxu0 %v18494_v0  ;;  %13770 = vmatpush1.bf16.msra.mxu1 %v18496_v62  ;;  %v10411_v0 = vld [vmem:[#allocation11 + $0xb8] sm:$0xff]  ;;  %v18034_v62 = vcombine.low %v10398_v2, %v10402_v7  ;;  %v10450_v2 = vld [vmem:[#allocation11 + $0x1f0] sm:$0xff] }
 0x72a   :  { %13607 = vmatprep.subr.bf16.mxu0 %v18503_v15  ;;  %13771 = vmatprep.subr.bf16.mxu1 %v18505_v29  ;;  %v18036_v15 = vcombine.low %v10399_v8, %v10403_v52  ;;  %v18043_v29 = vcombine.high %v10406_v5, %v10410_v11  ;;  %v18045_v16 = vcombine.high %v10407_v6, %v10411_v0  ;;  %v10447_v7 = vld [vmem:[#allocation11 + $0x1d8] sm:$0xff] }
 0x72b   :  { %v10451_v8 = vld [vmem:[#allocation11 + $0x1f8] sm:$0xff]  ;;  %v18074_v52 = vcombine.low %v10438_v56, %v10442_v33  ;;  %v10490_v56 = vld [vmem:[#allocation11 + $0x330] sm:$0xff] }
 0x72c   :  { %v10487_v33 = vld [vmem:[#allocation11 + $0x318] sm:$0xff] }
 0x72d   :  { %13608 = vmatpush1.bf16.msra.mxu0 %v18502_v21  ;;  %13772 = vmatpush1.bf16.msra.mxu1 %v18504_v47  ;;  %v10419_v21 = vld [vmem:[#allocation11 + $0xf8] sm:$0xff]  ;;  %v18042_v47 = vcombine.low %v10406_v5, %v10410_v11  ;;  %v10458_v5 = vld [vmem:[#allocation11 + $0x230] sm:$0xff] }
 0x72e   :  { %13609 = vmatprep.subr.bf16.mxu0 %v18511_v26  ;;  %13773 = vmatprep.subr.bf16.mxu1 %v18513_v32  ;;  %v18044_v26 = vcombine.low %v10407_v6, %v10411_v0  ;;  %v18051_v32 = vcombine.high %v10414_v27, %v10418_v34  ;;  %v18053_v41 = vcombine.high %v10415_v31, %v10419_v21  ;;  %v10455_v11 = vld [vmem:[#allocation11 + $0x218] sm:$0xff] }
 0x72f   :  { %v10459_v6 = vld [vmem:[#allocation11 + $0x238] sm:$0xff] }
 0x731   :  { %13610 = vmatpush1.bf16.msra.mxu0 %v18510_v57  ;;  %13774 = vmatpush1.bf16.msra.mxu1 %v18512_v28  ;;  %v18050_v57 = vcombine.low %v10414_v27, %v10418_v34  ;;  %v18052_v28 = vcombine.low %v10415_v31, %v10419_v21  ;;  %v10466_v27 = vld [vmem:[#allocation11 + $0x270] sm:$0xff]  ;;  %v10463_v34 = vld [vmem:[#allocation11 + $0x258] sm:$0xff] }
 0x732   :  { %13611 = vmatprep.subr.bf16.mxu0 %v18519_v39  ;;  %13775 = vmatprep.subr.bf16.mxu1 %v18521_v30  ;;  %v18059_v39 = vcombine.high %v10422_v18, %v10426_v13  ;;  %v10467_v31 = vld [vmem:[#allocation11 + $0x278] sm:$0xff] }
 0x735   :  { %13612 = vmatpush1.bf16.msra.mxu0 %v18518_v49  ;;  %13776 = vmatpush1.bf16.msra.mxu1 %v18520_v51  ;;  %v18058_v49 = vcombine.low %v10422_v18, %v10426_v13  ;;  %v10474_v18 = vld [vmem:[#allocation11 + $0x2b0] sm:$0xff]  ;;  %v10471_v13 = vld [vmem:[#allocation11 + $0x298] sm:$0xff] }
 0x736   :  { %13613 = vmatprep.subr.bf16.mxu0 %v18527_v3  ;;  %13777 = vmatprep.subr.bf16.mxu1 %v18529_v53  ;;  %v18067_v3 = vcombine.high %v10430_v42, %v10434_v12  ;;  %v18069_v53 = vcombine.high %v10431_v54, %v10435_v22 }
 0x739   :  { %13614 = vmatpush1.bf16.msra.mxu0 %v18526_v35  ;;  %13778 = vmatpush1.bf16.msra.mxu1 %v18528_v44  ;;  %v18066_v35 = vcombine.low %v10430_v42, %v10434_v12  ;;  %v18068_v44 = vcombine.low %v10431_v54, %v10435_v22  ;;  %v10482_v42 = vld [vmem:[#allocation11 + $0x2f0] sm:$0xff]  ;;  %v10479_v12 = vld [vmem:[#allocation11 + $0x2d8] sm:$0xff] }
 0x73a   :  { %13788 = vmatprep.subr.bf16.mxu0 %v18027_v61  ;;  %13952 = vmatprep.subr.bf16.mxu1 %v18029_v63  ;;  %v18077_v61 = vcombine.high %v10439_v38, %v10443_v59  ;;  %v10446_v63 = vld [vmem:[#allocation11 + $0x1d0] sm:$0xff]  ;;  %v10483_v54 = vld [vmem:[#allocation11 + $0x2f8] sm:$0xff] }
 0x73b   :  { %v18082_v0 = vcombine.low %v10446_v63, %v10450_v2 }
 0x73c   :  { %13616 = vmatmul.mubr.bf16.vlgmr.msra.gmra.mrb[16].mxu0 %v20416_v14  ;;  %13780 = vmatmul.mubr.bf16.vlgmr.msra.gmra.mrb[16].mxu1 %v20416_v14 }
 0x73d   :  { %13789 = vmatpush1.bf16.msra.mxu0 %v18026_v9  ;;  %13820 = vmatprep.mubr.bf16.mxu0 %v20348_v17  ;;  %v18076_v9 = vcombine.low %v10439_v38, %v10443_v59  ;;  %v10491_v38 = vld [vmem:[#allocation11 + $0x338] sm:$0xff] }
 0x73e   :  { %13953 = vmatpush1.bf16.msra.mxu1 %v18028_v10  ;;  %13984 = vmatprep.mubr.bf16.mxu1 %v20348_v17  ;;  %v10423_v17 = vld [vmem:[#allocation11 + $0x118] sm:$0xff]  ;;  %v18083_v10 = vcombine.high %v10446_v63, %v10450_v2  ;;  %v10498_v63 = vld [vmem:[#allocation11 + $0x370] sm:$0xff] }
 0x73f   :  { %13790 = vmatprep.subr.bf16.mxu0 %v18035_v55  ;;  %13954 = vmatprep.subr.bf16.mxu1 %v18037_v1  ;;  %v18061_v30 = vcombine.high %v10423_v17, %v10427_v37  ;;  %v18060_v51 = vcombine.low %v10423_v17, %v10427_v37  ;;  %v18085_v55 = vcombine.high %v10447_v7, %v10451_v8  ;;  %v10454_v1 = vld [vmem:[#allocation11 + $0x210] sm:$0xff]  ;;  %v10475_v17 = vld [vmem:[#allocation11 + $0x2b8] sm:$0xff] }
 0x740   :  { %v18090_v21 = vcombine.low %v10454_v1, %v10458_v5  ;;  %v10495_v2 = vld [vmem:[#allocation11 + $0x358] sm:$0xff] }
 0x741   :  { %13791 = vmatpush1.bf16.msra.mxu0 %v18034_v62  ;;  %v18084_v62 = vcombine.low %v10447_v7, %v10451_v8  ;;  %v10499_v7 = vld [vmem:[#allocation11 + $0x378] sm:$0xff] }
 0x742   :  { %13955 = vmatpush1.bf16.msra.mxu1 %v18036_v15  ;;  %13792 = vmatprep.subr.bf16.mxu0 %v18043_v29  ;;  %v18091_v15 = vcombine.high %v10454_v1, %v10458_v5  ;;  %v18093_v29 = vcombine.high %v10455_v11, %v10459_v6  ;;  %v10506_v1 = vld [vmem:[#allocation11 + $0x3b0] sm:$0xff]  ;;  %v10503_v5 = vld [vmem:[#allocation11 + $0x398] sm:$0xff] }
 0x743   :  { %13956 = vmatprep.subr.bf16.mxu1 %v18045_v16  ;;  %v10462_v16 = vld [vmem:[#allocation11 + $0x250] sm:$0xff] }
 0x744   :  { %v18098_v37 = vcombine.low %v10462_v16, %v10466_v27 }
 0x745   :  { %13793 = vmatpush1.bf16.msra.mxu0 %v18042_v47  ;;  %v18092_v47 = vcombine.low %v10455_v11, %v10459_v6  ;;  %v10507_v11 = vld [vmem:[#allocation11 + $0x3b8] sm:$0xff] }
 0x746   :  { %13957 = vmatpush1.bf16.msra.mxu1 %v18044_v26  ;;  %13794 = vmatprep.subr.bf16.mxu0 %v18051_v32  ;;  %v18099_v26 = vcombine.high %v10462_v16, %v10466_v27  ;;  %v18101_v32 = vcombine.high %v10463_v34, %v10467_v31  ;;  %v10514_v16 = vld [vmem:[#allocation11 + $0x3f0] sm:$0xff]  ;;  %v10511_v27 = vld [vmem:[#allocation11 + $0x3d8] sm:$0xff] }
 0x747   :  { %13958 = vmatprep.subr.bf16.mxu1 %v18053_v41  ;;  %v10470_v41 = vld [vmem:[#allocation11 + $0x290] sm:$0xff] }
 0x748   :  { %v18106_v22 = vcombine.low %v10470_v41, %v10474_v18 }
 0x749   :  { %13795 = vmatpush1.bf16.msra.mxu0 %v18050_v57  ;;  %v18100_v57 = vcombine.low %v10463_v34, %v10467_v31  ;;  %v10515_v34 = vld [vmem:[#allocation11 + $0x3f8] sm:$0xff] }
 0x74a   :  { %13959 = vmatpush1.bf16.msra.mxu1 %v18052_v28  ;;  %13796 = vmatprep.subr.bf16.mxu0 %v18059_v39  ;;  %v18107_v28 = vcombine.high %v10470_v41, %v10474_v18  ;;  %v18109_v39 = vcombine.high %v10471_v13, %v10475_v17  ;;  %v10522_v41 = vld [vmem:[#allocation11 + $0x430] sm:$0xff]  ;;  %v10519_v18 = vld [vmem:[#allocation11 + $0x418] sm:$0xff] }
 0x74b   :  { %13960 = vmatprep.subr.bf16.mxu1 %v18061_v30  ;;  %v10478_v30 = vld [vmem:[#allocation11 + $0x2d0] sm:$0xff] }
 0x74c   :  { %v18114_v59 = vcombine.low %v10478_v30, %v10482_v42 }
 0x74d   :  { %13797 = vmatpush1.bf16.msra.mxu0 %v18058_v49  ;;  %v18108_v49 = vcombine.low %v10471_v13, %v10475_v17  ;;  %v10523_v13 = vld [vmem:[#allocation11 + $0x438] sm:$0xff] }
 0x74e   :  { %13961 = vmatpush1.bf16.msra.mxu1 %v18060_v51  ;;  %13798 = vmatprep.subr.bf16.mxu0 %v18067_v3  ;;  %v18115_v51 = vcombine.high %v10478_v30, %v10482_v42  ;;  %v18117_v3 = vcombine.high %v10479_v12, %v10483_v54  ;;  %v10530_v30 = vld [vmem:[#allocation11 + $0x470] sm:$0xff] }
 0x74f   :  { %13962 = vmatprep.subr.bf16.mxu1 %v18069_v53  ;;  %v10486_v53 = vld [vmem:[#allocation11 + $0x310] sm:$0xff] }
 0x750   :  { %v18122_v8 = vcombine.low %v10486_v53, %v10490_v56 }
 0x751   :  { %13799 = vmatpush1.bf16.msra.mxu0 %v18066_v35  ;;  %v18116_v35 = vcombine.low %v10479_v12, %v10483_v54  ;;  %v10527_v12 = vld [vmem:[#allocation11 + $0x458] sm:$0xff] }
 0x752   :  { %13963 = vmatpush1.bf16.msra.mxu1 %v18068_v44  ;;  %13800 = vmatprep.subr.bf16.mxu0 %v18075_v60  ;;  %v18123_v44 = vcombine.high %v10486_v53, %v10490_v56  ;;  %v18125_v60 = vcombine.high %v10487_v33, %v10491_v38  ;;  %v10531_v54 = vld [vmem:[#allocation11 + $0x478] sm:$0xff] }
 0x753   :  { %13964 = vmatprep.subr.bf16.mxu1 %v18077_v61  ;;  %v10494_v61 = vld [vmem:[#allocation11 + $0x350] sm:$0xff]  ;;  %v18165_v53 = vcombine.high %v10527_v12, %v10531_v54  ;;  %v10535_v56 = vld [vmem:[#allocation11 + $0x498] sm:$0xff] }
 0x754   :  { %v18130_v6 = vcombine.low %v10494_v61, %v10498_v63 }
 0x755   :  { %13801 = vmatpush1.bf16.msra.mxu0 %v18074_v52  ;;  %v18124_v52 = vcombine.low %v10487_v33, %v10491_v38  ;;  %v10539_v33 = vld [vmem:[#allocation11 + $0x4b8] sm:$0xff] }
 0x756   :  { %13965 = vmatpush1.bf16.msra.mxu1 %v18076_v9  ;;  %13802 = vmatprep.subr.bf16.mxu0 %v18083_v10  ;;  %v18131_v9 = vcombine.high %v10494_v61, %v10498_v63  ;;  %v18133_v10 = vcombine.high %v10495_v2, %v10499_v7  ;;  %v10546_v61 = vld [vmem:[#allocation11 + $0x4f0] sm:$0xff]  ;;  %v10543_v63 = vld [vmem:[#allocation11 + $0x4d8] sm:$0xff] }
 0x757   :  { %13966 = vmatprep.subr.bf16.mxu1 %v18085_v55  ;;  %v10502_v55 = vld [vmem:[#allocation11 + $0x390] sm:$0xff] }
 0x758   :  { %v18138_v31 = vcombine.low %v10502_v55, %v10506_v1 }
 0x759   :  { %13803 = vmatpush1.bf16.msra.mxu0 %v18082_v0  ;;  %v18132_v0 = vcombine.low %v10495_v2, %v10499_v7  ;;  %v10547_v2 = vld [vmem:[#allocation11 + $0x4f8] sm:$0xff] }
 0x75a   :  { %13967 = vmatpush1.bf16.msra.mxu1 %v18084_v62  ;;  %13804 = vmatprep.subr.bf16.mxu0 %v18091_v15  ;;  %v18139_v62 = vcombine.high %v10502_v55, %v10506_v1  ;;  %v18141_v15 = vcombine.high %v10503_v5, %v10507_v11  ;;  %v10551_v55 = vld [vmem:[#allocation11 + $0x518] sm:$0xff] }
 0x75b   :  { %13968 = vmatprep.subr.bf16.mxu1 %v18093_v29  ;;  %v10510_v29 = vld [vmem:[#allocation11 + $0x3d0] sm:$0xff]  ;;  %v10555_v1 = vld [vmem:[#allocation11 + $0x538] sm:$0xff] }
 0x75c   :  { %v18146_v17 = vcombine.low %v10510_v29, %v10514_v16 }
 0x75d   :  { %13805 = vmatpush1.bf16.msra.mxu0 %v18090_v21  ;;  %v18140_v21 = vcombine.low %v10503_v5, %v10507_v11  ;;  %v18180_v5 = vcombine.low %v10543_v63, %v10547_v2 }
 0x75e   :  { %13969 = vmatpush1.bf16.msra.mxu1 %v18092_v47  ;;  %13806 = vmatprep.subr.bf16.mxu0 %v18099_v26  ;;  %v18147_v47 = vcombine.high %v10510_v29, %v10514_v16  ;;  %v18149_v26 = vcombine.high %v10511_v27, %v10515_v34  ;;  %v10563_v29 = vld [vmem:[#allocation11 + $0x578] sm:$0xff] }
 0x75f   :  { %13970 = vmatprep.subr.bf16.mxu1 %v18101_v32  ;;  %v10518_v32 = vld [vmem:[#allocation11 + $0x410] sm:$0xff] }
 0x760   :  { %v18154_v42 = vcombine.low %v10518_v32, %v10522_v41 }
 0x761   :  { %13807 = vmatpush1.bf16.msra.mxu0 %v18098_v37  ;;  %v18148_v37 = vcombine.low %v10511_v27, %v10515_v34  ;;  %v18188_v27 = vcombine.low %v10551_v55, %v10555_v1 }
 0x762   :  { %13971 = vmatpush1.bf16.msra.mxu1 %v18100_v57  ;;  %13808 = vmatprep.subr.bf16.mxu0 %v18107_v28  ;;  %v18155_v57 = vcombine.high %v10518_v32, %v10522_v41  ;;  %v18157_v28 = vcombine.high %v10519_v18, %v10523_v13  ;;  %v10571_v32 = vld [vmem:[#allocation11 + $0x5b8] sm:$0xff] }
 0x763   :  { %13972 = vmatprep.subr.bf16.mxu1 %v18109_v39  ;;  %v10526_v39 = vld [vmem:[#allocation11 + $0x450] sm:$0xff] }
 0x764   :  { %v18162_v38 = vcombine.low %v10526_v39, %v10530_v30 }
 0x765   :  { %13809 = vmatpush1.bf16.msra.mxu0 %v18106_v22  ;;  %v18156_v22 = vcombine.low %v10519_v18, %v10523_v13 }
 0x766   :  { %13973 = vmatpush1.bf16.msra.mxu1 %v18108_v49  ;;  %13810 = vmatprep.subr.bf16.mxu0 %v18115_v51  ;;  %v18163_v49 = vcombine.high %v10526_v39, %v10530_v30  ;;  %v10534_v51 = vld [vmem:[#allocation11 + $0x490] sm:$0xff]  ;;  %v10579_v39 = vld [vmem:[#allocation11 + $0x5f8] sm:$0xff] }
 0x767   :  { %13974 = vmatprep.subr.bf16.mxu1 %v18117_v3  ;;  %v10538_v3 = vld [vmem:[#allocation11 + $0x4b0] sm:$0xff] }
 0x768   :  { %v18170_v7 = vcombine.low %v10534_v51, %v10538_v3 }
 0x769   :  { %13811 = vmatpush1.bf16.msra.mxu0 %v18114_v59  ;;  %v18164_v59 = vcombine.low %v10527_v12, %v10531_v54 }
 0x76a   :  { %13975 = vmatpush1.bf16.msra.mxu1 %v18116_v35  ;;  %13812 = vmatprep.subr.bf16.mxu0 %v18123_v44  ;;  %v18171_v35 = vcombine.high %v10534_v51, %v10538_v3  ;;  %v18173_v44 = vcombine.high %v10535_v56, %v10539_v33  ;;  %v10583_v51 = vld [vmem:[#allocation11 + $0x618] sm:$0xff] }
 0x76b   :  { %13976 = vmatprep.subr.bf16.mxu1 %v18125_v60  ;;  %v10542_v60 = vld [vmem:[#allocation11 + $0x4d0] sm:$0xff]  ;;  %v10587_v3 = vld [vmem:[#allocation11 + $0x638] sm:$0xff] }
 0x76d   :  { %13813 = vmatpush1.bf16.msra.mxu0 %v18122_v8  ;;  %v18179_v8 = vcombine.high %v10542_v60, %v10546_v61 }
 0x76e   :  { %13977 = vmatpush1.bf16.msra.mxu1 %v18124_v52  ;;  %13814 = vmatprep.subr.bf16.mxu0 %v18131_v9  ;;  %v18181_v52 = vcombine.high %v10543_v63, %v10547_v2  ;;  %v10550_v9 = vld [vmem:[#allocation11 + $0x510] sm:$0xff]  ;;  %v18220_v63 = vcombine.low %v10583_v51, %v10587_v3 }
 0x76f   :  { %13978 = vmatprep.subr.bf16.mxu1 %v18133_v10  ;;  %v10554_v10 = vld [vmem:[#allocation11 + $0x530] sm:$0xff] }
 0x770   :  { %v18187_v11 = vcombine.high %v10550_v9, %v10554_v10  ;;  %v18186_v16 = vcombine.low %v10550_v9, %v10554_v10  ;;  %v10603_v9 = vld [vmem:[#allocation11 + $0x6b8] sm:$0xff] }
 0x771   :  { %13815 = vmatpush1.bf16.msra.mxu0 %v18130_v6  ;;  %v18189_v6 = vcombine.high %v10551_v55, %v10555_v1 }
 0x772   :  { %13979 = vmatpush1.bf16.msra.mxu1 %v18132_v0  ;;  %13816 = vmatprep.subr.bf16.mxu0 %v18139_v62  ;;  %v10558_v0 = vld [vmem:[#allocation11 + $0x550] sm:$0xff] }
 0x773   :  { %13980 = vmatprep.subr.bf16.mxu1 %v18141_v15  ;;  %v10562_v62 = vld [vmem:[#allocation11 + $0x570] sm:$0xff]  ;;  %v10559_v15 = vld [vmem:[#allocation11 + $0x558] sm:$0xff] }
 0x774   :  { %v18195_v34 = vcombine.high %v10558_v0, %v10562_v62  ;;  %v18194_v41 = vcombine.low %v10558_v0, %v10562_v62  ;;  %v18196_v18 = vcombine.low %v10559_v15, %v10563_v29  ;;  %v10611_v0 = vld [vmem:[#allocation11 + $0x6f8] sm:$0xff] }
 0x775   :  { %13817 = vmatpush1.bf16.msra.mxu0 %v18138_v31  ;;  %v18197_v31 = vcombine.high %v10559_v15, %v10563_v29 }
 0x776   :  { %13981 = vmatpush1.bf16.msra.mxu1 %v18140_v21  ;;  %13818 = vmatprep.subr.bf16.mxu0 %v18147_v47  ;;  %v10566_v21 = vld [vmem:[#allocation11 + $0x590] sm:$0xff] }
 0x777   :  { %13982 = vmatprep.subr.bf16.mxu1 %v18149_v26  ;;  %v10570_v47 = vld [vmem:[#allocation11 + $0x5b0] sm:$0xff]  ;;  %v10567_v26 = vld [vmem:[#allocation11 + $0x598] sm:$0xff] }
 0x778   :  { %v18203_v13 = vcombine.high %v10566_v21, %v10570_v47  ;;  %v18202_v30 = vcombine.low %v10566_v21, %v10570_v47  ;;  %v10619_v21 = vld [vmem:[#allocation11 + $0x738] sm:$0xff] }
 0x779   :  { %13819 = vmatpush1.bf16.msra.mxu0 %v18146_v17  ;;  %v18205_v17 = vcombine.high %v10567_v26, %v10571_v32 }
 0x77a   :  { %13983 = vmatpush1.bf16.msra.mxu1 %v18148_v37  ;;  %13829 = vmatprep.subr.bf16.mxu0 %v18155_v57  ;;  %v10574_v37 = vld [vmem:[#allocation11 + $0x5d0] sm:$0xff] }
 0x77b   :  { %13993 = vmatprep.subr.bf16.mxu1 %v18157_v28  ;;  %v10578_v57 = vld [vmem:[#allocation11 + $0x5f0] sm:$0xff]  ;;  %v10575_v28 = vld [vmem:[#allocation11 + $0x5d8] sm:$0xff] }
 0x77c   :  { %13821 = vmatmul.mubr.bf16.vlgmr.msra.gmra.mrb[20].mxu0 %v20356_v46  ;;  %v18211_v12 = vcombine.high %v10574_v37, %v10578_v57  ;;  %v18213_v54 = vcombine.high %v10575_v28, %v10579_v39 }
 0x77d   :  { %13985 = vmatmul.mubr.bf16.vlgmr.msra.gmra.mrb[20].mxu1 %v20356_v46  ;;  %13830 = vmatpush1.bf16.msra.mxu0 %v18154_v42  ;;  %v18172_v46 = vcombine.low %v10535_v56, %v10539_v33  ;;  %v18204_v42 = vcombine.low %v10567_v26, %v10571_v32  ;;  %v18212_v56 = vcombine.low %v10575_v28, %v10579_v39 }
 0x77e   :  { %13861 = vmatprep.mubr.bf16.mxu0 %v20358_v58  ;;  %13994 = vmatpush1.bf16.msra.mxu1 %v18156_v22  ;;  %v10582_v22 = vld [vmem:[#allocation11 + $0x610] sm:$0xff] }
 0x77f   :  { %14025 = vmatprep.mubr.bf16.mxu1 %v20358_v58  ;;  %13831 = vmatprep.subr.bf16.mxu0 %v18163_v49  ;;  %v18178_v58 = vcombine.low %v10542_v60, %v10546_v61  ;;  %v10586_v49 = vld [vmem:[#allocation11 + $0x630] sm:$0xff]  ;;  %v10595_v60 = vld [vmem:[#allocation11 + $0x678] sm:$0xff] }
 0x780   :  { %13995 = vmatprep.subr.bf16.mxu1 %v18165_v53  ;;  %v18210_v53 = vcombine.low %v10574_v37, %v10578_v57  ;;  %v18219_v33 = vcombine.high %v10582_v22, %v10586_v49  ;;  %v18218_v61 = vcombine.low %v10582_v22, %v10586_v49  ;;  %v10627_v37 = vld [vmem:[#allocation11 + $0x778] sm:$0xff] }
 0x781   :  { %13832 = vmatpush1.bf16.msra.mxu0 %v18162_v38  ;;  %v18221_v38 = vcombine.high %v10583_v51, %v10587_v3  ;;  %v10635_v22 = vld [vmem:[#allocation11 + $0x7b8] sm:$0xff] }
 0x782   :  { %13996 = vmatpush1.bf16.msra.mxu1 %v18164_v59  ;;  %13833 = vmatprep.subr.bf16.mxu0 %v18171_v35  ;;  %v10590_v59 = vld [vmem:[#allocation11 + $0x650] sm:$0xff] }
 0x783   :  { %13997 = vmatprep.subr.bf16.mxu1 %v18173_v44  ;;  %v10594_v35 = vld [vmem:[#allocation11 + $0x670] sm:$0xff]  ;;  %v10591_v44 = vld [vmem:[#allocation11 + $0x658] sm:$0xff] }
 0x784   :  { %v18227_v2 = vcombine.high %v10590_v59, %v10594_v35  ;;  %v18226_v10 = vcombine.low %v10590_v59, %v10594_v35  ;;  %v18228_v55 = vcombine.low %v10591_v44, %v10595_v60  ;;  %v10643_v59 = vld [vmem:[#allocation11 + $0x7f8] sm:$0xff] }
 0x785   :  { %13834 = vmatpush1.bf16.msra.mxu0 %v18170_v7  ;;  %v18229_v7 = vcombine.high %v10591_v44, %v10595_v60 }
 0x786   :  { %13998 = vmatpush1.bf16.msra.mxu1 %v18172_v46  ;;  %13835 = vmatprep.subr.bf16.mxu0 %v18179_v8  ;;  %v10598_v46 = vld [vmem:[#allocation11 + $0x690] sm:$0xff] }
 0x787   :  { %13999 = vmatprep.subr.bf16.mxu1 %v18181_v52  ;;  %v10602_v8 = vld [vmem:[#allocation11 + $0x6b0] sm:$0xff]  ;;  %v10599_v52 = vld [vmem:[#allocation11 + $0x698] sm:$0xff] }
 0x788   :  { %v18235_v1 = vcombine.high %v10598_v46, %v10602_v8  ;;  %v18234_v62 = vcombine.low %v10598_v46, %v10602_v8  ;;  %v18236_v15 = vcombine.low %v10599_v52, %v10603_v9  ;;  %v10651_v46 = vld [vmem:[#allocation11 + $0x838] sm:$0xff] }
 0x789   :  { %13836 = vmatpush1.bf16.msra.mxu0 %v18178_v58  ;;  %v18237_v58 = vcombine.high %v10599_v52, %v10603_v9 }
 0x78a   :  { %14000 = vmatpush1.bf16.msra.mxu1 %v18180_v5  ;;  %13837 = vmatprep.subr.bf16.mxu0 %v18187_v11  ;;  %v10606_v5 = vld [vmem:[#allocation11 + $0x6d0] sm:$0xff] }
 0x78b   :  { %14001 = vmatprep.subr.bf16.mxu1 %v18189_v6  ;;  %v10610_v11 = vld [vmem:[#allocation11 + $0x6f0] sm:$0xff]  ;;  %v10607_v6 = vld [vmem:[#allocation11 + $0x6d8] sm:$0xff] }
 0x78c   :  { %v18243_v29 = vcombine.high %v10606_v5, %v10610_v11  ;;  %v18242_v47 = vcombine.low %v10606_v5, %v10610_v11  ;;  %v18244_v26 = vcombine.low %v10607_v6, %v10611_v0  ;;  %v10655_v5 = vld [vmem:[#allocation11 + $0x858] sm:$0xff] }
 0x78d   :  { %13838 = vmatpush1.bf16.msra.mxu0 %v18186_v16  ;;  %v18245_v16 = vcombine.high %v10607_v6, %v10611_v0  ;;  %v10659_v11 = vld [vmem:[#allocation11 + $0x878] sm:$0xff] }
 0x78e   :  { %14002 = vmatpush1.bf16.msra.mxu1 %v18188_v27  ;;  %13839 = vmatprep.subr.bf16.mxu0 %v18195_v34  ;;  %v10614_v27 = vld [vmem:[#allocation11 + $0x710] sm:$0xff] }
 0x78f   :  { %14003 = vmatprep.subr.bf16.mxu1 %v18197_v31  ;;  %v10618_v34 = vld [vmem:[#allocation11 + $0x730] sm:$0xff]  ;;  %v10615_v31 = vld [vmem:[#allocation11 + $0x718] sm:$0xff] }
 0x790   :  { %v18251_v32 = vcombine.high %v10614_v27, %v10618_v34  ;;  %v18250_v57 = vcombine.low %v10614_v27, %v10618_v34  ;;  %v18252_v28 = vcombine.low %v10615_v31, %v10619_v21  ;;  %v10667_v27 = vld [vmem:[#allocation11 + $0x8b8] sm:$0xff] }
 0x791   :  { %13840 = vmatpush1.bf16.msra.mxu0 %v18194_v41  ;;  %v18253_v41 = vcombine.high %v10615_v31, %v10619_v21  ;;  %v18292_v31 = vcombine.low %v10655_v5, %v10659_v11 }
 0x792   :  { %14004 = vmatpush1.bf16.msra.mxu1 %v18196_v18  ;;  %13841 = vmatprep.subr.bf16.mxu0 %v18203_v13  ;;  %v10622_v18 = vld [vmem:[#allocation11 + $0x750] sm:$0xff] }
 0x793   :  { %14005 = vmatprep.subr.bf16.mxu1 %v18205_v17  ;;  %v10626_v13 = vld [vmem:[#allocation11 + $0x770] sm:$0xff]  ;;  %v10623_v17 = vld [vmem:[#allocation11 + $0x758] sm:$0xff] }
 0x794   :  { %v18259_v39 = vcombine.high %v10622_v18, %v10626_v13  ;;  %v18258_v49 = vcombine.low %v10622_v18, %v10626_v13  ;;  %v18260_v51 = vcombine.low %v10623_v17, %v10627_v37  ;;  %v10675_v18 = vld [vmem:[#allocation11 + $0x8f8] sm:$0xff] }
 0x795   :  { %13842 = vmatpush1.bf16.msra.mxu0 %v18202_v30  ;;  %v18261_v30 = vcombine.high %v10623_v17, %v10627_v37 }
 0x796   :  { %14006 = vmatpush1.bf16.msra.mxu1 %v18204_v42  ;;  %13843 = vmatprep.subr.bf16.mxu0 %v18211_v12  ;;  %v10630_v42 = vld [vmem:[#allocation11 + $0x790] sm:$0xff] }
 0x797   :  { %14007 = vmatprep.subr.bf16.mxu1 %v18213_v54  ;;  %v10634_v12 = vld [vmem:[#allocation11 + $0x7b0] sm:$0xff]  ;;  %v10631_v54 = vld [vmem:[#allocation11 + $0x798] sm:$0xff] }
 0x798   :  { %v18267_v3 = vcombine.high %v10630_v42, %v10634_v12  ;;  %v18266_v35 = vcombine.low %v10630_v42, %v10634_v12  ;;  %v18268_v44 = vcombine.low %v10631_v54, %v10635_v22 }
 0x799   :  { %13844 = vmatpush1.bf16.msra.mxu0 %v18210_v53  ;;  %v18269_v53 = vcombine.high %v10631_v54, %v10635_v22  ;;  %v10686_v22 = vld [vmem:[#allocation11 + $0x950] sm:$0xff] }
 0x79a   :  { %14008 = vmatpush1.bf16.msra.mxu1 %v18212_v56  ;;  %13845 = vmatprep.subr.bf16.mxu0 %v18219_v33  ;;  %v10638_v56 = vld [vmem:[#allocation11 + $0x7d0] sm:$0xff] }
 0x79b   :  { %14009 = vmatprep.subr.bf16.mxu1 %v18221_v38  ;;  %v10642_v33 = vld [vmem:[#allocation11 + $0x7f0] sm:$0xff]  ;;  %v10639_v38 = vld [vmem:[#allocation11 + $0x7d8] sm:$0xff] }
 0x79c   :  { %v18275_v60 = vcombine.high %v10638_v56, %v10642_v33  ;;  %v18274_v8 = vcombine.low %v10638_v56, %v10642_v33  ;;  %v18276_v52 = vcombine.low %v10639_v38, %v10643_v59 }
 0x79d   :  { %13846 = vmatpush1.bf16.msra.mxu0 %v18218_v61  ;;  %v18277_v61 = vcombine.high %v10639_v38, %v10643_v59  ;;  %v10694_v59 = vld [vmem:[#allocation11 + $0x990] sm:$0xff] }
 0x79e   :  { %14010 = vmatpush1.bf16.msra.mxu1 %v18220_v63  ;;  %13847 = vmatprep.subr.bf16.mxu0 %v18227_v2  ;;  %v10646_v63 = vld [vmem:[#allocation11 + $0x810] sm:$0xff] }
 0x79f   :  { %14011 = vmatprep.subr.bf16.mxu1 %v18229_v7  ;;  %v10650_v2 = vld [vmem:[#allocation11 + $0x830] sm:$0xff]  ;;  %v10647_v7 = vld [vmem:[#allocation11 + $0x818] sm:$0xff] }
 0x7a0   :  { %v18283_v9 = vcombine.high %v10646_v63, %v10650_v2  ;;  %v18284_v6 = vcombine.low %v10647_v7, %v10651_v46 }
 0x7a1   :  { %13848 = vmatpush1.bf16.msra.mxu0 %v18226_v10  ;;  %v18285_v10 = vcombine.high %v10647_v7, %v10651_v46  ;;  %v10702_v46 = vld [vmem:[#allocation11 + $0x9d0] sm:$0xff] }
 0x7a2   :  { %14012 = vmatpush1.bf16.msra.mxu1 %v18228_v55  ;;  %13849 = vmatprep.subr.bf16.mxu0 %v18235_v1  ;;  %v10654_v55 = vld [vmem:[#allocation11 + $0x850] sm:$0xff] }
 0x7a3   :  { %14013 = vmatprep.subr.bf16.mxu1 %v18237_v58  ;;  %v10658_v1 = vld [vmem:[#allocation11 + $0x870] sm:$0xff]  ;;  %v18282_v58 = vcombine.low %v10646_v63, %v10650_v2 }
 0x7a4   :  { %v18291_v0 = vcombine.high %v10654_v55, %v10658_v1  ;;  %v18290_v34 = vcombine.low %v10654_v55, %v10658_v1 }
 0x7a5   :  { %13850 = vmatpush1.bf16.msra.mxu0 %v18234_v62  ;;  %v10662_v62 = vld [vmem:[#allocation11 + $0x890] sm:$0xff] }
 0x7a6   :  { %14014 = vmatpush1.bf16.msra.mxu1 %v18236_v15  ;;  %13851 = vmatprep.subr.bf16.mxu0 %v18243_v29  ;;  %v10666_v15 = vld [vmem:[#allocation11 + $0x8b0] sm:$0xff]  ;;  %v18293_v29 = vcombine.high %v10655_v5, %v10659_v11 }
 0x7a7   :  { %14015 = vmatprep.subr.bf16.mxu1 %v18245_v16  ;;  %v10663_v16 = vld [vmem:[#allocation11 + $0x898] sm:$0xff]  ;;  %v18299_v21 = vcombine.high %v10662_v62, %v10666_v15  ;;  %v18298_v13 = vcombine.low %v10662_v62, %v10666_v15  ;;  %v10710_v5 = vld [vmem:[#allocation11 + $0xa10] sm:$0xff] }
 0x7a8   :  { %v10714_v11 = vld [vmem:[#allocation11 + $0xa30] sm:$0xff] }
 0x7a9   :  { %13852 = vmatpush1.bf16.msra.mxu0 %v18242_v47  ;;  %v18301_v47 = vcombine.high %v10663_v16, %v10667_v27 }
 0x7aa   :  { %14016 = vmatpush1.bf16.msra.mxu1 %v18244_v26  ;;  %13853 = vmatprep.subr.bf16.mxu0 %v18251_v32  ;;  %v10670_v26 = vld [vmem:[#allocation11 + $0x8d0] sm:$0xff] }
 0x7ab   :  { %14017 = vmatprep.subr.bf16.mxu1 %v18253_v41  ;;  %v10674_v32 = vld [vmem:[#allocation11 + $0x8f0] sm:$0xff]  ;;  %v10671_v41 = vld [vmem:[#allocation11 + $0x8d8] sm:$0xff] }
 0x7ac   :  { %v18307_v17 = vcombine.high %v10670_v26, %v10674_v32  ;;  %v18309_v37 = vcombine.high %v10671_v41, %v10675_v18  ;;  %v18308_v42 = vcombine.low %v10671_v41, %v10675_v18  ;;  %v10726_v18 = vld [vmem:[#allocation11 + $0xa90] sm:$0xff] }
 0x7ad   :  { %13854 = vmatpush1.bf16.msra.mxu0 %v18250_v57  ;;  %v10678_v57 = vld [vmem:[#allocation11 + $0x910] sm:$0xff] }
 0x7ae   :  { %14018 = vmatpush1.bf16.msra.mxu1 %v18252_v28  ;;  %13855 = vmatprep.subr.bf16.mxu0 %v18259_v39  ;;  %v10682_v28 = vld [vmem:[#allocation11 + $0x930] sm:$0xff]  ;;  %v10679_v39 = vld [vmem:[#allocation11 + $0x918] sm:$0xff] }
 0x7af   :  { %14019 = vmatprep.subr.bf16.mxu1 %v18261_v30  ;;  %v10683_v30 = vld [vmem:[#allocation11 + $0x938] sm:$0xff]  ;;  %v18315_v12 = vcombine.high %v10678_v57, %v10682_v28 }
 0x7b0   :  { %v18317_v54 = vcombine.high %v10679_v39, %v10683_v30  ;;  %v18316_v56 = vcombine.low %v10679_v39, %v10683_v30  ;;  %v10734_v30 = vld [vmem:[#allocation11 + $0xad0] sm:$0xff] }
 0x7b1   :  { %13856 = vmatpush1.bf16.msra.mxu0 %v18258_v49  ;;  %v10690_v49 = vld [vmem:[#allocation11 + $0x970] sm:$0xff] }
 0x7b2   :  { %14020 = vmatpush1.bf16.msra.mxu1 %v18260_v51  ;;  %13857 = vmatprep.subr.bf16.mxu0 %v18267_v3  ;;  %v10687_v51 = vld [vmem:[#allocation11 + $0x958] sm:$0xff]  ;;  %v18323_v33 = vcombine.high %v10686_v22, %v10690_v49 }
 0x7b3   :  { %14021 = vmatprep.subr.bf16.mxu1 %v18269_v53  ;;  %v10691_v3 = vld [vmem:[#allocation11 + $0x978] sm:$0xff]  ;;  %v18314_v53 = vcombine.low %v10678_v57, %v10682_v28 }
 0x7b4   :  { %v18325_v38 = vcombine.high %v10687_v51, %v10691_v3  ;;  %v18324_v63 = vcombine.low %v10687_v51, %v10691_v3  ;;  %v10742_v3 = vld [vmem:[#allocation11 + $0xb10] sm:$0xff] }
 0x7b5   :  { %13858 = vmatpush1.bf16.msra.mxu0 %v18266_v35  ;;  %v10698_v35 = vld [vmem:[#allocation11 + $0x9b0] sm:$0xff] }
 0x7b6   :  { %14022 = vmatpush1.bf16.msra.mxu1 %v18268_v44  ;;  %13859 = vmatprep.subr.bf16.mxu0 %v18275_v60  ;;  %v10695_v44 = vld [vmem:[#allocation11 + $0x998] sm:$0xff]  ;;  %v18331_v2 = vcombine.high %v10694_v59, %v10698_v35 }
 0x7b7   :  { %14023 = vmatprep.subr.bf16.mxu1 %v18277_v61  ;;  %v10699_v60 = vld [vmem:[#allocation11 + $0x9b8] sm:$0xff]  ;;  %v18322_v61 = vcombine.low %v10686_v22, %v10690_v49 }
 0x7b8   :  { %v18333_v7 = vcombine.high %v10695_v44, %v10699_v60  ;;  %v18332_v55 = vcombine.low %v10695_v44, %v10699_v60  ;;  %v10750_v60 = vld [vmem:[#allocation11 + $0xb50] sm:$0xff] }
 0x7b9   :  { %13860 = vmatpush1.bf16.msra.mxu0 %v18274_v8  ;;  %v10706_v8 = vld [vmem:[#allocation11 + $0x9f0] sm:$0xff] }
 0x7ba   :  { %14024 = vmatpush1.bf16.msra.mxu1 %v18276_v52  ;;  %13870 = vmatprep.subr.bf16.mxu0 %v18283_v9  ;;  %v10703_v52 = vld [vmem:[#allocation11 + $0x9d8] sm:$0xff]  ;;  %v18339_v1 = vcombine.high %v10702_v46, %v10706_v8  ;;  %v18338_v62 = vcombine.low %v10702_v46, %v10706_v8 }
 0x7bb   :  { %14034 = vmatprep.subr.bf16.mxu1 %v18285_v10  ;;  %v10707_v9 = vld [vmem:[#allocation11 + $0x9f8] sm:$0xff]  ;;  %v18330_v10 = vcombine.low %v10694_v59, %v10698_v35 }
 0x7bc   :  { %13862 = vmatmul.mubr.bf16.vlgmr.msra.gmra.mrb[20].mxu0 %v20365_v25  ;;  %v18340_v15 = vcombine.low %v10703_v52, %v10707_v9 }
 0x7bd   :  { %14026 = vmatmul.mubr.bf16.vlgmr.msra.gmra.mrb[20].mxu1 %v20365_v25  ;;  %13871 = vmatpush1.bf16.msra.mxu0 %v18282_v58  ;;  %v18300_v25 = vcombine.low %v10663_v16, %v10667_v27  ;;  %v18341_v58 = vcombine.high %v10703_v52, %v10707_v9  ;;  %v10718_v27 = vld [vmem:[#allocation11 + $0xa50] sm:$0xff] }
 0x7be   :  { %13902 = vmatprep.mubr.bf16.mxu0 %v20399_v19  ;;  %14035 = vmatpush1.bf16.msra.mxu1 %v18284_v6  ;;  %v10711_v6 = vld [vmem:[#allocation11 + $0xa18] sm:$0xff]  ;;  %v10758_v9 = vld [vmem:[#allocation11 + $0xb90] sm:$0xff] }
 0x7bf   :  { %14066 = vmatprep.mubr.bf16.mxu1 %v20399_v19  ;;  %13872 = vmatprep.subr.bf16.mxu0 %v18291_v0  ;;  %v18306_v19 = vcombine.low %v10670_v26, %v10674_v32  ;;  %v10715_v0 = vld [vmem:[#allocation11 + $0xa38] sm:$0xff] }
 0x7c0   :  { %14036 = vmatprep.subr.bf16.mxu1 %v18293_v29  ;;  %v18347_v29 = vcombine.high %v10710_v5, %v10714_v11  ;;  %v18349_v16 = vcombine.high %v10711_v6, %v10715_v0  ;;  %v18348_v26 = vcombine.low %v10711_v6, %v10715_v0  ;;  %v10766_v0 = vld [vmem:[#allocation11 + $0xbd0] sm:$0xff] }
 0x7c1   :  { %13873 = vmatpush1.bf16.msra.mxu0 %v18290_v34  ;;  %v10722_v34 = vld [vmem:[#allocation11 + $0xa70] sm:$0xff] }
 0x7c2   :  { %14037 = vmatpush1.bf16.msra.mxu1 %v18292_v31  ;;  %13874 = vmatprep.subr.bf16.mxu0 %v18299_v21  ;;  %v10719_v31 = vld [vmem:[#allocation11 + $0xa58] sm:$0xff]  ;;  %v18355_v32 = vcombine.high %v10718_v27, %v10722_v34 }
 0x7c3   :  { %14038 = vmatprep.subr.bf16.mxu1 %v18301_v47  ;;  %v10723_v21 = vld [vmem:[#allocation11 + $0xa78] sm:$0xff]  ;;  %v18346_v47 = vcombine.low %v10710_v5, %v10714_v11 }
 0x7c4   :  { %v18357_v41 = vcombine.high %v10719_v31, %v10723_v21  ;;  %v18356_v57 = vcombine.low %v10719_v31, %v10723_v21  ;;  %v10774_v21 = vld [vmem:[#allocation11 + $0xc10] sm:$0xff] }
 0x7c5   :  { %13875 = vmatpush1.bf16.msra.mxu0 %v18298_v13  ;;  %v10730_v13 = vld [vmem:[#allocation11 + $0xab0] sm:$0xff] }
 0x7c6   :  { %14039 = vmatpush1.bf16.msra.mxu1 %v18300_v25  ;;  %13876 = vmatprep.subr.bf16.mxu0 %v18307_v17  ;;  %v10727_v25 = vld [vmem:[#allocation11 + $0xa98] sm:$0xff]  ;;  %v18363_v28 = vcombine.high %v10726_v18, %v10730_v13 }
 0x7c7   :  { %14040 = vmatprep.subr.bf16.mxu1 %v18309_v37  ;;  %v10731_v17 = vld [vmem:[#allocation11 + $0xab8] sm:$0xff]  ;;  %v18354_v37 = vcombine.low %v10718_v27, %v10722_v34 }
 0x7c8   :  { %v18365_v39 = vcombine.high %v10727_v25, %v10731_v17  ;;  %v18364_v22 = vcombine.low %v10727_v25, %v10731_v17  ;;  %v10782_v17 = vld [vmem:[#allocation11 + $0xc50] sm:$0xff] }
 0x7c9   :  { %13877 = vmatpush1.bf16.msra.mxu0 %v18306_v19  ;;  %v10738_v19 = vld [vmem:[#allocation11 + $0xaf0] sm:$0xff] }
 0x7ca   :  { %14041 = vmatpush1.bf16.msra.mxu1 %v18308_v42  ;;  %13878 = vmatprep.subr.bf16.mxu0 %v18315_v12  ;;  %v10735_v42 = vld [vmem:[#allocation11 + $0xad8] sm:$0xff]  ;;  %v18371_v49 = vcombine.high %v10734_v30, %v10738_v19 }
 0x7cb   :  { %14042 = vmatprep.subr.bf16.mxu1 %v18317_v54  ;;  %v10739_v12 = vld [vmem:[#allocation11 + $0xaf8] sm:$0xff]  ;;  %v18362_v54 = vcombine.low %v10726_v18, %v10730_v13 }
 0x7cc   :  { %v18373_v51 = vcombine.high %v10735_v42, %v10739_v12  ;;  %v18372_v59 = vcombine.low %v10735_v42, %v10739_v12  ;;  %v10790_v42 = vld [vmem:[#allocation11 + $0xc90] sm:$0xff] }
 0x7cd   :  { %13879 = vmatpush1.bf16.msra.mxu0 %v18314_v53  ;;  %v10746_v53 = vld [vmem:[#allocation11 + $0xb30] sm:$0xff] }
 0x7ce   :  { %14043 = vmatpush1.bf16.msra.mxu1 %v18316_v56  ;;  %13880 = vmatprep.subr.bf16.mxu0 %v18323_v33  ;;  %v10743_v56 = vld [vmem:[#allocation11 + $0xb18] sm:$0xff]  ;;  %v18379_v35 = vcombine.high %v10742_v3, %v10746_v53  ;;  %v10794_v12 = vld [vmem:[#allocation11 + $0xcb0] sm:$0xff] }
 0x7cf   :  { %14044 = vmatprep.subr.bf16.mxu1 %v18325_v38  ;;  %v10747_v33 = vld [vmem:[#allocation11 + $0xb38] sm:$0xff]  ;;  %v18370_v38 = vcombine.low %v10734_v30, %v10738_v19 }
 0x7d0   :  { %v18381_v44 = vcombine.high %v10743_v56, %v10747_v33  ;;  %v18380_v46 = vcombine.low %v10743_v56, %v10747_v33  ;;  %v10798_v33 = vld [vmem:[#allocation11 + $0xcd0] sm:$0xff] }
 0x7d1   :  { %13881 = vmatpush1.bf16.msra.mxu0 %v18322_v61  ;;  %v10754_v61 = vld [vmem:[#allocation11 + $0xb70] sm:$0xff] }
 0x7d2   :  { %14045 = vmatpush1.bf16.msra.mxu1 %v18324_v63  ;;  %13882 = vmatprep.subr.bf16.mxu0 %v18331_v2  ;;  %v10751_v63 = vld [vmem:[#allocation11 + $0xb58] sm:$0xff]  ;;  %v18387_v8 = vcombine.high %v10750_v60, %v10754_v61 }
 0x7d3   :  { %14046 = vmatprep.subr.bf16.mxu1 %v18333_v7  ;;  %v10755_v2 = vld [vmem:[#allocation11 + $0xb78] sm:$0xff]  ;;  %v18378_v7 = vcombine.low %v10742_v3, %v10746_v53  ;;  %v18427_v53 = vcombine.high %v10790_v42, %v10794_v12 }
 0x7d4   :  { %v18389_v52 = vcombine.high %v10751_v63, %v10755_v2  ;;  %v18388_v5 = vcombine.low %v10751_v63, %v10755_v2  ;;  %v10806_v63 = vld [vmem:[#allocation11 + $0xd10] sm:$0xff] }
 0x7d5   :  { %13883 = vmatpush1.bf16.msra.mxu0 %v18330_v10  ;;  %v10762_v10 = vld [vmem:[#allocation11 + $0xbb0] sm:$0xff] }
 0x7d6   :  { %14047 = vmatpush1.bf16.msra.mxu1 %v18332_v55  ;;  %13884 = vmatprep.subr.bf16.mxu0 %v18339_v1  ;;  %v10759_v55 = vld [vmem:[#allocation11 + $0xb98] sm:$0xff]  ;;  %v18395_v11 = vcombine.high %v10758_v9, %v10762_v10  ;;  %v10810_v2 = vld [vmem:[#allocation11 + $0xd30] sm:$0xff] }
 0x7d7   :  { %14048 = vmatprep.subr.bf16.mxu1 %v18341_v58  ;;  %v10763_v1 = vld [vmem:[#allocation11 + $0xbb8] sm:$0xff]  ;;  %v18386_v58 = vcombine.low %v10750_v60, %v10754_v61 }
 0x7d8   :  { %v18397_v6 = vcombine.high %v10759_v55, %v10763_v1  ;;  %v18396_v27 = vcombine.low %v10759_v55, %v10763_v1  ;;  %v10814_v55 = vld [vmem:[#allocation11 + $0xd50] sm:$0xff] }
 0x7d9   :  { %13885 = vmatpush1.bf16.msra.mxu0 %v18338_v62  ;;  %v10770_v62 = vld [vmem:[#allocation11 + $0xbf0] sm:$0xff] }
 0x7da   :  { %14049 = vmatpush1.bf16.msra.mxu1 %v18340_v15  ;;  %13886 = vmatprep.subr.bf16.mxu0 %v18347_v29  ;;  %v10767_v15 = vld [vmem:[#allocation11 + $0xbd8] sm:$0xff]  ;;  %v18403_v34 = vcombine.high %v10766_v0, %v10770_v62  ;;  %v10818_v1 = vld [vmem:[#allocation11 + $0xd70] sm:$0xff] }
 0x7db   :  { %14050 = vmatprep.subr.bf16.mxu1 %v18349_v16  ;;  %v10771_v29 = vld [vmem:[#allocation11 + $0xbf8] sm:$0xff]  ;;  %v18394_v16 = vcombine.low %v10758_v9, %v10762_v10  ;;  %v18443_v9 = vcombine.high %v10806_v63, %v10810_v2 }
 0x7dc   :  { %v18405_v31 = vcombine.high %v10767_v15, %v10771_v29  ;;  %v18404_v18 = vcombine.low %v10767_v15, %v10771_v29 }
 0x7dd   :  { %13887 = vmatpush1.bf16.msra.mxu0 %v18346_v47  ;;  %v10778_v47 = vld [vmem:[#allocation11 + $0xc30] sm:$0xff] }
 0x7de   :  { %14051 = vmatpush1.bf16.msra.mxu1 %v18348_v26  ;;  %13888 = vmatprep.subr.bf16.mxu0 %v18355_v32  ;;  %v10775_v26 = vld [vmem:[#allocation11 + $0xc18] sm:$0xff]  ;;  %v18411_v13 = vcombine.high %v10774_v21, %v10778_v47 }
 0x7df   :  { %14052 = vmatprep.subr.bf16.mxu1 %v18357_v41  ;;  %v10779_v32 = vld [vmem:[#allocation11 + $0xc38] sm:$0xff]  ;;  %v18402_v41 = vcombine.low %v10766_v0, %v10770_v62  ;;  %v18442_v0 = vcombine.low %v10806_v63, %v10810_v2 }
 0x7e0   :  { %v18413_v25 = vcombine.high %v10775_v26, %v10779_v32  ;;  %v18412_v30 = vcombine.low %v10775_v26, %v10779_v32  ;;  %v10826_v26 = vld [vmem:[#allocation11 + $0xdb0] sm:$0xff] }
 0x7e1   :  { %13889 = vmatpush1.bf16.msra.mxu0 %v18354_v37  ;;  %v10786_v37 = vld [vmem:[#allocation11 + $0xc70] sm:$0xff] }
 0x7e2   :  { %14053 = vmatpush1.bf16.msra.mxu1 %v18356_v57  ;;  %13890 = vmatprep.subr.bf16.mxu0 %v18363_v28  ;;  %v18410_v57 = vcombine.low %v10774_v21, %v10778_v47  ;;  %v10783_v28 = vld [vmem:[#allocation11 + $0xc58] sm:$0xff]  ;;  %v18419_v19 = vcombine.high %v10782_v17, %v10786_v37  ;;  %v10822_v47 = vld [vmem:[#allocation11 + $0xd90] sm:$0xff] }
 0x7e3   :  { %14054 = vmatprep.subr.bf16.mxu1 %v18365_v39  ;;  %v10787_v39 = vld [vmem:[#allocation11 + $0xc78] sm:$0xff] }
 0x7e4   :  { %v18420_v3 = vcombine.low %v10783_v28, %v10787_v39 }
 0x7e5   :  { %13891 = vmatpush1.bf16.msra.mxu0 %v18362_v54  ;;  %v18421_v54 = vcombine.high %v10783_v28, %v10787_v39  ;;  %v18450_v28 = vcombine.low %v10814_v55, %v10818_v1 }
 0x7e6   :  { %14055 = vmatpush1.bf16.msra.mxu1 %v18364_v22  ;;  %13892 = vmatprep.subr.bf16.mxu0 %v18371_v49  ;;  %v10791_v22 = vld [vmem:[#allocation11 + $0xc98] sm:$0xff] }
 0x7e7   :  { %14056 = vmatprep.subr.bf16.mxu1 %v18373_v51  ;;  %v10795_v49 = vld [vmem:[#allocation11 + $0xcb8] sm:$0xff]  ;;  %v18418_v51 = vcombine.low %v10782_v17, %v10786_v37 }
 0x7e8   :  { %v18429_v56 = vcombine.high %v10791_v22, %v10795_v49 }
 0x7e9   :  { %13893 = vmatpush1.bf16.msra.mxu0 %v18370_v38  ;;  %v10802_v38 = vld [vmem:[#allocation11 + $0xcf0] sm:$0xff] }
 0x7ea   :  { %14057 = vmatpush1.bf16.msra.mxu1 %v18372_v59  ;;  %13894 = vmatprep.subr.bf16.mxu0 %v18379_v35  ;;  %v10799_v59 = vld [vmem:[#allocation11 + $0xcd8] sm:$0xff]  ;;  %v18435_v60 = vcombine.high %v10798_v33, %v10802_v38 }
 0x7eb   :  { %14058 = vmatprep.subr.bf16.mxu1 %v18381_v44  ;;  %v10803_v35 = vld [vmem:[#allocation11 + $0xcf8] sm:$0xff]  ;;  %v18426_v44 = vcombine.low %v10790_v42, %v10794_v12  ;;  %v10830_v42 = vld [vmem:[#allocation11 + $0xdd0] sm:$0xff] }
 0x7ec   :  { %v18437_v61 = vcombine.high %v10799_v59, %v10803_v35  ;;  %v10834_v12 = vld [vmem:[#allocation11 + $0xdf0] sm:$0xff] }
 0x7ed   :  { %13895 = vmatpush1.bf16.msra.mxu0 %v18378_v7  ;;  %v10807_v7 = vld [vmem:[#allocation11 + $0xd18] sm:$0xff]  ;;  %v18467_v2 = vcombine.high %v10830_v42, %v10834_v12 }
 0x7ee   :  { %14059 = vmatpush1.bf16.msra.mxu1 %v18380_v46  ;;  %13896 = vmatprep.subr.bf16.mxu0 %v18387_v8  ;;  %v10811_v46 = vld [vmem:[#allocation11 + $0xd38] sm:$0xff]  ;;  %v14116_v8 = vld [vmem:[#allocation13] sm:$0xff] }
 0x7ef   :  { %14060 = vmatprep.subr.bf16.mxu1 %v18389_v52  ;;  %v18436_v52 = vcombine.low %v10799_v59, %v10803_v35  ;;  %v18445_v10 = vcombine.high %v10807_v7, %v10811_v46  ;;  %v14203_v62 = vrot.slane %v14116_v8, %v20170_v43  ;;  %v14127_v15 = vrot.slane %v14116_v8, %v20210_v23  ;;  %v10831_v59 = vld [vmem:[#allocation11 + $0xdd8] sm:$0xff] }
 0x7f0   :  { %v14135_v29 = vrot.slane %v14116_v8, %v20167_v40  ;;  %v10835_v35 = vld [vmem:[#allocation11 + $0xdf8] sm:$0xff] }
 0x7f1   :  { %13897 = vmatpush1.bf16.msra.mxu0 %v18386_v58  ;;  %v14123_v58 = vrot.slane %v14116_v8, %v20161_v36  ;;  %v14243_v17 = vrot.slane %v14203_v62, %v20170_v43  ;;  %v14167_v37 = vrot.slane %v14127_v15, %v20161_v36 }
 0x7f2   :  { %14061 = vmatpush1.bf16.msra.mxu1 %v18388_v5  ;;  %13898 = vmatprep.subr.bf16.mxu0 %v18395_v11  ;;  %v14131_v5 = vrot.slane %v14116_v8, %v20164_v48  ;;  %v10815_v11 = vld [vmem:[#allocation11 + $0xd58] sm:$0xff] }
 0x7f3   :  { %14062 = vmatprep.subr.bf16.mxu1 %v18397_v6  ;;  %v10819_v6 = vld [vmem:[#allocation11 + $0xd78] sm:$0xff]  ;;  %v14163_v32 = vrot.slane %v14123_v58, %v20161_v36 }
 0x7f4   :  { %v18453_v21 = vcombine.high %v10815_v11, %v10819_v6  ;;  %v10839_v58 = vld [vmem:[#allocation11 + $0xe18] sm:$0xff] }
 0x7f5   :  { %13899 = vmatpush1.bf16.msra.mxu0 %v18394_v16  ;;  %v18444_v16 = vcombine.low %v10807_v7, %v10811_v46 }
 0x7f6   :  { %14063 = vmatpush1.bf16.msra.mxu1 %v18396_v27  ;;  %13900 = vmatprep.subr.bf16.mxu0 %v18403_v34  ;;  %v14211_v27 = vrot.slane %v14116_v8, %v20173_v45  ;;  %v18451_v34 = vcombine.high %v10814_v55, %v10818_v1  ;;  %v10838_v55 = vld [vmem:[#allocation11 + $0xe10] sm:$0xff] }
 0x7f7   :  { %14064 = vmatprep.subr.bf16.mxu1 %v18405_v31  ;;  %v14215_v31 = vrot.slane %v14116_v8, %v20177_v50  ;;  %v10842_v1 = vld [vmem:[#allocation11 + $0xe30] sm:$0xff] }
 0x7f8   :  { %v14251_v39 = vrot.slane %v14211_v27, %v20170_v43  ;;  %v18475_v62 = vcombine.high %v10838_v55, %v10842_v1  ;;  %v10847_v27 = vld [vmem:[#allocation11 + $0xe58] sm:$0xff] }
 0x7f9   :  { %13901 = vmatpush1.bf16.msra.mxu0 %v18402_v41  ;;  %v14171_v41 = vrot.slane %v14131_v5, %v20161_v36  ;;  %v10843_v5 = vld [vmem:[#allocation11 + $0xe38] sm:$0xff] }
 0x7fa   :  { %14065 = vmatpush1.bf16.msra.mxu1 %v18404_v18  ;;  %13911 = vmatprep.subr.bf16.mxu0 %v18411_v13  ;;  %v14207_v18 = vrot.slane %v14116_v8, %v20215_v4  ;;  %v10823_v13 = vld [vmem:[#allocation11 + $0xd98] sm:$0xff]  ;;  %v18477_v15 = vcombine.high %v10839_v58, %v10843_v5 }
 0x7fb   :  { %14075 = vmatprep.subr.bf16.mxu1 %v18413_v25  ;;  %v10827_v25 = vld [vmem:[#allocation11 + $0xdb8] sm:$0xff] }
 0x7fc   :  { %13903 = vmatmul.mubr.bf16.vlgmr.msra.gmra.mrb[20].mxu0 %v20405_v24  ;;  %v18460_v63 = vcombine.low %v10823_v13, %v10827_v25 }
 0x7fd   :  { %14067 = vmatmul.mubr.bf16.vlgmr.msra.gmra.mrb[20].mxu1 %v20405_v24  ;;  %13912 = vmatpush1.bf16.msra.mxu0 %v18410_v57  ;;  %v18428_v24 = vcombine.low %v10791_v22, %v10795_v49  ;;  %v14175_v57 = vrot.slane %v14135_v29, %v20161_v36  ;;  %v14255_v49 = vrot.slane %v14215_v31, %v20170_v43  ;;  %v10846_v29 = vld [vmem:[#allocation11 + $0xe50] sm:$0xff] }
 0x7fe   :  { %13943 = vmatprep.mubr.bf16.mxu0 %v20409_v20  ;;  %14076 = vmatpush1.bf16.msra.mxu1 %v18412_v30  ;;  %v18452_v30 = vcombine.low %v10815_v11, %v10819_v6  ;;  %v18466_v11 = vcombine.low %v10830_v42, %v10834_v12  ;;  %v18474_v31 = vcombine.low %v10838_v55, %v10842_v1  ;;  %v10867_v42 = vld [vmem:[#allocation11 + $0xef8] sm:$0xff]  ;;  %v10886_v55 = vld [vmem:[#allocation11 + $0xf90] sm:$0xff] }
 0x7ff   :  { %14107 = vmatprep.mubr.bf16.mxu1 %v20409_v20  ;;  %13913 = vmatprep.subr.bf16.mxu0 %v18419_v19  ;;  %v18434_v20 = vcombine.low %v10798_v33, %v10802_v38  ;;  %v18459_v19 = vcombine.high %v10822_v47, %v10826_v26  ;;  %v14247_v33 = vrot.slane %v14207_v18, %v20170_v43  ;;  %v10858_v18 = vld [vmem:[#allocation11 + $0xeb0] sm:$0xff] }
 0x800   :  { %14077 = vmatprep.subr.bf16.mxu1 %v18421_v54  ;;  %v10890_v1 = vld [vmem:[#allocation11 + $0xfb0] sm:$0xff] }
 0x801   :  { %13914 = vmatpush1.bf16.msra.mxu0 %v18418_v51  ;;  %v18461_v51 = vcombine.high %v10823_v13, %v10827_v25  ;;  %v10855_v13 = vld [vmem:[#allocation11 + $0xe98] sm:$0xff] }
 0x802   :  { %14078 = vmatpush1.bf16.msra.mxu1 %v18420_v3  ;;  %13915 = vmatprep.subr.bf16.mxu0 %v18427_v53  ;;  %v10859_v25 = vld [vmem:[#allocation11 + $0xeb8] sm:$0xff] }
 0x803   :  { %14079 = vmatprep.subr.bf16.mxu1 %v18429_v56 }
 0x805   :  { %13916 = vmatpush1.bf16.msra.mxu0 %v18426_v44 }
 0x806   :  { %14080 = vmatpush1.bf16.msra.mxu1 %v18428_v24  ;;  %13917 = vmatprep.subr.bf16.mxu0 %v18435_v60 }
 0x807   :  { %14081 = vmatprep.subr.bf16.mxu1 %v18437_v61  ;;  %v18458_v61 = vcombine.low %v10822_v47, %v10826_v26  ;;  %v18476_v47 = vcombine.low %v10839_v58, %v10843_v5  ;;  %v10887_v58 = vld [vmem:[#allocation11 + $0xf98] sm:$0xff] }
 0x808   :  { %v10891_v5 = vld [vmem:[#allocation11 + $0xfb8] sm:$0xff] }
 0x809   :  { %13918 = vmatpush1.bf16.msra.mxu0 %v18434_v20 }
 0x80a   :  { %14082 = vmatpush1.bf16.msra.mxu1 %v18436_v52  ;;  %13919 = vmatprep.subr.bf16.mxu0 %v18443_v9 }
 0x80b   :  { %14083 = vmatprep.subr.bf16.mxu1 %v18445_v10  ;;  %v18469_v10 = vcombine.high %v10831_v59, %v10835_v35 }
 0x80d   :  { %13920 = vmatpush1.bf16.msra.mxu0 %v18442_v0  ;;  %v18468_v0 = vcombine.low %v10831_v59, %v10835_v35 }
 0x80e   :  { %14084 = vmatpush1.bf16.msra.mxu1 %v18444_v16  ;;  %13921 = vmatprep.subr.bf16.mxu0 %v18451_v34  ;;  %v10850_v16 = vld [vmem:[#allocation11 + $0xe70] sm:$0xff]  ;;  %v10851_v34 = vld [vmem:[#allocation11 + $0xe78] sm:$0xff] }
 0x80f   :  { %v13617_v54 = vpop.f32.mrb[16].mxu0  ;;  %v13781_v22 = vpop.f32.mrb[16].mxu1  ;;  %14085 = vmatprep.subr.bf16.mxu1 %v18453_v21  ;;  %v18483_v26 = vcombine.high %v10846_v29, %v10850_v16 }
 0x810   :  { %v14192_v3 = vmul.f32 %v14163_v32, %v13617_v54  ;;  %v14194_v53 = vmul.f32 %v14171_v41, %v13781_v22  ;;  %v13619_v56 = vpop.f32.mrb[17].mxu0  ;;  %v13783_v38 = vpop.f32.mrb[17].mxu1  ;;  %v18485_v32 = vcombine.high %v10847_v27, %v10851_v34  ;;  %v10854_v41 = vld [vmem:[#allocation11 + $0xe90] sm:$0xff]  ;;  %v18492_v54 = vcombine.low %v10855_v13, %v10859_v25 }
 0x811   :  { %v14195_v44 = vmul.f32 %v14175_v57, %v13783_v38  ;;  %v13621_v24 = vpop.f32.mrb[18].mxu0  ;;  %v13785_v60 = vpop.f32.mrb[18].mxu1  ;;  %13922 = vmatpush1.bf16.msra.mxu0 %v18450_v28  ;;  %v14193_v20 = vmul.f32 %v14167_v37, %v13619_v56  ;;  %v18484_v37 = vcombine.low %v10847_v27, %v10851_v34  ;;  %v18491_v57 = vcombine.high %v10854_v41, %v10858_v18  ;;  %v10875_v56 = vld [vmem:[#allocation11 + $0xf38] sm:$0xff] }
 0x812   :  { %v20450_v7 = vadd.f32 %v14243_v17, %v14192_v3  ;;  %v20452_v46 = vadd.f32 %v14251_v39, %v14194_v53  ;;  %14086 = vmatpush1.bf16.msra.mxu1 %v18452_v30  ;;  %v13622_v8 = vpop.f32.mrb[19].mxu0  ;;  %v13786_v52 = vpop.f32.mrb[19].mxu1  ;;  %13923 = vmatprep.subr.bf16.mxu0 %v18459_v19  ;;  %v18482_v17 = vcombine.low %v10846_v29, %v10850_v16  ;;  %v10862_v39 = vld [vmem:[#allocation11 + $0xed0] sm:$0xff]  ;;  %v10863_v19 = vld [vmem:[#allocation11 + $0xed8] sm:$0xff] }
 0x813   :  { %v20454_v9 = vadd.f32 %v14255_v49, %v14195_v44  ;;  %14087 = vmatprep.subr.bf16.mxu1 %v18461_v51  ;;  %v14273_v6 = vadd.f32 %v14247_v33, %v14193_v20  ;;  %v18493_v28 = vcombine.high %v10855_v13, %v10859_v25  ;;  %v10866_v30 = vld [vmem:[#allocation11 + $0xef0] sm:$0xff]  ;;  %v18490_v12 = vcombine.low %v10854_v41, %v10858_v18  ;;  %v10871_v53 = vld [vmem:[#allocation11 + $0xf18] sm:$0xff] }
 0x814   :  { %v18499_v22 = vcombine.high %v10862_v39, %v10866_v30  ;;  %v18501_v49 = vcombine.high %v10863_v19, %v10867_v42  ;;  %v10870_v51 = vld [vmem:[#allocation11 + $0xf10] sm:$0xff]  ;;  %v18498_v33 = vcombine.low %v10862_v39, %v10866_v30  ;;  %v18500_v38 = vcombine.low %v10863_v19, %v10867_v42  ;;  %v10895_v16 = vld [vmem:[#allocation11 + $0xfd8] sm:$0xff] }
 0x815   :  { %13924 = vmatpush1.bf16.msra.mxu0 %v18458_v61  ;;  %v18535_v21 = vmul.f32 -1.442695, %v14273_v6  ;;  %v10874_v3 = vld [vmem:[#allocation11 + $0xf30] sm:$0xff]  ;;  %v18509_v35 = vcombine.high %v10871_v53, %v10875_v56  ;;  %v10879_v61 = vld [vmem:[#allocation11 + $0xf58] sm:$0xff]  ;;  %v18508_v20 = vcombine.low %v10871_v53, %v10875_v56  ;;  %v18522_v34 = vcombine.low %v10886_v55, %v10890_v1 }
 0x816   :  { %14088 = vmatpush1.bf16.msra.mxu1 %v18460_v63  ;;  %13925 = vmatprep.subr.bf16.mxu0 %v18467_v2  ;;  %v18507_v59 = vcombine.high %v10870_v51, %v10874_v3  ;;  %v10878_v44 = vld [vmem:[#allocation11 + $0xf50] sm:$0xff]  ;;  %v10883_v63 = vld [vmem:[#allocation11 + $0xf78] sm:$0xff]  ;;  %v18506_v2 = vcombine.low %v10870_v51, %v10874_v3 }
 0x817   :  { %14089 = vmatprep.subr.bf16.mxu1 %v18469_v10  ;;  %19537 = vpow2.f32 %v18535_v21  ;;  %v10882_v24 = vld [vmem:[#allocation11 + $0xf70] sm:$0xff]  ;;  %v18517_v10 = vcombine.high %v10879_v61, %v10883_v63  ;;  %v18516_v6 = vcombine.low %v10879_v61, %v10883_v63  ;;  %v10899_v27 = vld [vmem:[#allocation11 + $0xff8] sm:$0xff] }
 0x818   :  { %v18515_v8 = vcombine.high %v10878_v44, %v10882_v24  ;;  %v10898_v29 = vld [vmem:[#allocation11 + $0xff0] sm:$0xff]  ;;  %v19126_v18 = vld [vmem:[#allocation14 + $0xc] ss:$16 sps:$4 sm:$0xff]   ;;  %v19130_v30 = vld [vmem:[#allocation14 + $0x28] ss:$16 sps:$4 sm:$0xff]  }
 0x819   :  { %13926 = vmatpush1.bf16.msra.mxu0 %v18466_v11  ;;  %v18514_v11 = vcombine.low %v10878_v44, %v10882_v24  ;;  %v19123_v41 = vld [vmem:[#allocation14 + $0x4] ss:$16 sps:$4 sm:$0xff]   ;;  %v19121_v25 = vld [vmem:[#allocation14] ss:$16 sps:$4 sm:$0xff]   ;;  %v19138_v42 = vld [vmem:[#allocation14 + $0x4c] ss:$16 sps:$4 sm:$0xff]  }
 0x81a   :  { %14090 = vmatpush1.bf16.msra.mxu1 %v18468_v0  ;;  %13927 = vmatprep.subr.bf16.mxu0 %v18475_v62  ;;  %v18523_v0 = vcombine.high %v10886_v55, %v10890_v1  ;;  %v18525_v62 = vcombine.high %v10887_v58, %v10891_v5  ;;  %v19127_v39 = vld [vmem:[#allocation14 + $0x20] ss:$16 sps:$4 sm:$0xff]   ;;  %v19135_v19 = vld [vmem:[#allocation14 + $0x44] ss:$16 sps:$4 sm:$0xff]   ;;  %v19142_v51 = vld [vmem:[#allocation14 + $0x68] ss:$16 sps:$4 sm:$0xff]  }
 0x81b   :  { %14091 = vmatprep.subr.bf16.mxu1 %v18477_v15  ;;  %v10894_v15 = vld [vmem:[#allocation11 + $0xfd0] sm:$0xff]  ;;  %v19150_v53 = vld [vmem:[#allocation14 + $0x8c] ss:$16 sps:$4 sm:$0xff]   ;;  %v19154_v44 = vld [vmem:[#allocation14 + $0xa8] ss:$16 sps:$4 sm:$0xff]  }
 0x81c   :  { %v18531_v21 = vcombine.high %v10894_v15, %v10898_v29  ;;  %v19147_v3 = vld [vmem:[#allocation14 + $0x84] ss:$16 sps:$4 sm:$0xff]   ;;  %v19145_v56 = vld [vmem:[#allocation14 + $0x80] ss:$16 sps:$4 sm:$0xff]   ;;  %v19160_v63 = vld [vmem:[#allocation14 + $0xc8] ss:$16 sps:$4 sm:$0xff]  }
 0x81d   :  { %13928 = vmatpush1.bf16.msra.mxu0 %v18474_v31  ;;  %v18524_v31 = vcombine.low %v10887_v58, %v10891_v5  ;;  %v19159_v24 = vld [vmem:[#allocation14 + $0xc4] ss:$16 sps:$4 sm:$0xff]   ;;  %v19157_v61 = vld [vmem:[#allocation14 + $0xc0] ss:$16 sps:$4 sm:$0xff]   ;;  %v19174_v55 = vld [vmem:[#allocation14 + $0x10c] ss:$16 sps:$4 sm:$0xff]  }
 0x81e   :  { %14092 = vmatpush1.bf16.msra.mxu1 %v18476_v47  ;;  %13929 = vmatprep.subr.bf16.mxu0 %v18483_v26  ;;  %v18533_v47 = vcombine.high %v10895_v16, %v10899_v27  ;;  %v18530_v26 = vcombine.low %v10894_v15, %v10898_v29  ;;  %v18534_v1 = vmul.f32 -1.442695, %v20450_v7  ;;  %v19169_v58 = vld [vmem:[#allocation14 + $0x100] ss:$16 sps:$4 sm:$0xff]   ;;  %v18537_v5 = vmul.f32 -1.442695, %v20454_v9 }
 0x81f   :  { %14093 = vmatprep.subr.bf16.mxu1 %v18485_v32  ;;  %v18532_v32 = vcombine.low %v10895_v16, %v10899_v27  ;;  %v19178_v15 = vld [vmem:[#allocation14 + $0x128] ss:$16 sps:$4 sm:$0xff]   ;;  %v19183_v29 = vld [vmem:[#allocation14 + $0x144] ss:$16 sps:$4 sm:$0xff]   ;;  %v19186_v7 = vld [vmem:[#allocation14 + $0x14c] ss:$16 sps:$4 sm:$0xff]  }
 0x820   :  { %v19181_v16 = vld [vmem:[#allocation14 + $0x140] ss:$16 sps:$4 sm:$0xff]   ;;  %v19184_v9 = vld [vmem:[#allocation14 + $0x148] ss:$16 sps:$4 sm:$0xff]   ;;  %v19189_v27 = vld [vmem:[#allocation14 + $0x164] ss:$16 sps:$4 sm:$0xff]  }
 0x821   :  { %13930 = vmatpush1.bf16.msra.mxu0 %v18482_v17  ;;  %v19538_v60 = vpop.eup %19537  ;;  %v19124_v17 = vld [vmem:[#allocation14 + $0x8] ss:$16 sps:$4 sm:$0xff]  }
 0x822   :  { %14094 = vmatpush1.bf16.msra.mxu1 %v18484_v37  ;;  %13931 = vmatprep.subr.bf16.mxu0 %v18491_v57  ;;  %v14305_v52 = vadd.f32 1.0, %v19538_v60  ;;  %v19129_v37 = vld [vmem:[#allocation14 + $0x24] ss:$16 sps:$4 sm:$0xff]   ;;  %v19162_v60 = vld [vmem:[#allocation14 + $0xcc] ss:$16 sps:$4 sm:$0xff]  }
 0x823   :  { %14095 = vmatprep.subr.bf16.mxu1 %v18493_v28  ;;  %v19132_v28 = vld [vmem:[#allocation14 + $0x2c] ss:$16 sps:$4 sm:$0xff]  }
 0x824   :  { %19539 = vrcp.f32 %v14305_v52  ;;  %v19166_v52 = vld [vmem:[#allocation14 + $0xe8] ss:$16 sps:$4 sm:$0xff]  }
 0x825   :  { %13932 = vmatpush1.bf16.msra.mxu0 %v18490_v12  ;;  %v19133_v12 = vld [vmem:[#allocation14 + $0x40] ss:$16 sps:$4 sm:$0xff]   ;;  %19541 = vpow2.f32 %v18534_v1  ;;  %v19238_v1 = vld [vmem:[#allocation14 + $0x268] ss:$16 sps:$4 sm:$0xff]  }
 0x826   :  { %14096 = vmatpush1.bf16.msra.mxu1 %v18492_v54  ;;  %13933 = vmatprep.subr.bf16.mxu0 %v18499_v22  ;;  %v19136_v54 = vld [vmem:[#allocation14 + $0x48] ss:$16 sps:$4 sm:$0xff]   ;;  %v19141_v22 = vld [vmem:[#allocation14 + $0x64] ss:$16 sps:$4 sm:$0xff]   ;;  %19543 = vpow2.f32 %v18537_v5  ;;  %v19246_v5 = vld [vmem:[#allocation14 + $0x28c] ss:$16 sps:$4 sm:$0xff]  }
 0x827   :  { %14097 = vmatprep.subr.bf16.mxu1 %v18501_v49  ;;  %v19144_v49 = vld [vmem:[#allocation14 + $0x6c] ss:$16 sps:$4 sm:$0xff]  }
 0x829   :  { %13934 = vmatpush1.bf16.msra.mxu0 %v18498_v33  ;;  %v19148_v33 = vld [vmem:[#allocation14 + $0x88] ss:$16 sps:$4 sm:$0xff]  }
 0x82a   :  { %14098 = vmatpush1.bf16.msra.mxu1 %v18500_v38  ;;  %13935 = vmatprep.subr.bf16.mxu0 %v18507_v59  ;;  %v19153_v38 = vld [vmem:[#allocation14 + $0xa4] ss:$16 sps:$4 sm:$0xff]   ;;  %v19156_v59 = vld [vmem:[#allocation14 + $0xac] ss:$16 sps:$4 sm:$0xff]  }
 0x82b   :  { %14099 = vmatprep.subr.bf16.mxu1 %v18509_v35  ;;  %v19151_v35 = vld [vmem:[#allocation14 + $0xa0] ss:$16 sps:$4 sm:$0xff]  }
 0x82d   :  { %13936 = vmatpush1.bf16.msra.mxu0 %v18506_v2  ;;  %v19165_v2 = vld [vmem:[#allocation14 + $0xe4] ss:$16 sps:$4 sm:$0xff]  }
 0x82e   :  { %14100 = vmatpush1.bf16.msra.mxu1 %v18508_v20  ;;  %13937 = vmatprep.subr.bf16.mxu0 %v18515_v8  ;;  %v19540_v13 = vpop.eup %19539  ;;  %v19168_v20 = vld [vmem:[#allocation14 + $0xec] ss:$16 sps:$4 sm:$0xff]   ;;  %v19163_v8 = vld [vmem:[#allocation14 + $0xe0] ss:$16 sps:$4 sm:$0xff]  }
 0x82f   :  { %14101 = vmatprep.subr.bf16.mxu1 %v18517_v10  ;;  %v14329_v57 = vpack.c.bf16 %v19540_v13, %v19540_v13  ;;  %v19171_v10 = vld [vmem:[#allocation14 + $0x104] ss:$16 sps:$4 sm:$0xff]   ;;  %v19193_v13 = vld [vmem:[#allocation14 + $0x180] ss:$16 sps:$4 sm:$0xff]  }
 0x831   :  { %13938 = vmatpush1.bf16.msra.mxu0 %v18514_v11  ;;  %v19172_v11 = vld [vmem:[#allocation14 + $0x108] ss:$16 sps:$4 sm:$0xff]  }
 0x832   :  { %14102 = vmatpush1.bf16.msra.mxu1 %v18516_v6  ;;  %13939 = vmatprep.subr.bf16.mxu0 %v18523_v0  ;;  %v19177_v6 = vld [vmem:[#allocation14 + $0x124] ss:$16 sps:$4 sm:$0xff]   ;;  %v19180_v0 = vld [vmem:[#allocation14 + $0x12c] ss:$16 sps:$4 sm:$0xff]  }
 0x833   :  { %14103 = vmatprep.subr.bf16.mxu1 %v18525_v62  ;;  %v19175_v62 = vld [vmem:[#allocation14 + $0x120] ss:$16 sps:$4 sm:$0xff]  }
 0x835   :  { %13940 = vmatpush1.bf16.msra.mxu0 %v18522_v34  ;;  %v19192_v34 = vld [vmem:[#allocation14 + $0x16c] ss:$16 sps:$4 sm:$0xff]  }
 0x836   :  { %14104 = vmatpush1.bf16.msra.mxu1 %v18524_v31  ;;  %13941 = vmatprep.subr.bf16.mxu0 %v18531_v21  ;;  %v19187_v31 = vld [vmem:[#allocation14 + $0x160] ss:$16 sps:$4 sm:$0xff]   ;;  %v19542_v21 = vpop.eup %19541 }
 0x837   :  { %14105 = vmatprep.subr.bf16.mxu1 %v18533_v47  ;;  %v19190_v47 = vld [vmem:[#allocation14 + $0x168] ss:$16 sps:$4 sm:$0xff]  }
 0x839   :  { %13942 = vmatpush1.bf16.msra.mxu0 %v18530_v26  ;;  %v19195_v26 = vld [vmem:[#allocation14 + $0x184] ss:$16 sps:$4 sm:$0xff]  }
 0x83a   :  { %14106 = vmatpush1.bf16.msra.mxu1 %v18532_v32  ;;  %15872 = vmatprep.subr.bf16.mxu0 %v19123_v41  ;;  %v19198_v32 = vld [vmem:[#allocation14 + $0x18c] ss:$16 sps:$4 sm:$0xff]   ;;  %v19544_v41 = vpop.eup %19543 }
 0x83b   :  { %16036 = vmatprep.subr.bf16.mxu1 %v19126_v18  ;;  %v14304_v18 = vadd.f32 1.0, %v19542_v21  ;;  %v19259_v21 = vld [vmem:[#allocation14 + $0x2e0] ss:$16 sps:$4 sm:$0xff]  }
 0x83c   :  { %13944 = vmatmul.mubr.bf16.vlgmr.msra.gmra.mrb[20].mxu0 %v20416_v14 }
 0x83d   :  { %14108 = vmatmul.mubr.bf16.vlgmr.msra.gmra.mrb[20].mxu1 %v20416_v14  ;;  %15873 = vmatpush1.bf16.msra.mxu0 %v19121_v25  ;;  %v19139_v14 = vld [vmem:[#allocation14 + $0x60] ss:$16 sps:$4 sm:$0xff]   ;;  %v19196_v25 = vld [vmem:[#allocation14 + $0x188] ss:$16 sps:$4 sm:$0xff]   ;;  %19545 = vrcp.f32 %v14304_v18 }
 0x83e   :  { %15904 = vmatprep.mubr.bf16.mxu0 %v14329_v57  ;;  %16037 = vmatpush1.bf16.msra.mxu1 %v19124_v17  ;;  %v19201_v17 = vld [vmem:[#allocation14 + $0x1a4] ss:$16 sps:$4 sm:$0xff]   ;;  %v19265_v18 = vld [vmem:[#allocation14 + $0x300] ss:$16 sps:$4 sm:$0xff]  }
 0x83f   :  { %16068 = vmatprep.mubr.bf16.mxu1 %v14329_v57  ;;  %15874 = vmatprep.subr.bf16.mxu0 %v19129_v37  ;;  %v14307_v37 = vadd.f32 1.0, %v19544_v41  ;;  %v19204_v57 = vld [vmem:[#allocation14 + $0x1ac] ss:$16 sps:$4 sm:$0xff]   ;;  %v18536_v41 = vmul.f32 -1.442695, %v20452_v46 }
 0x840   :  { %16038 = vmatprep.subr.bf16.mxu1 %v19132_v28  ;;  %v19199_v28 = vld [vmem:[#allocation14 + $0x1a0] ss:$16 sps:$4 sm:$0xff]   ;;  %v19280_v46 = vld [vmem:[#allocation14 + $0x348] ss:$16 sps:$4 sm:$0xff]  }
 0x841   :  { %15875 = vmatpush1.bf16.msra.mxu0 %v19127_v39  ;;  %v19202_v39 = vld [vmem:[#allocation14 + $0x1a8] ss:$16 sps:$4 sm:$0xff]   ;;  %19547 = vrcp.f32 %v14307_v37  ;;  %v19271_v37 = vld [vmem:[#allocation14 + $0x320] ss:$16 sps:$4 sm:$0xff]  }
 0x842   :  { %16039 = vmatpush1.bf16.msra.mxu1 %v19130_v30  ;;  %15876 = vmatprep.subr.bf16.mxu0 %v19135_v19  ;;  %v19207_v30 = vld [vmem:[#allocation14 + $0x1c4] ss:$16 sps:$4 sm:$0xff]   ;;  %v19210_v19 = vld [vmem:[#allocation14 + $0x1cc] ss:$16 sps:$4 sm:$0xff]   ;;  %19549 = vpow2.f32 %v18536_v41 }
 0x843   :  { %16040 = vmatprep.subr.bf16.mxu1 %v19138_v42  ;;  %v19205_v42 = vld [vmem:[#allocation14 + $0x1c0] ss:$16 sps:$4 sm:$0xff]   ;;  %v19348_v41 = vld [vmem:[#allocation14 + $0x4ac] ss:$16 sps:$4 sm:$0xff]  }
 0x845   :  { %15877 = vmatpush1.bf16.msra.mxu0 %v19133_v12  ;;  %v19208_v12 = vld [vmem:[#allocation14 + $0x1c8] ss:$16 sps:$4 sm:$0xff]  }
 0x846   :  { %16041 = vmatpush1.bf16.msra.mxu1 %v19136_v54  ;;  %15878 = vmatprep.subr.bf16.mxu0 %v19141_v22  ;;  %v19213_v54 = vld [vmem:[#allocation14 + $0x1e4] ss:$16 sps:$4 sm:$0xff]   ;;  %v19216_v22 = vld [vmem:[#allocation14 + $0x1ec] ss:$16 sps:$4 sm:$0xff]  }
 0x847   :  { %16042 = vmatprep.subr.bf16.mxu1 %v19144_v49  ;;  %v19211_v49 = vld [vmem:[#allocation14 + $0x1e0] ss:$16 sps:$4 sm:$0xff]  }
 0x849   :  { %15879 = vmatpush1.bf16.msra.mxu0 %v19139_v14  ;;  %v19214_v14 = vld [vmem:[#allocation14 + $0x1e8] ss:$16 sps:$4 sm:$0xff]  }
 0x84a   :  { %16043 = vmatpush1.bf16.msra.mxu1 %v19142_v51  ;;  %15880 = vmatprep.subr.bf16.mxu0 %v19147_v3  ;;  %v19219_v51 = vld [vmem:[#allocation14 + $0x204] ss:$16 sps:$4 sm:$0xff]   ;;  %v19546_v3 = vpop.eup %19545 }
 0x84b   :  { %16044 = vmatprep.subr.bf16.mxu1 %v19150_v53  ;;  %v19222_v53 = vld [vmem:[#allocation14 + $0x20c] ss:$16 sps:$4 sm:$0xff]  }
 0x84d   :  { %15881 = vmatpush1.bf16.msra.mxu0 %v19145_v56  ;;  %v19548_v56 = vpop.eup %19547 }
 0x84e   :  { %16045 = vmatpush1.bf16.msra.mxu1 %v19148_v33  ;;  %15882 = vmatprep.subr.bf16.mxu0 %v19153_v38  ;;  %v19217_v33 = vld [vmem:[#allocation14 + $0x200] ss:$16 sps:$4 sm:$0xff]   ;;  %v14328_v38 = vpack.c.bf16 %v19546_v3, %v19546_v3 }
 0x84f   :  { %16046 = vmatprep.subr.bf16.mxu1 %v19156_v59  ;;  %v19220_v59 = vld [vmem:[#allocation14 + $0x208] ss:$16 sps:$4 sm:$0xff]   ;;  %v19289_v3 = vld [vmem:[#allocation14 + $0x380] ss:$16 sps:$4 sm:$0xff]  }
 0x851   :  { %15883 = vmatpush1.bf16.msra.mxu0 %v19151_v35  ;;  %v19225_v35 = vld [vmem:[#allocation14 + $0x224] ss:$16 sps:$4 sm:$0xff]  }
 0x852   :  { %16047 = vmatpush1.bf16.msra.mxu1 %v19154_v44  ;;  %15884 = vmatprep.subr.bf16.mxu0 %v19159_v24  ;;  %v14331_v44 = vpack.c.bf16 %v19548_v56, %v19548_v56  ;;  %v19228_v24 = vld [vmem:[#allocation14 + $0x22c] ss:$16 sps:$4 sm:$0xff]   ;;  %v19297_v56 = vld [vmem:[#allocation14 + $0x3a4] ss:$16 sps:$4 sm:$0xff]  }
 0x853   :  { %16048 = vmatprep.subr.bf16.mxu1 %v19162_v60  ;;  %v19223_v60 = vld [vmem:[#allocation14 + $0x220] ss:$16 sps:$4 sm:$0xff]  }
 0x855   :  { %15885 = vmatpush1.bf16.msra.mxu0 %v19157_v61  ;;  %v19226_v61 = vld [vmem:[#allocation14 + $0x228] ss:$16 sps:$4 sm:$0xff]  }
 0x856   :  { %16049 = vmatpush1.bf16.msra.mxu1 %v19160_v63  ;;  %15886 = vmatprep.subr.bf16.mxu0 %v19165_v2  ;;  %v19231_v63 = vld [vmem:[#allocation14 + $0x244] ss:$16 sps:$4 sm:$0xff]   ;;  %v19234_v2 = vld [vmem:[#allocation14 + $0x24c] ss:$16 sps:$4 sm:$0xff]  }
 0x857   :  { %16050 = vmatprep.subr.bf16.mxu1 %v19168_v20  ;;  %v19229_v20 = vld [vmem:[#allocation14 + $0x240] ss:$16 sps:$4 sm:$0xff]  }
 0x859   :  { %15887 = vmatpush1.bf16.msra.mxu0 %v19163_v8  ;;  %v19232_v8 = vld [vmem:[#allocation14 + $0x248] ss:$16 sps:$4 sm:$0xff]  }
 0x85a   :  { %16051 = vmatpush1.bf16.msra.mxu1 %v19166_v52  ;;  %15888 = vmatprep.subr.bf16.mxu0 %v19171_v10  ;;  %v19237_v52 = vld [vmem:[#allocation14 + $0x264] ss:$16 sps:$4 sm:$0xff]   ;;  %v19240_v10 = vld [vmem:[#allocation14 + $0x26c] ss:$16 sps:$4 sm:$0xff]  }
 0x85b   :  { %16052 = vmatprep.subr.bf16.mxu1 %v19174_v55  ;;  %v19235_v55 = vld [vmem:[#allocation14 + $0x260] ss:$16 sps:$4 sm:$0xff]  }
 0x85d   :  { %15889 = vmatpush1.bf16.msra.mxu0 %v19169_v58  ;;  %v19243_v58 = vld [vmem:[#allocation14 + $0x284] ss:$16 sps:$4 sm:$0xff]  }
 0x85e   :  { %16053 = vmatpush1.bf16.msra.mxu1 %v19172_v11  ;;  %15890 = vmatprep.subr.bf16.mxu0 %v19177_v6  ;;  %v19241_v11 = vld [vmem:[#allocation14 + $0x280] ss:$16 sps:$4 sm:$0xff]   ;;  %v19244_v6 = vld [vmem:[#allocation14 + $0x288] ss:$16 sps:$4 sm:$0xff]  }
 0x85f   :  { %16054 = vmatprep.subr.bf16.mxu1 %v19180_v0  ;;  %v19249_v0 = vld [vmem:[#allocation14 + $0x2a4] ss:$16 sps:$4 sm:$0xff]  }
 0x861   :  { %15891 = vmatpush1.bf16.msra.mxu0 %v19175_v62  ;;  %v19252_v62 = vld [vmem:[#allocation14 + $0x2ac] ss:$16 sps:$4 sm:$0xff]  }
 0x862   :  { %16055 = vmatpush1.bf16.msra.mxu1 %v19178_v15  ;;  %15892 = vmatprep.subr.bf16.mxu0 %v19183_v29  ;;  %v19247_v15 = vld [vmem:[#allocation14 + $0x2a0] ss:$16 sps:$4 sm:$0xff]   ;;  %v19250_v29 = vld [vmem:[#allocation14 + $0x2a8] ss:$16 sps:$4 sm:$0xff]  }
 0x863   :  { %16056 = vmatprep.subr.bf16.mxu1 %v19186_v7  ;;  %v19255_v7 = vld [vmem:[#allocation14 + $0x2c4] ss:$16 sps:$4 sm:$0xff]  }
 0x865   :  { %15893 = vmatpush1.bf16.msra.mxu0 %v19181_v16  ;;  %v19258_v16 = vld [vmem:[#allocation14 + $0x2cc] ss:$16 sps:$4 sm:$0xff]  }
 0x866   :  { %16057 = vmatpush1.bf16.msra.mxu1 %v19184_v9  ;;  %15894 = vmatprep.subr.bf16.mxu0 %v19189_v27  ;;  %v19253_v9 = vld [vmem:[#allocation14 + $0x2c0] ss:$16 sps:$4 sm:$0xff]   ;;  %v19256_v27 = vld [vmem:[#allocation14 + $0x2c8] ss:$16 sps:$4 sm:$0xff]  }
 0x867   :  { %16058 = vmatprep.subr.bf16.mxu1 %v19192_v34  ;;  %v19261_v34 = vld [vmem:[#allocation14 + $0x2e4] ss:$16 sps:$4 sm:$0xff]  }
 0x869   :  { %15895 = vmatpush1.bf16.msra.mxu0 %v19187_v31  ;;  %v19264_v31 = vld [vmem:[#allocation14 + $0x2ec] ss:$16 sps:$4 sm:$0xff]  }
 0x86a   :  { %16059 = vmatpush1.bf16.msra.mxu1 %v19190_v47  ;;  %15896 = vmatprep.subr.bf16.mxu0 %v19195_v26  ;;  %v19262_v47 = vld [vmem:[#allocation14 + $0x2e8] ss:$16 sps:$4 sm:$0xff]   ;;  %v19267_v26 = vld [vmem:[#allocation14 + $0x304] ss:$16 sps:$4 sm:$0xff]  }
 0x86b   :  { %16060 = vmatprep.subr.bf16.mxu1 %v19198_v32  ;;  %v19270_v32 = vld [vmem:[#allocation14 + $0x30c] ss:$16 sps:$4 sm:$0xff]  }
 0x86d   :  { %15897 = vmatpush1.bf16.msra.mxu0 %v19193_v13  ;;  %v19268_v13 = vld [vmem:[#allocation14 + $0x308] ss:$16 sps:$4 sm:$0xff]  }
 0x86e   :  { %16061 = vmatpush1.bf16.msra.mxu1 %v19196_v25  ;;  %15898 = vmatprep.subr.bf16.mxu0 %v19201_v17  ;;  %v19273_v25 = vld [vmem:[#allocation14 + $0x324] ss:$16 sps:$4 sm:$0xff]   ;;  %v19276_v17 = vld [vmem:[#allocation14 + $0x32c] ss:$16 sps:$4 sm:$0xff]  }
 0x86f   :  { %16062 = vmatprep.subr.bf16.mxu1 %v19204_v57  ;;  %v19274_v57 = vld [vmem:[#allocation14 + $0x328] ss:$16 sps:$4 sm:$0xff]  }
 0x871   :  { %15899 = vmatpush1.bf16.msra.mxu0 %v19199_v28  ;;  %v19279_v28 = vld [vmem:[#allocation14 + $0x344] ss:$16 sps:$4 sm:$0xff]  }
 0x872   :  { %16063 = vmatpush1.bf16.msra.mxu1 %v19202_v39  ;;  %15900 = vmatprep.subr.bf16.mxu0 %v19207_v30  ;;  %v19282_v39 = vld [vmem:[#allocation14 + $0x34c] ss:$16 sps:$4 sm:$0xff]   ;;  %v19277_v30 = vld [vmem:[#allocation14 + $0x340] ss:$16 sps:$4 sm:$0xff]  }
 0x873   :  { %16064 = vmatprep.subr.bf16.mxu1 %v19210_v19  ;;  %v19285_v19 = vld [vmem:[#allocation14 + $0x364] ss:$16 sps:$4 sm:$0xff]  }
 0x875   :  { %15901 = vmatpush1.bf16.msra.mxu0 %v19205_v42  ;;  %v19288_v42 = vld [vmem:[#allocation14 + $0x36c] ss:$16 sps:$4 sm:$0xff]  }
 0x876   :  { %16065 = vmatpush1.bf16.msra.mxu1 %v19208_v12  ;;  %15902 = vmatprep.subr.bf16.mxu0 %v19213_v54  ;;  %v19283_v12 = vld [vmem:[#allocation14 + $0x360] ss:$16 sps:$4 sm:$0xff]   ;;  %v19550_v54 = vpop.eup %19549 }
 0x877   :  { %16066 = vmatprep.subr.bf16.mxu1 %v19216_v22  ;;  %v19286_v22 = vld [vmem:[#allocation14 + $0x368] ss:$16 sps:$4 sm:$0xff]  }
 0x879   :  { %15903 = vmatpush1.bf16.msra.mxu0 %v19211_v49  ;;  %v19291_v49 = vld [vmem:[#allocation14 + $0x384] ss:$16 sps:$4 sm:$0xff]  }
 0x87a   :  { %16067 = vmatpush1.bf16.msra.mxu1 %v19214_v14  ;;  %15913 = vmatprep.subr.bf16.mxu0 %v19219_v51  ;;  %v19294_v14 = vld [vmem:[#allocation14 + $0x38c] ss:$16 sps:$4 sm:$0xff]   ;;  %v14306_v51 = vadd.f32 1.0, %v19550_v54  ;;  %v19364_v54 = vld [vmem:[#allocation14 + $0x508] ss:$16 sps:$4 sm:$0xff]  }
 0x87b   :  { %16077 = vmatprep.subr.bf16.mxu1 %v19222_v53  ;;  %v19292_v53 = vld [vmem:[#allocation14 + $0x388] ss:$16 sps:$4 sm:$0xff]  }
 0x87c   :  { %15905 = vmatmul.mubr.bf16.vlgmr.msra.gmra.mrb[24].mxu0 %v14328_v38  ;;  %19551 = vrcp.f32 %v14306_v51  ;;  %v19370_v51 = vld [vmem:[#allocation14 + $0x528] ss:$16 sps:$4 sm:$0xff]  }
 0x87d   :  { %16069 = vmatmul.mubr.bf16.vlgmr.msra.gmra.mrb[24].mxu1 %v14328_v38  ;;  %15914 = vmatpush1.bf16.msra.mxu0 %v19217_v33  ;;  %v19300_v33 = vld [vmem:[#allocation14 + $0x3ac] ss:$16 sps:$4 sm:$0xff]   ;;  %v19295_v38 = vld [vmem:[#allocation14 + $0x3a0] ss:$16 sps:$4 sm:$0xff]  }
 0x87e   :  { %15945 = vmatprep.mubr.bf16.mxu0 %v14331_v44  ;;  %16078 = vmatpush1.bf16.msra.mxu1 %v19220_v59  ;;  %v19298_v59 = vld [vmem:[#allocation14 + $0x3a8] ss:$16 sps:$4 sm:$0xff]  }
 0x87f   :  { %16109 = vmatprep.mubr.bf16.mxu1 %v14331_v44  ;;  %15915 = vmatprep.subr.bf16.mxu0 %v19225_v35  ;;  %v19303_v35 = vld [vmem:[#allocation14 + $0x3c4] ss:$16 sps:$4 sm:$0xff]   ;;  %v19306_v44 = vld [vmem:[#allocation14 + $0x3cc] ss:$16 sps:$4 sm:$0xff]  }
 0x880   :  { %16079 = vmatprep.subr.bf16.mxu1 %v19228_v24  ;;  %v19301_v24 = vld [vmem:[#allocation14 + $0x3c0] ss:$16 sps:$4 sm:$0xff]  }
 0x881   :  { %15916 = vmatpush1.bf16.msra.mxu0 %v19223_v60  ;;  %v19304_v60 = vld [vmem:[#allocation14 + $0x3c8] ss:$16 sps:$4 sm:$0xff]  }
 0x882   :  { %16080 = vmatpush1.bf16.msra.mxu1 %v19226_v61  ;;  %15917 = vmatprep.subr.bf16.mxu0 %v19231_v63  ;;  %v19309_v61 = vld [vmem:[#allocation14 + $0x3e4] ss:$16 sps:$4 sm:$0xff]   ;;  %v19312_v63 = vld [vmem:[#allocation14 + $0x3ec] ss:$16 sps:$4 sm:$0xff]  }
 0x883   :  { %16081 = vmatprep.subr.bf16.mxu1 %v19234_v2  ;;  %v19307_v2 = vld [vmem:[#allocation14 + $0x3e0] ss:$16 sps:$4 sm:$0xff]  }
 0x885   :  { %15918 = vmatpush1.bf16.msra.mxu0 %v19229_v20  ;;  %v19310_v20 = vld [vmem:[#allocation14 + $0x3e8] ss:$16 sps:$4 sm:$0xff]  }
 0x886   :  { %16082 = vmatpush1.bf16.msra.mxu1 %v19232_v8  ;;  %15919 = vmatprep.subr.bf16.mxu0 %v19237_v52  ;;  %v19315_v8 = vld [vmem:[#allocation14 + $0x404] ss:$16 sps:$4 sm:$0xff]   ;;  %v19552_v52 = vpop.eup %19551 }
 0x887   :  { %16083 = vmatprep.subr.bf16.mxu1 %v19240_v10  ;;  %v19318_v10 = vld [vmem:[#allocation14 + $0x40c] ss:$16 sps:$4 sm:$0xff]  }
 0x889   :  { %15920 = vmatpush1.bf16.msra.mxu0 %v19235_v55  ;;  %v19313_v55 = vld [vmem:[#allocation14 + $0x400] ss:$16 sps:$4 sm:$0xff]  }
 0x88a   :  { %16084 = vmatpush1.bf16.msra.mxu1 %v19238_v1  ;;  %15921 = vmatprep.subr.bf16.mxu0 %v19243_v58  ;;  %v14330_v1 = vpack.c.bf16 %v19552_v52, %v19552_v52  ;;  %v19316_v58 = vld [vmem:[#allocation14 + $0x408] ss:$16 sps:$4 sm:$0xff]  }
 0x88b   :  { %16085 = vmatprep.subr.bf16.mxu1 %v19246_v5  ;;  %v19321_v5 = vld [vmem:[#allocation14 + $0x424] ss:$16 sps:$4 sm:$0xff]   ;;  %v19394_v52 = vld [vmem:[#allocation14 + $0x5a8] ss:$16 sps:$4 sm:$0xff]  }
 0x88d   :  { %15922 = vmatpush1.bf16.msra.mxu0 %v19241_v11  ;;  %v19324_v11 = vld [vmem:[#allocation14 + $0x42c] ss:$16 sps:$4 sm:$0xff]  }
 0x88e   :  { %16086 = vmatpush1.bf16.msra.mxu1 %v19244_v6  ;;  %15923 = vmatprep.subr.bf16.mxu0 %v19249_v0  ;;  %v19319_v6 = vld [vmem:[#allocation14 + $0x420] ss:$16 sps:$4 sm:$0xff]   ;;  %v19322_v0 = vld [vmem:[#allocation14 + $0x428] ss:$16 sps:$4 sm:$0xff]  }
 0x88f   :  { %16087 = vmatprep.subr.bf16.mxu1 %v19252_v62  ;;  %v19327_v62 = vld [vmem:[#allocation14 + $0x444] ss:$16 sps:$4 sm:$0xff]  }
 0x891   :  { %15924 = vmatpush1.bf16.msra.mxu0 %v19247_v15  ;;  %v19330_v15 = vld [vmem:[#allocation14 + $0x44c] ss:$16 sps:$4 sm:$0xff]  }
 0x892   :  { %16088 = vmatpush1.bf16.msra.mxu1 %v19250_v29  ;;  %15925 = vmatprep.subr.bf16.mxu0 %v19255_v7  ;;  %v19325_v29 = vld [vmem:[#allocation14 + $0x440] ss:$16 sps:$4 sm:$0xff]   ;;  %v19328_v7 = vld [vmem:[#allocation14 + $0x448] ss:$16 sps:$4 sm:$0xff]  }
 0x893   :  { %16089 = vmatprep.subr.bf16.mxu1 %v19258_v16  ;;  %v19333_v16 = vld [vmem:[#allocation14 + $0x464] ss:$16 sps:$4 sm:$0xff]  }
 0x895   :  { %15926 = vmatpush1.bf16.msra.mxu0 %v19253_v9  ;;  %v19336_v9 = vld [vmem:[#allocation14 + $0x46c] ss:$16 sps:$4 sm:$0xff]  }
 0x896   :  { %16090 = vmatpush1.bf16.msra.mxu1 %v19256_v27  ;;  %15927 = vmatprep.subr.bf16.mxu0 %v19261_v34  ;;  %v19331_v27 = vld [vmem:[#allocation14 + $0x460] ss:$16 sps:$4 sm:$0xff]   ;;  %v19334_v34 = vld [vmem:[#allocation14 + $0x468] ss:$16 sps:$4 sm:$0xff]  }
 0x897   :  { %16091 = vmatprep.subr.bf16.mxu1 %v19264_v31  ;;  %v19339_v31 = vld [vmem:[#allocation14 + $0x484] ss:$16 sps:$4 sm:$0xff]  }
 0x899   :  { %15928 = vmatpush1.bf16.msra.mxu0 %v19259_v21  ;;  %v19342_v21 = vld [vmem:[#allocation14 + $0x48c] ss:$16 sps:$4 sm:$0xff]  }
 0x89a   :  { %16092 = vmatpush1.bf16.msra.mxu1 %v19262_v47  ;;  %15929 = vmatprep.subr.bf16.mxu0 %v19267_v26  ;;  %v19337_v47 = vld [vmem:[#allocation14 + $0x480] ss:$16 sps:$4 sm:$0xff]   ;;  %v19340_v26 = vld [vmem:[#allocation14 + $0x488] ss:$16 sps:$4 sm:$0xff]  }
 0x89b   :  { %16093 = vmatprep.subr.bf16.mxu1 %v19270_v32  ;;  %v19345_v32 = vld [vmem:[#allocation14 + $0x4a4] ss:$16 sps:$4 sm:$0xff]  }
 0x89d   :  { %15930 = vmatpush1.bf16.msra.mxu0 %v19265_v18  ;;  %v19343_v18 = vld [vmem:[#allocation14 + $0x4a0] ss:$16 sps:$4 sm:$0xff]  }
 0x89e   :  { %16094 = vmatpush1.bf16.msra.mxu1 %v19268_v13  ;;  %15931 = vmatprep.subr.bf16.mxu0 %v19273_v25  ;;  %v19346_v13 = vld [vmem:[#allocation14 + $0x4a8] ss:$16 sps:$4 sm:$0xff]   ;;  %v19351_v25 = vld [vmem:[#allocation14 + $0x4c4] ss:$16 sps:$4 sm:$0xff]  }
 0x89f   :  { %16095 = vmatprep.subr.bf16.mxu1 %v19276_v17  ;;  %v19354_v17 = vld [vmem:[#allocation14 + $0x4cc] ss:$16 sps:$4 sm:$0xff]  }
 0x8a1   :  { %15932 = vmatpush1.bf16.msra.mxu0 %v19271_v37  ;;  %v19349_v37 = vld [vmem:[#allocation14 + $0x4c0] ss:$16 sps:$4 sm:$0xff]  }
 0x8a2   :  { %16096 = vmatpush1.bf16.msra.mxu1 %v19274_v57  ;;  %15933 = vmatprep.subr.bf16.mxu0 %v19279_v28  ;;  %v19352_v57 = vld [vmem:[#allocation14 + $0x4c8] ss:$16 sps:$4 sm:$0xff]   ;;  %v19357_v28 = vld [vmem:[#allocation14 + $0x4e4] ss:$16 sps:$4 sm:$0xff]  }
 0x8a3   :  { %16097 = vmatprep.subr.bf16.mxu1 %v19282_v39  ;;  %v19360_v39 = vld [vmem:[#allocation14 + $0x4ec] ss:$16 sps:$4 sm:$0xff]  }
 0x8a5   :  { %15934 = vmatpush1.bf16.msra.mxu0 %v19277_v30  ;;  %v19355_v30 = vld [vmem:[#allocation14 + $0x4e0] ss:$16 sps:$4 sm:$0xff]  }
 0x8a6   :  { %16098 = vmatpush1.bf16.msra.mxu1 %v19280_v46  ;;  %15935 = vmatprep.subr.bf16.mxu0 %v19285_v19  ;;  %v19358_v46 = vld [vmem:[#allocation14 + $0x4e8] ss:$16 sps:$4 sm:$0xff]   ;;  %v19363_v19 = vld [vmem:[#allocation14 + $0x504] ss:$16 sps:$4 sm:$0xff]  }
 0x8a7   :  { %16099 = vmatprep.subr.bf16.mxu1 %v19288_v42  ;;  %v19366_v42 = vld [vmem:[#allocation14 + $0x50c] ss:$16 sps:$4 sm:$0xff]  }
 0x8a9   :  { %15936 = vmatpush1.bf16.msra.mxu0 %v19283_v12  ;;  %v19361_v12 = vld [vmem:[#allocation14 + $0x500] ss:$16 sps:$4 sm:$0xff]  }
 0x8aa   :  { %16100 = vmatpush1.bf16.msra.mxu1 %v19286_v22  ;;  %15937 = vmatprep.subr.bf16.mxu0 %v19291_v49  ;;  %v19369_v22 = vld [vmem:[#allocation14 + $0x524] ss:$16 sps:$4 sm:$0xff]   ;;  %v19372_v49 = vld [vmem:[#allocation14 + $0x52c] ss:$16 sps:$4 sm:$0xff]  }
 0x8ab   :  { %16101 = vmatprep.subr.bf16.mxu1 %v19294_v14  ;;  %v19367_v14 = vld [vmem:[#allocation14 + $0x520] ss:$16 sps:$4 sm:$0xff]  }
 0x8ad   :  { %15938 = vmatpush1.bf16.msra.mxu0 %v19289_v3  ;;  %v19375_v3 = vld [vmem:[#allocation14 + $0x544] ss:$16 sps:$4 sm:$0xff]  }
 0x8ae   :  { %16102 = vmatpush1.bf16.msra.mxu1 %v19292_v53  ;;  %15939 = vmatprep.subr.bf16.mxu0 %v19297_v56  ;;  %v19378_v53 = vld [vmem:[#allocation14 + $0x54c] ss:$16 sps:$4 sm:$0xff]   ;;  %v19373_v56 = vld [vmem:[#allocation14 + $0x540] ss:$16 sps:$4 sm:$0xff]  }
 0x8af   :  { %16103 = vmatprep.subr.bf16.mxu1 %v19300_v33  ;;  %v19376_v33 = vld [vmem:[#allocation14 + $0x548] ss:$16 sps:$4 sm:$0xff]  }
 0x8b1   :  { %15940 = vmatpush1.bf16.msra.mxu0 %v19295_v38  ;;  %v19381_v38 = vld [vmem:[#allocation14 + $0x564] ss:$16 sps:$4 sm:$0xff]  }
 0x8b2   :  { %16104 = vmatpush1.bf16.msra.mxu1 %v19298_v59  ;;  %15941 = vmatprep.subr.bf16.mxu0 %v19303_v35  ;;  %v19384_v59 = vld [vmem:[#allocation14 + $0x56c] ss:$16 sps:$4 sm:$0xff]   ;;  %v19379_v35 = vld [vmem:[#allocation14 + $0x560] ss:$16 sps:$4 sm:$0xff]  }
 0x8b3   :  { %16105 = vmatprep.subr.bf16.mxu1 %v19306_v44  ;;  %v19382_v44 = vld [vmem:[#allocation14 + $0x568] ss:$16 sps:$4 sm:$0xff]  }
 0x8b5   :  { %15942 = vmatpush1.bf16.msra.mxu0 %v19301_v24  ;;  %v19387_v24 = vld [vmem:[#allocation14 + $0x584] ss:$16 sps:$4 sm:$0xff]  }
 0x8b6   :  { %16106 = vmatpush1.bf16.msra.mxu1 %v19304_v60  ;;  %15943 = vmatprep.subr.bf16.mxu0 %v19309_v61  ;;  %v19390_v60 = vld [vmem:[#allocation14 + $0x58c] ss:$16 sps:$4 sm:$0xff]   ;;  %v19385_v61 = vld [vmem:[#allocation14 + $0x580] ss:$16 sps:$4 sm:$0xff]  }
 0x8b7   :  { %16107 = vmatprep.subr.bf16.mxu1 %v19312_v63  ;;  %v19388_v63 = vld [vmem:[#allocation14 + $0x588] ss:$16 sps:$4 sm:$0xff]  }
 0x8b9   :  { %15944 = vmatpush1.bf16.msra.mxu0 %v19307_v2  ;;  %v19393_v2 = vld [vmem:[#allocation14 + $0x5a4] ss:$16 sps:$4 sm:$0xff]  }
 0x8ba   :  { %16108 = vmatpush1.bf16.msra.mxu1 %v19310_v20  ;;  %15954 = vmatprep.subr.bf16.mxu0 %v19315_v8  ;;  %v19396_v20 = vld [vmem:[#allocation14 + $0x5ac] ss:$16 sps:$4 sm:$0xff]   ;;  %v19391_v8 = vld [vmem:[#allocation14 + $0x5a0] ss:$16 sps:$4 sm:$0xff]  }
 0x8bb   :  { %16118 = vmatprep.subr.bf16.mxu1 %v19318_v10  ;;  %v19399_v10 = vld [vmem:[#allocation14 + $0x5c4] ss:$16 sps:$4 sm:$0xff]  }
 0x8bc   :  { %15946 = vmatmul.mubr.bf16.vlgmr.msra.gmra.mrb[24].mxu0 %v14330_v1 }
 0x8bd   :  { %16110 = vmatmul.mubr.bf16.vlgmr.msra.gmra.mrb[24].mxu1 %v14330_v1  ;;  %15955 = vmatpush1.bf16.msra.mxu0 %v19313_v55  ;;  %v19402_v55 = vld [vmem:[#allocation14 + $0x5cc] ss:$16 sps:$4 sm:$0xff]   ;;  %v19397_v1 = vld [vmem:[#allocation14 + $0x5c0] ss:$16 sps:$4 sm:$0xff]  }
 0x8be   :  { %16119 = vmatpush1.bf16.msra.mxu1 %v19316_v58  ;;  %15956 = vmatprep.subr.bf16.mxu0 %v19321_v5  ;;  %v19400_v58 = vld [vmem:[#allocation14 + $0x5c8] ss:$16 sps:$4 sm:$0xff]   ;;  %v19405_v5 = vld [vmem:[#allocation14 + $0x5e4] ss:$16 sps:$4 sm:$0xff]  }
 0x8bf   :  { %16120 = vmatprep.subr.bf16.mxu1 %v19324_v11  ;;  %v19408_v11 = vld [vmem:[#allocation14 + $0x5ec] ss:$16 sps:$4 sm:$0xff]  }
 0x8c1   :  { %15957 = vmatpush1.bf16.msra.mxu0 %v19319_v6  ;;  %v19403_v6 = vld [vmem:[#allocation14 + $0x5e0] ss:$16 sps:$4 sm:$0xff]  }
 0x8c2   :  { %16121 = vmatpush1.bf16.msra.mxu1 %v19322_v0  ;;  %15958 = vmatprep.subr.bf16.mxu0 %v19327_v62  ;;  %v19406_v0 = vld [vmem:[#allocation14 + $0x5e8] ss:$16 sps:$4 sm:$0xff]   ;;  %v19411_v62 = vld [vmem:[#allocation14 + $0x604] ss:$16 sps:$4 sm:$0xff]  }
 0x8c3   :  { %16122 = vmatprep.subr.bf16.mxu1 %v19330_v15  ;;  %v19414_v15 = vld [vmem:[#allocation14 + $0x60c] ss:$16 sps:$4 sm:$0xff]  }
 0x8c5   :  { %15959 = vmatpush1.bf16.msra.mxu0 %v19325_v29  ;;  %v14117_v29 = vld [vmem:[#allocation13 + $0x8] sm:$0xff] }
 0x8c6   :  { %16123 = vmatpush1.bf16.msra.mxu1 %v19328_v7  ;;  %15960 = vmatprep.subr.bf16.mxu0 %v19333_v16  ;;  %v14139_v7 = vrot.slane %v14117_v29, %v20161_v36  ;;  %v14147_v16 = vrot.slane %v14117_v29, %v20164_v48 }
 0x8c7   :  { %16124 = vmatprep.subr.bf16.mxu1 %v19336_v9  ;;  %v14143_v9 = vrot.slane %v14117_v29, %v20210_v23 }
 0x8c9   :  { %15961 = vmatpush1.bf16.msra.mxu0 %v19331_v27  ;;  %v14219_v27 = vrot.slane %v14117_v29, %v20170_v43 }
 0x8ca   :  { %16125 = vmatpush1.bf16.msra.mxu1 %v19334_v34  ;;  %15962 = vmatprep.subr.bf16.mxu0 %v19339_v31  ;;  %v14151_v34 = vrot.slane %v14117_v29, %v20167_v40  ;;  %v14227_v31 = vrot.slane %v14117_v29, %v20173_v45 }
 0x8cb   :  { %16126 = vmatprep.subr.bf16.mxu1 %v19342_v21  ;;  %v14223_v21 = vrot.slane %v14117_v29, %v20215_v4 }
 0x8cd   :  { %15963 = vmatpush1.bf16.msra.mxu0 %v19337_v47  ;;  %v14179_v47 = vrot.slane %v14139_v7, %v20161_v36  ;;  %v19424_v7 = vld [vmem:[#allocation14 + $0x648] ss:$16 sps:$4 sm:$0xff]  }
 0x8ce   :  { %16127 = vmatpush1.bf16.msra.mxu1 %v19340_v26  ;;  %15964 = vmatprep.subr.bf16.mxu0 %v19345_v32  ;;  %v14231_v26 = vrot.slane %v14117_v29, %v20177_v50  ;;  %v14187_v32 = vrot.slane %v14147_v16, %v20161_v36  ;;  %v19421_v29 = vld [vmem:[#allocation14 + $0x640] ss:$16 sps:$4 sm:$0xff]   ;;  %v19429_v16 = vld [vmem:[#allocation14 + $0x664] ss:$16 sps:$4 sm:$0xff]  }
 0x8cf   :  { %16128 = vmatprep.subr.bf16.mxu1 %v19348_v41  ;;  %v14183_v41 = vrot.slane %v14143_v9, %v20161_v36  ;;  %v19432_v9 = vld [vmem:[#allocation14 + $0x66c] ss:$16 sps:$4 sm:$0xff]  }
 0x8d1   :  { %15965 = vmatpush1.bf16.msra.mxu0 %v19343_v18  ;;  %v14259_v18 = vrot.slane %v14219_v27, %v20170_v43  ;;  %v19427_v27 = vld [vmem:[#allocation14 + $0x660] ss:$16 sps:$4 sm:$0xff]  }
 0x8d2   :  { %16129 = vmatpush1.bf16.msra.mxu1 %v19346_v13  ;;  %15966 = vmatprep.subr.bf16.mxu0 %v19351_v25  ;;  %v14191_v13 = vrot.slane %v14151_v34, %v20161_v36  ;;  %v19430_v34 = vld [vmem:[#allocation14 + $0x668] ss:$16 sps:$4 sm:$0xff]  }
 0x8d3   :  { %16130 = vmatprep.subr.bf16.mxu1 %v19354_v17  ;;  %v14267_v17 = vrot.slane %v14227_v31, %v20170_v43  ;;  %v19435_v31 = vld [vmem:[#allocation14 + $0x684] ss:$16 sps:$4 sm:$0xff]  }
 0x8d5   :  { %15967 = vmatpush1.bf16.msra.mxu0 %v19349_v37  ;;  %v14263_v37 = vrot.slane %v14223_v21, %v20170_v43  ;;  %v19438_v21 = vld [vmem:[#allocation14 + $0x68c] ss:$16 sps:$4 sm:$0xff]  }
 0x8d6   :  { %16131 = vmatpush1.bf16.msra.mxu1 %v19352_v57  ;;  %15968 = vmatprep.subr.bf16.mxu0 %v19357_v28 }
 0x8d7   :  { %16132 = vmatprep.subr.bf16.mxu1 %v19360_v39 }
 0x8d9   :  { %15969 = vmatpush1.bf16.msra.mxu0 %v19355_v30  ;;  %v14271_v30 = vrot.slane %v14231_v26, %v20170_v43  ;;  %v19436_v26 = vld [vmem:[#allocation14 + $0x688] ss:$16 sps:$4 sm:$0xff]  }
 0x8da   :  { %16133 = vmatpush1.bf16.msra.mxu1 %v19358_v46  ;;  %15970 = vmatprep.subr.bf16.mxu0 %v19363_v19 }
 0x8db   :  { %16134 = vmatprep.subr.bf16.mxu1 %v19366_v42 }
 0x8dd   :  { %15971 = vmatpush1.bf16.msra.mxu0 %v19361_v12 }
 0x8de   :  { %16135 = vmatpush1.bf16.msra.mxu1 %v19364_v54  ;;  %15972 = vmatprep.subr.bf16.mxu0 %v19369_v22 }
 0x8df   :  { %16136 = vmatprep.subr.bf16.mxu1 %v19372_v49 }
 0x8e1   :  { %15973 = vmatpush1.bf16.msra.mxu0 %v19367_v14 }
 0x8e2   :  { %16137 = vmatpush1.bf16.msra.mxu1 %v19370_v51  ;;  %15974 = vmatprep.subr.bf16.mxu0 %v19375_v3 }
 0x8e3   :  { %16138 = vmatprep.subr.bf16.mxu1 %v19378_v53 }
 0x8e5   :  { %15975 = vmatpush1.bf16.msra.mxu0 %v19373_v56 }
 0x8e6   :  { %16139 = vmatpush1.bf16.msra.mxu1 %v19376_v33  ;;  %15976 = vmatprep.subr.bf16.mxu0 %v19381_v38 }
 0x8e7   :  { %16140 = vmatprep.subr.bf16.mxu1 %v19384_v59 }
 0x8e9   :  { %15977 = vmatpush1.bf16.msra.mxu0 %v19379_v35 }
 0x8ea   :  { %16141 = vmatpush1.bf16.msra.mxu1 %v19382_v44  ;;  %15978 = vmatprep.subr.bf16.mxu0 %v19387_v24 }
 0x8eb   :  { %16142 = vmatprep.subr.bf16.mxu1 %v19390_v60 }
 0x8ed   :  { %15979 = vmatpush1.bf16.msra.mxu0 %v19385_v61 }
 0x8ee   :  { %16143 = vmatpush1.bf16.msra.mxu1 %v19388_v63  ;;  %15980 = vmatprep.subr.bf16.mxu0 %v19393_v2 }
 0x8ef   :  { %16144 = vmatprep.subr.bf16.mxu1 %v19396_v20 }
 0x8f1   :  { %15981 = vmatpush1.bf16.msra.mxu0 %v19391_v8 }
 0x8f2   :  { %16145 = vmatpush1.bf16.msra.mxu1 %v19394_v52  ;;  %15982 = vmatprep.subr.bf16.mxu0 %v19399_v10  ;;  %v19409_v10 = vld [vmem:[#allocation14 + $0x600] ss:$16 sps:$4 sm:$0xff]  }
 0x8f3   :  { %16146 = vmatprep.subr.bf16.mxu1 %v19402_v55  ;;  %v19412_v55 = vld [vmem:[#allocation14 + $0x608] ss:$16 sps:$4 sm:$0xff]  }
 0x8f5   :  { %15983 = vmatpush1.bf16.msra.mxu0 %v19397_v1 }
 0x8f6   :  { %16147 = vmatpush1.bf16.msra.mxu1 %v19400_v58  ;;  %15984 = vmatprep.subr.bf16.mxu0 %v19405_v5  ;;  %v19417_v58 = vld [vmem:[#allocation14 + $0x624] ss:$16 sps:$4 sm:$0xff]   ;;  %v19420_v5 = vld [vmem:[#allocation14 + $0x62c] ss:$16 sps:$4 sm:$0xff]  }
 0x8f7   :  { %16148 = vmatprep.subr.bf16.mxu1 %v19408_v11 }
 0x8f9   :  { %15985 = vmatpush1.bf16.msra.mxu0 %v19403_v6  ;;  %v19415_v6 = vld [vmem:[#allocation14 + $0x620] ss:$16 sps:$4 sm:$0xff]  }
 0x8fa   :  { %16149 = vmatpush1.bf16.msra.mxu1 %v19406_v0  ;;  %15995 = vmatprep.subr.bf16.mxu0 %v19411_v62  ;;  %v19418_v0 = vld [vmem:[#allocation14 + $0x628] ss:$16 sps:$4 sm:$0xff]   ;;  %v19423_v62 = vld [vmem:[#allocation14 + $0x644] ss:$16 sps:$4 sm:$0xff]  }
 0x8fb   :  { %16159 = vmatprep.subr.bf16.mxu1 %v19414_v15  ;;  %v19426_v15 = vld [vmem:[#allocation14 + $0x64c] ss:$16 sps:$4 sm:$0xff]  }
 0x90f   :  { %v13945_v25 = vpop.f32.mrb[20].mxu0 }
 0x910   :  { %v14196_v57 = vmul.f32 %v14179_v47, %v13945_v25  ;;  %v14109_v28 = vpop.f32.mrb[20].mxu1  ;;  %v13947_v39 = vpop.f32.mrb[21].mxu0  ;;  %v19433_v47 = vld [vmem:[#allocation14 + $0x680] ss:$16 sps:$4 sm:$0xff]   ;;  %v19447_v25 = vld [vmem:[#allocation14 + $0x6c4] ss:$16 sps:$4 sm:$0xff]  }
 0x911   :  { %v14198_v46 = vmul.f32 %v14187_v32, %v14109_v28  ;;  %v14197_v19 = vmul.f32 %v14183_v41, %v13947_v39  ;;  %v14111_v42 = vpop.f32.mrb[21].mxu1  ;;  %v13949_v12 = vpop.f32.mrb[22].mxu0  ;;  %v19441_v32 = vld [vmem:[#allocation14 + $0x6a4] ss:$16 sps:$4 sm:$0xff]   ;;  %v19444_v41 = vld [vmem:[#allocation14 + $0x6ac] ss:$16 sps:$4 sm:$0xff]  }
 0x912   :  { %v14276_v54 = vadd.f32 %v14259_v18, %v14196_v57  ;;  %v14199_v22 = vmul.f32 %v14191_v13, %v14111_v42  ;;  %v14113_v49 = vpop.f32.mrb[22].mxu1  ;;  %v13950_v14 = vpop.f32.mrb[23].mxu0  ;;  %v19439_v18 = vld [vmem:[#allocation14 + $0x6a0] ss:$16 sps:$4 sm:$0xff]   ;;  %v19442_v13 = vld [vmem:[#allocation14 + $0x6a8] ss:$16 sps:$4 sm:$0xff]  }
 0x913   :  { %v20477_v51 = vadd.f32 %v14267_v17, %v14198_v46  ;;  %v14277_v3 = vadd.f32 %v14263_v37, %v14197_v19  ;;  %v14114_v53 = vpop.f32.mrb[23].mxu1  ;;  %v19450_v17 = vld [vmem:[#allocation14 + $0x6cc] ss:$16 sps:$4 sm:$0xff]   ;;  %v19445_v37 = vld [vmem:[#allocation14 + $0x6c0] ss:$16 sps:$4 sm:$0xff]  }
 0x914   :  { %v18538_v56 = vmul.f32 -1.442695, %v14276_v54  ;;  %v14279_v33 = vadd.f32 %v14271_v30, %v14199_v22  ;;  %v19448_v57 = vld [vmem:[#allocation14 + $0x6c8] ss:$16 sps:$4 sm:$0xff]   ;;  %v19453_v28 = vld [vmem:[#allocation14 + $0x6e4] ss:$16 sps:$4 sm:$0xff]  }
 0x915   :  { %v18539_v38 = vmul.f32 -1.442695, %v14277_v3  ;;  %v19456_v39 = vld [vmem:[#allocation14 + $0x6ec] ss:$16 sps:$4 sm:$0xff]   ;;  %v19451_v30 = vld [vmem:[#allocation14 + $0x6e0] ss:$16 sps:$4 sm:$0xff]  }
 0x916   :  { %19553 = vpow2.f32 %v18538_v56  ;;  %v18541_v59 = vmul.f32 -1.442695, %v14279_v33  ;;  %v19454_v46 = vld [vmem:[#allocation14 + $0x6e8] ss:$16 sps:$4 sm:$0xff]   ;;  %v19459_v19 = vld [vmem:[#allocation14 + $0x704] ss:$16 sps:$4 sm:$0xff]  }
 0x917   :  { %19555 = vpow2.f32 %v18539_v38  ;;  %v19462_v42 = vld [vmem:[#allocation14 + $0x70c] ss:$16 sps:$4 sm:$0xff]   ;;  %v18540_v12 = vmul.f32 -1.442695, %v20477_v51  ;;  %v19457_v54 = vld [vmem:[#allocation14 + $0x700] ss:$16 sps:$4 sm:$0xff]  }
 0x918   :  { %19557 = vpow2.f32 %v18541_v59  ;;  %v19460_v22 = vld [vmem:[#allocation14 + $0x708] ss:$16 sps:$4 sm:$0xff]   ;;  %v19465_v49 = vld [vmem:[#allocation14 + $0x724] ss:$16 sps:$4 sm:$0xff]   ;;  %v19468_v14 = vld [vmem:[#allocation14 + $0x72c] ss:$16 sps:$4 sm:$0xff]  }
 0x919   :  { %v19463_v3 = vld [vmem:[#allocation14 + $0x720] ss:$16 sps:$4 sm:$0xff]   ;;  %v19466_v53 = vld [vmem:[#allocation14 + $0x728] ss:$16 sps:$4 sm:$0xff]   ;;  %v19471_v56 = vld [vmem:[#allocation14 + $0x744] ss:$16 sps:$4 sm:$0xff]  }
 0x91a   :  { %v19474_v33 = vld [vmem:[#allocation14 + $0x74c] ss:$16 sps:$4 sm:$0xff]   ;;  %v19469_v51 = vld [vmem:[#allocation14 + $0x740] ss:$16 sps:$4 sm:$0xff]   ;;  %v19472_v38 = vld [vmem:[#allocation14 + $0x748] ss:$16 sps:$4 sm:$0xff]  }
 0x91b   :  { %v19477_v59 = vld [vmem:[#allocation14 + $0x764] ss:$16 sps:$4 sm:$0xff]  }
 0x920   :  { %v19554_v35 = vpop.eup %19553 }
 0x921   :  { %v14308_v44 = vadd.f32 1.0, %v19554_v35  ;;  %v19556_v24 = vpop.eup %19555  ;;  %v19480_v35 = vld [vmem:[#allocation14 + $0x76c] ss:$16 sps:$4 sm:$0xff]  }
 0x922   :  { %v19558_v60 = vpop.eup %19557  ;;  %v14309_v61 = vadd.f32 1.0, %v19556_v24  ;;  %v19478_v24 = vld [vmem:[#allocation14 + $0x768] ss:$16 sps:$4 sm:$0xff]  }
 0x923   :  { %19559 = vrcp.f32 %v14308_v44  ;;  %v14311_v63 = vadd.f32 1.0, %v19558_v60  ;;  %v19475_v44 = vld [vmem:[#allocation14 + $0x760] ss:$16 sps:$4 sm:$0xff]  }
 0x924   :  { %19561 = vrcp.f32 %v14309_v61  ;;  %v19483_v61 = vld [vmem:[#allocation14 + $0x784] ss:$16 sps:$4 sm:$0xff]  }
 0x925   :  { %19563 = vrcp.f32 %v14311_v63  ;;  %v19486_v63 = vld [vmem:[#allocation14 + $0x78c] ss:$16 sps:$4 sm:$0xff]  }
 0x926   :  { %19565 = vpow2.f32 %v18540_v12  ;;  %v19526_v12 = vld [vmem:[#allocation17 + $0xe8] sm:$0xff]  }
 0x92d   :  { %v19560_v2 = vpop.eup %19559 }
 0x92e   :  { %v19562_v20 = vpop.eup %19561  ;;  %v14332_v1 = vpack.c.bf16 %v19560_v2, %v19560_v2 }
 0x92f   :  { %v19564_v8 = vpop.eup %19563  ;;  %v14333_v52 = vpack.c.bf16 %v19562_v20, %v19562_v20  ;;  %v19481_v20 = vld [vmem:[#allocation14 + $0x780] ss:$16 sps:$4 sm:$0xff]  }
 0x930   :  { %v14335_v11 = vpack.c.bf16 %v19564_v8, %v19564_v8  ;;  %v19566_v60 = vpop.eup %19565  ;;  %v19484_v8 = vld [vmem:[#allocation14 + $0x788] ss:$16 sps:$4 sm:$0xff]  }
 0x931   :  { %15986 = vmatprep.mubr.bf16.mxu0 %v14333_v52  ;;  %16150 = vmatprep.mubr.bf16.mxu1 %v14333_v52  ;;  %v14310_v2 = vadd.f32 1.0, %v19566_v60  ;;  %v19489_v52 = vld [vmem:[#allocation14 + $0x7a4] ss:$16 sps:$4 sm:$0xff]  }
 0x932   :  { %15987 = vmatmul.mubr.bf16.vlgmr.msra.gmra.mrb[24].mxu0 %v14332_v1  ;;  %16151 = vmatmul.mubr.bf16.vlgmr.msra.gmra.mrb[24].mxu1 %v14332_v1  ;;  %v19490_v1 = vld [vmem:[#allocation14 + $0x7a8] ss:$16 sps:$4 sm:$0xff]  }
 0x933   :  { %15996 = vmatpush1.bf16.msra.mxu0 %v19409_v10  ;;  %16160 = vmatpush1.bf16.msra.mxu1 %v19412_v55  ;;  %v19492_v10 = vld [vmem:[#allocation14 + $0x7ac] ss:$16 sps:$4 sm:$0xff]   ;;  %19567 = vrcp.f32 %v14310_v2  ;;  %v19487_v55 = vld [vmem:[#allocation14 + $0x7a0] ss:$16 sps:$4 sm:$0xff]  }
 0x934   :  { %16027 = vmatprep.mubr.bf16.mxu0 %v14335_v11  ;;  %16191 = vmatprep.mubr.bf16.mxu1 %v14335_v11  ;;  %v19493_v11 = vld [vmem:[#allocation14 + $0x7c0] ss:$16 sps:$4 sm:$0xff]  }
 0x935   :  { %15997 = vmatprep.subr.bf16.mxu0 %v19417_v58  ;;  %16161 = vmatprep.subr.bf16.mxu1 %v19420_v5  ;;  %v19495_v58 = vld [vmem:[#allocation14 + $0x7c4] ss:$16 sps:$4 sm:$0xff]   ;;  %v19498_v5 = vld [vmem:[#allocation14 + $0x7cc] ss:$16 sps:$4 sm:$0xff]  }
 0x937   :  { %15998 = vmatpush1.bf16.msra.mxu0 %v19415_v6  ;;  %16162 = vmatpush1.bf16.msra.mxu1 %v19418_v0  ;;  %v19496_v6 = vld [vmem:[#allocation14 + $0x7c8] ss:$16 sps:$4 sm:$0xff]   ;;  %v19501_v0 = vld [vmem:[#allocation14 + $0x7e4] ss:$16 sps:$4 sm:$0xff]  }
 0x938   :  { %15999 = vmatprep.subr.bf16.mxu0 %v19423_v62  ;;  %16163 = vmatprep.subr.bf16.mxu1 %v19426_v15  ;;  %v19504_v62 = vld [vmem:[#allocation14 + $0x7ec] ss:$16 sps:$4 sm:$0xff]   ;;  %v19499_v15 = vld [vmem:[#allocation14 + $0x7e0] ss:$16 sps:$4 sm:$0xff]  }
 0x93b   :  { %16000 = vmatpush1.bf16.msra.mxu0 %v19421_v29  ;;  %16164 = vmatpush1.bf16.msra.mxu1 %v19424_v7  ;;  %v19502_v29 = vld [vmem:[#allocation14 + $0x7e8] ss:$16 sps:$4 sm:$0xff]  }
 0x93c   :  { %16001 = vmatprep.subr.bf16.mxu0 %v19429_v16  ;;  %16165 = vmatprep.subr.bf16.mxu1 %v19432_v9  ;;  %v19505_v9 = vld [vmem:[#allocation17 + $0x40] sm:$0xff]  }
 0x93d   :  { %v19568_v7 = vpop.eup %19567 }
 0x93e   :  { %v14334_v16 = vpack.c.bf16 %v19568_v7, %v19568_v7 }
 0x93f   :  { %16002 = vmatpush1.bf16.msra.mxu0 %v19427_v27  ;;  %16166 = vmatpush1.bf16.msra.mxu1 %v19430_v34  ;;  %v19506_v27 = vld [vmem:[#allocation17 + $0xc0] sm:$0xff]  }
 0x940   :  { %16003 = vmatprep.subr.bf16.mxu0 %v19435_v31  ;;  %16167 = vmatprep.subr.bf16.mxu1 %v19438_v21  ;;  %v19507_v34 = vld [vmem:[#allocation17] sm:$0xff]   ;;  %v19509_v21 = vld [vmem:[#allocation17 + $0x48] sm:$0xff]  }
 0x941   :  { %v19508_v31 = vld [vmem:[#allocation17 + $0x80] sm:$0xff]  }
 0x943   :  { %16004 = vmatpush1.bf16.msra.mxu0 %v19433_v47  ;;  %16168 = vmatpush1.bf16.msra.mxu1 %v19436_v26  ;;  %v19510_v47 = vld [vmem:[#allocation17 + $0xc8] sm:$0xff]  }
 0x944   :  { %16005 = vmatprep.subr.bf16.mxu0 %v19441_v32  ;;  %16169 = vmatprep.subr.bf16.mxu1 %v19444_v41  ;;  %v19511_v26 = vld [vmem:[#allocation17 + $0x8] sm:$0xff]   ;;  %v19513_v41 = vld [vmem:[#allocation17 + $0x50] sm:$0xff]  }
 0x945   :  { %v19512_v32 = vld [vmem:[#allocation17 + $0x88] sm:$0xff]  }
 0x947   :  { %16006 = vmatpush1.bf16.msra.mxu0 %v19439_v18  ;;  %16170 = vmatpush1.bf16.msra.mxu1 %v19442_v13  ;;  %v19514_v18 = vld [vmem:[#allocation17 + $0xd0] sm:$0xff]  }
 0x948   :  { %16007 = vmatprep.subr.bf16.mxu0 %v19447_v25  ;;  %16171 = vmatprep.subr.bf16.mxu1 %v19450_v17  ;;  %v19515_v13 = vld [vmem:[#allocation17 + $0x10] sm:$0xff]   ;;  %v19517_v17 = vld [vmem:[#allocation17 + $0x58] sm:$0xff]  }
 0x949   :  { %v19516_v25 = vld [vmem:[#allocation17 + $0x90] sm:$0xff]  }
 0x94b   :  { %16008 = vmatpush1.bf16.msra.mxu0 %v19445_v37  ;;  %16172 = vmatpush1.bf16.msra.mxu1 %v19448_v57  ;;  %v19518_v37 = vld [vmem:[#allocation17 + $0xd8] sm:$0xff]  }
 0x94c   :  { %16009 = vmatprep.subr.bf16.mxu0 %v19453_v28  ;;  %16173 = vmatprep.subr.bf16.mxu1 %v19456_v39  ;;  %v19519_v57 = vld [vmem:[#allocation17 + $0x18] sm:$0xff]   ;;  %v19521_v39 = vld [vmem:[#allocation17 + $0x60] sm:$0xff]  }
 0x94d   :  { %v19520_v28 = vld [vmem:[#allocation17 + $0x98] sm:$0xff]  }
 0x94f   :  { %16010 = vmatpush1.bf16.msra.mxu0 %v19451_v30  ;;  %16174 = vmatpush1.bf16.msra.mxu1 %v19454_v46  ;;  %v19522_v30 = vld [vmem:[#allocation17 + $0xe0] sm:$0xff]  }
 0x950   :  { %16011 = vmatprep.subr.bf16.mxu0 %v19459_v19  ;;  %16175 = vmatprep.subr.bf16.mxu1 %v19462_v42  ;;  %v19523_v46 = vld [vmem:[#allocation17 + $0x20] sm:$0xff]   ;;  %v19525_v42 = vld [vmem:[#allocation17 + $0x68] sm:$0xff]  }
 0x951   :  { %v19524_v19 = vld [vmem:[#allocation17 + $0xa0] sm:$0xff]  }
 0x953   :  { %16012 = vmatpush1.bf16.msra.mxu0 %v19457_v54  ;;  %16176 = vmatpush1.bf16.msra.mxu1 %v19460_v22  ;;  %v19527_v54 = vld [vmem:[#allocation17 + $0x28] sm:$0xff]  }
 0x954   :  { %16013 = vmatprep.subr.bf16.mxu0 %v19465_v49  ;;  %16177 = vmatprep.subr.bf16.mxu1 %v19468_v14  ;;  %v19528_v22 = vld [vmem:[#allocation17 + $0xa8] sm:$0xff]   ;;  %v19529_v49 = vld [vmem:[#allocation17 + $0x70] sm:$0xff]  }
 0x955   :  { %v19530_v14 = vld [vmem:[#allocation17 + $0xf0] sm:$0xff]  }
 0x957   :  { %16014 = vmatpush1.bf16.msra.mxu0 %v19463_v3  ;;  %16178 = vmatpush1.bf16.msra.mxu1 %v19466_v53  ;;  %v19531_v3 = vld [vmem:[#allocation17 + $0x30] sm:$0xff]  }
 0x958   :  { %16015 = vmatprep.subr.bf16.mxu0 %v19471_v56  ;;  %16179 = vmatprep.subr.bf16.mxu1 %v19474_v33  ;;  %v19532_v53 = vld [vmem:[#allocation17 + $0xb0] sm:$0xff]   ;;  %v19533_v56 = vld [vmem:[#allocation17 + $0x78] sm:$0xff]  }
 0x959   :  { %v19534_v33 = vld [vmem:[#allocation17 + $0xf8] sm:$0xff]  }
 0x95b   :  { %16016 = vmatpush1.bf16.msra.mxu0 %v19469_v51  ;;  %16180 = vmatpush1.bf16.msra.mxu1 %v19472_v38  ;;  %v19535_v51 = vld [vmem:[#allocation17 + $0x38] sm:$0xff]  }
 0x95c   :  { %16017 = vmatprep.subr.bf16.mxu0 %v19477_v59  ;;  %16181 = vmatprep.subr.bf16.mxu1 %v19480_v35  ;;  %v19536_v38 = vld [vmem:[#allocation17 + $0xb8] sm:$0xff]  }
 0x95d   :  { %v16200_v59 = vld [vmem:[#allocation16] sm:$0xff] }
 0x95e   :  { %v16205_v35 = vrot.slane %v16200_v59, %v20161_v36  ;;  %v16217_v60 = vrot.slane %v16200_v59, %v20167_v40  ;;  %v16249_v2 = vrot.slane %v16200_v59, %v20215_v4 }
 0x95f   :  { %16018 = vmatpush1.bf16.msra.mxu0 %v19475_v44  ;;  %16182 = vmatpush1.bf16.msra.mxu1 %v19478_v24  ;;  %v16213_v44 = vrot.slane %v16200_v59, %v20164_v48  ;;  %v16209_v24 = vrot.slane %v16200_v59, %v20210_v23 }
 0x960   :  { %16019 = vmatprep.subr.bf16.mxu0 %v19483_v61  ;;  %16183 = vmatprep.subr.bf16.mxu1 %v19486_v63  ;;  %v16245_v61 = vrot.slane %v16200_v59, %v20170_v43  ;;  %v16253_v63 = vrot.slane %v16200_v59, %v20173_v45  ;;  %v16237_v48 = vrot.slane %v16217_v60, %v20161_v36 }
 0x961   :  { %v16269_v45 = vrot.slane %v16249_v2, %v20170_v43 }
 0x962   :  { %v16265_v23 = vrot.slane %v16245_v61, %v20170_v43  ;;  %v16273_v40 = vrot.slane %v16253_v63, %v20170_v43 }
 0x963   :  { %16020 = vmatpush1.bf16.msra.mxu0 %v19481_v20  ;;  %16184 = vmatpush1.bf16.msra.mxu1 %v19484_v8  ;;  %v16257_v20 = vrot.slane %v16200_v59, %v20177_v50  ;;  %v16225_v8 = vrot.slane %v16205_v35, %v20161_v36 }
 0x964   :  { %16021 = vmatprep.subr.bf16.mxu0 %v19489_v52  ;;  %16185 = vmatprep.subr.bf16.mxu1 %v19492_v10  ;;  %v16233_v52 = vrot.slane %v16213_v44, %v20161_v36  ;;  %v16229_v10 = vrot.slane %v16209_v24, %v20161_v36 }
 0x965   :  { %v16277_v4 = vrot.slane %v16257_v20, %v20170_v43 }
 0x967   :  { %16022 = vmatpush1.bf16.msra.mxu0 %v19487_v55  ;;  %16186 = vmatpush1.bf16.msra.mxu1 %v19490_v1 }
 0x968   :  { %16023 = vmatprep.subr.bf16.mxu0 %v19495_v58  ;;  %16187 = vmatprep.subr.bf16.mxu1 %v19498_v5 }
 0x96b   :  { %16024 = vmatpush1.bf16.msra.mxu0 %v19493_v11  ;;  %16188 = vmatpush1.bf16.msra.mxu1 %v19496_v6 }
 0x96c   :  { %16025 = vmatprep.subr.bf16.mxu0 %v19501_v0  ;;  %16189 = vmatprep.subr.bf16.mxu1 %v19504_v62 }
 0x96f   :  { %16026 = vmatpush1.bf16.msra.mxu0 %v19499_v15  ;;  %16190 = vmatpush1.bf16.msra.mxu1 %v19502_v29 }
 0x970   :  { %18834 = vmatprep.subr.bf16.mxu0 %v19505_v9  ;;  %18856 = vmatprep.subr.bf16.mxu1 %v19506_v27 }
 0x972   :  { %16028 = vmatmul.mubr.bf16.vlgmr.msra.gmra.mrb[24].mxu0 %v14334_v16  ;;  %16192 = vmatmul.mubr.bf16.vlgmr.msra.gmra.mrb[24].mxu1 %v14334_v16 }
 0x973   :  { %18835 = vmatpush3.bf16.msra.mxu0 %v19507_v34  ;;  %18857 = vmatpush3.bf16.msra.mxu1 %v19508_v31 }
 0x974   :  { %18836 = vmatprep.subr.bf16.mxu0 %v19509_v21  ;;  %18858 = vmatprep.subr.bf16.mxu1 %v19510_v47 }
 0x977   :  { %18837 = vmatpush3.bf16.msra.mxu0 %v19511_v26  ;;  %18859 = vmatpush3.bf16.msra.mxu1 %v19512_v32 }
 0x978   :  { %18838 = vmatprep.subr.bf16.mxu0 %v19513_v41  ;;  %18860 = vmatprep.subr.bf16.mxu1 %v19514_v18 }
 0x97b   :  { %18839 = vmatpush3.bf16.msra.mxu0 %v19515_v13  ;;  %18861 = vmatpush3.bf16.msra.mxu1 %v19516_v25 }
 0x97c   :  { %18840 = vmatprep.subr.bf16.mxu0 %v19517_v17  ;;  %18862 = vmatprep.subr.bf16.mxu1 %v19518_v37 }
 0x97f   :  { %18841 = vmatpush3.bf16.msra.mxu0 %v19519_v57  ;;  %18863 = vmatpush3.bf16.msra.mxu1 %v19520_v28 }
 0x980   :  { %18842 = vmatprep.subr.bf16.mxu0 %v19521_v39  ;;  %18864 = vmatprep.subr.bf16.mxu1 %v19522_v30 }
 0x983   :  { %18843 = vmatpush3.bf16.msra.mxu0 %v19523_v46  ;;  %18865 = vmatpush3.bf16.msra.mxu1 %v19524_v19 }
 0x984   :  { %18844 = vmatprep.subr.bf16.mxu0 %v19525_v42  ;;  %18866 = vmatprep.subr.bf16.mxu1 %v19526_v12 }
 0x987   :  { %18845 = vmatpush3.bf16.msra.mxu0 %v19527_v54  ;;  %18867 = vmatpush3.bf16.msra.mxu1 %v19528_v22 }
 0x988   :  { %18846 = vmatprep.subr.bf16.mxu0 %v19529_v49  ;;  %18868 = vmatprep.subr.bf16.mxu1 %v19530_v14  ;;  %v16646_v49 = vld [vmem:[#allocation19] sm:$0x3] }
 0x989   :  { %v16655_v60 = vrot.slane %v16646_v49, %v20170_v43 }
 0x98b   :  { %18847 = vmatpush3.bf16.msra.mxu0 %v19531_v3  ;;  %18869 = vmatpush3.bf16.msra.mxu1 %v19532_v53 }
 0x98c   :  { %18848 = vmatprep.subr.bf16.mxu0 %v19533_v56  ;;  %18870 = vmatprep.subr.bf16.mxu1 %v19534_v33 }
 0x98f   :  { %18849 = vmatpush3.bf16.msra.mxu0 %v19535_v51  ;;  %18871 = vmatpush3.bf16.msra.mxu1 %v19536_v38  ;;  %v16650_v38 = vrot.slane %v16646_v49, %v20161_v36 }
 0xa45   :  { %v16029_v55 = vpop.f32.mrb[24].mxu0  ;;  %v16193_v1 = vpop.f32.mrb[24].mxu1 }
 0xa46   :  { %v16238_v58 = vmul.f32 %v16225_v8, %v16029_v55  ;;  %v16240_v50 = vmul.f32 %v16233_v52, %v16193_v1  ;;  %v16031_v5 = vpop.f32.mrb[25].mxu0  ;;  %v16195_v11 = vpop.f32.mrb[25].mxu1 }
 0xa47   :  { %v16239_v6 = vmul.f32 %v16229_v10, %v16031_v5  ;;  %v16241_v0 = vmul.f32 %v16237_v48, %v16195_v11  ;;  %v16033_v62 = vpop.f32.mrb[26].mxu0  ;;  %v16197_v15 = vpop.f32.mrb[26].mxu1 }
 0xa48   :  { %v16278_v29 = vadd.f32 %v16265_v23, %v16238_v58  ;;  %v16280_v7 = vadd.f32 %v16273_v40, %v16240_v50  ;;  %v16034_v16 = vpop.f32.mrb[27].mxu0  ;;  %v16198_v9 = vpop.f32.mrb[27].mxu1 }
 0xa49   :  { %v16279_v27 = vadd.f32 %v16269_v45, %v16239_v6  ;;  %v16281_v34 = vadd.f32 %v16277_v4, %v16241_v0 }
 0xa4a   :  { %v18798_v31 = vmul.f32 -1.442695, %v16278_v29  ;;  %v18800_v21 = vmul.f32 -1.442695, %v16280_v7 }
 0xa4b   :  { %v18799_v47 = vmul.f32 -1.442695, %v16279_v27  ;;  %v18801_v26 = vmul.f32 -1.442695, %v16281_v34 }
 0xa4c   :  { %19569 = vpow2.f32 %v18798_v31 }
 0xa4d   :  { %19571 = vpow2.f32 %v18800_v21 }
 0xa4e   :  { %19573 = vpow2.f32 %v18799_v47 }
 0xa4f   :  { %19575 = vpow2.f32 %v18801_v26 }
 0xa56   :  { %v19570_v32 = vpop.eup %19569 }
 0xa57   :  { %v19572_v41 = vpop.eup %19571  ;;  %v16294_v18 = vadd.f32 1.0, %v19570_v32 }
 0xa58   :  { %v19574_v13 = vpop.eup %19573  ;;  %v16296_v25 = vadd.f32 1.0, %v19572_v41 }
 0xa59   :  { %v19576_v17 = vpop.eup %19575  ;;  %19577 = vrcp.f32 %v16294_v18  ;;  %v16295_v37 = vadd.f32 1.0, %v19574_v13 }
 0xa5a   :  { %19579 = vrcp.f32 %v16296_v25  ;;  %v16297_v57 = vadd.f32 1.0, %v19576_v17 }
 0xa5b   :  { %19581 = vrcp.f32 %v16295_v37 }
 0xa5c   :  { %19583 = vrcp.f32 %v16297_v57 }
 0xa63   :  { %v19578_v28 = vpop.eup %19577 }
 0xa64   :  { %v19580_v39 = vpop.eup %19579  ;;  %v16306_v12 = vpack.c.bf16 %v19578_v28, %v19578_v28 }
 0xa65   :  { %v19582_v30 = vpop.eup %19581  ;;  %v16308_v54 = vpack.c.bf16 %v19580_v39, %v19580_v39 }
 0xa66   :  { %v19584_v46 = vpop.eup %19583  ;;  %v16307_v19 = vpack.c.bf16 %v19582_v30, %v19582_v30 }
 0xa67   :  { %v16309_v42 = vpack.c.bf16 %v19584_v46, %v19584_v46 }
 0xa68   :  { %16598 = vmatprep.mubr.bf16.mxu0 %v16307_v19 }
 0xa69   :  { %16638 = vmatprep.mubr.bf16.mxu1 %v16309_v42  ;;  %16599 = vmatmul.mubr.bf16.vlgmr.msra.gmra.mrb[28].mxu0 %v16306_v12 }
 0xa6a   :  { %16639 = vmatmul.mubr.bf16.vlgmr.msra.gmra.mrb[28].mxu1 %v16308_v54 }
 0xb3c   :  { %v18850_v22 = vpop.f32.mrb[28].mxu0 }
 0xb3d   :  { %v18872_v14 = vpop.f32.mrb[28].mxu1  ;;  %v18851_v3 = vpop.f32.mrb[29].mxu0 }
 0xb3e   :  { %v18852_v53 = vadd.f32 %v18851_v3, %v18850_v22  ;;  %v18873_v56 = vpop.f32.mrb[29].mxu1  ;;  %v18853_v33 = vpop.f32.mrb[30].mxu0 }
 0xb3f   :  { %v18874_v51 = vadd.f32 %v18873_v56, %v18872_v14  ;;  %v18875_v59 = vpop.f32.mrb[30].mxu1  ;;  %v18854_v35 = vpop.f32.mrb[31].mxu0 }
 0xb40   :  { %v18876_v44 = vpop.f32.mrb[31].mxu1 }
 0xb41   :  { %v16641_v24 = vadd.f32 %v18874_v51, %v18852_v53 }
 0xb43   :  { %v16651_v61 = vmul.f32 %v16650_v38, %v16641_v24 }
 0xb45   :  { %v16656_v63 = vadd.f32 %v16655_v60, %v16651_v61 }
 0xb47   :  { %16657 = vst [vmem:[#allocation20] sm:$0xff] %v16656_v63 }
 0xb48   :  { %19839 = shalt.err (!%p19836_p8)
}
 0xb49   :  { %s19840_s7 = scalar_lea.hbm %s20521_s11, 128 }
 0xb4a   :  { %p19841_p9 = scmp.ne.s32.totalorder %s20521_s11, %s19840_s7  ;;  %p19844_p10 = scmp.lt.u32.totalorder %s19840_s7, %s20521_s11 }
 0xb4c   :  { %p19846_p11 = pnand %p19844_p10, %p19841_p9 }
 0xb4e   :  { %19849 = shalt.err (!%p19846_p11)
}
 0xb4f   :  { %16667 = dma.vmem_to_hbm [thread:$0]  %s16665_s13, 128, %s20521_s11, [#allocation4]  }
 0xb50   :  { %19862 = dma.done.wait [#allocation4], 128  }
 0xb51   :  { %19863 = vsyncadd [#allocation4], 4294967168 }
 0xb52   :  { %16671 = vsyncpa [#allocation3], 1 }
 0xb53   :  { %16672 = vsyncpa [#allocation6], 1 }
 0xb54   :  { %16673 = vsyncpa [#allocation9], 1 }
 0xb55   :  { %16674 = vsyncpa [#allocation12], 1 }
 0xb56   :  { %16675 = vsyncpa [#allocation15], 1 }
 0xb57   :  { %16676 = vsyncpa [#allocation18], 1 }
 0xb58   :  { %16677 = vsyncpa [#allocation4], 1 }

</bundles_post_ra>
